<compile_context>
chip_gen: v5e
topology: v5e:2x2
jax: 0.10.0
libtpu: 0.0.40
codegen_flags: <defaults>
</compile_context>

<pallas_src>
import numpy as np
import jax
import jax.numpy as jnp
from jax.experimental import pallas as pl
from jax.experimental.pallas import tpu as pltpu

OUT_PAD = 128  # lane-dense output width (first esd columns are the real output)


# ----------------------------------------------------------------------------
# Wrapper-side weight preparation (plain numpy / JAX, runs once).
# ----------------------------------------------------------------------------
def build_conv_matrix(w_oihw, h_in, w_in, pad, stride):
    """Fold im2col gather + conv weight into one dense matrix.

    Rows are NHWC-flattened input features ((ih*w_in+iw)*Cin+ci), columns are
    NHWC-flattened output features ((oh*w_out+ow)*Cout+co).  Zero padding of
    the convolution is folded in as all-zero rows contributions.
    """
    Cout, Cin, kh, kw = w_oihw.shape
    h_out = (h_in + 2 * pad - kh) // stride + 1
    w_out = (w_in + 2 * pad - kw) // stride + 1
    C = np.zeros((h_in * w_in * Cin, h_out * w_out * Cout), np.float32)
    for oh in range(h_out):
        for ow in range(w_out):
            o = (oh * w_out + ow) * Cout
            for i in range(kh):
                for j in range(kw):
                    ih = stride * oh + i - pad
                    iw = stride * ow + j - pad
                    if 0 <= ih < h_in and 0 <= iw < w_in:
                        r = (ih * w_in + iw) * Cin
                        C[r:r + Cin, o:o + Cout] = np.asarray(w_oihw[:, :, i, j]).T
    return C, h_out, w_out


def conv_w_to_mat(w_oihw):
    """PyTorch conv weight (Cout,Cin,kh,kw) -> im2col matrix (kh*kw*Cin, Cout)."""
    Cout, Cin, kh, kw = w_oihw.shape
    return jnp.transpose(w_oihw, (2, 3, 1, 0)).reshape(kh * kw * Cin, Cout)


def im2col(x_nhwc, kh, kw, stride, pad):
    """Reference-only im2col: (N,H,W,C) -> (N*Ho*Wo, kh*kw*C)."""
    N, H, W, C = x_nhwc.shape
    xp = jnp.pad(x_nhwc, ((0, 0), (pad, pad), (pad, pad), (0, 0)))
    Ho = (H + 2 * pad - kh) // stride + 1
    Wo = (W + 2 * pad - kw) // stride + 1
    patches = []
    for i in range(kh):
        for j in range(kw):
            patches.append(
                xp[:, i:i + stride * Ho:stride, j:j + stride * Wo:stride, :])
    cols = jnp.stack(patches, axis=3).reshape(N * Ho * Wo, kh * kw * C)
    return cols, Ho, Wo


def init_params(key, encoded_space_dim):
    ks = jax.random.split(key, 12)

    def nrm(k, shape, scale=0.1):
        return scale * jax.random.normal(k, shape, jnp.float32)

    return dict(
        w1=nrm(ks[0], (8, 1, 3, 3)),   b1=nrm(ks[1], (8,)),
        w2=nrm(ks[2], (16, 8, 3, 3)),  b2=nrm(ks[3], (16,)),
        w3=nrm(ks[4], (32, 16, 3, 3)), b3=nrm(ks[5], (32,)),
        wp=nrm(ks[6], (encoded_space_dim, 8)), bp=nrm(ks[7], (8,)),
        wl1=nrm(ks[8], (296, 32)),     bl1=nrm(ks[9], (32,)),
        wl2=nrm(ks[10], (32, encoded_space_dim)),
        bl2=nrm(ks[11], (encoded_space_dim,)),
        # BatchNorm2d(16), eval mode, PyTorch default stats/affine.
        gamma=jnp.ones((16,), jnp.float32), beta=jnp.zeros((16,), jnp.float32),
        rmean=jnp.zeros((16,), jnp.float32), rvar=jnp.ones((16,), jnp.float32),
    )


def prepare_operands(raw, weight_dtype=jnp.bfloat16):
    eps = 1e-5
    s = np.asarray(raw["gamma"] / jnp.sqrt(raw["rvar"] + eps))
    shift = np.asarray(raw["beta"]) - np.asarray(raw["rmean"]) * s

    # Fold BatchNorm (eval) into conv2 weights/bias.
    w2_bn = np.asarray(raw["w2"]) * s[:, None, None, None]
    b2_bn = np.asarray(raw["b2"]) * s + shift

    # Combined conv matrices (gather + weights folded into a dense GEMM each).
    C1, h1, w1o = build_conv_matrix(np.asarray(raw["w1"]), 28, 28, pad=1, stride=2)  # (784, 1568)
    C2, h2, w2o = build_conv_matrix(w2_bn, 14, 14, pad=1, stride=2)                  # (1568, 896)
    C3, h3, w3o = build_conv_matrix(np.asarray(raw["w3"]), 7, 7, pad=0, stride=2)    # (896, 288)

    b1r = np.tile(np.asarray(raw["b1"]), h1 * w1o)   # (1568,)
    b2r = np.tile(b2_bn, h2 * w2o)                   # (896,)
    b3r = np.tile(np.asarray(raw["b3"]), h3 * w3o)   # (288,)

    # Split Linear(296,32) and fold the NCHW flatten + prior_fc.
    wl1 = np.asarray(raw["wl1"])
    wl1a = wl1[:8]                                   # prior part (8, 32)
    wl1b = wl1[8:]                                   # conv part, rows = c*9 + p (NCHW flatten)
    # Our conv3 output is NHWC-flattened (p*32 + c): permute rows accordingly.
    wfc = np.concatenate([wl1b[p::9] for p in range(9)], axis=0)   # (288, 32)
    wpfc = np.asarray(raw["wp"]) @ wl1a                            # (esd, 32)
    bh = np.asarray(raw["bp"]) @ wl1a + np.asarray(raw["bl1"])     # (32,)

    esd = int(raw["wl2"].shape[1])
    w2p = np.zeros((32, OUT_PAD), np.float32)
    w2p[:, :esd] = np.asarray(raw["wl2"])
    b2p = np.zeros((OUT_PAD,), np.float32)
    b2p[:esd] = np.asarray(raw["bl2"])

    wd = weight_dtype
    f32 = jnp.float32
    return dict(
        c1=jnp.asarray(C1, wd), b1=jnp.asarray(b1r, f32).reshape(1, -1),
        c2=jnp.asarray(C2, wd), b2=jnp.asarray(b2r, f32).reshape(1, -1),
        c3=jnp.asarray(C3, wd), b3=jnp.asarray(b3r, f32).reshape(1, -1),
        wfc=jnp.asarray(wfc, wd), wpfc=jnp.asarray(wpfc, wd),
        bh=jnp.asarray(bh, f32).reshape(1, -1),
        w2p=jnp.asarray(w2p, wd), b2p=jnp.asarray(b2p, f32).reshape(1, -1),
        esd=esd,
    )


# ----------------------------------------------------------------------------
# The fused Pallas kernel: one grid step = B_TILE images, 5 GEMMs + ReLUs.
# ----------------------------------------------------------------------------
def _encoder_fused_kernel(x_ref, pr_ref,
                          c1_ref, b1_ref, c2_ref, b2_ref, c3_ref, b3_ref,
                          wfc_ref, wpfc_ref, bh_ref, w2p_ref, b2p_ref,
                          out_ref):
    f32 = jnp.float32
    bf16 = jnp.bfloat16

    def mm(a, w_ref):
        return jnp.dot(a.astype(bf16), w_ref[...], preferred_element_type=f32)

    x = x_ref[...]                                              # (bt, 784)
    # conv1 (1->8, s2, p1) + ReLU   (Dropout = identity in eval mode)
    y1 = jnp.maximum(mm(x, c1_ref) + b1_ref[...], 0.0)          # (bt, 1568)
    # conv2 (8->16, s2, p1) + folded BatchNorm + ReLU
    y2 = jnp.maximum(mm(y1, c2_ref) + b2_ref[...], 0.0)         # (bt, 896)
    # conv3 (16->32, s2, p0) + ReLU
    y3 = jnp.maximum(mm(y2, c3_ref) + b3_ref[...], 0.0)         # (bt, 288)
    # prior_fc folded into encoder_lin[0]; flatten folded into wfc row perm.
    h = mm(y3, wfc_ref) + mm(pr_ref[...], wpfc_ref) + bh_ref[...]
    h = jnp.maximum(h, 0.0)                                      # (bt, 32)
    out = mm(h, w2p_ref) + b2p_ref[...]                          # (bt, 128) lane-dense
    out_ref[...] = out.astype(out_ref.dtype)
    # TODO(synk): the torch.isnan(x).any() check in forward() only assigns a
    # dead local and is intentionally not reproduced.


def _round_up(n, m):
    return ((n + m - 1) // m) * m


# ----------------------------------------------------------------------------
# Forward pass (single pallas_call, grid over batch tiles).
# ----------------------------------------------------------------------------
def encoder_conv_with_prior(ops, x_nchw, prior, b_tile=128):
    B = x_nchw.shape[0]
    assert x_nchw.shape[1:] == (1, 28, 28), x_nchw.shape   # Linear(296) requires 28x28
    esd = ops["esd"]

    # Raw pixels streamed directly; conv1's im2col is folded into c1.
    x_flat = x_nchw.reshape(B, 28 * 28).astype(jnp.float32)      # NCHW, C=1 -> (ih*28+iw)
    pr = prior.astype(jnp.float32).reshape(B, esd)

    bt = min(b_tile, _round_up(B, 8))       # sublane-aligned batch tile
    Bp = _round_up(B, bt)
    if Bp != B:
        x_flat = jnp.pad(x_flat, ((0, Bp - B), (0, 0)))
        pr = jnp.pad(pr, ((0, Bp - B), (0, 0)))

    resident = [ops["c1"], ops["b1"], ops["c2"], ops["b2"], ops["c3"], ops["b3"],
                ops["wfc"], ops["wpfc"], ops["bh"], ops["w2p"], ops["b2p"]]

    in_specs = [
        pl.BlockSpec((bt, 28 * 28), lambda i: (i, 0)),   # streamed pixels
        pl.BlockSpec((bt, esd), lambda i: (i, 0)),       # streamed prior
    ] + [pl.BlockSpec(a.shape, lambda i: (0, 0)) for a in resident]  # VMEM-resident

    flops_per_img = 2 * (784 * 1568 + 1568 * 896 + 896 * 288
                         + 288 * 32 + esd * 32 + 32 * OUT_PAD)
    bytes_accessed = int(sum(int(a.size) * a.dtype.itemsize for a in resident)
                         + int(x_flat.size) * 4 + int(pr.size) * 4
                         + Bp * OUT_PAD * 4)

    out = pl.pallas_call(
        _encoder_fused_kernel,
        out_shape=jax.ShapeDtypeStruct((Bp, OUT_PAD), jnp.float32),
        grid=(Bp // bt,),
        in_specs=in_specs,
        out_specs=pl.BlockSpec((bt, OUT_PAD), lambda i: (i, 0)),
        compiler_params=pltpu.CompilerParams(
            dimension_semantics=("parallel",),
            vmem_limit_bytes=32 * 1024 * 1024),
        cost_estimate=pl.CostEstimate(flops=int(Bp) * flops_per_img,
                                      transcendentals=0,
                                      bytes_accessed=bytes_accessed),
    )(x_flat, pr, *resident)
    return out[:B, :esd]


# ----------------------------------------------------------------------------
# Pure-JAX f32 reference (eval-mode PyTorch semantics) for a correctness check.
# ----------------------------------------------------------------------------
def reference_forward(raw, x_nchw, prior):
    N = x_nchw.shape[0]
    x = jnp.transpose(x_nchw, (0, 2, 3, 1))
    cols, Ho, Wo = im2col(x, 3, 3, 2, 1)
    y = jnp.maximum(cols @ conv_w_to_mat(raw["w1"]) + raw["b1"], 0.0)
    x = y.reshape(N, Ho, Wo, 8)
    cols, Ho, Wo = im2col(x, 3, 3, 2, 1)
    y = cols @ conv_w_to_mat(raw["w2"]) + raw["b2"]
    s = raw["gamma"] / jnp.sqrt(raw["rvar"] + 1e-5)
    y = jnp.maximum(y * s + (raw["beta"] - raw["rmean"] * s), 0.0)
    x = y.reshape(N, Ho, Wo, 16)
    cols, Ho, Wo = im2col(x, 3, 3, 2, 0)
    y = jnp.maximum(cols @ conv_w_to_mat(raw["w3"]) + raw["b3"], 0.0)
    x = y.reshape(N, Ho, Wo, 32)
    flat = jnp.transpose(x, (0, 3, 1, 2)).reshape(N, -1)       # NCHW flatten
    p = prior @ raw["wp"] + raw["bp"]
    comb = jnp.concatenate([p, flat], axis=1)
    h = jnp.maximum(comb @ raw["wl1"] + raw["bl1"], 0.0)
    return h @ raw["wl2"] + raw["bl2"]


if __name__ == "__main__":
    encoded_space_dim = 4
    batch = 2

    key = jax.random.PRNGKey(0)
    k_param, k_x, k_p = jax.random.split(key, 3)

    raw = init_params(k_param, encoded_space_dim)
    ops = prepare_operands(raw)   # bf16 weight matrices, BN / flatten / prior_fc folded

    # Spatial size must be 28x28 so the flattened conv features (288) plus the
    # prior features (8) match Linear(296, 32).
    x = jax.random.normal(k_x, (batch, 1, 28, 28), jnp.float32)
    prior = jax.random.normal(k_p, (batch, encoded_space_dim), jnp.float32)

    out = encoder_conv_with_prior(ops, x, prior)
    out = jax.block_until_ready(out)
    assert out.shape == (batch, encoded_space_dim), out.shape

    ref = reference_forward(raw, x, prior)
    max_err = float(jnp.max(jnp.abs(out - ref)))
    # bf16 weights / activations on the MXU (f32 accumulate) => looser tolerance.
    assert jnp.allclose(out, ref, atol=5e-2, rtol=5e-2), max_err

    print("KERNEL_OK")
</pallas_src>

<mosaic_0001>
module attributes {stable_mosaic.version = 11 : i64} {
  func.func @_encoder_fused_kernel(%arg0: i32, %arg1: memref<8x784xf32, #tpu.memory_space<vmem>>, %arg2: memref<8x4xf32, #tpu.memory_space<vmem>>, %arg3: memref<784x1568xbf16, #tpu.memory_space<vmem>>, %arg4: memref<1x1568xf32, #tpu.memory_space<vmem>>, %arg5: memref<1568x784xbf16, #tpu.memory_space<vmem>>, %arg6: memref<1x784xf32, #tpu.memory_space<vmem>>, %arg7: memref<784x288xbf16, #tpu.memory_space<vmem>>, %arg8: memref<1x288xf32, #tpu.memory_space<vmem>>, %arg9: memref<288x32xbf16, #tpu.memory_space<vmem>>, %arg10: memref<4x32xbf16, #tpu.memory_space<vmem>>, %arg11: memref<1x32xf32, #tpu.memory_space<vmem>>, %arg12: memref<32x128xbf16, #tpu.memory_space<vmem>>, %arg13: memref<1x128xf32, #tpu.memory_space<vmem>>, %arg14: memref<8x128xf32, #tpu.memory_space<vmem>>) attributes {dimension_semantics = [#tpu.dimension_semantics<parallel>], iteration_bounds = array<i64: 1>, scalar_prefetch = 0 : i64, scratch_operands = 0 : i64, tpu.core_type = #tpu.core_type<tc>, window_params = [{transform_indices = @transform_0, window_bounds = array<i64: 8, 784>}, {transform_indices = @transform_1, window_bounds = array<i64: 8, 4>}, {pipeline_mode = #tpu.pipeline_mode<synchronous>, transform_indices = @transform_2, window_bounds = array<i64: 784, 1568>}, {pipeline_mode = #tpu.pipeline_mode<synchronous>, transform_indices = @transform_3, window_bounds = array<i64: 1, 1568>}, {pipeline_mode = #tpu.pipeline_mode<synchronous>, transform_indices = @transform_4, window_bounds = array<i64: 1568, 784>}, {pipeline_mode = #tpu.pipeline_mode<synchronous>, transform_indices = @transform_5, window_bounds = array<i64: 1, 784>}, {pipeline_mode = #tpu.pipeline_mode<synchronous>, transform_indices = @transform_6, window_bounds = array<i64: 784, 288>}, {pipeline_mode = #tpu.pipeline_mode<synchronous>, transform_indices = @transform_7, window_bounds = array<i64: 1, 288>}, {pipeline_mode = #tpu.pipeline_mode<synchronous>, transform_indices = @transform_8, window_bounds = array<i64: 288, 32>}, {pipeline_mode = #tpu.pipeline_mode<synchronous>, transform_indices = @transform_9, window_bounds = array<i64: 4, 32>}, {pipeline_mode = #tpu.pipeline_mode<synchronous>, transform_indices = @transform_10, window_bounds = array<i64: 1, 32>}, {pipeline_mode = #tpu.pipeline_mode<synchronous>, transform_indices = @transform_11, window_bounds = array<i64: 32, 128>}, {pipeline_mode = #tpu.pipeline_mode<synchronous>, transform_indices = @transform_12, window_bounds = array<i64: 1, 128>}, {transform_indices = @transform_13, window_bounds = array<i64: 8, 128>}]} {
    %c0 = arith.constant 0 : index
    %c0_0 = arith.constant 0 : index
    %0 = vector.load %arg1[%c0, %c0_0] : memref<8x784xf32, #tpu.memory_space<vmem>>, vector<8x784xf32>
    %1 = arith.truncf %0 : vector<8x784xf32> to vector<8x784xbf16>
    %c0_1 = arith.constant 0 : index
    %c0_2 = arith.constant 0 : index
    %2 = vector.load %arg3[%c0_1, %c0_2] : memref<784x1568xbf16, #tpu.memory_space<vmem>>, vector<784x1568xbf16>
    %cst = arith.constant dense<0.000000e+00> : vector<8x1568xf32>
    %3 = tpu.matmul %1, %2, %cst {dimension_numbers = #tpu.dot_dimension_numbers<[1], [0], [0], [1], [0, 0, 1, 1], [], []>} : vector<8x784xbf16>, vector<784x1568xbf16>, vector<8x1568xf32> -> vector<8x1568xf32>
    %c0_3 = arith.constant 0 : index
    %c0_4 = arith.constant 0 : index
    %4 = vector.load %arg4[%c0_3, %c0_4] : memref<1x1568xf32, #tpu.memory_space<vmem>>, vector<1x1568xf32>
    %5 = vector.broadcast %4 : vector<1x1568xf32> to vector<8x1568xf32>
    %6 = arith.addf %3, %5 : vector<8x1568xf32>
    %cst_5 = arith.constant 0.000000e+00 : f32
    %7 = vector.broadcast %cst_5 : f32 to vector<8x1568xf32>
    %8 = arith.maximumf %6, %7 : vector<8x1568xf32>
    %9 = arith.truncf %8 : vector<8x1568xf32> to vector<8x1568xbf16>
    %c0_6 = arith.constant 0 : index
    %c0_7 = arith.constant 0 : index
    %10 = vector.load %arg5[%c0_6, %c0_7] : memref<1568x784xbf16, #tpu.memory_space<vmem>>, vector<1568x784xbf16>
    %cst_8 = arith.constant dense<0.000000e+00> : vector<8x784xf32>
    %11 = tpu.matmul %9, %10, %cst_8 {dimension_numbers = #tpu.dot_dimension_numbers<[1], [0], [0], [1], [0, 0, 1, 1], [], []>} : vector<8x1568xbf16>, vector<1568x784xbf16>, vector<8x784xf32> -> vector<8x784xf32>
    %c0_9 = arith.constant 0 : index
    %c0_10 = arith.constant 0 : index
    %12 = vector.load %arg6[%c0_9, %c0_10] : memref<1x784xf32, #tpu.memory_space<vmem>>, vector<1x784xf32>
    %13 = vector.broadcast %12 : vector<1x784xf32> to vector<8x784xf32>
    %14 = arith.addf %11, %13 : vector<8x784xf32>
    %cst_11 = arith.constant 0.000000e+00 : f32
    %15 = vector.broadcast %cst_11 : f32 to vector<8x784xf32>
    %16 = arith.maximumf %14, %15 : vector<8x784xf32>
    %17 = arith.truncf %16 : vector<8x784xf32> to vector<8x784xbf16>
    %c0_12 = arith.constant 0 : index
    %c0_13 = arith.constant 0 : index
    %18 = vector.load %arg7[%c0_12, %c0_13] : memref<784x288xbf16, #tpu.memory_space<vmem>>, vector<784x288xbf16>
    %cst_14 = arith.constant dense<0.000000e+00> : vector<8x288xf32>
    %19 = tpu.matmul %17, %18, %cst_14 {dimension_numbers = #tpu.dot_dimension_numbers<[1], [0], [0], [1], [0, 0, 1, 1], [], []>} : vector<8x784xbf16>, vector<784x288xbf16>, vector<8x288xf32> -> vector<8x288xf32>
    %c0_15 = arith.constant 0 : index
    %c0_16 = arith.constant 0 : index
    %20 = vector.load %arg8[%c0_15, %c0_16] : memref<1x288xf32, #tpu.memory_space<vmem>>, vector<1x288xf32>
    %21 = vector.broadcast %20 : vector<1x288xf32> to vector<8x288xf32>
    %22 = arith.addf %19, %21 : vector<8x288xf32>
    %cst_17 = arith.constant 0.000000e+00 : f32
    %23 = vector.broadcast %cst_17 : f32 to vector<8x288xf32>
    %24 = arith.maximumf %22, %23 : vector<8x288xf32>
    %25 = arith.truncf %24 : vector<8x288xf32> to vector<8x288xbf16>
    %c0_18 = arith.constant 0 : index
    %c0_19 = arith.constant 0 : index
    %26 = vector.load %arg9[%c0_18, %c0_19] : memref<288x32xbf16, #tpu.memory_space<vmem>>, vector<288x32xbf16>
    %cst_20 = arith.constant dense<0.000000e+00> : vector<8x32xf32>
    %27 = tpu.matmul %25, %26, %cst_20 {dimension_numbers = #tpu.dot_dimension_numbers<[1], [0], [0], [1], [0, 0, 1, 1], [], []>} : vector<8x288xbf16>, vector<288x32xbf16>, vector<8x32xf32> -> vector<8x32xf32>
    %c0_21 = arith.constant 0 : index
    %c0_22 = arith.constant 0 : index
    %28 = vector.load %arg2[%c0_21, %c0_22] : memref<8x4xf32, #tpu.memory_space<vmem>>, vector<8x4xf32>
    %29 = arith.truncf %28 : vector<8x4xf32> to vector<8x4xbf16>
    %c0_23 = arith.constant 0 : index
    %c0_24 = arith.constant 0 : index
    %30 = vector.load %arg10[%c0_23, %c0_24] : memref<4x32xbf16, #tpu.memory_space<vmem>>, vector<4x32xbf16>
    %cst_25 = arith.constant dense<0.000000e+00> : vector<8x32xf32>
    %31 = tpu.matmul %29, %30, %cst_25 {dimension_numbers = #tpu.dot_dimension_numbers<[1], [0], [0], [1], [0, 0, 1, 1], [], []>} : vector<8x4xbf16>, vector<4x32xbf16>, vector<8x32xf32> -> vector<8x32xf32>
    %32 = arith.addf %27, %31 : vector<8x32xf32>
    %c0_26 = arith.constant 0 : index
    %c0_27 = arith.constant 0 : index
    %33 = vector.load %arg11[%c0_26, %c0_27] : memref<1x32xf32, #tpu.memory_space<vmem>>, vector<1x32xf32>
    %34 = vector.broadcast %33 : vector<1x32xf32> to vector<8x32xf32>
    %35 = arith.addf %32, %34 : vector<8x32xf32>
    %cst_28 = arith.constant 0.000000e+00 : f32
    %36 = vector.broadcast %cst_28 : f32 to vector<8x32xf32>
    %37 = arith.maximumf %35, %36 : vector<8x32xf32>
    %38 = arith.truncf %37 : vector<8x32xf32> to vector<8x32xbf16>
    %c0_29 = arith.constant 0 : index
    %c0_30 = arith.constant 0 : index
    %39 = vector.load %arg12[%c0_29, %c0_30] : memref<32x128xbf16, #tpu.memory_space<vmem>>, vector<32x128xbf16>
    %cst_31 = arith.constant dense<0.000000e+00> : vector<8x128xf32>
    %40 = tpu.matmul %38, %39, %cst_31 {dimension_numbers = #tpu.dot_dimension_numbers<[1], [0], [0], [1], [0, 0, 1, 1], [], []>} : vector<8x32xbf16>, vector<32x128xbf16>, vector<8x128xf32> -> vector<8x128xf32>
    %c0_32 = arith.constant 0 : index
    %c0_33 = arith.constant 0 : index
    %41 = vector.load %arg13[%c0_32, %c0_33] : memref<1x128xf32, #tpu.memory_space<vmem>>, vector<1x128xf32>
    %42 = vector.broadcast %41 : vector<1x128xf32> to vector<8x128xf32>
    %43 = arith.addf %40, %42 : vector<8x128xf32>
    %c0_34 = arith.constant 0 : index
    %c0_35 = arith.constant 0 : index
    %44 = vector.load %arg14[%c0_34, %c0_35] : memref<8x128xf32, #tpu.memory_space<vmem>>, vector<8x128xf32>
    tpu.vector_store %arg14[%c0_34, %c0_35], %43 {strides = array<i32>} : memref<8x128xf32, #tpu.memory_space<vmem>>, vector<8x128xf32>,
    return
  }
  func.func @transform_0(%arg0: i32) -> (i32, i32) {
    %c0_i32 = arith.constant 0 : i32
    %c0_i32_0 = arith.constant 0 : i32
    return %arg0, %c0_i32 : i32, i32
  }
  func.func @transform_1(%arg0: i32) -> (i32, i32) {
    %c0_i32 = arith.constant 0 : i32
    %c0_i32_0 = arith.constant 0 : i32
    return %arg0, %c0_i32 : i32, i32
  }
  func.func @transform_2(%arg0: i32) -> (i32, i32) {
    %c0_i32 = arith.constant 0 : i32
    %c0_i32_0 = arith.constant 0 : i32
    %c0_i32_1 = arith.constant 0 : i32
    return %c0_i32, %c0_i32_0 : i32, i32
  }
  func.func @transform_3(%arg0: i32) -> (i32, i32) {
    %c0_i32 = arith.constant 0 : i32
    %c0_i32_0 = arith.constant 0 : i32
    %c0_i32_1 = arith.constant 0 : i32
    return %c0_i32, %c0_i32_0 : i32, i32
  }
  func.func @transform_4(%arg0: i32) -> (i32, i32) {
    %c0_i32 = arith.constant 0 : i32
    %c0_i32_0 = arith.constant 0 : i32
    %c0_i32_1 = arith.constant 0 : i32
    return %c0_i32, %c0_i32_0 : i32, i32
  }
  func.func @transform_5(%arg0: i32) -> (i32, i32) {
    %c0_i32 = arith.constant 0 : i32
    %c0_i32_0 = arith.constant 0 : i32
    %c0_i32_1 = arith.constant 0 : i32
    return %c0_i32, %c0_i32_0 : i32, i32
  }
  func.func @transform_6(%arg0: i32) -> (i32, i32) {
    %c0_i32 = arith.constant 0 : i32
    %c0_i32_0 = arith.constant 0 : i32
    %c0_i32_1 = arith.constant 0 : i32
    return %c0_i32, %c0_i32_0 : i32, i32
  }
  func.func @transform_7(%arg0: i32) -> (i32, i32) {
    %c0_i32 = arith.constant 0 : i32
    %c0_i32_0 = arith.constant 0 : i32
    %c0_i32_1 = arith.constant 0 : i32
    return %c0_i32, %c0_i32_0 : i32, i32
  }
  func.func @transform_8(%arg0: i32) -> (i32, i32) {
    %c0_i32 = arith.constant 0 : i32
    %c0_i32_0 = arith.constant 0 : i32
    %c0_i32_1 = arith.constant 0 : i32
    return %c0_i32, %c0_i32_0 : i32, i32
  }
  func.func @transform_9(%arg0: i32) -> (i32, i32) {
    %c0_i32 = arith.constant 0 : i32
    %c0_i32_0 = arith.constant 0 : i32
    %c0_i32_1 = arith.constant 0 : i32
    return %c0_i32, %c0_i32_0 : i32, i32
  }
  func.func @transform_10(%arg0: i32) -> (i32, i32) {
    %c0_i32 = arith.constant 0 : i32
    %c0_i32_0 = arith.constant 0 : i32
    %c0_i32_1 = arith.constant 0 : i32
    return %c0_i32, %c0_i32_0 : i32, i32
  }
  func.func @transform_11(%arg0: i32) -> (i32, i32) {
    %c0_i32 = arith.constant 0 : i32
    %c0_i32_0 = arith.constant 0 : i32
    %c0_i32_1 = arith.constant 0 : i32
    return %c0_i32, %c0_i32_0 : i32, i32
  }
  func.func @transform_12(%arg0: i32) -> (i32, i32) {
    %c0_i32 = arith.constant 0 : i32
    %c0_i32_0 = arith.constant 0 : i32
    %c0_i32_1 = arith.constant 0 : i32
    return %c0_i32, %c0_i32_0 : i32, i32
  }
  func.func @transform_13(%arg0: i32) -> (i32, i32) {
    %c0_i32 = arith.constant 0 : i32
    %c0_i32_0 = arith.constant 0 : i32
    return %arg0, %c0_i32 : i32, i32
  }
}

</mosaic_0001>

<bundles_post_ra>
// kernel: tpu_custom_call.1
= control target key start
LH: loop header
LB: loop body
LE: loop exit
PB: predicated region body
PF: predicated region fallthrough
CT: control target
= control target key end

     0   :  { %vm4010_vm0 = vcmask 130048   ;;  %s29479_s0 = inlined_call_operand.vmem [shape: f32[8,784], index: 0, kind: input, shape index: {}]   ;;  %s29480_s1 = inlined_call_operand.vmem [shape: f32[8,4], index: 1, kind: input, shape index: {}]   ;;  %s29481_s2 = inlined_call_operand.vmem [shape: bf16[784,1568], index: 2, kind: input, shape index: {}]   ;;  %s29482_s3 = inlined_call_operand.vmem [shape: f32[1,1568], index: 3, kind: input, shape index: {}]   ;;  %s29483_s4 = inlined_call_operand.vmem [shape: bf16[1568,784], index: 4, kind: input, shape index: {}]   ;;  %s29484_s5 = inlined_call_operand.vmem [shape: f32[1,784], index: 5, kind: input, shape index: {}]   ;;  %s29485_s6 = inlined_call_operand.vmem [shape: bf16[784,288], index: 6, kind: input, shape index: {}]   ;;  %s29486_s7 = inlined_call_operand.vmem [shape: f32[1,288], index: 7, kind: input, shape index: {}]   ;;  %s29487_s8 = inlined_call_operand.vmem [shape: bf16[288,32], index: 8, kind: input, shape index: {}]   ;;  %s29488_s9 = inlined_call_operand.vmem [shape: bf16[4,32], index: 9, kind: input, shape index: {}]   ;;  %s29489_s10 = inlined_call_operand.vmem [shape: f32[1,32], index: 10, kind: input, shape index: {}]   ;;  %s29490_s11 = inlined_call_operand.vmem [shape: bf16[32,128], index: 11, kind: input, shape index: {}]   ;;  %s29491_s12 = inlined_call_operand.vmem [shape: f32[1,128], index: 12, kind: input, shape index: {}]   ;;  %s29492_s13 = inlined_call_operand.hbm [shape: f32[8,128], index: 13, kind: output, shape index: {}]  }
   0x1   :  { %v12658_v0 = vld [vmem:[%s29481_s2 + $0x2d8] sm:$0xf]  ;;  %v18375_v1 = vld [vmem:[%s29481_s2 + $0x308] sm:$0xf0]  ;;  %v12606_v11 = vld [vmem:[%s29481_s2 + $0x270] sm:$0xf] }
   0x2   :  { %v13074_v2 = vld [vmem:[%s29481_s2 + $0x618] sm:$0xf]  ;;  %v12659_v3 = vor.u32 %v18375_v1, %v12658_v0  ;;  %v18479_v4 = vld [vmem:[%s29481_s2 + $0x648] sm:$0xf0]  ;;  %v18362_v13 = vld [vmem:[%s29481_s2 + $0x2a0] sm:$0xf0] }
   0x3   :  { %v13490_v5 = vld [vmem:[%s29481_s2 + $0x958] sm:$0xf]  ;;  %v18583_v6 = vld [vmem:[%s29481_s2 + $0x988] sm:$0xf0]  ;;  %v13075_v7 = vor.u32 %v18479_v4, %v13074_v2  ;;  %v13022_v14 = vld [vmem:[%s29481_s2 + $0x5b0] sm:$0xf]  ;;  %v12607_v16 = vor.u32 %v18362_v13, %v12606_v11 }
   0x4   :  { %v13491_v8 = vor.u32 %v18583_v6, %v13490_v5  ;;  %v13906_v9 = vld [vmem:[%s29481_s2 + $0xc98] sm:$0xf]  ;;  %v18687_v10 = vld [vmem:[%s29481_s2 + $0xcc8] sm:$0xf0]  ;;  %4014 = vmatpush.bf16.msra.mxu0 %v12659_v3  ;;  %v18466_v15 = vld [vmem:[%s29481_s2 + $0x5e0] sm:$0xf0] }
   0x5   :  { %v13907_v12 = vor.u32 %v18687_v10, %v13906_v9  ;;  %4027 = vmatpush.bf16.msra.mxu1 %v13075_v7  ;;  %v13023_v17 = vor.u32 %v18466_v15, %v13022_v14  ;;  %v13438_v18 = vld [vmem:[%s29481_s2 + $0x8f0] sm:$0xf]  ;;  %v18570_v19 = vld [vmem:[%s29481_s2 + $0x920] sm:$0xf0]  ;;  %v12554_v23 = vld [vmem:[%s29481_s2 + $0x208] sm:$0xf] }
   0x6   :  { %4040 = vmatpush.bf16.msra.mxu2 %v13491_v8  ;;  %v13854_v20 = vld [vmem:[%s29481_s2 + $0xc30] sm:$0xf]  ;;  %v13439_v21 = vor.u32 %v18570_v19, %v13438_v18  ;;  %v18674_v22 = vld [vmem:[%s29481_s2 + $0xc60] sm:$0xf0]  ;;  %v18349_v24 = vld [vmem:[%s29481_s2 + $0x238] sm:$0xf0] }
   0x7   :  { %4053 = vmatpush.bf16.msra.mxu3 %v13907_v12  ;;  %v13855_v25 = vor.u32 %v18674_v22, %v13854_v20  ;;  %v12970_v26 = vld [vmem:[%s29481_s2 + $0x548] sm:$0xf]  ;;  %v18453_v27 = vld [vmem:[%s29481_s2 + $0x578] sm:$0xf0]  ;;  %v12555_v29 = vor.u32 %v18349_v24, %v12554_v23  ;;  %v12502_v35 = vld [vmem:[%s29481_s2 + $0x1a0] sm:$0xf] }
   0x8   :  { %v13386_v28 = vld [vmem:[%s29481_s2 + $0x888] sm:$0xf]  ;;  %4015 = vmatpush.bf16.msra.mxu0 %v12607_v16  ;;  %v18557_v30 = vld [vmem:[%s29481_s2 + $0x8b8] sm:$0xf0]  ;;  %v12971_v33 = vor.u32 %v18453_v27, %v12970_v26  ;;  %v18336_v36 = vld [vmem:[%s29481_s2 + $0x1d0] sm:$0xf0] }
   0x9   :  { %v13802_v31 = vld [vmem:[%s29481_s2 + $0xbc8] sm:$0xf]  ;;  %v18661_v32 = vld [vmem:[%s29481_s2 + $0xbf8] sm:$0xf0]  ;;  %4028 = vmatpush.bf16.msra.mxu1 %v13023_v17  ;;  %v13387_v34 = vor.u32 %v18557_v30, %v13386_v28  ;;  %v12918_v37 = vld [vmem:[%s29481_s2 + $0x4e0] sm:$0xf]  ;;  %v12503_v44 = vor.u32 %v18336_v36, %v12502_v35 }
   0xa   :  { %4041 = vmatpush.bf16.msra.mxu2 %v13439_v21  ;;  %v13803_v38 = vor.u32 %v18661_v32, %v13802_v31  ;;  %v18440_v39 = vld [vmem:[%s29481_s2 + $0x510] sm:$0xf0]  ;;  %v13334_v40 = vld [vmem:[%s29481_s2 + $0x820] sm:$0xf]  ;;  %v12450_v47 = vld [vmem:[%s29481_s2 + $0x138] sm:$0xf] }
   0xb   :  { %4054 = vmatpush.bf16.msra.mxu3 %v13855_v25  ;;  %v18544_v41 = vld [vmem:[%s29481_s2 + $0x850] sm:$0xf0]  ;;  %v13750_v42 = vld [vmem:[%s29481_s2 + $0xb60] sm:$0xf]  ;;  %v12919_v45 = vor.u32 %v18440_v39, %v12918_v37  ;;  %v18323_v48 = vld [vmem:[%s29481_s2 + $0x168] sm:$0xf0] }
   0xc   :  { %v18648_v43 = vld [vmem:[%s29481_s2 + $0xb90] sm:$0xf0]  ;;  %4016 = vmatpush.bf16.msra.mxu0 %v12555_v29  ;;  %v13335_v46 = vor.u32 %v18544_v41, %v13334_v40  ;;  %v12866_v49 = vld [vmem:[%s29481_s2 + $0x478] sm:$0xf]  ;;  %v18427_v51 = vld [vmem:[%s29481_s2 + $0x4a8] sm:$0xf0]  ;;  %v12451_v56 = vor.u32 %v18323_v48, %v12450_v47 }
   0xd   :  { %4029 = vmatpush.bf16.msra.mxu1 %v12971_v33  ;;  %v13751_v50 = vor.u32 %v18648_v43, %v13750_v42  ;;  %v13282_v52 = vld [vmem:[%s29481_s2 + $0x7b8] sm:$0xf]  ;;  %v18531_v53 = vld [vmem:[%s29481_s2 + $0x7e8] sm:$0xf0]  ;;  %v12867_v57 = vor.u32 %v18427_v51, %v12866_v49  ;;  %v12398_v59 = vld [vmem:[%s29481_s2 + $0xd0] sm:$0xf] }
   0xe   :  { %4042 = vmatpush.bf16.msra.mxu2 %v13387_v34  ;;  %v13698_v54 = vld [vmem:[%s29481_s2 + $0xaf8] sm:$0xf]  ;;  %v18635_v55 = vld [vmem:[%s29481_s2 + $0xb28] sm:$0xf0]  ;;  %v13283_v58 = vor.u32 %v18531_v53, %v13282_v52  ;;  %v18310_v60 = vld [vmem:[%s29481_s2 + $0x100] sm:$0xf0] }
   0xf   :  { %4055 = vmatpush.bf16.msra.mxu3 %v13803_v38  ;;  %v12814_v61 = vld [vmem:[%s29481_s2 + $0x410] sm:$0xf]  ;;  %v13699_v62 = vor.u32 %v18635_v55, %v13698_v54  ;;  %v18414_v63 = vld [vmem:[%s29481_s2 + $0x440] sm:$0xf0]  ;;  %v12399_v4 = vor.u32 %v18310_v60, %v12398_v59  ;;  %v12346_v7 = vld [vmem:[%s29481_s2 + $0x68] sm:$0xf] }
  0x10   :  { %4017 = vmatpush.bf16.msra.mxu0 %v12503_v44  ;;  %v13230_v0 = vld [vmem:[%s29481_s2 + $0x750] sm:$0xf]  ;;  %v18518_v1 = vld [vmem:[%s29481_s2 + $0x780] sm:$0xf0]  ;;  %v12815_v5 = vor.u32 %v18414_v63, %v12814_v61  ;;  %v18297_v8 = vld [vmem:[%s29481_s2 + $0x98] sm:$0xf0] }
  0x11   :  { %4030 = vmatpush.bf16.msra.mxu1 %v12919_v45  ;;  %v13646_v2 = vld [vmem:[%s29481_s2 + $0xa90] sm:$0xf]  ;;  %v18622_v3 = vld [vmem:[%s29481_s2 + $0xac0] sm:$0xf0]  ;;  %v13231_v6 = vor.u32 %v18518_v1, %v13230_v0  ;;  %v12762_v9 = vld [vmem:[%s29481_s2 + $0x3a8] sm:$0xf]  ;;  %v12347_v16 = vor.u32 %v18297_v8, %v12346_v7 }
  0x12   :  { %4043 = vmatpush.bf16.msra.mxu2 %v13335_v46  ;;  %v13647_v10 = vor.u32 %v18622_v3, %v13646_v2  ;;  %v18401_v11 = vld [vmem:[%s29481_s2 + $0x3d8] sm:$0xf0]  ;;  %v13178_v12 = vld [vmem:[%s29481_s2 + $0x6e8] sm:$0xf]  ;;  %v12294_v17 = vld [vmem:[%s29481_s2] sm:$0xf] }
  0x13   :  { %4056 = vmatpush.bf16.msra.mxu3 %v13751_v50  ;;  %v18505_v13 = vld [vmem:[%s29481_s2 + $0x718] sm:$0xf0]  ;;  %v13594_v14 = vld [vmem:[%s29481_s2 + $0xa28] sm:$0xf]  ;;  %v18284_v18 = vld [vmem:[%s29481_s2 + $0x30] sm:$0xf0]  ;;  %v12763_v19 = vor.u32 %v18401_v11, %v12762_v9 }
  0x14   :  { %4018 = vmatpush.bf16.msra.mxu0 %v12451_v56  ;;  %v18609_v15 = vld [vmem:[%s29481_s2 + $0xa58] sm:$0xf0]  ;;  %v13179_v20 = vor.u32 %v18505_v13, %v13178_v12  ;;  %v12710_v21 = vld [vmem:[%s29481_s2 + $0x340] sm:$0xf]  ;;  %v18388_v22 = vld [vmem:[%s29481_s2 + $0x370] sm:$0xf0]  ;;  %v12295_v31 = vor.u32 %v18284_v18, %v12294_v17 }
  0x15   :  { %4031 = vmatpush.bf16.msra.mxu1 %v12867_v57  ;;  %v13126_v23 = vld [vmem:[%s29481_s2 + $0x680] sm:$0xf]  ;;  %v13595_v24 = vor.u32 %v18609_v15, %v13594_v14  ;;  %v18492_v25 = vld [vmem:[%s29481_s2 + $0x6b0] sm:$0xf0]  ;;  %v14322_v28 = vld [vmem:[%s29481_s2 + $0xfd8] sm:$0xf]  ;;  %v12711_v35 = vor.u32 %v18388_v22, %v12710_v21 }
  0x16   :  { %4044 = vmatpush.bf16.msra.mxu2 %v13283_v58  ;;  %v13542_v26 = vld [vmem:[%s29481_s2 + $0x9c0] sm:$0xf]  ;;  %v18596_v27 = vld [vmem:[%s29481_s2 + $0x9f0] sm:$0xf0]  ;;  %v18791_v29 = vld [vmem:[%s29481_s2 + $0x1008] sm:$0xf0]  ;;  %v13127_v36 = vor.u32 %v18492_v25, %v13126_v23 }
  0x17   :  { %4057 = vmatpush.bf16.msra.mxu3 %v13699_v62  ;;  %v14738_v30 = vld [vmem:[%s29481_s2 + $0x1318] sm:$0xf]  ;;  %v18895_v32 = vld [vmem:[%s29481_s2 + $0x1348] sm:$0xf0]  ;;  %v18369_v33 = vld [vmem:[%s29481_s2 + $0x2dc] sm:$0xf]  ;;  %v13543_v39 = vor.u32 %v18596_v27, %v13542_v26  ;;  %v14323_v40 = vor.u32 %v18791_v29, %v14322_v28 }
  0x18   :  { %4019 = vmatpush.bf16.msra.mxu0 %v12399_v4  ;;  %v12660_v34 = vld [vmem:[%s29481_s2 + $0x30c] sm:$0xf0]  ;;  %v14790_v37 = vld [vmem:[%s29481_s2 + $0x1380] sm:$0xf]  ;;  %v18908_v38 = vld [vmem:[%s29481_s2 + $0x13b0] sm:$0xf0]  ;;  %v14739_v44 = vor.u32 %v18895_v32, %v14738_v30 }
  0x19   :  { %4032 = vmatpush.bf16.msra.mxu1 %v12815_v5  ;;  %v48_v41 = vld [vmem:[%s29479_s0 + $0x10] sm:$0xff]  ;;  %v18473_v42 = vld [vmem:[%s29481_s2 + $0x61c] sm:$0xf]  ;;  %v12663_v45 = vor.u32 %v18369_v33, %v12660_v34  ;;  %v18778_v47 = vld [vmem:[%s29481_s2 + $0xfa0] sm:$0xf0]  ;;  %v14791_v49 = vor.u32 %v18908_v38, %v14790_v37 }
  0x1a   :  { %4045 = vmatpush.bf16.msra.mxu2 %v13231_v6  ;;  %v13076_v43 = vld [vmem:[%s29481_s2 + $0x64c] sm:$0xf0]  ;;  %v18882_v50 = vld [vmem:[%s29481_s2 + $0x12e0] sm:$0xf0]  ;;  %v18356_v51 = vld [vmem:[%s29481_s2 + $0x274] sm:$0xf]  ;;  %v20118_v53 = vpack.c.bf16 %v48_v41, %v48_v41 }
  0x1b   :  { %4058 = vmatpush.bf16.msra.mxu3 %v13647_v10  ;;  %v14270_v46 = vld [vmem:[%s29481_s2 + $0xf70] sm:$0xf]  ;;  %v12608_v52 = vld [vmem:[%s29481_s2 + $0x2a4] sm:$0xf0]  ;;  %v18460_v54 = vld [vmem:[%s29481_s2 + $0x5b4] sm:$0xf]  ;;  %v13079_v56 = vor.u32 %v18473_v42, %v13076_v43 }
  0x1c   :  { %4020 = vmatpush.bf16.msra.mxu0 %v12347_v16  ;;  %v14686_v48 = vld [vmem:[%s29481_s2 + $0x12b0] sm:$0xf]  ;;  %v46_v55 = vld [vmem:[%s29479_s0] sm:$0xff]  ;;  %v14271_v57 = vor.u32 %v18778_v47, %v14270_v46  ;;  %v13024_v58 = vld [vmem:[%s29481_s2 + $0x5e4] sm:$0xf0]  ;;  %v12611_v63 = vor.u32 %v18356_v51, %v12608_v52 }
  0x1d   :  { %4033 = vmatpush.bf16.msra.mxu1 %v12763_v19  ;;  %v14218_v59 = vld [vmem:[%s29481_s2 + $0xf08] sm:$0xf]  ;;  %v18765_v60 = vld [vmem:[%s29481_s2 + $0xf38] sm:$0xf0]  ;;  %v20135_v61 = vpack.c.bf16 %v46_v55, %v46_v55  ;;  %v14687_v62 = vor.u32 %v18882_v50, %v14686_v48  ;;  %v18343_v2 = vld [vmem:[%s29481_s2 + $0x20c] sm:$0xf]  ;;  %v13027_v8 = vor.u32 %v18460_v54, %v13024_v58 }
  0x1e   :  { %4046 = vmatpush.bf16.msra.mxu2 %v13179_v20  ;;  %v14634_v0 = vld [vmem:[%s29481_s2 + $0x1248] sm:$0xf]  ;;  %v18869_v1 = vld [vmem:[%s29481_s2 + $0x1278] sm:$0xf0]  ;;  %v12556_v3 = vld [vmem:[%s29481_s2 + $0x23c] sm:$0xf0]  ;;  %v14219_v9 = vor.u32 %v18765_v60, %v14218_v59 }
  0x1f   :  { %4059 = vmatpush.bf16.msra.mxu3 %v13595_v24  ;;  %v47_v4 = vld [vmem:[%s29479_s0 + $0x8] sm:$0xff]  ;;  %v49_v5 = vld [vmem:[%s29479_s0 + $0x18] sm:$0xff]  ;;  %v12972_v11 = vld [vmem:[%s29481_s2 + $0x57c] sm:$0xf0]  ;;  %v14635_v12 = vor.u32 %v18869_v1, %v14634_v0  ;;  %v12559_v13 = vor.u32 %v18343_v2, %v12556_v3 }
  0x20   :  { %4021 = vmatpush.bf16.msra.mxu0 %v12295_v31  ;;  %v20157_v6 = vpack.c.bf16 %v47_v4, %v47_v4  ;;  %v20159_v7 = vpack.c.bf16 %v49_v5, %v49_v5  ;;  %v18447_v10 = vld [vmem:[%s29481_s2 + $0x54c] sm:$0xf]  ;;  %v14166_v14 = vld [vmem:[%s29481_s2 + $0xea0] sm:$0xf]  ;;  %v18752_v15 = vld [vmem:[%s29481_s2 + $0xed0] sm:$0xf0] }
  0x21   :  { %4034 = vmatpush.bf16.msra.mxu1 %v12711_v35  ;;  %v14582_v16 = vld [vmem:[%s29481_s2 + $0x11e0] sm:$0xf]  ;;  %v18856_v17 = vld [vmem:[%s29481_s2 + $0x1210] sm:$0xf0]  ;;  %v18330_v18 = vld [vmem:[%s29481_s2 + $0x1a4] sm:$0xf]  ;;  %v12975_v20 = vor.u32 %v18447_v10, %v12972_v11  ;;  %v14167_v21 = vor.u32 %v18752_v15, %v14166_v14 }
  0x22   :  { %4047 = vmatpush.bf16.msra.mxu2 %v13127_v36  ;;  %v12504_v19 = vld [vmem:[%s29481_s2 + $0x1d4] sm:$0xf0]  ;;  %v18434_v22 = vld [vmem:[%s29481_s2 + $0x4e4] sm:$0xf]  ;;  %v14583_v24 = vor.u32 %v18856_v17, %v14582_v16  ;;  %v18739_v27 = vld [vmem:[%s29481_s2 + $0xe68] sm:$0xf0] }
  0x23   :  { %4060 = vmatpush.bf16.msra.mxu3 %v13543_v39  ;;  %4022 = vmatmul.bf16.vlgmr.msra.gmra.mxu0 %v20135_v61  ;;  %v12920_v23 = vld [vmem:[%s29481_s2 + $0x514] sm:$0xf0]  ;;  %v12507_v25 = vor.u32 %v18330_v18, %v12504_v19  ;;  %v18843_v29 = vld [vmem:[%s29481_s2 + $0x11a8] sm:$0xf0]  ;;  %v18317_v30 = vld [vmem:[%s29481_s2 + $0x13c] sm:$0xf] }
  0x24   :  { %4066 = vmatpush.bf16.msrb.mxu0 %v14323_v40  ;;  %4035 = vmatmul.bf16.vlgmr.msra.gmra.mxu1 %v20157_v6  ;;  %v14114_v26 = vld [vmem:[%s29481_s2 + $0xe38] sm:$0xf]  ;;  %v12452_v31 = vld [vmem:[%s29481_s2 + $0x16c] sm:$0xf0]  ;;  %v12923_v32 = vor.u32 %v18434_v22, %v12920_v23  ;;  %v18421_v34 = vld [vmem:[%s29481_s2 + $0x47c] sm:$0xf] }
  0x25   :  { %4079 = vmatpush.bf16.msrb.mxu1 %v14739_v44  ;;  %4048 = vmatmul.bf16.vlgmr.msra.gmra.mxu2 %v20118_v53  ;;  %v14530_v28 = vld [vmem:[%s29481_s2 + $0x1178] sm:$0xf]  ;;  %v14115_v33 = vor.u32 %v18739_v27, %v14114_v26  ;;  %v12868_v35 = vld [vmem:[%s29481_s2 + $0x4ac] sm:$0xf0]  ;;  %v12455_v38 = vor.u32 %v18317_v30, %v12452_v31  ;;  %v18726_v40 = vld [vmem:[%s29481_s2 + $0xe00] sm:$0xf0] }
  0x26   :  { %4099 = vmatpush.bf16.msrb.mxu2 %v14791_v49  ;;  %4061 = vmatmul.bf16.vlgmr.msra.gmra.mxu3 %v20159_v7  ;;  %v52_v36 = vld [vmem:[%s29479_s0 + $0x30] sm:$0xff]  ;;  %v14531_v37 = vor.u32 %v18843_v29, %v14530_v28  ;;  %v18830_v42 = vld [vmem:[%s29481_s2 + $0x1140] sm:$0xf0]  ;;  %v12400_v44 = vld [vmem:[%s29481_s2 + $0x104] sm:$0xf0]  ;;  %v12871_v46 = vor.u32 %v18421_v34, %v12868_v35 }
  0x27   :  { %4105 = vmatpush.bf16.msrb.mxu3 %v12663_v45  ;;  %v14062_v39 = vld [vmem:[%s29481_s2 + $0xdd0] sm:$0xf]  ;;  %v18304_v43 = vld [vmem:[%s29481_s2 + $0xd4] sm:$0xf]  ;;  %v20238_v45 = vpack.c.bf16 %v52_v36, %v52_v36  ;;  %v12816_v49 = vld [vmem:[%s29481_s2 + $0x444] sm:$0xf0] }
  0x28   :  { %4067 = vmatpush.bf16.msrb.mxu0 %v14271_v57  ;;  %v14478_v41 = vld [vmem:[%s29481_s2 + $0x1110] sm:$0xf]  ;;  %v14063_v47 = vor.u32 %v18726_v40, %v14062_v39  ;;  %v18408_v48 = vld [vmem:[%s29481_s2 + $0x414] sm:$0xf]  ;;  %v12403_v51 = vor.u32 %v18304_v43, %v12400_v44  ;;  %v14010_v52 = vld [vmem:[%s29481_s2 + $0xd68] sm:$0xf] }
  0x29   :  { %4080 = vmatpush.bf16.msrb.mxu1 %v14687_v62  ;;  %v14479_v50 = vor.u32 %v18830_v42, %v14478_v41  ;;  %v18713_v54 = vld [vmem:[%s29481_s2 + $0xd98] sm:$0xf0]  ;;  %v14426_v55 = vld [vmem:[%s29481_s2 + $0x10a8] sm:$0xf]  ;;  %v18291_v57 = vld [vmem:[%s29481_s2 + $0x6c] sm:$0xf]  ;;  %v12819_v59 = vor.u32 %v18408_v48, %v12816_v49 }
  0x2a   :  { %4118 = vmatpush.bf16.msra.mxu2 %v13079_v56  ;;  %v18817_v56 = vld [vmem:[%s29481_s2 + $0x10d8] sm:$0xf0]  ;;  %v12348_v58 = vld [vmem:[%s29481_s2 + $0x9c] sm:$0xf0]  ;;  %v14011_v60 = vor.u32 %v18713_v54, %v14010_v52  ;;  %v18395_v62 = vld [vmem:[%s29481_s2 + $0x3ac] sm:$0xf] }
  0x2b   :  { %4106 = vmatpush.bf16.msrb.mxu3 %v12611_v63  ;;  %v12764_v63 = vld [vmem:[%s29481_s2 + $0x3dc] sm:$0xf0]  ;;  %v14427_v1 = vor.u32 %v18817_v56, %v14426_v55  ;;  %v12351_v2 = vor.u32 %v18291_v57, %v12348_v58  ;;  %v18700_v3 = vld [vmem:[%s29481_s2 + $0xd30] sm:$0xf0]  ;;  %v18577_v10 = vld [vmem:[%s29481_s2 + $0x95c] sm:$0xf] }
  0x2c   :  { %4068 = vmatpush.bf16.msrb.mxu0 %v14219_v9  ;;  %v13958_v0 = vld [vmem:[%s29481_s2 + $0xd00] sm:$0xf]  ;;  %v18804_v5 = vld [vmem:[%s29481_s2 + $0x1070] sm:$0xf0]  ;;  %v12296_v9 = vld [vmem:[%s29481_s2 + $0x34] sm:$0xf0]  ;;  %v12767_v14 = vor.u32 %v18395_v62, %v12764_v63 }
  0x2d   :  { %4081 = vmatpush.bf16.msrb.mxu1 %v14635_v12  ;;  %v14374_v4 = vld [vmem:[%s29481_s2 + $0x1040] sm:$0xf]  ;;  %v13492_v11 = vld [vmem:[%s29481_s2 + $0x98c] sm:$0xf0]  ;;  %v18681_v12 = vld [vmem:[%s29481_s2 + $0xc9c] sm:$0xf]  ;;  %v13959_v15 = vor.u32 %v18700_v3, %v13958_v0 }
  0x2e   :  { %4119 = vmatpush.bf16.msra.mxu2 %v13027_v8  ;;  %v18278_v8 = vld [vmem:[%s29481_s2 + $0x4] sm:$0xf]  ;;  %v18785_v16 = vld [vmem:[%s29481_s2 + $0xfdc] sm:$0xf]  ;;  %v14324_v17 = vld [vmem:[%s29481_s2 + $0x100c] sm:$0xf0]  ;;  %v14375_v19 = vor.u32 %v18804_v5, %v14374_v4 }
  0x2f   :  { %4107 = vmatpush.bf16.msrb.mxu3 %v12559_v13  ;;  %v13908_v13 = vld [vmem:[%s29481_s2 + $0xccc] sm:$0xf0]  ;;  %v50_v18 = vld [vmem:[%s29479_s0 + $0x20] sm:$0xff]  ;;  %v12712_v22 = vld [vmem:[%s29481_s2 + $0x374] sm:$0xf0]  ;;  %v14327_v29 = vor.u32 %v18785_v16, %v14324_v17 }
  0x30   :  { %4069 = vmatpush.bf16.msrb.mxu0 %v14167_v21  ;;  %v18382_v21 = vld [vmem:[%s29481_s2 + $0x344] sm:$0xf]  ;;  %v51_v23 = vld [vmem:[%s29479_s0 + $0x28] sm:$0xff]  ;;  %v18889_v26 = vld [vmem:[%s29481_s2 + $0x131c] sm:$0xf]  ;;  %v20329_v30 = vpack.c.bf16 %v50_v18, %v50_v18 }
  0x31   :  { %4082 = vmatpush.bf16.msrb.mxu1 %v14583_v24  ;;  %v13495_v24 = vor.u32 %v18577_v10, %v13492_v11  ;;  %v14740_v27 = vld [vmem:[%s29481_s2 + $0x134c] sm:$0xf0]  ;;  %v18564_v28 = vld [vmem:[%s29481_s2 + $0x8f4] sm:$0xf]  ;;  %v13440_v31 = vld [vmem:[%s29481_s2 + $0x924] sm:$0xf0]  ;;  %v12715_v34 = vor.u32 %v18382_v21, %v12712_v22  ;;  %v20340_v35 = vpack.c.bf16 %v51_v23, %v51_v23 }
  0x32   :  { %4120 = vmatpush.bf16.msra.mxu2 %v12975_v20  ;;  %v12299_v20 = vor.u32 %v18278_v8, %v12296_v9  ;;  %v18772_v36 = vld [vmem:[%s29481_s2 + $0xf74] sm:$0xf]  ;;  %v13443_v39 = vor.u32 %v18564_v28, %v13440_v31  ;;  %v14688_v42 = vld [vmem:[%s29481_s2 + $0x12e4] sm:$0xf0]  ;;  %v18551_v43 = vld [vmem:[%s29481_s2 + $0x88c] sm:$0xf] }
  0x33   :  { %4108 = vmatpush.bf16.msrb.mxu3 %v12507_v25  ;;  %v13911_v25 = vor.u32 %v18681_v12, %v13908_v13  ;;  %v18876_v41 = vld [vmem:[%s29481_s2 + $0x12b4] sm:$0xf]  ;;  %v13804_v48 = vld [vmem:[%s29481_s2 + $0xbfc] sm:$0xf0]  ;;  %v18759_v49 = vld [vmem:[%s29481_s2 + $0xf0c] sm:$0xf] }
  0x34   :  { %4070 = vmatpush.bf16.msrb.mxu0 %v14115_v33  ;;  %v13856_v33 = vld [vmem:[%s29481_s2 + $0xc64] sm:$0xf0]  ;;  %v18863_v55 = vld [vmem:[%s29481_s2 + $0x124c] sm:$0xf]  ;;  %v14636_v56 = vld [vmem:[%s29481_s2 + $0x127c] sm:$0xf0] }
  0x35   :  { %4083 = vmatpush.bf16.msrb.mxu1 %v14531_v37  ;;  %14840 = vmatmul.msk.bf16.vlgmr.msrb.gmra.mxu2 %vm4010_vm0, %v20238_v45  ;;  %v14272_v37 = vld [vmem:[%s29481_s2 + $0xfa4] sm:$0xf0]  ;;  %v18538_v57 = vld [vmem:[%s29481_s2 + $0x824] sm:$0xf]  ;;  %v13752_v62 = vld [vmem:[%s29481_s2 + $0xb94] sm:$0xf0] }
  0x36   :  { %4121 = vmatpush.bf16.msra.mxu2 %v12923_v32  ;;  %v18668_v32 = vld [vmem:[%s29481_s2 + $0xc34] sm:$0xf]  ;;  %v14275_v44 = vor.u32 %v18772_v36, %v14272_v37  ;;  %v18746_v63 = vld [vmem:[%s29481_s2 + $0xea4] sm:$0xf]  ;;  %v14168_v0 = vld [vmem:[%s29481_s2 + $0xed4] sm:$0xf0] }
  0x37   :  { %4109 = vmatpush.bf16.msrb.mxu3 %v12455_v38  ;;  %v14743_v38 = vor.u32 %v18889_v26, %v14740_v27  ;;  %v13859_v40 = vor.u32 %v18668_v32, %v13856_v33  ;;  %v18850_v4 = vld [vmem:[%s29481_s2 + $0x11e4] sm:$0xf]  ;;  %v14584_v5 = vld [vmem:[%s29481_s2 + $0x1214] sm:$0xf0]  ;;  %v18525_v8 = vld [vmem:[%s29481_s2 + $0x7bc] sm:$0xf]  ;;  %v14171_v9 = vor.u32 %v18746_v63, %v14168_v0 }
  0x38   :  { %4071 = vmatpush.bf16.msrb.mxu0 %v14063_v47  ;;  %v18655_v47 = vld [vmem:[%s29481_s2 + $0xbcc] sm:$0xf]  ;;  %v13284_v10 = vld [vmem:[%s29481_s2 + $0x7ec] sm:$0xf0]  ;;  %v18629_v11 = vld [vmem:[%s29481_s2 + $0xafc] sm:$0xf] }
  0x39   :  { %4084 = vmatpush.bf16.msrb.mxu1 %v14479_v50  ;;  %v14220_v50 = vld [vmem:[%s29481_s2 + $0xf3c] sm:$0xf0]  ;;  %v13807_v54 = vor.u32 %v18655_v47, %v13804_v48  ;;  %v13700_v12 = vld [vmem:[%s29481_s2 + $0xb2c] sm:$0xf0]  ;;  %v18733_v13 = vld [vmem:[%s29481_s2 + $0xe3c] sm:$0xf]  ;;  %v13287_v16 = vor.u32 %v18525_v8, %v13284_v10 }
  0x3a   :  { %4122 = vmatpush.bf16.msra.mxu2 %v12871_v46  ;;  %v13388_v46 = vld [vmem:[%s29481_s2 + $0x8bc] sm:$0xf0]  ;;  %v14223_v58 = vor.u32 %v18759_v49, %v14220_v50  ;;  %v13703_v17 = vor.u32 %v18629_v11, %v13700_v12  ;;  %v18837_v18 = vld [vmem:[%s29481_s2 + $0x117c] sm:$0xf]  ;;  %v13232_v22 = vld [vmem:[%s29481_s2 + $0x784] sm:$0xf0] }
  0x3b   :  { %4110 = vmatpush.bf16.msrb.mxu3 %v12403_v51  ;;  %v14691_v51 = vor.u32 %v18876_v41, %v14688_v42  ;;  %v13391_v52 = vor.u32 %v18551_v43, %v13388_v46  ;;  %v18616_v23 = vld [vmem:[%s29481_s2 + $0xa94] sm:$0xf]  ;;  %v14064_v26 = vld [vmem:[%s29481_s2 + $0xe04] sm:$0xf0]  ;;  %v18499_v33 = vld [vmem:[%s29481_s2 + $0x6ec] sm:$0xf] }
  0x3c   :  { %4072 = vmatpush.bf16.msrb.mxu0 %v14011_v60  ;;  %v18642_v60 = vld [vmem:[%s29481_s2 + $0xb64] sm:$0xf]  ;;  %v18824_v31 = vld [vmem:[%s29481_s2 + $0x1114] sm:$0xf]  ;;  %v14480_v32 = vld [vmem:[%s29481_s2 + $0x1144] sm:$0xf0] }
  0x3d   :  { %4085 = vmatpush.bf16.msrb.mxu1 %v14427_v1  ;;  %v14639_v1 = vor.u32 %v18863_v55, %v14636_v56  ;;  %v13755_v3 = vor.u32 %v18642_v60, %v13752_v62  ;;  %v13180_v36 = vld [vmem:[%s29481_s2 + $0x71c] sm:$0xf0]  ;;  %v18603_v37 = vld [vmem:[%s29481_s2 + $0xa2c] sm:$0xf]  ;;  %v14483_v41 = vor.u32 %v18824_v31, %v14480_v32  ;;  %v18486_v47 = vld [vmem:[%s29481_s2 + $0x684] sm:$0xf] }
  0x3e   :  { %4123 = vmatpush.bf16.msra.mxu2 %v12819_v59  ;;  %v13336_v59 = vld [vmem:[%s29481_s2 + $0x854] sm:$0xf0]  ;;  %v18811_v42 = vld [vmem:[%s29481_s2 + $0x10ac] sm:$0xf]  ;;  %v14428_v43 = vld [vmem:[%s29481_s2 + $0x10dc] sm:$0xf0] }
  0x3f   :  { %4111 = vmatpush.bf16.msrb.mxu3 %v12351_v2  ;;  %v13339_v2 = vor.u32 %v18538_v57, %v13336_v59  ;;  %v13128_v48 = vld [vmem:[%s29481_s2 + $0x6b4] sm:$0xf0]  ;;  %v18590_v49 = vld [vmem:[%s29481_s2 + $0x9c4] sm:$0xf]  ;;  %v12666_v55 = vld [vmem:[%s29481_s2 + $0x2e0] sm:$0xf] }
  0x40   :  { %4073 = vmatpush.bf16.msrb.mxu0 %v13959_v15  ;;  %v14587_v15 = vor.u32 %v18850_v4, %v14584_v5  ;;  %v18376_v56 = vld [vmem:[%s29481_s2 + $0x310] sm:$0xf0]  ;;  %v13082_v57 = vld [vmem:[%s29481_s2 + $0x620] sm:$0xf]  ;;  %v18902_v60 = vld [vmem:[%s29481_s2 + $0x1384] sm:$0xf]  ;;  %v13131_v63 = vor.u32 %v18486_v47, %v13128_v48 }
  0x41   :  { %4086 = vmatpush.bf16.msrb.mxu1 %v14375_v19  ;;  %v14532_v19 = vld [vmem:[%s29481_s2 + $0x11ac] sm:$0xf0]  ;;  %v18480_v59 = vld [vmem:[%s29481_s2 + $0x650] sm:$0xf0]  ;;  %v14792_v62 = vld [vmem:[%s29481_s2 + $0x13b4] sm:$0xf0]  ;;  %v12667_v5 = vor.u32 %v18376_v56, %v12666_v55 }
  0x42   :  { %4124 = vmatpush.bf16.msra.mxu2 %v12767_v14  ;;  %v14116_v14 = vld [vmem:[%s29481_s2 + $0xe6c] sm:$0xf0]  ;;  %v14535_v27 = vor.u32 %v18837_v18, %v14532_v19  ;;  %v18584_v8 = vld [vmem:[%s29481_s2 + $0x990] sm:$0xf0]  ;;  %v13083_v11 = vor.u32 %v18480_v59, %v13082_v57  ;;  %v14795_v12 = vor.u32 %v18902_v60, %v14792_v62 }
  0x43   :  { %4112 = vmatpush.bf16.msrb.mxu3 %v12299_v20  ;;  %4074 = vmatmul.bf16.vlgmr.msrb.gmra.mxu0 %v20329_v30  ;;  %v18512_v20 = vld [vmem:[%s29481_s2 + $0x754] sm:$0xf]  ;;  %v14119_v21 = vor.u32 %v18733_v13, %v14116_v14  ;;  %v12614_v13 = vld [vmem:[%s29481_s2 + $0x278] sm:$0xf]  ;;  %v18363_v14 = vld [vmem:[%s29481_s2 + $0x2a8] sm:$0xf0] }
  0x44   :  { %4131 = vmatpush.bf16.msra.mxu0 %v13495_v24  ;;  %4087 = vmatmul.bf16.vlgmr.msrb.gmra.mxu1 %v20340_v35  ;;  %v13648_v24 = vld [vmem:[%s29481_s2 + $0xac4] sm:$0xf0]  ;;  %v13235_v28 = vor.u32 %v18512_v20, %v13232_v22  ;;  %v18688_v10 = vld [vmem:[%s29481_s2 + $0xcd0] sm:$0xf0]  ;;  %v13446_v20 = vld [vmem:[%s29481_s2 + $0x8f8] sm:$0xf] }
  0x45   :  { %4144 = vmatpush.bf16.msra.mxu1 %v13911_v25  ;;  %v18720_v25 = vld [vmem:[%s29481_s2 + $0xdd4] sm:$0xf]  ;;  %v18571_v22 = vld [vmem:[%s29481_s2 + $0x928] sm:$0xf0] }
  0x46   :  { %4125 = vmatpush.bf16.msra.mxu2 %v12715_v34  ;;  %4113 = vmatmul.bf16.vlgmr.msrb.gmra.mxu3 %v20135_v61  ;;  %v14067_v34 = vor.u32 %v18720_v25, %v14064_v26  ;;  %v12562_v26 = vld [vmem:[%s29481_s2 + $0x210] sm:$0xf]  ;;  %v13447_v31 = vor.u32 %v18571_v22, %v13446_v20 }
  0x47   :  { %4157 = vmatpush.bf16.msra.mxu3 %v14327_v29  ;;  %v13651_v29 = vor.u32 %v18616_v23, %v13648_v24  ;;  %v13862_v23 = vld [vmem:[%s29481_s2 + $0xc38] sm:$0xf]  ;;  %v18675_v24 = vld [vmem:[%s29481_s2 + $0xc68] sm:$0xf0] }
  0x48   :  { %4132 = vmatpush.bf16.msra.mxu0 %v13443_v39  ;;  %v18707_v39 = vld [vmem:[%s29481_s2 + $0xd6c] sm:$0xf]  ;;  %v13863_v32 = vor.u32 %v18675_v24, %v13862_v23 }
  0x49   :  { %4145 = vmatpush.bf16.msra.mxu1 %v13859_v40  ;;  %4126 = vmatmul.bf16.vlgmr.msra.gmra.mxu2 %v20157_v6  ;;  %v14012_v40 = vld [vmem:[%s29481_s2 + $0xd9c] sm:$0xf0] }
  0x4a   :  { %4170 = vmatpush.bf16.msrb.mxu2 %v14743_v38  ;;  %v13596_v38 = vld [vmem:[%s29481_s2 + $0xa5c] sm:$0xf0]  ;;  %v14015_v50 = vor.u32 %v18707_v39, %v14012_v40 }
  0x4b   :  { %4158 = vmatpush.bf16.msra.mxu3 %v14275_v44  ;;  %v13183_v44 = vor.u32 %v18499_v33, %v13180_v36  ;;  %v13599_v46 = vor.u32 %v18603_v37, %v13596_v38  ;;  %v13394_v33 = vld [vmem:[%s29481_s2 + $0x890] sm:$0xf]  ;;  %v18662_v38 = vld [vmem:[%s29481_s2 + $0xc00] sm:$0xf0] }
  0x4c   :  { %4133 = vmatpush.bf16.msra.mxu0 %v13391_v52  ;;  %v18694_v52 = vld [vmem:[%s29481_s2 + $0xd04] sm:$0xf]  ;;  %v13810_v37 = vld [vmem:[%s29481_s2 + $0xbd0] sm:$0xf] }
  0x4d   :  { %4146 = vmatpush.bf16.msra.mxu1 %v13807_v54  ;;  %v13960_v54 = vld [vmem:[%s29481_s2 + $0xd34] sm:$0xf0] }
  0x4e   :  { %4171 = vmatpush.bf16.msrb.mxu2 %v14691_v51  ;;  %v13544_v51 = vld [vmem:[%s29481_s2 + $0x9f4] sm:$0xf0]  ;;  %v13963_v4 = vor.u32 %v18694_v52, %v13960_v54 }
  0x4f   :  { %4159 = vmatpush.bf16.msra.mxu3 %v14223_v58  ;;  %v14431_v58 = vor.u32 %v18811_v42, %v14428_v43  ;;  %v13547_v0 = vor.u32 %v18590_v49, %v13544_v51 }
  0x50   :  { %4134 = vmatpush.bf16.msra.mxu0 %v13339_v2  ;;  %v14376_v2 = vld [vmem:[%s29481_s2 + $0x1074] sm:$0xf0] }
  0x51   :  { %4147 = vmatpush.bf16.msra.mxu1 %v13755_v3  ;;  %v13498_v3 = vld [vmem:[%s29481_s2 + $0x960] sm:$0xf] }
  0x52   :  { %4172 = vmatpush.bf16.msrb.mxu2 %v14639_v1  ;;  %v18798_v1 = vld [vmem:[%s29481_s2 + $0x1044] sm:$0xf]  ;;  %v13499_v18 = vor.u32 %v18584_v8, %v13498_v3 }
  0x53   :  { %4160 = vmatpush.bf16.msra.mxu3 %v14171_v9  ;;  %v13914_v9 = vld [vmem:[%s29481_s2 + $0xca0] sm:$0xf] }
  0x54   :  { %4135 = vmatpush.bf16.msra.mxu0 %v13287_v16  ;;  %v13030_v16 = vld [vmem:[%s29481_s2 + $0x5b8] sm:$0xf]  ;;  %v13915_v19 = vor.u32 %v18688_v10, %v13914_v9 }
  0x55   :  { %4148 = vmatpush.bf16.msra.mxu1 %v13703_v17  ;;  %v18467_v17 = vld [vmem:[%s29481_s2 + $0x5e8] sm:$0xf0] }
  0x56   :  { %4173 = vmatpush.bf16.msrb.mxu2 %v14587_v15  ;;  %v14379_v15 = vor.u32 %v18798_v1, %v14376_v2  ;;  %v13031_v25 = vor.u32 %v18467_v17, %v13030_v16 }
  0x57   :  { %4161 = vmatpush.bf16.msra.mxu3 %v14119_v21  ;;  %v12615_v21 = vor.u32 %v18363_v14, %v12614_v13 }
  0x58   :  { %4136 = vmatpush.bf16.msra.mxu0 %v13235_v28  ;;  %v12978_v28 = vld [vmem:[%s29481_s2 + $0x550] sm:$0xf] }
  0x59   :  { %4149 = vmatpush.bf16.msra.mxu1 %v13651_v29  ;;  %v18454_v29 = vld [vmem:[%s29481_s2 + $0x580] sm:$0xf0] }
  0x5a   :  { %4174 = vmatpush.bf16.msrb.mxu2 %v14535_v27  ;;  %v18350_v27 = vld [vmem:[%s29481_s2 + $0x240] sm:$0xf0] }
  0x5b   :  { %4162 = vmatpush.bf16.msra.mxu3 %v14067_v34  ;;  %v18558_v34 = vld [vmem:[%s29481_s2 + $0x8c0] sm:$0xf0]  ;;  %v12563_v36 = vor.u32 %v18350_v27, %v12562_v26 }
  0x5c   :  { %4137 = vmatpush.bf16.msra.mxu0 %v13183_v44 }
  0x5d   :  { %4150 = vmatpush.bf16.msra.mxu1 %v13599_v46 }
  0x5e   :  { %4175 = vmatpush.bf16.msrb.mxu2 %v14483_v41 }
  0x5f   :  { %4163 = vmatpush.bf16.msra.mxu3 %v14015_v50 }
  0x60   :  { %4138 = vmatpush.bf16.msra.mxu0 %v13131_v63 }
  0x61   :  { %4151 = vmatpush.bf16.msra.mxu1 %v13547_v0 }
  0x62   :  { %4176 = vmatpush.bf16.msrb.mxu2 %v14431_v58 }
  0x63   :  { %4164 = vmatpush.bf16.msra.mxu3 %v13963_v4  ;;  %4139 = vmatmul.bf16.vlgmr.msra.gmra.mxu0 %v20118_v53 }
  0x64   :  { %4190 = vmatpush.bf16.msrb.mxu0 %v14795_v12 }
  0x65   :  { %4196 = vmatpush.bf16.msrb.mxu1 %v12667_v5 }
  0x66   :  { %4177 = vmatpush.bf16.msrb.mxu2 %v14379_v15  ;;  %4165 = vmatmul.bf16.vlgmr.msra.gmra.mxu3 %v20329_v30 }
  0x67   :  { %4209 = vmatpush.bf16.msrb.mxu3 %v13083_v11 }
  0x68   :  { %4222 = vmatpush.bf16.msra.mxu0 %v13499_v18 }
  0x69   :  { %4197 = vmatpush.bf16.msrb.mxu1 %v12615_v21 }
  0x6a   :  { %4235 = vmatpush.bf16.msra.mxu2 %v13915_v19 }
  0x6b   :  { %18 = vsyncpa [#allocation3], 0  ;;  %4210 = vmatpush.bf16.msrb.mxu3 %v13031_v25  ;;  %v12979_v39 = vor.u32 %v18454_v29, %v12978_v28  ;;  %4178 = vmatmul.bf16.vlgmr.msrb.gmra.mxu2 %v20340_v35  ;;  %v12510_v40 = vld [vmem:[%s29481_s2 + $0x1a8] sm:$0xf]  ;;  %v18337_v41 = vld [vmem:[%s29481_s2 + $0x1d8] sm:$0xf0]  ;;  %v13395_v44 = vor.u32 %v18558_v34, %v13394_v33  ;;  %v13811_v46 = vor.u32 %v18662_v38, %v13810_v37 }
  0x6c   :  { %4152 = vmatmul.bf16.vlgmr.msra.gmra.mxu1 %v20159_v7  ;;  %v12926_v42 = vld [vmem:[%s29481_s2 + $0x4e8] sm:$0xf]  ;;  %v18441_v43 = vld [vmem:[%s29481_s2 + $0x518] sm:$0xf0]  ;;  %4223 = vmatpush.bf16.msra.mxu0 %v13447_v31  ;;  %v12511_v48 = vor.u32 %v18337_v41, %v12510_v40  ;;  %v12458_v54 = vld [vmem:[%s29481_s2 + $0x140] sm:$0xf] }
  0x6d   :  { %v13342_v47 = vld [vmem:[%s29481_s2 + $0x828] sm:$0xf]  ;;  %4198 = vmatpush.bf16.msrb.mxu1 %v12563_v36  ;;  %v18545_v49 = vld [vmem:[%s29481_s2 + $0x858] sm:$0xf0]  ;;  %v12927_v52 = vor.u32 %v18441_v43, %v12926_v42  ;;  %v18324_v55 = vld [vmem:[%s29481_s2 + $0x170] sm:$0xf0] }
  0x6e   :  { %4236 = vmatpush.bf16.msra.mxu2 %v13863_v32  ;;  %v13758_v50 = vld [vmem:[%s29481_s2 + $0xb68] sm:$0xf]  ;;  %v18649_v51 = vld [vmem:[%s29481_s2 + $0xb98] sm:$0xf0]  ;;  %v12874_v56 = vld [vmem:[%s29481_s2 + $0x480] sm:$0xf]  ;;  %v13343_v58 = vor.u32 %v18545_v49, %v13342_v47  ;;  %v12459_v62 = vor.u32 %v18324_v55, %v12458_v54 }
  0x6f   :  { %4211 = vmatpush.bf16.msrb.mxu3 %v12979_v39  ;;  %v18428_v57 = vld [vmem:[%s29481_s2 + $0x4b0] sm:$0xf0]  ;;  %v13759_v59 = vor.u32 %v18649_v51, %v13758_v50  ;;  %v13290_v60 = vld [vmem:[%s29481_s2 + $0x7c0] sm:$0xf]  ;;  %v12406_v3 = vld [vmem:[%s29481_s2 + $0xd8] sm:$0xf] }
  0x70   :  { %4224 = vmatpush.bf16.msra.mxu0 %v13395_v44  ;;  %v18532_v63 = vld [vmem:[%s29481_s2 + $0x7f0] sm:$0xf0]  ;;  %v13706_v0 = vld [vmem:[%s29481_s2 + $0xb00] sm:$0xf]  ;;  %v12875_v2 = vor.u32 %v18428_v57, %v12874_v56  ;;  %v18311_v4 = vld [vmem:[%s29481_s2 + $0x108] sm:$0xf0] }
  0x71   :  { %4199 = vmatpush.bf16.msrb.mxu1 %v12511_v48  ;;  %v18636_v1 = vld [vmem:[%s29481_s2 + $0xb30] sm:$0xf0]  ;;  %v12822_v5 = vld [vmem:[%s29481_s2 + $0x418] sm:$0xf]  ;;  %v18415_v8 = vld [vmem:[%s29481_s2 + $0x448] sm:$0xf0]  ;;  %v13291_v9 = vor.u32 %v18532_v63, %v13290_v60  ;;  %v12407_v12 = vor.u32 %v18311_v4, %v12406_v3 }
  0x72   :  { %4237 = vmatpush.bf16.msra.mxu2 %v13811_v46  ;;  %v13707_v10 = vor.u32 %v18636_v1, %v13706_v0  ;;  %v13238_v11 = vld [vmem:[%s29481_s2 + $0x758] sm:$0xf]  ;;  %v18519_v13 = vld [vmem:[%s29481_s2 + $0x788] sm:$0xf0]  ;;  %v12823_v16 = vor.u32 %v18415_v8, %v12822_v5  ;;  %v12354_v17 = vld [vmem:[%s29481_s2 + $0x70] sm:$0xf] }
  0x73   :  { %4212 = vmatpush.bf16.msrb.mxu3 %v12927_v52  ;;  %v13654_v14 = vld [vmem:[%s29481_s2 + $0xa98] sm:$0xf]  ;;  %v18623_v15 = vld [vmem:[%s29481_s2 + $0xac8] sm:$0xf0]  ;;  %v18298_v18 = vld [vmem:[%s29481_s2 + $0xa0] sm:$0xf0]  ;;  %14841 = vmatmul.msk.bf16.vlgmr.msrb.gmra.mxu0 %vm4010_vm0, %v20238_v45  ;;  %v13239_v21 = vor.u32 %v18519_v13, %v13238_v11 }
  0x74   :  { %4225 = vmatpush.bf16.msra.mxu0 %v13343_v58  ;;  %v12770_v19 = vld [vmem:[%s29481_s2 + $0x3b0] sm:$0xf]  ;;  %v18402_v20 = vld [vmem:[%s29481_s2 + $0x3e0] sm:$0xf0]  ;;  %v13655_v22 = vor.u32 %v18623_v15, %v13654_v14  ;;  %v12355_v25 = vor.u32 %v18298_v18, %v12354_v17  ;;  %v12302_v28 = vld [vmem:[%s29481_s2 + $0x8] sm:$0xf] }
  0x75   :  { %4200 = vmatpush.bf16.msrb.mxu1 %v12459_v62  ;;  %v13186_v23 = vld [vmem:[%s29481_s2 + $0x6f0] sm:$0xf]  ;;  %v18506_v24 = vld [vmem:[%s29481_s2 + $0x720] sm:$0xf0]  ;;  %v12771_v29 = vor.u32 %v18402_v20, %v12770_v19  ;;  %v18285_v31 = vld [vmem:[%s29481_s2 + $0x38] sm:$0xf0] }
  0x76   :  { %4238 = vmatpush.bf16.msra.mxu2 %v13759_v59  ;;  %v13602_v26 = vld [vmem:[%s29481_s2 + $0xa30] sm:$0xf]  ;;  %v18610_v27 = vld [vmem:[%s29481_s2 + $0xa60] sm:$0xf0]  ;;  %v12718_v32 = vld [vmem:[%s29481_s2 + $0x348] sm:$0xf]  ;;  %v13187_v38 = vor.u32 %v18506_v24, %v13186_v23  ;;  %v12303_v43 = vor.u32 %v18285_v31, %v12302_v28 }
  0x77   :  { %4213 = vmatpush.bf16.msrb.mxu3 %v12875_v2  ;;  %v18389_v33 = vld [vmem:[%s29481_s2 + $0x378] sm:$0xf0]  ;;  %v14330_v34 = vld [vmem:[%s29481_s2 + $0xfe0] sm:$0xf]  ;;  %v18792_v36 = vld [vmem:[%s29481_s2 + $0x1010] sm:$0xf0]  ;;  %v13603_v39 = vor.u32 %v18610_v27, %v13602_v26 }
  0x78   :  { %4226 = vmatpush.bf16.msra.mxu0 %v13291_v9  ;;  %v14746_v37 = vld [vmem:[%s29481_s2 + $0x1320] sm:$0xf]  ;;  %v18896_v40 = vld [vmem:[%s29481_s2 + $0x1350] sm:$0xf0]  ;;  %v13134_v41 = vld [vmem:[%s29481_s2 + $0x688] sm:$0xf]  ;;  %v12719_v48 = vor.u32 %v18389_v33, %v12718_v32  ;;  %v14331_v49 = vor.u32 %v18792_v36, %v14330_v34 }
  0x79   :  { %4201 = vmatpush.bf16.msrb.mxu1 %v12407_v12  ;;  %v18493_v42 = vld [vmem:[%s29481_s2 + $0x6b8] sm:$0xf0]  ;;  %v13550_v44 = vld [vmem:[%s29481_s2 + $0x9c8] sm:$0xf]  ;;  %v18370_v47 = vld [vmem:[%s29481_s2 + $0x2e4] sm:$0xf]  ;;  %v14747_v54 = vor.u32 %v18896_v40, %v14746_v37 }
  0x7a   :  { %4239 = vmatpush.bf16.msra.mxu2 %v13707_v10  ;;  %v18597_v46 = vld [vmem:[%s29481_s2 + $0x9f8] sm:$0xf0]  ;;  %v12668_v50 = vld [vmem:[%s29481_s2 + $0x314] sm:$0xf0]  ;;  %v14798_v51 = vld [vmem:[%s29481_s2 + $0x1388] sm:$0xf]  ;;  %v13135_v57 = vor.u32 %v18493_v42, %v13134_v41 }
  0x7b   :  { %4214 = vmatpush.bf16.msrb.mxu3 %v12823_v16  ;;  %v18909_v52 = vld [vmem:[%s29481_s2 + $0x13b8] sm:$0xf0]  ;;  %v14278_v55 = vld [vmem:[%s29481_s2 + $0xf78] sm:$0xf]  ;;  %v18779_v56 = vld [vmem:[%s29481_s2 + $0xfa8] sm:$0xf0]  ;;  %v13551_v58 = vor.u32 %v18597_v46, %v13550_v44  ;;  %v12671_v62 = vor.u32 %v18370_v47, %v12668_v50 }
  0x7c   :  { %4227 = vmatpush.bf16.msra.mxu0 %v13239_v21  ;;  %v14694_v59 = vld [vmem:[%s29481_s2 + $0x12b8] sm:$0xf]  ;;  %v18883_v60 = vld [vmem:[%s29481_s2 + $0x12e8] sm:$0xf0]  ;;  %v14799_v63 = vor.u32 %v18909_v52, %v14798_v51  ;;  %v18474_v0 = vld [vmem:[%s29481_s2 + $0x624] sm:$0xf]  ;;  %v14279_v2 = vor.u32 %v18779_v56, %v14278_v55 }
  0x7d   :  { %4202 = vmatpush.bf16.msrb.mxu1 %v12355_v25  ;;  %v13084_v1 = vld [vmem:[%s29481_s2 + $0x654] sm:$0xf0]  ;;  %v18357_v3 = vld [vmem:[%s29481_s2 + $0x27c] sm:$0xf]  ;;  %v12616_v4 = vld [vmem:[%s29481_s2 + $0x2ac] sm:$0xf0]  ;;  %v14695_v5 = vor.u32 %v18883_v60, %v14694_v59 }
  0x7e   :  { %4240 = vmatpush.bf16.msra.mxu2 %v13655_v22  ;;  %v14226_v8 = vld [vmem:[%s29481_s2 + $0xf10] sm:$0xf]  ;;  %v18766_v9 = vld [vmem:[%s29481_s2 + $0xf40] sm:$0xf0]  ;;  %v13087_v10 = vor.u32 %v18474_v0, %v13084_v1  ;;  %v12619_v13 = vor.u32 %v18357_v3, %v12616_v4  ;;  %v18461_v14 = vld [vmem:[%s29481_s2 + $0x5bc] sm:$0xf] }
  0x7f   :  { %4215 = vmatpush.bf16.msrb.mxu3 %v12771_v29  ;;  %v14642_v11 = vld [vmem:[%s29481_s2 + $0x1250] sm:$0xf]  ;;  %v18870_v12 = vld [vmem:[%s29481_s2 + $0x1280] sm:$0xf0]  ;;  %v14227_v16 = vor.u32 %v18766_v9, %v14226_v8  ;;  %v18344_v17 = vld [vmem:[%s29481_s2 + $0x214] sm:$0xf] }
  0x80   :  { %4228 = vmatpush.bf16.msra.mxu0 %v13187_v38  ;;  %v13032_v15 = vld [vmem:[%s29481_s2 + $0x5ec] sm:$0xf0]  ;;  %v12564_v18 = vld [vmem:[%s29481_s2 + $0x244] sm:$0xf0]  ;;  %v14643_v19 = vor.u32 %v18870_v12, %v14642_v11  ;;  %v18753_v21 = vld [vmem:[%s29481_s2 + $0xed8] sm:$0xf0] }
  0x81   :  { %4203 = vmatpush.bf16.msrb.mxu1 %v12303_v43  ;;  %v14174_v20 = vld [vmem:[%s29481_s2 + $0xea8] sm:$0xf]  ;;  %v13035_v22 = vor.u32 %v18461_v14, %v13032_v15  ;;  %v18857_v24 = vld [vmem:[%s29481_s2 + $0x1218] sm:$0xf0]  ;;  %v12567_v25 = vor.u32 %v18344_v17, %v12564_v18  ;;  %v18448_v26 = vld [vmem:[%s29481_s2 + $0x554] sm:$0xf] }
  0x82   :  { %4241 = vmatpush.bf16.msra.mxu2 %v13603_v39  ;;  %v14590_v23 = vld [vmem:[%s29481_s2 + $0x11e8] sm:$0xf]  ;;  %v14175_v28 = vor.u32 %v18753_v21, %v14174_v20  ;;  %v18331_v29 = vld [vmem:[%s29481_s2 + $0x1ac] sm:$0xf]  ;;  %v12512_v31 = vld [vmem:[%s29481_s2 + $0x1dc] sm:$0xf0] }
  0x83   :  { %4216 = vmatpush.bf16.msrb.mxu3 %v12719_v48  ;;  %v12980_v27 = vld [vmem:[%s29481_s2 + $0x584] sm:$0xf0]  ;;  %v14591_v32 = vor.u32 %v18857_v24, %v14590_v23  ;;  %v14122_v33 = vld [vmem:[%s29481_s2 + $0xe40] sm:$0xf]  ;;  %v18740_v34 = vld [vmem:[%s29481_s2 + $0xe70] sm:$0xf0]  ;;  %v12515_v39 = vor.u32 %v18331_v29, %v12512_v31 }
  0x84   :  { %4229 = vmatpush.bf16.msra.mxu0 %v13135_v57  ;;  %4204 = vmatmul.bf16.vlgmr.msrb.gmra.mxu1 %v20135_v61  ;;  %v12983_v36 = vor.u32 %v18448_v26, %v12980_v27  ;;  %v14538_v37 = vld [vmem:[%s29481_s2 + $0x1180] sm:$0xf]  ;;  %v18844_v38 = vld [vmem:[%s29481_s2 + $0x11b0] sm:$0xf0]  ;;  %v18435_v40 = vld [vmem:[%s29481_s2 + $0x4ec] sm:$0xf]  ;;  %v14123_v42 = vor.u32 %v18740_v34, %v14122_v33 }
  0x85   :  { %4248 = vmatpush.bf16.msra.mxu1 %v14331_v49  ;;  %v12928_v41 = vld [vmem:[%s29481_s2 + $0x51c] sm:$0xf0]  ;;  %v18318_v43 = vld [vmem:[%s29481_s2 + $0x144] sm:$0xf]  ;;  %v12460_v44 = vld [vmem:[%s29481_s2 + $0x174] sm:$0xf0]  ;;  %v14539_v46 = vor.u32 %v18844_v38, %v14538_v37 }
  0x86   :  { %4242 = vmatpush.bf16.msra.mxu2 %v13551_v58  ;;  %4217 = vmatmul.bf16.vlgmr.msrb.gmra.mxu3 %v20157_v6  ;;  %v14070_v47 = vld [vmem:[%s29481_s2 + $0xdd8] sm:$0xf]  ;;  %v18727_v48 = vld [vmem:[%s29481_s2 + $0xe08] sm:$0xf0]  ;;  %v12931_v49 = vor.u32 %v18435_v40, %v12928_v41  ;;  %v12463_v52 = vor.u32 %v18318_v43, %v12460_v44  ;;  %v18305_v57 = vld [vmem:[%s29481_s2 + $0xdc] sm:$0xf] }
  0x87   :  { %4261 = vmatpush.bf16.msra.mxu3 %v14747_v54  ;;  %4230 = vmatmul.bf16.vlgmr.msra.gmra.mxu0 %v20118_v53  ;;  %v14486_v50 = vld [vmem:[%s29481_s2 + $0x1118] sm:$0xf]  ;;  %v18831_v51 = vld [vmem:[%s29481_s2 + $0x1148] sm:$0xf0]  ;;  %v18422_v54 = vld [vmem:[%s29481_s2 + $0x484] sm:$0xf]  ;;  %v14071_v56 = vor.u32 %v18727_v48, %v14070_v47 }
  0x88   :  { %4281 = vmatpush.bf16.msrb.mxu0 %v14799_v63  ;;  %v12876_v55 = vld [vmem:[%s29481_s2 + $0x4b4] sm:$0xf0]  ;;  %v12408_v58 = vld [vmem:[%s29481_s2 + $0x10c] sm:$0xf0]  ;;  %v14487_v59 = vor.u32 %v18831_v51, %v14486_v50  ;;  %v18818_v1 = vld [vmem:[%s29481_s2 + $0x10e0] sm:$0xf0] }
  0x89   :  { %4249 = vmatpush.bf16.msra.mxu1 %v14279_v2  ;;  %4243 = vmatmul.bf16.vlgmr.msra.gmra.mxu2 %v20159_v7  ;;  %v14018_v60 = vld [vmem:[%s29481_s2 + $0xd70] sm:$0xf]  ;;  %v12879_v63 = vor.u32 %v18422_v54, %v12876_v55  ;;  %v12411_v2 = vor.u32 %v18305_v57, %v12408_v58  ;;  %v18409_v3 = vld [vmem:[%s29481_s2 + $0x41c] sm:$0xf]  ;;  %v18292_v8 = vld [vmem:[%s29481_s2 + $0x74] sm:$0xf] }
  0x8a   :  { %4287 = vmatpush.bf16.msrb.mxu2 %v12671_v62  ;;  %v18714_v62 = vld [vmem:[%s29481_s2 + $0xda0] sm:$0xf0]  ;;  %v14434_v0 = vld [vmem:[%s29481_s2 + $0x10b0] sm:$0xf]  ;;  %v12356_v9 = vld [vmem:[%s29481_s2 + $0xa4] sm:$0xf0] }
  0x8b   :  { %4262 = vmatpush.bf16.msra.mxu3 %v14695_v5  ;;  %v12824_v4 = vld [vmem:[%s29481_s2 + $0x44c] sm:$0xf0]  ;;  %v14019_v5 = vor.u32 %v18714_v62, %v14018_v60  ;;  %v14435_v11 = vor.u32 %v18818_v1, %v14434_v0  ;;  %v18701_v12 = vld [vmem:[%s29481_s2 + $0xd38] sm:$0xf0]  ;;  %v13500_v17 = vld [vmem:[%s29481_s2 + $0x994] sm:$0xf0] }
  0x8c   :  { %4300 = vmatpush.bf16.msra.mxu0 %v13087_v10  ;;  %v13966_v10 = vld [vmem:[%s29481_s2 + $0xd08] sm:$0xf]  ;;  %v18805_v14 = vld [vmem:[%s29481_s2 + $0x1078] sm:$0xf0]  ;;  %v12827_v15 = vor.u32 %v18409_v3, %v12824_v4  ;;  %v18682_v18 = vld [vmem:[%s29481_s2 + $0xca4] sm:$0xf] }
  0x8d   :  { %4250 = vmatpush.bf16.msra.mxu1 %v14227_v16  ;;  %v18578_v16 = vld [vmem:[%s29481_s2 + $0x964] sm:$0xf]  ;;  %v13916_v20 = vld [vmem:[%s29481_s2 + $0xcd4] sm:$0xf0]  ;;  %v18396_v21 = vld [vmem:[%s29481_s2 + $0x3b4] sm:$0xf]  ;;  %v13967_v23 = vor.u32 %v18701_v12, %v13966_v10 }
  0x8e   :  { %4288 = vmatpush.bf16.msrb.mxu2 %v12619_v13  ;;  %v14382_v13 = vld [vmem:[%s29481_s2 + $0x1048] sm:$0xf]  ;;  %v18279_v24 = vld [vmem:[%s29481_s2 + $0xc] sm:$0xf]  ;;  %v13503_v27 = vor.u32 %v18578_v16, %v13500_v17  ;;  %v14332_v29 = vld [vmem:[%s29481_s2 + $0x1014] sm:$0xf0]  ;;  %v13919_v31 = vor.u32 %v18682_v18, %v13916_v20 }
  0x8f   :  { %4263 = vmatpush.bf16.msra.mxu3 %v14643_v19  ;;  %v12359_v19 = vor.u32 %v18292_v8, %v12356_v9  ;;  %v14383_v26 = vor.u32 %v18805_v14, %v14382_v13  ;;  %v18565_v33 = vld [vmem:[%s29481_s2 + $0x8fc] sm:$0xf]  ;;  %v13448_v34 = vld [vmem:[%s29481_s2 + $0x92c] sm:$0xf0]  ;;  %v12720_v40 = vld [vmem:[%s29481_s2 + $0x37c] sm:$0xf0] }
  0x90   :  { %4301 = vmatpush.bf16.msra.mxu0 %v13035_v22  ;;  %v12772_v22 = vld [vmem:[%s29481_s2 + $0x3e4] sm:$0xf0]  ;;  %v13864_v38 = vld [vmem:[%s29481_s2 + $0xc6c] sm:$0xf0]  ;;  %v14748_v43 = vld [vmem:[%s29481_s2 + $0x1354] sm:$0xf0]  ;;  %v13451_v44 = vor.u32 %v18565_v33, %v13448_v34 }
  0x91   :  { %4251 = vmatpush.bf16.msra.mxu1 %v14175_v28  ;;  %v18786_v28 = vld [vmem:[%s29481_s2 + $0xfe4] sm:$0xf]  ;;  %v14280_v47 = vld [vmem:[%s29481_s2 + $0xfac] sm:$0xf0]  ;;  %v18552_v50 = vld [vmem:[%s29481_s2 + $0x894] sm:$0xf] }
  0x92   :  { %4289 = vmatpush.bf16.msrb.mxu2 %v12567_v25  ;;  %v12304_v25 = vld [vmem:[%s29481_s2 + $0x3c] sm:$0xf0]  ;;  %v14335_v41 = vor.u32 %v18786_v28, %v14332_v29  ;;  %v13396_v51 = vld [vmem:[%s29481_s2 + $0x8c4] sm:$0xf0]  ;;  %v18656_v54 = vld [vmem:[%s29481_s2 + $0xbd4] sm:$0xf] }
  0x93   :  { %4264 = vmatpush.bf16.msra.mxu3 %v14591_v32  ;;  %v12775_v32 = vor.u32 %v18396_v21, %v12772_v22  ;;  %v12307_v37 = vor.u32 %v18279_v24, %v12304_v25  ;;  %v13812_v55 = vld [vmem:[%s29481_s2 + $0xc04] sm:$0xf0]  ;;  %v18877_v57 = vld [vmem:[%s29481_s2 + $0x12bc] sm:$0xf]  ;;  %v14696_v58 = vld [vmem:[%s29481_s2 + $0x12ec] sm:$0xf0] }
  0x94   :  { %4302 = vmatpush.bf16.msra.mxu0 %v12983_v36  ;;  %v18669_v36 = vld [vmem:[%s29481_s2 + $0xc3c] sm:$0xf]  ;;  %v18760_v60 = vld [vmem:[%s29481_s2 + $0xf14] sm:$0xf]  ;;  %v14228_v62 = vld [vmem:[%s29481_s2 + $0xf44] sm:$0xf0]  ;;  %v13815_v0 = vor.u32 %v18656_v54, %v13812_v55  ;;  %v14699_v3 = vor.u32 %v18877_v57, %v14696_v58 }
  0x95   :  { %4252 = vmatpush.bf16.msra.mxu1 %v14123_v42  ;;  %v18890_v42 = vld [vmem:[%s29481_s2 + $0x1324] sm:$0xf]  ;;  %v13867_v48 = vor.u32 %v18669_v36, %v13864_v38  ;;  %v18539_v1 = vld [vmem:[%s29481_s2 + $0x82c] sm:$0xf]  ;;  %v14231_v8 = vor.u32 %v18760_v60, %v14228_v62  ;;  %v18864_v9 = vld [vmem:[%s29481_s2 + $0x1254] sm:$0xf] }
  0x96   :  { %4290 = vmatpush.bf16.msrb.mxu2 %v12515_v39  ;;  %v18383_v39 = vld [vmem:[%s29481_s2 + $0x34c] sm:$0xf]  ;;  %v14644_v10 = vld [vmem:[%s29481_s2 + $0x1284] sm:$0xf0]  ;;  %v14176_v14 = vld [vmem:[%s29481_s2 + $0xedc] sm:$0xf0] }
  0x97   :  { %4265 = vmatpush.bf16.msra.mxu3 %v14539_v46  ;;  %14842 = vmatmul.msk.bf16.vlgmr.msrb.gmra.mxu0 %vm4010_vm0, %v20238_v45  ;;  %v18773_v46 = vld [vmem:[%s29481_s2 + $0xf7c] sm:$0xf]  ;;  %v18643_v4 = vld [vmem:[%s29481_s2 + $0xb6c] sm:$0xf]  ;;  %v18526_v16 = vld [vmem:[%s29481_s2 + $0x7c4] sm:$0xf]  ;;  %v14647_v18 = vor.u32 %v18864_v9, %v14644_v10 }
  0x98   :  { %4303 = vmatpush.bf16.msra.mxu0 %v12931_v49  ;;  %v12723_v49 = vor.u32 %v18383_v39, %v12720_v40  ;;  %v18747_v13 = vld [vmem:[%s29481_s2 + $0xeac] sm:$0xf]  ;;  %v13292_v17 = vld [vmem:[%s29481_s2 + $0x7f4] sm:$0xf0]  ;;  %v14592_v24 = vld [vmem:[%s29481_s2 + $0x121c] sm:$0xf0] }
  0x99   :  { %4253 = vmatpush.bf16.msra.mxu1 %v14071_v56  ;;  %v14283_v56 = vor.u32 %v18773_v46, %v14280_v47  ;;  %v13708_v20 = vld [vmem:[%s29481_s2 + $0xb34] sm:$0xf0]  ;;  %v14179_v22 = vor.u32 %v18747_v13, %v14176_v14  ;;  %v18617_v34 = vld [vmem:[%s29481_s2 + $0xa9c] sm:$0xf]  ;;  %v13656_v36 = vld [vmem:[%s29481_s2 + $0xacc] sm:$0xf0] }
  0x9a   :  { %4291 = vmatpush.bf16.msrb.mxu2 %v12463_v52  ;;  %v14751_v52 = vor.u32 %v18890_v42, %v14748_v43  ;;  %v14124_v28 = vld [vmem:[%s29481_s2 + $0xe74] sm:$0xf0]  ;;  %v18838_v39 = vld [vmem:[%s29481_s2 + $0x1184] sm:$0xf]  ;;  %v18721_v43 = vld [vmem:[%s29481_s2 + $0xddc] sm:$0xf]  ;;  %v13659_v46 = vor.u32 %v18617_v34, %v13656_v36 }
  0x9b   :  { %4266 = vmatpush.bf16.msra.mxu3 %v14487_v59  ;;  %v13399_v59 = vor.u32 %v18552_v50, %v13396_v51  ;;  %v14540_v40 = vld [vmem:[%s29481_s2 + $0x11b4] sm:$0xf0]  ;;  %v18604_v51 = vld [vmem:[%s29481_s2 + $0xa34] sm:$0xf]  ;;  %v18825_v57 = vld [vmem:[%s29481_s2 + $0x111c] sm:$0xf] }
  0x9c   :  { %4304 = vmatpush.bf16.msra.mxu0 %v12879_v63  ;;  %v20981_v63 = vld [vmem:[%s29482_s3] sm:$0xff]  ;;  %v14543_v50 = vor.u32 %v18838_v39, %v14540_v40  ;;  %v14488_v58 = vld [vmem:[%s29481_s2 + $0x114c] sm:$0xf0]  ;;  %v18708_v60 = vld [vmem:[%s29481_s2 + $0xd74] sm:$0xf]  ;;  %vm9551_vm1 = vcmask 261120  }
  0x9d   :  { %4254 = vmatpush.bf16.msra.mxu1 %v14019_v5  ;;  %v13760_v5 = vld [vmem:[%s29481_s2 + $0xb9c] sm:$0xf0]  ;;  %v14020_v62 = vld [vmem:[%s29481_s2 + $0xda4] sm:$0xf0]  ;;  %v14491_v9 = vor.u32 %v18825_v57, %v14488_v58  ;;  %v18799_v34 = vld [vmem:[%s29481_s2 + $0x104c] sm:$0xf] }
  0x9e   :  { %4292 = vmatpush.bf16.msrb.mxu2 %v12411_v2  ;;  %v13344_v2 = vld [vmem:[%s29481_s2 + $0x85c] sm:$0xf0]  ;;  %v12674_v10 = vld [vmem:[%s29481_s2 + $0x2e8] sm:$0xf]  ;;  %v14023_v14 = vor.u32 %v18708_v60, %v14020_v62  ;;  %v18689_v40 = vld [vmem:[%s29481_s2 + $0xcd8] sm:$0xf0] }
  0x9f   :  { %4267 = vmatpush.bf16.msra.mxu3 %v14435_v11  ;;  %v750_v11 = vperm.slane %v20981_v63, 0  ;;  %v13347_v12 = vor.u32 %v18539_v1, %v13344_v2  ;;  %v14384_v36 = vld [vmem:[%s29481_s2 + $0x107c] sm:$0xf0]  ;;  %v13922_v39 = vld [vmem:[%s29481_s2 + $0xca8] sm:$0xf]  ;;  %vm12065_vm2 = vcmask 1041408  }
  0xa0   :  { %4305 = vmatpush.bf16.msra.mxu0 %v12827_v15  ;;  %v13763_v15 = vor.u32 %v18643_v4, %v13760_v5  ;;  %v4023_v21 = vpop.f32.mrf.mxu0  ;;  %v18591_v4 = vld [vmem:[%s29481_s2 + $0x9cc] sm:$0xf]  ;;  %v13552_v5 = vld [vmem:[%s29481_s2 + $0x9fc] sm:$0xf0]  ;;  %v12986_v57 = vld [vmem:[%s29481_s2 + $0x558] sm:$0xf] }
  0xa1   :  { %4255 = vmatpush.bf16.msra.mxu1 %v13967_v23  ;;  %v18851_v23 = vld [vmem:[%s29481_s2 + $0x11ec] sm:$0xf]  ;;  %v4024_v25 = vadd.f32 %v4023_v21, %v750_v11  ;;  %v13090_v21 = vld [vmem:[%s29481_s2 + $0x628] sm:$0xf]  ;;  %vm12061_vm3 = vcmask 31744  }
  0xa2   :  { %4293 = vmatpush.bf16.msrb.mxu2 %v12359_v19  ;;  %v18630_v19 = vld [vmem:[%s29481_s2 + $0xb04] sm:$0xf]  ;;  %v14595_v33 = vor.u32 %v18851_v23, %v14592_v24  ;;  %v18903_v11 = vld [vmem:[%s29481_s2 + $0x138c] sm:$0xf] }
  0xa3   :  { %4268 = vmatpush.bf16.msra.mxu3 %v14383_v26  ;;  %v13295_v26 = vor.u32 %v18526_v16, %v13292_v17  ;;  %v13711_v29 = vor.u32 %v18630_v19, %v13708_v20  ;;  %v18812_v16 = vld [vmem:[%s29481_s2 + $0x10b4] sm:$0xf]  ;;  %v14436_v17 = vld [vmem:[%s29481_s2 + $0x10e4] sm:$0xf0]  ;;  %v18695_v19 = vld [vmem:[%s29481_s2 + $0xd0c] sm:$0xf] }
  0xa4   :  { %4306 = vmatpush.bf16.msra.mxu0 %v12775_v32  ;;  %4256 = vmatmul.bf16.vlgmr.msra.gmra.mxu1 %v20329_v30  ;;  %v13240_v32 = vld [vmem:[%s29481_s2 + $0x78c] sm:$0xf0]  ;;  %v13968_v20 = vld [vmem:[%s29481_s2 + $0xd3c] sm:$0xf0]  ;;  %v18455_v58 = vld [vmem:[%s29481_s2 + $0x588] sm:$0xf0] }
  0xa5   :  { %4313 = vmatpush.bf16.msrb.mxu1 %v13503_v27  ;;  %v18734_v27 = vld [vmem:[%s29481_s2 + $0xe44] sm:$0xf]  ;;  %v18559_v60 = vld [vmem:[%s29481_s2 + $0x8c8] sm:$0xf0] }
  0xa6   :  { %4294 = vmatpush.bf16.msrb.mxu2 %v12307_v37  ;;  %4269 = vmatmul.bf16.vlgmr.msra.gmra.mxu3 %v20340_v35  ;;  %v4036_v37 = vpop.f32.mrf.mxu1  ;;  %v14127_v38 = vor.u32 %v18734_v27, %v14124_v28  ;;  %v18585_v27 = vld [vmem:[%s29481_s2 + $0x998] sm:$0xf0] }
  0xa7   :  { %4326 = vmatpush.bf16.msrb.mxu3 %v13919_v31  ;;  %v18513_v31 = vld [vmem:[%s29481_s2 + $0x75c] sm:$0xf] }
  0xa8   :  { %4307 = vmatpush.bf16.msra.mxu0 %v12723_v49  ;;  %v13243_v42 = vor.u32 %v18513_v31, %v13240_v32  ;;  %v4049_v47 = vpop.f32.mrf.mxu2  ;;  %v13188_v49 = vld [vmem:[%s29481_s2 + $0x724] sm:$0xf0]  ;;  %v4025_v54 = vpop.f32.mrf.mxu0  ;;  %v12622_v31 = vld [vmem:[%s29481_s2 + $0x280] sm:$0xf]  ;;  %v13971_v32 = vor.u32 %v18695_v19, %v13968_v20  ;;  %v18325_v19 = vld [vmem:[%s29481_s2 + $0x178] sm:$0xf0] }
  0xa9   :  { %4314 = vmatpush.bf16.msrb.mxu1 %v13451_v44  ;;  %4295 = vmatmul.bf16.vlgmr.msrb.gmra.mxu2 %v20135_v61  ;;  %v14072_v44 = vld [vmem:[%s29481_s2 + $0xe0c] sm:$0xf0]  ;;  %v4062_v1 = vpop.f32.mrf.mxu3 }
  0xaa   :  { %4339 = vmatpush.bf16.msra.mxu2 %v14335_v41  ;;  %v4037_v41 = vadd.f32 %v4036_v37, %v4024_v25  ;;  %v18481_v25 = vld [vmem:[%s29481_s2 + $0x658] sm:$0xf0] }
  0xab   :  { %4327 = vmatpush.bf16.msrb.mxu3 %v13867_v48  ;;  %4308 = vmatmul.bf16.vlgmr.msra.gmra.mxu0 %v20157_v6  ;;  %v18500_v48 = vld [vmem:[%s29481_s2 + $0x6f4] sm:$0xf]  ;;  %v13091_v37 = vor.u32 %v18481_v25, %v13090_v21  ;;  %v18650_v25 = vld [vmem:[%s29481_s2 + $0xba0] sm:$0xf0] }
  0xac   :  { %4352 = vmatpush.bf16.msrb.mxu0 %v14751_v52  ;;  %v13604_v52 = vld [vmem:[%s29481_s2 + $0xa64] sm:$0xf0]  ;;  %v4050_v55 = vadd.f32 %v4049_v47, %v4037_v41  ;;  %v13038_v41 = vld [vmem:[%s29481_s2 + $0x5c0] sm:$0xf] }
  0xad   :  { %4315 = vmatpush.bf16.msrb.mxu1 %v13399_v59  ;;  %v13191_v59 = vor.u32 %v18500_v48, %v13188_v49  ;;  %v13607_v2 = vor.u32 %v18604_v51, %v13604_v52  ;;  %v14387_v48 = vor.u32 %v18799_v34, %v14384_v36  ;;  %v13923_v49 = vor.u32 %v18689_v40, %v13922_v39  ;;  %v18351_v51 = vld [vmem:[%s29481_s2 + $0x248] sm:$0xf0]  ;;  %v12414_v34 = vld [vmem:[%s29481_s2 + $0xe0] sm:$0xf]  ;;  %v18312_v36 = vld [vmem:[%s29481_s2 + $0x110] sm:$0xf0] }
  0xae   :  { %4340 = vmatpush.bf16.msra.mxu2 %v14283_v56  ;;  %v14075_v56 = vor.u32 %v18721_v43, %v14072_v44  ;;  %v4038_v13 = vpop.f32.mrf.mxu1  ;;  %v18468_v43 = vld [vmem:[%s29481_s2 + $0x5f0] sm:$0xf0]  ;;  %v13454_v44 = vld [vmem:[%s29481_s2 + $0x900] sm:$0xf] }
  0xaf   :  { %4328 = vmatpush.bf16.msrb.mxu3 %v13815_v0  ;;  %v18487_v0 = vld [vmem:[%s29481_s2 + $0x68c] sm:$0xf]  ;;  %v13039_v52 = vor.u32 %v18468_v43, %v13038_v41  ;;  %v13350_v13 = vld [vmem:[%s29481_s2 + $0x830] sm:$0xf]  ;;  %v18637_v41 = vld [vmem:[%s29481_s2 + $0xb38] sm:$0xf0] }
  0xb0   :  { %4353 = vmatpush.bf16.msrb.mxu0 %v14699_v3  ;;  %v13136_v3 = vld [vmem:[%s29481_s2 + $0x6bc] sm:$0xf0]  ;;  %v4051_v24 = vpop.f32.mrf.mxu2  ;;  %v751_v43 = vperm.slane %v20981_v63, 1 }
  0xb1   :  { %4316 = vmatpush.bf16.msrb.mxu1 %v13347_v12  ;;  %v14800_v12 = vld [vmem:[%s29481_s2 + $0x13bc] sm:$0xf0]  ;;  %v13766_v24 = vld [vmem:[%s29481_s2 + $0xb70] sm:$0xf] }
  0xb2   :  { %4341 = vmatpush.bf16.msra.mxu2 %v14231_v8  ;;  %v21094_v8 = vadd.f32 %v4062_v1, %v4050_v55  ;;  %v14803_v23 = vor.u32 %v18903_v11, %v14800_v12  ;;  %v13870_v55 = vld [vmem:[%s29481_s2 + $0xc40] sm:$0xf]  ;;  %v12934_v11 = vld [vmem:[%s29481_s2 + $0x4f0] sm:$0xf]  ;;  %v18442_v12 = vld [vmem:[%s29481_s2 + $0x520] sm:$0xf0] }
  0xb3   :  { %4329 = vmatpush.bf16.msrb.mxu3 %v13763_v15  ;;  %v18377_v15 = vld [vmem:[%s29481_s2 + $0x318] sm:$0xf0] }
  0xb4   :  { %4354 = vmatpush.bf16.msrb.mxu0 %v14647_v18  ;;  %v13139_v18 = vor.u32 %v18487_v0, %v13136_v3  ;;  %v12675_v28 = vor.u32 %v18377_v15, %v12674_v10  ;;  %v18338_v3 = vld [vmem:[%s29481_s2 + $0x1e0] sm:$0xf0]  ;;  %v18663_v10 = vld [vmem:[%s29481_s2 + $0xc08] sm:$0xf0] }
  0xb5   :  { %4317 = vmatpush.bf16.msrb.mxu1 %v13295_v26  ;;  %v13506_v26 = vld [vmem:[%s29481_s2 + $0x968] sm:$0xf] }
  0xb6   :  { %4342 = vmatpush.bf16.msra.mxu2 %v14179_v22  ;;  %v13555_v22 = vor.u32 %v18591_v4, %v13552_v5  ;;  %v12987_v4 = vor.u32 %v18455_v58, %v12986_v57  ;;  %v13662_v57 = vld [vmem:[%s29481_s2 + $0xaa0] sm:$0xf]  ;;  %v18624_v58 = vld [vmem:[%s29481_s2 + $0xad0] sm:$0xf0] }
  0xb7   :  { %4330 = vmatpush.bf16.msrb.mxu3 %v13711_v29  ;;  %v14439_v29 = vor.u32 %v18812_v16, %v14436_v17 }
  0xb8   :  { %4355 = vmatpush.bf16.msrb.mxu0 %v14595_v33  ;;  %v18364_v33 = vld [vmem:[%s29481_s2 + $0x2b0] sm:$0xf0]  ;;  %v4101_v62 = vpop.f32.mrf.mxu2 }
  0xb9   :  { %4318 = vmatpush.bf16.msrb.mxu1 %v13243_v42  ;;  %v4064_v42 = vpop.f32.mrf.mxu3  ;;  %v12623_v47 = vor.u32 %v18364_v33, %v12622_v31  ;;  %v13767_v33 = vor.u32 %v18650_v25, %v13766_v24  ;;  %v18897_v24 = vld [vmem:[%s29481_s2 + $0x1358] sm:$0xf0]  ;;  %v14806_v25 = vld [vmem:[%s29481_s2 + $0x1390] sm:$0xf] }
  0xba   :  { %4343 = vmatpush.bf16.msra.mxu2 %v14127_v38  ;;  %v13507_v38 = vor.u32 %v18585_v27, %v13506_v26  ;;  %v12882_v26 = vld [vmem:[%s29481_s2 + $0x488] sm:$0xf]  ;;  %v12830_v42 = vld [vmem:[%s29481_s2 + $0x420] sm:$0xf] }
  0xbb   :  { %4331 = vmatpush.bf16.msrb.mxu3 %v13659_v46  ;;  %v18572_v46 = vld [vmem:[%s29481_s2 + $0x930] sm:$0xf0]  ;;  %v13298_v27 = vld [vmem:[%s29481_s2 + $0x7c8] sm:$0xf] }
  0xbc   :  { %4356 = vmatpush.bf16.msrb.mxu0 %v14543_v50  ;;  %v12570_v50 = vld [vmem:[%s29481_s2 + $0x218] sm:$0xf]  ;;  %v13455_v54 = vor.u32 %v18572_v46, %v13454_v44  ;;  %v18416_v44 = vld [vmem:[%s29481_s2 + $0x450] sm:$0xf0]  ;;  %v13246_v46 = vld [vmem:[%s29481_s2 + $0x760] sm:$0xf] }
  0xbd   :  { %4319 = vmatpush.bf16.msrb.mxu1 %v13191_v59  ;;  %v13402_v59 = vld [vmem:[%s29481_s2 + $0x898] sm:$0xf]  ;;  %v12571_v0 = vor.u32 %v18351_v51, %v12570_v50  ;;  %v18299_v51 = vld [vmem:[%s29481_s2 + $0xa8] sm:$0xf0] }
  0xbe   :  { %4344 = vmatpush.bf16.msra.mxu2 %v14075_v56  ;;  %v18676_v56 = vld [vmem:[%s29481_s2 + $0xc70] sm:$0xf0]  ;;  %v13403_v5 = vor.u32 %v18559_v60, %v13402_v59  ;;  %v12362_v50 = vld [vmem:[%s29481_s2 + $0x78] sm:$0xf] }
  0xbf   :  { %4332 = vmatpush.bf16.msrb.mxu3 %v13607_v2  ;;  %v13871_v1 = vor.u32 %v18676_v56, %v13870_v55  ;;  %v12518_v2 = vld [vmem:[%s29481_s2 + $0x1b0] sm:$0xf]  ;;  %v12831_v55 = vor.u32 %v18416_v44, %v12830_v42  ;;  %v12778_v59 = vld [vmem:[%s29481_s2 + $0x3b8] sm:$0xf]  ;;  %v18475_v42 = vld [vmem:[%s29481_s2 + $0x62c] sm:$0xf] }
  0xc0   :  { %4357 = vmatpush.bf16.msrb.mxu0 %v14491_v9  ;;  %v13818_v9 = vld [vmem:[%s29481_s2 + $0xbd8] sm:$0xf]  ;;  %v12519_v15 = vor.u32 %v18338_v3, %v12518_v2  ;;  %v4075_v16 = vpop.f32.mrf.mxu0  ;;  %v18507_v2 = vld [vmem:[%s29481_s2 + $0x728] sm:$0xf0]  ;;  %v13092_v44 = vld [vmem:[%s29481_s2 + $0x65c] sm:$0xf0] }
  0xc1   :  { %4320 = vmatpush.bf16.msrb.mxu1 %v13139_v18  ;;  %v13819_v17 = vor.u32 %v18663_v10, %v13818_v9  ;;  %v12466_v18 = vld [vmem:[%s29481_s2 + $0x148] sm:$0xf]  ;;  %v4076_v20 = vadd.f32 %v4075_v16, %v21094_v8  ;;  %v4088_v21 = vpop.f32.mrf.mxu1  ;;  %v18429_v8 = vld [vmem:[%s29481_s2 + $0x4b8] sm:$0xf0]  ;;  %v18286_v9 = vld [vmem:[%s29481_s2 + $0x40] sm:$0xf0] }
  0xc2   :  { %4345 = vmatpush.bf16.msra.mxu2 %v14023_v14  ;;  %v18546_v14 = vld [vmem:[%s29481_s2 + $0x860] sm:$0xf0]  ;;  %v12883_v39 = vor.u32 %v18429_v8, %v12882_v26 }
  0xc3   :  { %4333 = vmatpush.bf16.msrb.mxu3 %v13555_v22  ;;  %v12935_v22 = vor.u32 %v18442_v12, %v12934_v11  ;;  %v4089_v31 = vadd.f32 %v4088_v21, %v4076_v20  ;;  %v13663_v11 = vor.u32 %v18624_v58, %v13662_v57  ;;  %v14338_v12 = vld [vmem:[%s29481_s2 + $0xfe8] sm:$0xf]  ;;  %v13142_v20 = vld [vmem:[%s29481_s2 + $0x690] sm:$0xf]  ;;  %v18494_v21 = vld [vmem:[%s29481_s2 + $0x6c0] sm:$0xf0] }
  0xc4   :  { %4358 = vmatpush.bf16.msrb.mxu0 %v14439_v29  ;;  %4321 = vmatmul.bf16.vlgmr.msrb.gmra.mxu1 %v20118_v53  ;;  %v4103_v29 = vpop.f32.mrf.mxu2  ;;  %v18910_v26 = vld [vmem:[%s29481_s2 + $0x13c0] sm:$0xf0]  ;;  %v12624_v57 = vld [vmem:[%s29481_s2 + $0x2b4] sm:$0xf0] }
  0xc5   :  { %4372 = vmatpush.bf16.msra.mxu1 %v14803_v23  ;;  %v13351_v23 = vor.u32 %v18546_v14, %v13350_v13  ;;  %v18793_v13 = vld [vmem:[%s29481_s2 + $0x1018] sm:$0xf0]  ;;  %v13610_v14 = vld [vmem:[%s29481_s2 + $0xa38] sm:$0xf]  ;;  %v18462_v58 = vld [vmem:[%s29481_s2 + $0x5c4] sm:$0xf] }
  0xc6   :  { %4346 = vmatpush.bf16.msra.mxu2 %v13971_v32  ;;  %4334 = vmatmul.bf16.vlgmr.msrb.gmra.mxu3 %v20159_v7  ;;  %v12467_v32 = vor.u32 %v18325_v19, %v12466_v18  ;;  %v12726_v18 = vld [vmem:[%s29481_s2 + $0x350] sm:$0xf]  ;;  %v18390_v19 = vld [vmem:[%s29481_s2 + $0x380] sm:$0xf0]  ;;  %v14339_v8 = vor.u32 %v18793_v13, %v14338_v12  ;;  %v18449_v12 = vld [vmem:[%s29481_s2 + $0x55c] sm:$0xf] }
  0xc7   :  { %4378 = vmatpush.bf16.msra.mxu3 %v12675_v28  ;;  %v18533_v28 = vld [vmem:[%s29481_s2 + $0x7f8] sm:$0xf0]  ;;  %v12988_v13 = vld [vmem:[%s29481_s2 + $0x58c] sm:$0xf0] }
  0xc8   :  { %4359 = vmatpush.bf16.msrb.mxu0 %v14387_v48  ;;  %v13299_v40 = vor.u32 %v18533_v28, %v13298_v27  ;;  %v12415_v48 = vor.u32 %v18312_v36, %v12414_v34  ;;  %v14286_v28 = vld [vmem:[%s29481_s2 + $0xf80] sm:$0xf]  ;;  %v13558_v34 = vld [vmem:[%s29481_s2 + $0x9d0] sm:$0xf]  ;;  %v18598_v36 = vld [vmem:[%s29481_s2 + $0xa00] sm:$0xf0] }
  0xc9   :  { %4391 = vmatpush.bf16.msrb.mxu1 %v13091_v37  ;;  %4347 = vmatmul.bf16.vlgmr.msra.gmra.mxu2 %v20329_v30  ;;  %v13714_v37 = vld [vmem:[%s29481_s2 + $0xb08] sm:$0xf] }
  0xca   :  { %4404 = vmatpush.bf16.msrb.mxu2 %v13507_v38  ;;  %v21248_v38 = vadd.f32 %v4101_v62, %v4089_v31  ;;  %v4090_v62 = vpop.f32.mrf.mxu1  ;;  %v12727_v31 = vor.u32 %v18390_v19, %v12726_v18  ;;  %v14130_v18 = vld [vmem:[%s29481_s2 + $0xe48] sm:$0xf]  ;;  %v18741_v19 = vld [vmem:[%s29481_s2 + $0xe78] sm:$0xf0] }
  0xcb   :  { %4379 = vmatpush.bf16.msra.mxu3 %v12623_v47  ;;  %4360 = vmatmul.bf16.vlgmr.msrb.gmra.mxu0 %v20340_v35  ;;  %v18520_v47 = vld [vmem:[%s29481_s2 + $0x790] sm:$0xf0]  ;;  %v18871_v62 = vld [vmem:[%s29481_s2 + $0x1288] sm:$0xf0] }
  0xcc   :  { %4417 = vmatpush.bf16.msra.mxu0 %v13923_v49  ;;  %v13715_v49 = vor.u32 %v18637_v41, %v13714_v37  ;;  %v13247_v56 = vor.u32 %v18520_v47, %v13246_v46  ;;  %v4127_v3 = vpop.f32.mrf.mxu2  ;;  %v12676_v41 = vld [vmem:[%s29481_s2 + $0x31c] sm:$0xf0]  ;;  %v18884_v47 = vld [vmem:[%s29481_s2 + $0x12f0] sm:$0xf0] }
  0xcd   :  { %4392 = vmatpush.bf16.msrb.mxu1 %v13039_v52  ;;  %v4077_v52 = vpop.f32.mrf.mxu0  ;;  %v14702_v46 = vld [vmem:[%s29481_s2 + $0x12c0] sm:$0xf] }
  0xce   :  { %4405 = vmatpush.bf16.msrb.mxu2 %v13455_v54  ;;  %v4114_v54 = vpop.f32.mrf.mxu3  ;;  %v18767_v52 = vld [vmem:[%s29481_s2 + $0xf48] sm:$0xf0] }
  0xcf   :  { %4380 = vmatpush.bf16.msra.mxu3 %v12571_v0  ;;  %v4115_v60 = vadd.f32 %v4114_v54, %v751_v43  ;;  %v18403_v0 = vld [vmem:[%s29481_s2 + $0x3e8] sm:$0xf0]  ;;  %v13095_v54 = vor.u32 %v18475_v42, %v13092_v44  ;;  %v12884_v42 = vld [vmem:[%s29481_s2 + $0x4bc] sm:$0xf0]  ;;  %v18832_v44 = vld [vmem:[%s29481_s2 + $0x1150] sm:$0xf0] }
  0xd0   :  { %4418 = vmatpush.bf16.msra.mxu0 %v13871_v1  ;;  %v13194_v1 = vld [vmem:[%s29481_s2 + $0x6f8] sm:$0xf] }
  0xd1   :  { %4393 = vmatpush.bf16.msrb.mxu1 %v12987_v4  ;;  %v12363_v4 = vor.u32 %v18299_v51, %v12362_v50  ;;  %v21298_v10 = vadd.f32 %v4127_v3, %v4115_v60  ;;  %v13195_v16 = vor.u32 %v18507_v2, %v13194_v1  ;;  %v14234_v51 = vld [vmem:[%s29481_s2 + $0xf18] sm:$0xf]  ;;  %v14182_v2 = vld [vmem:[%s29481_s2 + $0xeb0] sm:$0xf]  ;;  %v18754_v3 = vld [vmem:[%s29481_s2 + $0xee0] sm:$0xf0] }
  0xd2   :  { %4406 = vmatpush.bf16.msrb.mxu2 %v13403_v5  ;;  %v12310_v5 = vld [vmem:[%s29481_s2 + $0x10] sm:$0xf]  ;;  %v14650_v60 = vld [vmem:[%s29481_s2 + $0x1258] sm:$0xf] }
  0xd3   :  { %4381 = vmatpush.bf16.msra.mxu3 %v12519_v15  ;;  %v12779_v15 = vor.u32 %v18403_v0, %v12778_v59  ;;  %v13040_v59 = vld [vmem:[%s29481_s2 + $0x5f4] sm:$0xf0]  ;;  %v14235_v0 = vor.u32 %v18767_v52, %v14234_v51 }
  0xd4   :  { %4419 = vmatpush.bf16.msra.mxu0 %v13819_v17  ;;  %14843 = vmatmul.msk.bf16.vlgmr.msra.gmra.mxu1 %vm4010_vm0, %v20238_v45  ;;  %v18611_v17 = vld [vmem:[%s29481_s2 + $0xa68] sm:$0xf0]  ;;  %v4129_v43 = vpop.f32.mrf.mxu2 }
  0xd5   :  { %4394 = vmatpush.bf16.msrb.mxu1 %v12935_v22  ;;  %v14754_v22 = vld [vmem:[%s29481_s2 + $0x1328] sm:$0xf]  ;;  %v13611_v27 = vor.u32 %v18611_v17, %v13610_v14  ;;  %v14598_v14 = vld [vmem:[%s29481_s2 + $0x11f0] sm:$0xf]  ;;  %v14494_v43 = vld [vmem:[%s29481_s2 + $0x1120] sm:$0xf] }
  0xd6   :  { %4407 = vmatpush.bf16.msrb.mxu2 %v13351_v23  ;;  %v12311_v23 = vor.u32 %v18286_v9, %v12310_v5  ;;  %v4116_v29 = vpop.f32.mrf.mxu3  ;;  %v14755_v37 = vor.u32 %v18897_v24, %v14754_v22  ;;  %v14651_v5 = vor.u32 %v18871_v62, %v14650_v60  ;;  %v18345_v9 = vld [vmem:[%s29481_s2 + $0x21c] sm:$0xf]  ;;  %v12520_v24 = vld [vmem:[%s29481_s2 + $0x1e4] sm:$0xf0]  ;;  %v12832_v60 = vld [vmem:[%s29481_s2 + $0x454] sm:$0xf0] }
  0xd7   :  { %4382 = vmatpush.bf16.msra.mxu3 %v12467_v32  ;;  %v13143_v32 = vor.u32 %v18494_v21, %v13142_v20  ;;  %v12991_v21 = vor.u32 %v18449_v12, %v12988_v13  ;;  %v14131_v29 = vor.u32 %v18741_v19, %v14130_v18  ;;  %v14442_v62 = vld [vmem:[%s29481_s2 + $0x10b8] sm:$0xf]  ;;  %v12780_v18 = vld [vmem:[%s29481_s2 + $0x3ec] sm:$0xf0] }
  0xd8   :  { %4420 = vmatpush.bf16.msra.mxu0 %v13767_v33  ;;  %v18780_v33 = vld [vmem:[%s29481_s2 + $0xfb0] sm:$0xf0]  ;;  %v14390_v19 = vld [vmem:[%s29481_s2 + $0x1050] sm:$0xf] }
  0xd9   :  { %4395 = vmatpush.bf16.msrb.mxu1 %v12883_v39  ;;  %v14807_v39 = vor.u32 %v18910_v26, %v14806_v25  ;;  %v18436_v25 = vld [vmem:[%s29481_s2 + $0x4f4] sm:$0xf] }
  0xda   :  { %4408 = vmatpush.bf16.msrb.mxu2 %v13299_v40  ;;  %v18371_v40 = vld [vmem:[%s29481_s2 + $0x2ec] sm:$0xf] }
  0xdb   :  { %4383 = vmatpush.bf16.msra.mxu3 %v12415_v48  ;;  %v14287_v48 = vor.u32 %v18780_v33, %v14286_v28  ;;  %v12679_v50 = vor.u32 %v18371_v40, %v12676_v41  ;;  %v18845_v28 = vld [vmem:[%s29481_s2 + $0x11b8] sm:$0xf0]  ;;  %v18423_v40 = vld [vmem:[%s29481_s2 + $0x48c] sm:$0xf] }
  0xdc   :  { %4421 = vmatpush.bf16.msra.mxu0 %v13715_v49  ;;  %v13559_v49 = vor.u32 %v18598_v36, %v13558_v34  ;;  %v12887_v51 = vor.u32 %v18423_v40, %v12884_v42  ;;  %v14340_v40 = vld [vmem:[%s29481_s2 + $0x101c] sm:$0xf0] }
  0xdd   :  { %4396 = vmatpush.bf16.msrb.mxu1 %v12831_v55  ;;  %v14703_v55 = vor.u32 %v18884_v47, %v14702_v46 }
  0xde   :  { %4409 = vmatpush.bf16.msrb.mxu2 %v13247_v56  ;;  %v18358_v56 = vld [vmem:[%s29481_s2 + $0x284] sm:$0xf] }
  0xdf   :  { %4384 = vmatpush.bf16.msra.mxu3 %v12363_v4  ;;  %v12627_v1 = vor.u32 %v18358_v56, %v12624_v57  ;;  %v13043_v4 = vor.u32 %v18462_v58, %v13040_v59  ;;  %v12416_v56 = vld [vmem:[%s29481_s2 + $0x114] sm:$0xf0]  ;;  %v18410_v57 = vld [vmem:[%s29481_s2 + $0x424] sm:$0xf] }
  0xe0   :  { %4422 = vmatpush.bf16.msra.mxu0 %v13663_v11  ;;  %v12572_v11 = vld [vmem:[%s29481_s2 + $0x24c] sm:$0xf0]  ;;  %v4140_v20 = vpop.f32.mrf.mxu0  ;;  %v12835_v12 = vor.u32 %v18410_v57, %v12832_v60  ;;  %v14288_v57 = vld [vmem:[%s29481_s2 + $0xfb4] sm:$0xf0]  ;;  %v18657_v60 = vld [vmem:[%s29481_s2 + $0xbdc] sm:$0xf] }
  0xe1   :  { %4397 = vmatpush.bf16.msrb.mxu1 %v12779_v15  ;;  %v18858_v15 = vld [vmem:[%s29481_s2 + $0x1220] sm:$0xf0]  ;;  %v12575_v17 = vor.u32 %v18345_v9, %v12572_v11  ;;  %v4141_v26 = vadd.f32 %v4140_v20, %v21298_v10  ;;  %v14078_v10 = vld [vmem:[%s29481_s2 + $0xde0] sm:$0xf]  ;;  %v18579_v9 = vld [vmem:[%s29481_s2 + $0x96c] sm:$0xf] }
  0xe2   :  { %4410 = vmatpush.bf16.msrb.mxu2 %v13195_v16  ;;  %v14183_v16 = vor.u32 %v18754_v3, %v14182_v2  ;;  %v14599_v22 = vor.u32 %v18858_v15, %v14598_v14  ;;  %v13974_v2 = vld [vmem:[%s29481_s2 + $0xd10] sm:$0xf]  ;;  %v13508_v11 = vld [vmem:[%s29481_s2 + $0x99c] sm:$0xf0]  ;;  %v18293_v14 = vld [vmem:[%s29481_s2 + $0x7c] sm:$0xf] }
  0xe3   :  { %4385 = vmatpush.bf16.msra.mxu3 %v12311_v23  ;;  %v18332_v23 = vld [vmem:[%s29481_s2 + $0x1b4] sm:$0xf]  ;;  %v12364_v15 = vld [vmem:[%s29481_s2 + $0xac] sm:$0xf0]  ;;  %v18806_v20 = vld [vmem:[%s29481_s2 + $0x1080] sm:$0xf0] }
  0xe4   :  { %4423 = vmatpush.bf16.msra.mxu0 %v13611_v27  ;;  %v14546_v27 = vld [vmem:[%s29481_s2 + $0x1188] sm:$0xf] }
  0xe5   :  { %4398 = vmatpush.bf16.msrb.mxu1 %v12727_v31  ;;  %v12523_v31 = vor.u32 %v18332_v23, %v12520_v24  ;;  %v14547_v34 = vor.u32 %v18845_v28, %v14546_v27  ;;  %v13924_v23 = vld [vmem:[%s29481_s2 + $0xcdc] sm:$0xf0]  ;;  %v13511_v24 = vor.u32 %v18579_v9, %v13508_v11  ;;  %v18280_v27 = vld [vmem:[%s29481_s2 + $0x14] sm:$0xf]  ;;  %v18761_v11 = vld [vmem:[%s29481_s2 + $0xf1c] sm:$0xf] }
  0xe6   :  { %4411 = vmatpush.bf16.msrb.mxu2 %v13143_v32  ;;  %4386 = vmatmul.bf16.vlgmr.msra.gmra.mxu3 %v20135_v61  ;;  %v18728_v32 = vld [vmem:[%s29481_s2 + $0xe10] sm:$0xf0] }
  0xe7   :  { %4430 = vmatpush.bf16.msrb.mxu3 %v14339_v8  ;;  %v12936_v8 = vld [vmem:[%s29481_s2 + $0x524] sm:$0xf0]  ;;  %v14079_v46 = vor.u32 %v18728_v32, %v14078_v10  ;;  %v18384_v32 = vld [vmem:[%s29481_s2 + $0x354] sm:$0xf] }
  0xe8   :  { %4424 = vmatpush.bf16.msra.mxu0 %v13559_v49  ;;  %4399 = vmatmul.bf16.vlgmr.msrb.gmra.mxu1 %v20157_v6  ;;  %v12939_v33 = vor.u32 %v18436_v25, %v12936_v8  ;;  %v18715_v49 = vld [vmem:[%s29481_s2 + $0xda8] sm:$0xf0]  ;;  %v12367_v25 = vor.u32 %v18293_v14, %v12364_v15  ;;  %v13456_v8 = vld [vmem:[%s29481_s2 + $0x934] sm:$0xf0]  ;;  %v12312_v10 = vld [vmem:[%s29481_s2 + $0x44] sm:$0xf0] }
  0xe9   :  { %4443 = vmatpush.bf16.msra.mxu1 %v14755_v37  ;;  %4412 = vmatmul.bf16.vlgmr.msrb.gmra.mxu2 %v20118_v53  ;;  %v4153_v36 = vpop.f32.mrf.mxu1  ;;  %v18319_v37 = vld [vmem:[%s29481_s2 + $0x14c] sm:$0xf]  ;;  %v4166_v52 = vpop.f32.mrf.mxu3  ;;  %v14652_v14 = vld [vmem:[%s29481_s2 + $0x128c] sm:$0xf0]  ;;  %v18644_v15 = vld [vmem:[%s29481_s2 + $0xb74] sm:$0xf] }
  0xea   :  { %4463 = vmatpush.bf16.msra.mxu2 %v14807_v39  ;;  %v12468_v39 = vld [vmem:[%s29481_s2 + $0x17c] sm:$0xf0]  ;;  %v4154_v41 = vadd.f32 %v4153_v36, %v4141_v26  ;;  %v18566_v26 = vld [vmem:[%s29481_s2 + $0x904] sm:$0xf] }
  0xeb   :  { %4431 = vmatpush.bf16.msrb.mxu3 %v14287_v48  ;;  %4425 = vmatmul.bf16.vlgmr.msra.gmra.mxu0 %v20159_v7  ;;  %v12471_v47 = vor.u32 %v18319_v37, %v12468_v39  ;;  %v14026_v48 = vld [vmem:[%s29481_s2 + $0xd78] sm:$0xf]  ;;  %v18787_v39 = vld [vmem:[%s29481_s2 + $0xfec] sm:$0xf] }
  0xec   :  { %4469 = vmatpush.bf16.msrb.mxu0 %v12679_v50  ;;  %v4142_v50 = vpop.f32.mrf.mxu0  ;;  %v4167_v58 = vadd.f32 %v4166_v52, %v4154_v41  ;;  %v18891_v41 = vld [vmem:[%s29481_s2 + $0x132c] sm:$0xf]  ;;  %v13404_v52 = vld [vmem:[%s29481_s2 + $0x8cc] sm:$0xf0] }
  0xed   :  { %4444 = vmatpush.bf16.msra.mxu1 %v14703_v55  ;;  %v18306_v55 = vld [vmem:[%s29481_s2 + $0xe4] sm:$0xf]  ;;  %v14343_v50 = vor.u32 %v18787_v39, %v14340_v40  ;;  %v14132_v39 = vld [vmem:[%s29481_s2 + $0xe7c] sm:$0xf0]  ;;  %v18839_v40 = vld [vmem:[%s29481_s2 + $0x118c] sm:$0xf] }
  0xee   :  { %4482 = vmatpush.bf16.msrb.mxu2 %v13095_v54  ;;  %v14495_v54 = vor.u32 %v18832_v44, %v14494_v43  ;;  %v4179_v59 = vpop.f32.mrf.mxu2  ;;  %v14756_v43 = vld [vmem:[%s29481_s2 + $0x135c] sm:$0xf0]  ;;  %v18670_v44 = vld [vmem:[%s29481_s2 + $0xc44] sm:$0xf] }
  0xef   :  { %4432 = vmatpush.bf16.msrb.mxu3 %v14235_v0  ;;  %v18819_v0 = vld [vmem:[%s29481_s2 + $0x10e8] sm:$0xf0]  ;;  %v4180_v3 = vadd.f32 %v4179_v59, %v4167_v58  ;;  %v18878_v58 = vld [vmem:[%s29481_s2 + $0x12c4] sm:$0xf]  ;;  %v14704_v59 = vld [vmem:[%s29481_s2 + $0x12f4] sm:$0xf0] }
  0xf0   :  { %4470 = vmatpush.bf16.msrb.mxu0 %v12627_v1  ;;  %v14027_v1 = vor.u32 %v18715_v49, %v14026_v48  ;;  %v14443_v13 = vor.u32 %v18819_v0, %v14442_v62  ;;  %v12315_v48 = vor.u32 %v18280_v27, %v12312_v10  ;;  %v13820_v62 = vld [vmem:[%s29481_s2 + $0xc0c] sm:$0xf0]  ;;  %v13716_v27 = vld [vmem:[%s29481_s2 + $0xb3c] sm:$0xf0]  ;;  %v18514_v10 = vld [vmem:[%s29481_s2 + $0x764] sm:$0xf] }
  0xf1   :  { %4445 = vmatpush.bf16.msra.mxu1 %v14651_v5  ;;  %v18702_v5 = vld [vmem:[%s29481_s2 + $0xd40] sm:$0xf0]  ;;  %v13823_v9 = vor.u32 %v18657_v60, %v13820_v62  ;;  %v13612_v60 = vld [vmem:[%s29481_s2 + $0xa6c] sm:$0xf0] }
  0xf2   :  { %4483 = vmatpush.bf16.msrb.mxu2 %v13043_v4  ;;  %v12419_v4 = vor.u32 %v18306_v55, %v12416_v56  ;;  %v18774_v56 = vld [vmem:[%s29481_s2 + $0xf84] sm:$0xf] }
  0xf3   :  { %4433 = vmatpush.bf16.msrb.mxu3 %v14183_v16  ;;  %v18397_v16 = vld [vmem:[%s29481_s2 + $0x3bc] sm:$0xf] }
  0xf4   :  { %4471 = vmatpush.bf16.msrb.mxu0 %v12575_v17  ;;  %v4155_v17 = vpop.f32.mrf.mxu1  ;;  %v4192_v28 = vpop.f32.mrf.mxu0 }
  0xf5   :  { %4446 = vmatpush.bf16.msra.mxu1 %v14599_v22  ;;  %v18683_v22 = vld [vmem:[%s29481_s2 + $0xcac] sm:$0xf]  ;;  %v21547_v36 = vadd.f32 %v4192_v28, %v4180_v3  ;;  %v13352_v3 = vld [vmem:[%s29481_s2 + $0x864] sm:$0xf0]  ;;  %v752_v28 = vperm.slane %v20981_v63, 2 }
  0xf6   :  { %4484 = vmatpush.bf16.msrb.mxu2 %v12991_v21  ;;  %v13975_v21 = vor.u32 %v18702_v5, %v13974_v2  ;;  %v13927_v37 = vor.u32 %v18683_v22, %v13924_v23  ;;  %v4181_v42 = vpop.f32.mrf.mxu2  ;;  %v18540_v2 = vld [vmem:[%s29481_s2 + $0x834] sm:$0xf]  ;;  %v14707_v5 = vor.u32 %v18878_v58, %v14704_v59  ;;  %v18735_v63 = vld [vmem:[%s29481_s2 + $0xe4c] sm:$0xf]  ;;  %v14496_v58 = vld [vmem:[%s29481_s2 + $0x1154] sm:$0xf0] }
  0xf7   :  { %4434 = vmatpush.bf16.msrb.mxu3 %v14131_v29  ;;  %v12783_v29 = vor.u32 %v18397_v16, %v12780_v18  ;;  %v13768_v16 = vld [vmem:[%s29481_s2 + $0xba4] sm:$0xf0]  ;;  %v13355_v17 = vor.u32 %v18540_v2, %v13352_v3  ;;  %v14548_v42 = vld [vmem:[%s29481_s2 + $0x11bc] sm:$0xf0]  ;;  %v18605_v59 = vld [vmem:[%s29481_s2 + $0xa3c] sm:$0xf] }
  0xf8   :  { %4472 = vmatpush.bf16.msrb.mxu0 %v12523_v31  ;;  %v14391_v31 = vor.u32 %v18806_v20, %v14390_v19  ;;  %v18527_v19 = vld [vmem:[%s29481_s2 + $0x7cc] sm:$0xf]  ;;  %v13300_v20 = vld [vmem:[%s29481_s2 + $0x7fc] sm:$0xf0]  ;;  %v13771_v23 = vor.u32 %v18644_v15, %v13768_v16  ;;  %v13144_v3 = vld [vmem:[%s29481_s2 + $0x6c4] sm:$0xf0] }
  0xf9   :  { %4447 = vmatpush.bf16.msra.mxu1 %v14547_v34  ;;  %14844 = vmatmul.msk.bf16.vlgmr.msra.gmra.mxu2 %vm4010_vm0, %v20238_v45  ;;  %v4168_v34 = vpop.f32.mrf.mxu3  ;;  %v18904_v15 = vld [vmem:[%s29481_s2 + $0x1394] sm:$0xf]  ;;  %v14808_v16 = vld [vmem:[%s29481_s2 + $0x13c4] sm:$0xf0] }
  0xfa   :  { %4485 = vmatpush.bf16.msrb.mxu2 %v12939_v33  ;;  %v12728_v33 = vld [vmem:[%s29481_s2 + $0x384] sm:$0xf0] }
  0xfb   :  { %4435 = vmatpush.bf16.msrb.mxu3 %v14079_v46  ;;  %v13872_v46 = vld [vmem:[%s29481_s2 + $0xc74] sm:$0xf0]  ;;  %v12731_v49 = vor.u32 %v18384_v32, %v12728_v33 }
  0xfc   :  { %4473 = vmatpush.bf16.msrb.mxu0 %v12471_v47  ;;  %v13459_v47 = vor.u32 %v18566_v26, %v13456_v8  ;;  %v13875_v55 = vor.u32 %v18670_v44, %v13872_v46  ;;  %v14600_v26 = vld [vmem:[%s29481_s2 + $0x1224] sm:$0xf0]  ;;  %v18631_v8 = vld [vmem:[%s29481_s2 + $0xb0c] sm:$0xf]  ;;  %v13248_v32 = vld [vmem:[%s29481_s2 + $0x794] sm:$0xf0] }
  0xfd   :  { %4448 = vmatpush.bf16.msra.mxu1 %v14495_v54  ;;  %v14759_v54 = vor.u32 %v18891_v41, %v14756_v43  ;;  %v18618_v43 = vld [vmem:[%s29481_s2 + $0xaa4] sm:$0xf]  ;;  %v13664_v44 = vld [vmem:[%s29481_s2 + $0xad4] sm:$0xf0] }
  0xfe   :  { %4486 = vmatpush.bf16.msrb.mxu2 %v12887_v51  ;;  %v18553_v51 = vld [vmem:[%s29481_s2 + $0x89c] sm:$0xf] }
  0xff   :  { %4436 = vmatpush.bf16.msrb.mxu3 %v14027_v1  ;;  %v13407_v0 = vor.u32 %v18553_v51, %v13404_v52  ;;  %v14291_v1 = vor.u32 %v18774_v56, %v14288_v57  ;;  %v14551_v51 = vor.u32 %v18839_v40, %v14548_v42  ;;  %v13667_v52 = vor.u32 %v18618_v43, %v13664_v44  ;;  %v18826_v56 = vld [vmem:[%s29481_s2 + $0x1124] sm:$0xf]  ;;  %v12630_v44 = vld [vmem:[%s29481_s2 + $0x288] sm:$0xf] }
 0x100   :  { %4474 = vmatpush.bf16.msrb.mxu0 %v12419_v4  ;;  %v4194_v4 = vpop.f32.mrf.mxu0  ;;  %v18586_v40 = vld [vmem:[%s29481_s2 + $0x9a0] sm:$0xf0] }
 0x101   :  { %4449 = vmatpush.bf16.msra.mxu1 %v14443_v13  ;;  %v18865_v13 = vld [vmem:[%s29481_s2 + $0x125c] sm:$0xf]  ;;  %v4205_v41 = vpop.f32.mrf.mxu1  ;;  %v18690_v43 = vld [vmem:[%s29481_s2 + $0xce0] sm:$0xf0] }
 0x102   :  { %4487 = vmatpush.bf16.msrb.mxu2 %v12835_v12  ;;  %v14236_v12 = vld [vmem:[%s29481_s2 + $0xf4c] sm:$0xf0]  ;;  %v14655_v22 = vor.u32 %v18865_v13, %v14652_v14  ;;  %v4206_v46 = vadd.f32 %v4205_v41, %v752_v28  ;;  %v18709_v4 = vld [vmem:[%s29481_s2 + $0xd7c] sm:$0xf]  ;;  %v13615_v13 = vor.u32 %v18605_v59, %v13612_v60  ;;  %v18482_v28 = vld [vmem:[%s29481_s2 + $0x660] sm:$0xf0] }
 0x103   :  { %4437 = vmatpush.bf16.msrb.mxu3 %v13975_v21  ;;  %v14239_v18 = vor.u32 %v18761_v11, %v14236_v12  ;;  %v18748_v21 = vld [vmem:[%s29481_s2 + $0xeb4] sm:$0xf]  ;;  %v14499_v12 = vor.u32 %v18826_v56, %v14496_v58  ;;  %v18813_v14 = vld [vmem:[%s29481_s2 + $0x10bc] sm:$0xf]  ;;  %v13930_v41 = vld [vmem:[%s29481_s2 + $0xcb0] sm:$0xf] }
 0x104   :  { %4475 = vmatpush.bf16.msrb.mxu0 %v12367_v25  ;;  %v18852_v25 = vld [vmem:[%s29481_s2 + $0x11f4] sm:$0xf]  ;;  %v18573_v58 = vld [vmem:[%s29481_s2 + $0x938] sm:$0xf0]  ;;  %v13878_v59 = vld [vmem:[%s29481_s2 + $0xc48] sm:$0xf] }
 0x105   :  { %4450 = vmatpush.bf16.msra.mxu1 %v14391_v31  ;;  %v14603_v34 = vor.u32 %v18852_v25, %v14600_v26  ;;  %v18378_v25 = vld [vmem:[%s29481_s2 + $0x320] sm:$0xf0] }
 0x106   :  { %4488 = vmatpush.bf16.msrb.mxu2 %v12783_v29  ;;  %4438 = vmatmul.bf16.vlgmr.msrb.gmra.mxu3 %v20329_v30  ;;  %v13303_v29 = vor.u32 %v18527_v19, %v13300_v20  ;;  %v14444_v19 = vld [vmem:[%s29481_s2 + $0x10ec] sm:$0xf0]  ;;  %v18592_v20 = vld [vmem:[%s29481_s2 + $0x9d4] sm:$0xf] }
 0x107   :  { %4495 = vmatpush.bf16.msra.mxu3 %v13511_v24  ;;  %v14184_v24 = vld [vmem:[%s29481_s2 + $0xee4] sm:$0xf0] }
 0x108   :  { %4476 = vmatpush.bf16.msrb.mxu0 %v12315_v48  ;;  %4451 = vmatmul.bf16.vlgmr.msra.gmra.mxu1 %v20340_v35  ;;  %v14187_v31 = vor.u32 %v18748_v21, %v14184_v24  ;;  %v4231_v33 = vpop.f32.mrf.mxu0  ;;  %v14135_v48 = vor.u32 %v18735_v63, %v14132_v39  ;;  %v13560_v21 = vld [vmem:[%s29481_s2 + $0xa04] sm:$0xf0]  ;;  %v12682_v24 = vld [vmem:[%s29481_s2 + $0x2f0] sm:$0xf] }
 0x109   :  { %4508 = vmatpush.bf16.msrb.mxu1 %v13927_v37  ;;  %v13719_v37 = vor.u32 %v18631_v8, %v13716_v27  ;;  %v4218_v57 = vpop.f32.mrf.mxu3  ;;  %v14811_v8 = vor.u32 %v18904_v15, %v14808_v16  ;;  %v13098_v27 = vld [vmem:[%s29481_s2 + $0x630] sm:$0xf]  ;;  %v12683_v63 = vor.u32 %v18378_v25, %v12682_v24  ;;  %v18664_v15 = vld [vmem:[%s29481_s2 + $0xc10] sm:$0xf0]  ;;  %v12526_v16 = vld [vmem:[%s29481_s2 + $0x1b8] sm:$0xf] }
 0x10a   :  { %4489 = vmatpush.bf16.msrb.mxu2 %v12731_v49  ;;  %v18501_v49 = vld [vmem:[%s29481_s2 + $0x6fc] sm:$0xf]  ;;  %v4219_v62 = vadd.f32 %v4218_v57, %v4206_v46  ;;  %v13514_v39 = vld [vmem:[%s29481_s2 + $0x970] sm:$0xf]  ;;  %v13099_v42 = vor.u32 %v18482_v28, %v13098_v27  ;;  %v13462_v57 = vld [vmem:[%s29481_s2 + $0x908] sm:$0xf] }
 0x10b   :  { %4496 = vmatpush.bf16.msra.mxu3 %v13459_v47  ;;  %4477 = vmatmul.bf16.vlgmr.msrb.gmra.mxu0 %v20135_v61  ;;  %v13251_v47 = vor.u32 %v18514_v10, %v13248_v32  ;;  %v13563_v10 = vor.u32 %v18592_v20, %v13560_v21  ;;  %v13976_v32 = vld [vmem:[%s29481_s2 + $0xd44] sm:$0xf0]  ;;  %v18365_v46 = vld [vmem:[%s29481_s2 + $0x2b8] sm:$0xf0] }
 0x10c   :  { %4521 = vmatpush.bf16.msra.mxu0 %v14343_v50  ;;  %v13196_v50 = vld [vmem:[%s29481_s2 + $0x72c] sm:$0xf0]  ;;  %v12631_v56 = vor.u32 %v18365_v46, %v12630_v44  ;;  %v12422_v44 = vld [vmem:[%s29481_s2 + $0xe8] sm:$0xf]  ;;  %v18313_v46 = vld [vmem:[%s29481_s2 + $0x118] sm:$0xf0] }
 0x10d   :  { %4509 = vmatpush.bf16.msrb.mxu1 %v13875_v55  ;;  %4490 = vmatmul.bf16.vlgmr.msrb.gmra.mxu2 %v20157_v6  ;;  %v14080_v55 = vld [vmem:[%s29481_s2 + $0xe14] sm:$0xf0] }
 0x10e   :  { %4534 = vmatpush.bf16.msra.mxu2 %v14759_v54  ;;  %v18722_v54 = vld [vmem:[%s29481_s2 + $0xde4] sm:$0xf] }
 0x10f   :  { %4497 = vmatpush.bf16.msra.mxu3 %v13407_v0  ;;  %v13199_v0 = vor.u32 %v18501_v49, %v13196_v50  ;;  %v14083_v2 = vor.u32 %v18722_v54, %v14080_v55  ;;  %v18469_v49 = vld [vmem:[%s29481_s2 + $0x5f8] sm:$0xf0]  ;;  %v13931_v55 = vor.u32 %v18690_v43, %v13930_v41  ;;  %v18638_v43 = vld [vmem:[%s29481_s2 + $0xb40] sm:$0xf0] }
 0x110   :  { %4522 = vmatpush.bf16.msra.mxu0 %v14291_v1  ;;  %v18488_v1 = vld [vmem:[%s29481_s2 + $0x694] sm:$0xf]  ;;  %v4233_v11 = vpop.f32.mrf.mxu0 }
 0x111   :  { %4510 = vmatpush.bf16.msrb.mxu1 %v13823_v9  ;;  %v4232_v9 = vadd.f32 %v4231_v33, %v4219_v62  ;;  %v18800_v33 = vld [vmem:[%s29481_s2 + $0x1054] sm:$0xf]  ;;  %v18677_v62 = vld [vmem:[%s29481_s2 + $0xc78] sm:$0xf0]  ;;  %v13410_v11 = vld [vmem:[%s29481_s2 + $0x8a0] sm:$0xf] }
 0x112   :  { %4535 = vmatpush.bf16.msra.mxu2 %v14707_v5  ;;  %v14028_v5 = vld [vmem:[%s29481_s2 + $0xdac] sm:$0xf0] }
 0x113   :  { %4498 = vmatpush.bf16.msra.mxu3 %v13355_v17  ;;  %v4207_v17 = vpop.f32.mrf.mxu1  ;;  %v14031_v26 = vor.u32 %v18709_v4, %v14028_v5  ;;  %v13463_v4 = vor.u32 %v18573_v58, %v13462_v57  ;;  %v13879_v5 = vor.u32 %v18677_v62, %v13878_v59  ;;  %v13254_v58 = vld [vmem:[%s29481_s2 + $0x768] sm:$0xf]  ;;  %v18521_v59 = vld [vmem:[%s29481_s2 + $0x798] sm:$0xf0]  ;;  %v12423_v62 = vor.u32 %v18313_v46, %v12422_v44  ;;  %v18372_v46 = vld [vmem:[%s29481_s2 + $0x2f4] sm:$0xf] }
 0x114   :  { %4523 = vmatpush.bf16.msra.mxu0 %v14239_v18  ;;  %v4244_v18 = vpop.f32.mrf.mxu2  ;;  %v18339_v17 = vld [vmem:[%s29481_s2 + $0x1e8] sm:$0xf0] }
 0x115   :  { %4511 = vmatpush.bf16.msrb.mxu1 %v13771_v23  ;;  %v13147_v23 = vor.u32 %v18488_v1, %v13144_v3  ;;  %v18352_v1 = vld [vmem:[%s29481_s2 + $0x250] sm:$0xf0]  ;;  %v12527_v24 = vor.u32 %v18339_v17, %v12526_v16  ;;  %v13618_v17 = vld [vmem:[%s29481_s2 + $0xa40] sm:$0xf] }
 0x116   :  { %4536 = vmatpush.bf16.msra.mxu2 %v14655_v22  ;;  %v21722_v22 = vadd.f32 %v4244_v18, %v4232_v9  ;;  %v18456_v3 = vld [vmem:[%s29481_s2 + $0x590] sm:$0xf0]  ;;  %v12942_v18 = vld [vmem:[%s29481_s2 + $0x4f8] sm:$0xf] }
 0x117   :  { %4499 = vmatpush.bf16.msra.mxu3 %v13303_v29  ;;  %v18696_v29 = vld [vmem:[%s29481_s2 + $0xd14] sm:$0xf] }
 0x118   :  { %4524 = vmatpush.bf16.msra.mxu0 %v14187_v31  ;;  %v14447_v31 = vor.u32 %v18813_v14, %v14444_v19  ;;  %v21772_v50 = vpop.f32.mrf.mxu0  ;;  %v18443_v19 = vld [vmem:[%s29481_s2 + $0x528] sm:$0xf0]  ;;  %v18508_v16 = vld [vmem:[%s29481_s2 + $0x730] sm:$0xf0] }
 0x119   :  { %4512 = vmatpush.bf16.msrb.mxu1 %v13719_v37  ;;  %v4220_v37 = vpop.f32.mrf.mxu3  ;;  %v12943_v27 = vor.u32 %v18443_v19, %v12942_v18 }
 0x11a   :  { %4537 = vmatpush.bf16.msra.mxu2 %v14603_v34  ;;  %v14392_v34 = vld [vmem:[%s29481_s2 + $0x1084] sm:$0xf0] }
 0x11b   :  { %4500 = vmatpush.bf16.msra.mxu3 %v13251_v47  ;;  %v13979_v47 = vor.u32 %v18696_v29, %v13976_v32  ;;  %v13774_v29 = vld [vmem:[%s29481_s2 + $0xb78] sm:$0xf]  ;;  %v18326_v32 = vld [vmem:[%s29481_s2 + $0x180] sm:$0xf0] }
 0x11c   :  { %4525 = vmatpush.bf16.msra.mxu0 %v14135_v48  ;;  %v13046_v48 = vld [vmem:[%s29481_s2 + $0x5c8] sm:$0xf]  ;;  %v4246_v54 = vpop.f32.mrf.mxu2 }
 0x11d   :  { %4513 = vmatpush.bf16.msrb.mxu1 %v13667_v52  ;;  %v13515_v52 = vor.u32 %v18586_v40, %v13514_v39  ;;  %v13047_v60 = vor.u32 %v18469_v49, %v13046_v48  ;;  %v18534_v39 = vld [vmem:[%s29481_s2 + $0x800] sm:$0xf0]  ;;  %v18417_v48 = vld [vmem:[%s29481_s2 + $0x458] sm:$0xf0] }
 0x11e   :  { %4538 = vmatpush.bf16.msra.mxu2 %v14551_v51  ;;  %v14395_v51 = vor.u32 %v18800_v33, %v14392_v34  ;;  %v18430_v33 = vld [vmem:[%s29481_s2 + $0x4c0] sm:$0xf0] }
 0x11f   :  { %4501 = vmatpush.bf16.msra.mxu3 %v13199_v0  ;;  %v12578_v0 = vld [vmem:[%s29481_s2 + $0x220] sm:$0xf] }
 0x120   :  { %4526 = vmatpush.bf16.msra.mxu0 %v14083_v2  ;;  %v12994_v2 = vld [vmem:[%s29481_s2 + $0x560] sm:$0xf]  ;;  %v12579_v9 = vor.u32 %v18352_v1, %v12578_v0  ;;  %v4285_v20 = vpop.f32.mrf.mxu0  ;;  %v13670_v1 = vld [vmem:[%s29481_s2 + $0xaa8] sm:$0xf] }
 0x121   :  { %4514 = vmatpush.bf16.msrb.mxu1 %v13615_v13  ;;  %v13826_v13 = vld [vmem:[%s29481_s2 + $0xbe0] sm:$0xf]  ;;  %v12995_v14 = vor.u32 %v18456_v3, %v12994_v2  ;;  %v4257_v25 = vpop.f32.mrf.mxu1  ;;  %v18625_v2 = vld [vmem:[%s29481_s2 + $0xad8] sm:$0xf0]  ;;  %v18612_v20 = vld [vmem:[%s29481_s2 + $0xa70] sm:$0xf0] }
 0x122   :  { %4539 = vmatpush.bf16.msra.mxu2 %v14499_v12  ;;  %v18560_v12 = vld [vmem:[%s29481_s2 + $0x8d0] sm:$0xf0]  ;;  %v4258_v28 = vadd.f32 %v4257_v25, %v21722_v22  ;;  %v12890_v22 = vld [vmem:[%s29481_s2 + $0x490] sm:$0xf]  ;;  %v21878_v54 = vld [vmem:[%s29482_s3] sm:$0xff] }
 0x123   :  { %4502 = vmatpush.bf16.msra.mxu3 %v13147_v23  ;;  %v13411_v21 = vor.u32 %v18560_v12, %v13410_v11  ;;  %v13827_v23 = vor.u32 %v18664_v15, %v13826_v13  ;;  %v12891_v41 = vor.u32 %v18430_v33, %v12890_v22  ;;  %v12370_v3 = vld [vmem:[%s29481_s2 + $0x80] sm:$0xf]  ;;  %v18404_v11 = vld [vmem:[%s29481_s2 + $0x3f0] sm:$0xf0]  ;;  %v13255_v13 = vor.u32 %v18521_v59, %v13254_v58  ;;  %v12734_v25 = vld [vmem:[%s29481_s2 + $0x358] sm:$0xf] }
 0x124   :  { %4527 = vmatpush.bf16.msra.mxu0 %v14031_v26  ;;  %v13358_v26 = vld [vmem:[%s29481_s2 + $0x838] sm:$0xf]  ;;  %v13671_v15 = vor.u32 %v18625_v2, %v13670_v1  ;;  %v13619_v22 = vor.u32 %v18612_v20, %v13618_v17  ;;  %v18359_v2 = vld [vmem:[%s29481_s2 + $0x28c] sm:$0xf] }
 0x125   :  { %4515 = vmatpush.bf16.msrb.mxu1 %v13563_v10  ;;  %v12474_v10 = vld [vmem:[%s29481_s2 + $0x150] sm:$0xf]  ;;  %v13150_v33 = vld [vmem:[%s29481_s2 + $0x698] sm:$0xf] }
 0x126   :  { %4540 = vmatpush.bf16.msra.mxu2 %v14447_v31  ;;  %4503 = vmatmul.bf16.vlgmr.msra.gmra.mxu3 %v20118_v53  ;;  %v18651_v31 = vld [vmem:[%s29481_s2 + $0xba8] sm:$0xf0]  ;;  %v12475_v40 = vor.u32 %v18326_v32, %v12474_v10  ;;  %v18898_v10 = vld [vmem:[%s29481_s2 + $0x1360] sm:$0xf0]  ;;  %v14190_v20 = vld [vmem:[%s29481_s2 + $0xeb8] sm:$0xf] }
 0x127   :  { %4554 = vmatpush.bf16.msrb.mxu3 %v14811_v8  ;;  %v18547_v8 = vld [vmem:[%s29481_s2 + $0x868] sm:$0xf0]  ;;  %v13775_v37 = vor.u32 %v18651_v31, %v13774_v29  ;;  %v18794_v29 = vld [vmem:[%s29481_s2 + $0x1020] sm:$0xf0]  ;;  %v14762_v31 = vld [vmem:[%s29481_s2 + $0x1330] sm:$0xf] }
 0x128   :  { %4528 = vmatpush.bf16.msra.mxu0 %v13979_v47  ;;  %4516 = vmatmul.bf16.vlgmr.msrb.gmra.mxu1 %v20159_v7  ;;  %v13359_v34 = vor.u32 %v18547_v8, %v13358_v26  ;;  %v12838_v47 = vld [vmem:[%s29481_s2 + $0x428] sm:$0xf]  ;;  %v4309_v49 = vpop.f32.mrf.mxu0  ;;  %v18391_v26 = vld [vmem:[%s29481_s2 + $0x388] sm:$0xf0]  ;;  %v14346_v8 = vld [vmem:[%s29481_s2 + $0xff0] sm:$0xf]  ;;  %v14763_v44 = vor.u32 %v18898_v10, %v14762_v31 }
 0x129   :  { %4560 = vmatpush.bf16.msra.mxu1 %v12683_v63  ;;  %v13306_v63 = vld [vmem:[%s29481_s2 + $0x7d0] sm:$0xf]  ;;  %v12839_v0 = vor.u32 %v18417_v48, %v12838_v47  ;;  %v12684_v47 = vld [vmem:[%s29481_s2 + $0x324] sm:$0xf0] }
 0x12a   :  { %4541 = vmatpush.bf16.msra.mxu2 %v14395_v51  ;;  %v4270_v51 = vpop.f32.mrf.mxu3  ;;  %v14294_v48 = vld [vmem:[%s29481_s2 + $0xf88] sm:$0xf]  ;;  %v12687_v59 = vor.u32 %v18372_v46, %v12684_v47  ;;  %v18320_v46 = vld [vmem:[%s29481_s2 + $0x154] sm:$0xf] }
 0x12b   :  { %4573 = vmatpush.bf16.msra.mxu3 %v13099_v42  ;;  %4529 = vmatmul.bf16.vlgmr.msra.gmra.mxu0 %v20329_v30  ;;  %v13722_v42 = vld [vmem:[%s29481_s2 + $0xb10] sm:$0xf]  ;;  %v12476_v47 = vld [vmem:[%s29481_s2 + $0x184] sm:$0xf0] }
 0x12c   :  { %4586 = vmatpush.bf16.msrb.mxu0 %v13515_v52  ;;  %v13307_v52 = vor.u32 %v18534_v39, %v13306_v63  ;;  %v13723_v57 = vor.u32 %v18638_v43, %v13722_v42  ;;  %v4296_v12 = vpop.f32.mrf.mxu2  ;;  %v12735_v39 = vor.u32 %v18391_v26, %v12734_v25  ;;  %v18911_v42 = vld [vmem:[%s29481_s2 + $0x13c8] sm:$0xf0]  ;;  %v14347_v43 = vor.u32 %v18794_v29, %v14346_v8  ;;  %v12996_v29 = vld [vmem:[%s29481_s2 + $0x594] sm:$0xf0] }
 0x12d   :  { %4561 = vmatpush.bf16.msra.mxu1 %v12631_v56  ;;  %4542 = vmatmul.bf16.vlgmr.msra.gmra.mxu2 %v20340_v35  ;;  %v4271_v56 = vadd.f32 %v4270_v51, %v4258_v28  ;;  %v18859_v25 = vld [vmem:[%s29481_s2 + $0x1228] sm:$0xf0] }
 0x12e   :  { %4599 = vmatpush.bf16.msrb.mxu2 %v13931_v55  ;;  %v753_v55 = vperm.slane %v21878_v54, 3 }
 0x12f   :  { %4574 = vmatpush.bf16.msra.mxu3 %v13047_v60  ;;  %v4259_v60 = vpop.f32.mrf.mxu1 }
 0x130   :  { %4587 = vmatpush.bf16.msrb.mxu0 %v13463_v4  ;;  %v21899_v4 = vadd.f32 %v21772_v50, %v4271_v56  ;;  %v13202_v50 = vld [vmem:[%s29481_s2 + $0x700] sm:$0xf]  ;;  %v18885_v56 = vld [vmem:[%s29481_s2 + $0x12f8] sm:$0xf0]  ;;  %v18476_v60 = vld [vmem:[%s29481_s2 + $0x634] sm:$0xf] }
 0x131   :  { %4562 = vmatpush.bf16.msra.mxu1 %v12579_v9  ;;  %v12786_v9 = vld [vmem:[%s29481_s2 + $0x3c0] sm:$0xf]  ;;  %v13203_v28 = vor.u32 %v18508_v16, %v13202_v50 }
 0x132   :  { %4600 = vmatpush.bf16.msrb.mxu2 %v13879_v5  ;;  %v18300_v5 = vld [vmem:[%s29481_s2 + $0xb0] sm:$0xf0]  ;;  %v12787_v19 = vor.u32 %v18404_v11, %v12786_v9  ;;  %v4272_v32 = vpop.f32.mrf.mxu3  ;;  %v14658_v11 = vld [vmem:[%s29481_s2 + $0x1260] sm:$0xf] }
 0x133   :  { %4575 = vmatpush.bf16.msra.mxu3 %v12995_v14  ;;  %v4297_v14 = vadd.f32 %v4296_v12, %v753_v55  ;;  %v12371_v18 = vor.u32 %v18300_v5, %v12370_v3  ;;  %v14710_v55 = vld [vmem:[%s29481_s2 + $0x12c8] sm:$0xf]  ;;  %v12632_v3 = vld [vmem:[%s29481_s2 + $0x2bc] sm:$0xf0]  ;;  %v18768_v9 = vld [vmem:[%s29481_s2 + $0xf50] sm:$0xf0] }
 0x134   :  { %4588 = vmatpush.bf16.msrb.mxu0 %v13411_v21  ;;  %v12318_v21 = vld [vmem:[%s29481_s2 + $0x18] sm:$0xf]  ;;  %v14711_v1 = vor.u32 %v18885_v56, %v14710_v55  ;;  %v14242_v5 = vld [vmem:[%s29481_s2 + $0xf20] sm:$0xf]  ;;  %v18872_v12 = vld [vmem:[%s29481_s2 + $0x1290] sm:$0xf0] }
 0x135   :  { %4563 = vmatpush.bf16.msra.mxu1 %v12527_v24  ;;  %v21928_v24 = vadd.f32 %v4309_v49, %v4297_v14  ;;  %v4298_v49 = vpop.f32.mrf.mxu2  ;;  %v12635_v14 = vor.u32 %v18359_v2, %v12632_v3  ;;  %v13048_v50 = vld [vmem:[%s29481_s2 + $0x5fc] sm:$0xf0]  ;;  %v14243_v16 = vor.u32 %v18768_v9, %v14242_v5  ;;  %v14659_v17 = vor.u32 %v18872_v12, %v14658_v11  ;;  %v18833_v55 = vld [vmem:[%s29481_s2 + $0x1158] sm:$0xf0]  ;;  %v18307_v3 = vld [vmem:[%s29481_s2 + $0xec] sm:$0xf] }
 0x136   :  { %4601 = vmatpush.bf16.msrb.mxu2 %v13827_v23  ;;  %14845 = vmatmul.msk.bf16.vlgmr.msrb.gmra.mxu3 %vm4010_vm0, %v20238_v45  ;;  %v18287_v23 = vld [vmem:[%s29481_s2 + $0x48] sm:$0xf0]  ;;  %v12424_v5 = vld [vmem:[%s29481_s2 + $0x11c] sm:$0xf0]  ;;  %v18716_v12 = vld [vmem:[%s29481_s2 + $0xdb0] sm:$0xf0] }
 0x137   :  { %4576 = vmatpush.bf16.msra.mxu3 %v12943_v27  ;;  %v4311_v27 = vpop.f32.mrf.mxu0  ;;  %v12319_v63 = vor.u32 %v18287_v23, %v12318_v21  ;;  %v18755_v21 = vld [vmem:[%s29481_s2 + $0xee8] sm:$0xf0]  ;;  %v14606_v23 = vld [vmem:[%s29481_s2 + $0x11f8] sm:$0xf]  ;;  %v14034_v9 = vld [vmem:[%s29481_s2 + $0xd80] sm:$0xf] }
 0x138   :  { %4589 = vmatpush.bf16.msrb.mxu0 %v13359_v34  ;;  %v18495_v34 = vld [vmem:[%s29481_s2 + $0x6c8] sm:$0xf0]  ;;  %v14191_v10 = vor.u32 %v18755_v21, %v14190_v20  ;;  %v14607_v32 = vor.u32 %v18859_v25, %v14606_v23  ;;  %v14035_v21 = vor.u32 %v18716_v12, %v14034_v9  ;;  %v12372_v25 = vld [vmem:[%s29481_s2 + $0xb4] sm:$0xf0]  ;;  %v18554_v12 = vld [vmem:[%s29481_s2 + $0x8a4] sm:$0xf] }
 0x139   :  { %4564 = vmatpush.bf16.msra.mxu1 %v12475_v40  ;;  %v18599_v40 = vld [vmem:[%s29481_s2 + $0xa08] sm:$0xf0]  ;;  %v13151_v51 = vor.u32 %v18495_v34, %v13150_v33  ;;  %v12528_v33 = vld [vmem:[%s29481_s2 + $0x1ec] sm:$0xf0] }
 0x13a   :  { %4602 = vmatpush.bf16.msrb.mxu2 %v13775_v37  ;;  %v13566_v37 = vld [vmem:[%s29481_s2 + $0x9d8] sm:$0xf]  ;;  %v14138_v34 = vld [vmem:[%s29481_s2 + $0xe50] sm:$0xf]  ;;  %v18775_v9 = vld [vmem:[%s29481_s2 + $0xf8c] sm:$0xf] }
 0x13b   :  { %4577 = vmatpush.bf16.msra.mxu3 %v12891_v41  ;;  %v14814_v41 = vld [vmem:[%s29481_s2 + $0x1398] sm:$0xf] }
 0x13c   :  { %4590 = vmatpush.bf16.msrb.mxu0 %v13307_v52  ;;  %v18781_v52 = vld [vmem:[%s29481_s2 + $0xfb8] sm:$0xf0]  ;;  %v14815_v58 = vor.u32 %v18911_v42, %v14814_v41  ;;  %v12944_v42 = vld [vmem:[%s29481_s2 + $0x52c] sm:$0xf0] }
 0x13d   :  { %4565 = vmatpush.bf16.msra.mxu1 %v12423_v62  ;;  %v13100_v62 = vld [vmem:[%s29481_s2 + $0x664] sm:$0xf0]  ;;  %v18437_v41 = vld [vmem:[%s29481_s2 + $0x4fc] sm:$0xf] }
 0x13e   :  { %4603 = vmatpush.bf16.msrb.mxu2 %v13723_v57  ;;  %v13567_v57 = vor.u32 %v18599_v40, %v13566_v37  ;;  %v14554_v37 = vld [vmem:[%s29481_s2 + $0x1190] sm:$0xf]  ;;  %v12947_v56 = vor.u32 %v18437_v41, %v12944_v42 }
 0x13f   :  { %4578 = vmatpush.bf16.msra.mxu3 %v12839_v0  ;;  %v14295_v0 = vor.u32 %v18781_v52, %v14294_v48  ;;  %v14086_v48 = vld [vmem:[%s29481_s2 + $0xde8] sm:$0xf] }
 0x140   :  { %4591 = vmatpush.bf16.msrb.mxu0 %v13255_v13  ;;  %v13103_v13 = vor.u32 %v18476_v60, %v13100_v62  ;;  %v14502_v52 = vld [vmem:[%s29481_s2 + $0x1128] sm:$0xf]  ;;  %v18424_v60 = vld [vmem:[%s29481_s2 + $0x494] sm:$0xf] }
 0x141   :  { %4566 = vmatpush.bf16.msra.mxu1 %v12371_v18  ;;  %v18346_v18 = vld [vmem:[%s29481_s2 + $0x224] sm:$0xf]  ;;  %v4322_v8 = vpop.f32.mrf.mxu1  ;;  %v12892_v62 = vld [vmem:[%s29481_s2 + $0x4c4] sm:$0xf0]  ;;  %v14503_v2 = vor.u32 %v18833_v55, %v14502_v52 }
 0x142   :  { %4604 = vmatpush.bf16.msrb.mxu2 %v13671_v15  ;;  %v18463_v15 = vld [vmem:[%s29481_s2 + $0x5cc] sm:$0xf]  ;;  %v4323_v31 = vadd.f32 %v4322_v8, %v21928_v24  ;;  %v18742_v24 = vld [vmem:[%s29481_s2 + $0xe80] sm:$0xf0] }
 0x143   :  { %4579 = vmatpush.bf16.msra.mxu3 %v12787_v19  ;;  %v12580_v19 = vld [vmem:[%s29481_s2 + $0x254] sm:$0xf0]  ;;  %v13051_v26 = vor.u32 %v18463_v15, %v13048_v50  ;;  %v12895_v50 = vor.u32 %v18424_v60, %v12892_v62  ;;  %v18703_v8 = vld [vmem:[%s29481_s2 + $0xd48] sm:$0xf0]  ;;  %v18385_v60 = vld [vmem:[%s29481_s2 + $0x35c] sm:$0xf] }
 0x144   :  { %4592 = vmatpush.bf16.msrb.mxu0 %v13203_v28  ;;  %v12583_v27 = vor.u32 %v18346_v18, %v12580_v19  ;;  %v18450_v28 = vld [vmem:[%s29481_s2 + $0x564] sm:$0xf]  ;;  %v12840_v18 = vld [vmem:[%s29481_s2 + $0x45c] sm:$0xf0]  ;;  %v12736_v62 = vld [vmem:[%s29481_s2 + $0x38c] sm:$0xf0] }
 0x145   :  { %4567 = vmatpush.bf16.msra.mxu1 %v12319_v63  ;;  %v18846_v63 = vld [vmem:[%s29481_s2 + $0x11c0] sm:$0xf0] }
 0x146   :  { %4605 = vmatpush.bf16.msrb.mxu2 %v13619_v22  ;;  %v18333_v22 = vld [vmem:[%s29481_s2 + $0x1bc] sm:$0xf]  ;;  %v18294_v19 = vld [vmem:[%s29481_s2 + $0x84] sm:$0xf] }
 0x147   :  { %4580 = vmatpush.bf16.msra.mxu3 %v12735_v39  ;;  %v12999_v39 = vor.u32 %v18450_v28, %v12996_v29  ;;  %v12531_v40 = vor.u32 %v18333_v22, %v12528_v33  ;;  %v18807_v28 = vld [vmem:[%s29481_s2 + $0x1088] sm:$0xf0]  ;;  %v18580_v29 = vld [vmem:[%s29481_s2 + $0x974] sm:$0xf]  ;;  %v13932_v33 = vld [vmem:[%s29481_s2 + $0xce4] sm:$0xf0] }
 0x148   :  { %4593 = vmatpush.bf16.msrb.mxu0 %v13151_v51  ;;  %4568 = vmatmul.bf16.vlgmr.msra.gmra.mxu1 %v20135_v61  ;;  %v4361_v49 = vpop.f32.mrf.mxu0  ;;  %v18729_v51 = vld [vmem:[%s29481_s2 + $0xe18] sm:$0xf0]  ;;  %v18684_v22 = vld [vmem:[%s29481_s2 + $0xcb4] sm:$0xf] }
 0x149   :  { %4612 = vmatpush.bf16.msrb.mxu1 %v14347_v43  ;;  %v14139_v43 = vor.u32 %v18742_v24, %v14138_v34  ;;  %v12375_v24 = vor.u32 %v18294_v19, %v12372_v25  ;;  %v18879_v19 = vld [vmem:[%s29481_s2 + $0x12cc] sm:$0xf]  ;;  %v18762_v25 = vld [vmem:[%s29481_s2 + $0xf24] sm:$0xf] }
 0x14a   :  { %4606 = vmatpush.bf16.msrb.mxu2 %v13567_v57  ;;  %4581 = vmatmul.bf16.vlgmr.msra.gmra.mxu3 %v20157_v6  ;;  %v4324_v57 = vpop.f32.mrf.mxu1 }
 0x14b   :  { %4625 = vmatpush.bf16.msrb.mxu3 %v14763_v44  ;;  %4594 = vmatmul.bf16.vlgmr.msrb.gmra.mxu0 %v20118_v53  ;;  %v14555_v44 = vor.u32 %v18846_v63, %v14554_v37  ;;  %v18398_v37 = vld [vmem:[%s29481_s2 + $0x3c4] sm:$0xf]  ;;  %v12788_v63 = vld [vmem:[%s29481_s2 + $0x3f4] sm:$0xf0]  ;;  %v18671_v57 = vld [vmem:[%s29481_s2 + $0xc4c] sm:$0xf] }
 0x14c   :  { %4645 = vmatpush.bf16.msra.mxu0 %v14815_v58  ;;  %v4335_v58 = vpop.f32.mrf.mxu3  ;;  %v4348_v11 = vpop.f32.mrf.mxu2  ;;  %v12791_v55 = vor.u32 %v18398_v37, %v12788_v63  ;;  %v14192_v37 = vld [vmem:[%s29481_s2 + $0xeec] sm:$0xf0]  ;;  %v18528_v63 = vld [vmem:[%s29481_s2 + $0x7d4] sm:$0xf] }
 0x14d   :  { %4613 = vmatpush.bf16.msrb.mxu1 %v14295_v0  ;;  %4607 = vmatmul.bf16.vlgmr.msrb.gmra.mxu2 %v20159_v7  ;;  %v4336_v0 = vadd.f32 %v4335_v58, %v4323_v31  ;;  %v13880_v58 = vld [vmem:[%s29481_s2 + $0xc7c] sm:$0xf0] }
 0x14e   :  { %4651 = vmatpush.bf16.msra.mxu2 %v12687_v59  ;;  %v12479_v59 = vor.u32 %v18320_v46, %v12476_v47  ;;  %v13935_v47 = vor.u32 %v18684_v22, %v13932_v33  ;;  %v14660_v22 = vld [vmem:[%s29481_s2 + $0x1294] sm:$0xf0] }
 0x14f   :  { %4626 = vmatpush.bf16.msrb.mxu3 %v14711_v1  ;;  %v14087_v1 = vor.u32 %v18729_v51, %v14086_v48  ;;  %v4349_v15 = vadd.f32 %v4348_v11, %v4336_v0  ;;  %v18788_v48 = vld [vmem:[%s29481_s2 + $0xff4] sm:$0xf]  ;;  %v18567_v51 = vld [vmem:[%s29481_s2 + $0x90c] sm:$0xf]  ;;  %v14296_v11 = vld [vmem:[%s29481_s2 + $0xfbc] sm:$0xf0] }
 0x150   :  { %4664 = vmatpush.bf16.msrb.mxu0 %v13103_v13  ;;  %v14450_v13 = vld [vmem:[%s29481_s2 + $0x10c0] sm:$0xf]  ;;  %v4363_v31 = vpop.f32.mrf.mxu0 }
 0x151   :  { %4614 = vmatpush.bf16.msrb.mxu1 %v14243_v16  ;;  %v12427_v16 = vor.u32 %v18307_v3, %v12424_v5  ;;  %v4362_v20 = vadd.f32 %v4361_v49, %v4349_v15  ;;  %v14348_v49 = vld [vmem:[%s29481_s2 + $0x1024] sm:$0xf0]  ;;  %v13883_v5 = vor.u32 %v18671_v57, %v13880_v58  ;;  %v18658_v15 = vld [vmem:[%s29481_s2 + $0xbe4] sm:$0xf]  ;;  %v13256_v57 = vld [vmem:[%s29481_s2 + $0x79c] sm:$0xf0] }
 0x152   :  { %4652 = vmatpush.bf16.msra.mxu2 %v12635_v14  ;;  %v18820_v14 = vld [vmem:[%s29481_s2 + $0x10f0] sm:$0xf0]  ;;  %v4374_v34 = vpop.f32.mrf.mxu1  ;;  %v14351_v0 = vor.u32 %v18788_v48, %v14348_v49  ;;  %v18619_v58 = vld [vmem:[%s29481_s2 + $0xaac] sm:$0xf] }
 0x153   :  { %4627 = vmatpush.bf16.msrb.mxu3 %v14659_v17  ;;  %v18411_v17 = vld [vmem:[%s29481_s2 + $0x42c] sm:$0xf]  ;;  %v14451_v23 = vor.u32 %v18820_v14, %v14450_v13  ;;  %v12739_v13 = vor.u32 %v18385_v60, %v12736_v62  ;;  %v13412_v14 = vld [vmem:[%s29481_s2 + $0x8d4] sm:$0xf0]  ;;  %v18736_v48 = vld [vmem:[%s29481_s2 + $0xe54] sm:$0xf] }
 0x154   :  { %4665 = vmatpush.bf16.msrb.mxu0 %v13051_v26  ;;  %v13982_v26 = vld [vmem:[%s29481_s2 + $0xd18] sm:$0xf]  ;;  %v4350_v52 = vpop.f32.mrf.mxu2 }
 0x155   :  { %4615 = vmatpush.bf16.msrb.mxu1 %v14191_v10  ;;  %v12843_v10 = vor.u32 %v18411_v17, %v12840_v18  ;;  %v13983_v41 = vor.u32 %v18703_v8, %v13982_v26  ;;  %v14299_v18 = vor.u32 %v18775_v9, %v14296_v11  ;;  %v14244_v26 = vld [vmem:[%s29481_s2 + $0xf54] sm:$0xf0]  ;;  %v18541_v8 = vld [vmem:[%s29481_s2 + $0x83c] sm:$0xf]  ;;  %v14140_v52 = vld [vmem:[%s29481_s2 + $0xe84] sm:$0xf0] }
 0x156   :  { %4653 = vmatpush.bf16.msra.mxu2 %v12583_v27  ;;  %v14398_v27 = vld [vmem:[%s29481_s2 + $0x1058] sm:$0xf] }
 0x157   :  { %4628 = vmatpush.bf16.msrb.mxu3 %v14607_v32  ;;  %v13516_v32 = vld [vmem:[%s29481_s2 + $0x9a4] sm:$0xf0]  ;;  %v14399_v42 = vor.u32 %v18807_v28, %v14398_v27  ;;  %v13360_v27 = vld [vmem:[%s29481_s2 + $0x86c] sm:$0xf0]  ;;  %v18645_v28 = vld [vmem:[%s29481_s2 + $0xb7c] sm:$0xf] }
 0x158   :  { %4666 = vmatpush.bf16.msrb.mxu0 %v12999_v39  ;;  %v4337_v39 = vpop.f32.mrf.mxu3  ;;  %v13519_v46 = vor.u32 %v18580_v29, %v13516_v32  ;;  %v13776_v29 = vld [vmem:[%s29481_s2 + $0xbac] sm:$0xf0]  ;;  %v18866_v32 = vld [vmem:[%s29481_s2 + $0x1264] sm:$0xf]  ;;  %v13363_v33 = vor.u32 %v18541_v8, %v13360_v27 }
 0x159   :  { %4616 = vmatpush.bf16.msrb.mxu1 %v14139_v43  ;;  %v18281_v43 = vld [vmem:[%s29481_s2 + $0x1c] sm:$0xf]  ;;  %v13308_v39 = vld [vmem:[%s29481_s2 + $0x804] sm:$0xf0] }
 0x15a   :  { %4654 = vmatpush.bf16.msra.mxu2 %v12531_v40  ;;  %v22153_v40 = vadd.f32 %v4374_v34, %v4362_v20  ;;  %v4376_v17 = vpop.f32.mrf.mxu1  ;;  %v14712_v20 = vld [vmem:[%s29481_s2 + $0x12fc] sm:$0xf0]  ;;  %v13779_v34 = vor.u32 %v18645_v28, %v13776_v29  ;;  %v13311_v49 = vor.u32 %v18528_v63, %v13308_v39  ;;  %v14036_v28 = vld [vmem:[%s29481_s2 + $0xdb4] sm:$0xf0]  ;;  %v18489_v29 = vld [vmem:[%s29481_s2 + $0x69c] sm:$0xf] }
 0x15b   :  { %4629 = vmatpush.bf16.msrb.mxu3 %v14555_v44  ;;  %14846 = vmatmul.msk.bf16.vlgmr.msra.gmra.mxu0 %vm4010_vm0, %v20238_v45  ;;  %v12320_v44 = vld [vmem:[%s29481_s2 + $0x4c] sm:$0xf0]  ;;  %v14715_v31 = vor.u32 %v18879_v19, %v14712_v20  ;;  %v18606_v17 = vld [vmem:[%s29481_s2 + $0xa44] sm:$0xf]  ;;  %v18379_v63 = vld [vmem:[%s29481_s2 + $0x328] sm:$0xf0] }
 0x15c   :  { %4667 = vmatpush.bf16.msrb.mxu0 %v12947_v56  ;;  %v13464_v56 = vld [vmem:[%s29481_s2 + $0x93c] sm:$0xf0]  ;;  %v18905_v39 = vld [vmem:[%s29481_s2 + $0x139c] sm:$0xf] }
 0x15d   :  { %4617 = vmatpush.bf16.msrb.mxu1 %v14087_v1  ;;  %v18892_v1 = vld [vmem:[%s29481_s2 + $0x1334] sm:$0xf]  ;;  %v13467_v3 = vor.u32 %v18567_v51, %v13464_v56  ;;  %v754_v56 = vperm.slane %v21878_v54, 4 }
 0x15e   :  { %4655 = vmatpush.bf16.msra.mxu2 %v12479_v59  ;;  %v12323_v59 = vor.u32 %v18281_v43, %v12320_v44  ;;  %v14663_v43 = vor.u32 %v18866_v32, %v14660_v22  ;;  %v18593_v32 = vld [vmem:[%s29481_s2 + $0x9dc] sm:$0xf]  ;;  %v13568_v22 = vld [vmem:[%s29481_s2 + $0xa0c] sm:$0xf0] }
 0x15f   :  { %4630 = vmatpush.bf16.msrb.mxu3 %v14503_v2  ;;  %v14764_v2 = vld [vmem:[%s29481_s2 + $0x1364] sm:$0xf0] }
 0x160   :  { %4668 = vmatpush.bf16.msrb.mxu0 %v12895_v50  ;;  %v13828_v50 = vld [vmem:[%s29481_s2 + $0xc14] sm:$0xf0] }
 0x161   :  { %4618 = vmatpush.bf16.msrb.mxu1 %v14035_v21  ;;  %v13415_v21 = vor.u32 %v18554_v12, %v13412_v14  ;;  %v18723_v12 = vld [vmem:[%s29481_s2 + $0xdec] sm:$0xf]  ;;  %v18502_v14 = vld [vmem:[%s29481_s2 + $0x704] sm:$0xf] }
 0x162   :  { %4656 = vmatpush.bf16.msra.mxu2 %v12427_v16  ;;  %v14767_v16 = vor.u32 %v18892_v1, %v14764_v2  ;;  %v14143_v1 = vor.u32 %v18736_v48, %v14140_v52  ;;  %v18840_v2 = vld [vmem:[%s29481_s2 + $0x1194] sm:$0xf]  ;;  %v13984_v52 = vld [vmem:[%s29481_s2 + $0xd4c] sm:$0xf0] }
 0x163   :  { %4631 = vmatpush.bf16.msrb.mxu3 %v14451_v23  ;;  %v13831_v23 = vor.u32 %v18658_v15, %v13828_v50 }
 0x164   :  { %4669 = vmatpush.bf16.msrb.mxu0 %v12843_v10  ;;  %v14247_v10 = vor.u32 %v18762_v25, %v14244_v26  ;;  %v14504_v25 = vld [vmem:[%s29481_s2 + $0x115c] sm:$0xf0]  ;;  %v18710_v26 = vld [vmem:[%s29481_s2 + $0xd84] sm:$0xf] }
 0x165   :  { %4619 = vmatpush.bf16.msrb.mxu1 %v13983_v41  ;;  %v18632_v41 = vld [vmem:[%s29481_s2 + $0xb14] sm:$0xf]  ;;  %v4400_v60 = vpop.f32.mrf.mxu1 }
 0x166   :  { %4657 = vmatpush.bf16.msra.mxu2 %v12375_v24  ;;  %v18749_v24 = vld [vmem:[%s29481_s2 + $0xebc] sm:$0xf] }
 0x167   :  { %4632 = vmatpush.bf16.msrb.mxu3 %v14399_v42  ;;  %v13724_v42 = vld [vmem:[%s29481_s2 + $0xb44] sm:$0xf0]  ;;  %v14195_v44 = vor.u32 %v18749_v24, %v14192_v37 }
 0x168   :  { %4670 = vmatpush.bf16.msrb.mxu0 %v12791_v55  ;;  %4620 = vmatmul.bf16.vlgmr.msrb.gmra.mxu1 %v20329_v30  ;;  %v13727_v51 = vor.u32 %v18632_v41, %v13724_v42  ;;  %v18515_v55 = vld [vmem:[%s29481_s2 + $0x76c] sm:$0xf]  ;;  %v4426_v62 = vpop.f32.mrf.mxu0  ;;  %v14816_v41 = vld [vmem:[%s29481_s2 + $0x13cc] sm:$0xf0] }
 0x169   :  { %4677 = vmatpush.bf16.msra.mxu1 %v13519_v46  ;;  %v18853_v46 = vld [vmem:[%s29481_s2 + $0x11fc] sm:$0xf]  ;;  %v13259_v9 = vor.u32 %v18515_v55, %v13256_v57  ;;  %v13106_v55 = vld [vmem:[%s29481_s2 + $0x638] sm:$0xf]  ;;  %v14819_v57 = vor.u32 %v18905_v39, %v14816_v41  ;;  %v13834_v39 = vld [vmem:[%s29481_s2 + $0xbe8] sm:$0xf] }
 0x16a   :  { %4658 = vmatpush.bf16.msra.mxu2 %v12323_v59  ;;  %4633 = vmatmul.bf16.vlgmr.msrb.gmra.mxu3 %v20340_v35  ;;  %v13672_v59 = vld [vmem:[%s29481_s2 + $0xadc] sm:$0xf0]  ;;  %v18665_v41 = vld [vmem:[%s29481_s2 + $0xc18] sm:$0xf0] }
 0x16b   :  { %4690 = vmatpush.bf16.msra.mxu3 %v13935_v47  ;;  %v14608_v47 = vld [vmem:[%s29481_s2 + $0x122c] sm:$0xf0]  ;;  %v13675_v11 = vor.u32 %v18619_v58, %v13672_v59  ;;  %v18483_v59 = vld [vmem:[%s29481_s2 + $0x668] sm:$0xf0] }
 0x16c   :  { %4671 = vmatpush.bf16.msrb.mxu0 %v12739_v13  ;;  %v14088_v13 = vld [vmem:[%s29481_s2 + $0xe1c] sm:$0xf0]  ;;  %v4413_v50 = vpop.f32.mrf.mxu2 }
 0x16d   :  { %4678 = vmatpush.bf16.msra.mxu1 %v13467_v3  ;;  %4659 = vmatmul.bf16.vlgmr.msra.gmra.mxu2 %v20135_v61  ;;  %v14556_v3 = vld [vmem:[%s29481_s2 + $0x11c4] sm:$0xf0] }
 0x16e   :  { %4703 = vmatpush.bf16.msrb.mxu2 %v14351_v0  ;;  %v14611_v0 = vor.u32 %v18853_v46, %v14608_v47  ;;  %v14559_v19 = vor.u32 %v18840_v2, %v14556_v3  ;;  %v14452_v46 = vld [vmem:[%s29481_s2 + $0x10f4] sm:$0xf0]  ;;  %v18366_v3 = vld [vmem:[%s29481_s2 + $0x2c0] sm:$0xf0] }
 0x16f   :  { %4691 = vmatpush.bf16.msra.mxu3 %v13883_v5  ;;  %4672 = vmatmul.bf16.vlgmr.msrb.gmra.mxu0 %v20157_v6  ;;  %v4387_v5 = vpop.f32.mrf.mxu3 }
 0x170   :  { %4716 = vmatpush.bf16.msra.mxu0 %v14767_v16  ;;  %v4388_v15 = vadd.f32 %v4387_v5, %v754_v56  ;;  %v13204_v16 = vld [vmem:[%s29481_s2 + $0x734] sm:$0xf0]  ;;  %v4428_v24 = vpop.f32.mrf.mxu0  ;;  %v18801_v5 = vld [vmem:[%s29481_s2 + $0x105c] sm:$0xf] }
 0x171   :  { %4679 = vmatpush.bf16.msra.mxu1 %v13415_v21  ;;  %v14091_v21 = vor.u32 %v18723_v12, %v14088_v13  ;;  %v13207_v8 = vor.u32 %v18502_v14, %v13204_v16  ;;  %v13938_v13 = vld [vmem:[%s29481_s2 + $0xcb8] sm:$0xf]  ;;  %v18691_v14 = vld [vmem:[%s29481_s2 + $0xce8] sm:$0xf0]  ;;  %v13470_v16 = vld [vmem:[%s29481_s2 + $0x910] sm:$0xf] }
 0x172   :  { %4704 = vmatpush.bf16.msrb.mxu2 %v14299_v18  ;;  %v13620_v18 = vld [vmem:[%s29481_s2 + $0xa74] sm:$0xf0]  ;;  %v4401_v20 = vadd.f32 %v4400_v60, %v4388_v15  ;;  %v13054_v15 = vld [vmem:[%s29481_s2 + $0x5d0] sm:$0xf]  ;;  %v18340_v24 = vld [vmem:[%s29481_s2 + $0x1f0] sm:$0xf0] }
 0x173   :  { %4692 = vmatpush.bf16.msra.mxu3 %v13831_v23  ;;  %v18827_v23 = vld [vmem:[%s29481_s2 + $0x112c] sm:$0xf]  ;;  %v13623_v27 = vor.u32 %v18606_v17, %v13620_v18  ;;  %v13522_v60 = vld [vmem:[%s29481_s2 + $0x978] sm:$0xf]  ;;  %v18574_v17 = vld [vmem:[%s29481_s2 + $0x940] sm:$0xf0] }
 0x174   :  { %4717 = vmatpush.bf16.msra.mxu0 %v14715_v31  ;;  %v13152_v31 = vld [vmem:[%s29481_s2 + $0x6cc] sm:$0xf0]  ;;  %v14507_v37 = vor.u32 %v18827_v23, %v14504_v25  ;;  %v4415_v58 = vpop.f32.mrf.mxu2  ;;  %v18353_v23 = vld [vmem:[%s29481_s2 + $0x258] sm:$0xf0] }
 0x175   :  { %4680 = vmatpush.bf16.msra.mxu1 %v13363_v33  ;;  %v12690_v33 = vld [vmem:[%s29481_s2 + $0x2f8] sm:$0xf]  ;;  %v13155_v48 = vor.u32 %v18489_v29, %v13152_v31  ;;  %v18457_v29 = vld [vmem:[%s29481_s2 + $0x598] sm:$0xf0]  ;;  %v13418_v31 = vld [vmem:[%s29481_s2 + $0x8a8] sm:$0xf] }
 0x176   :  { %4705 = vmatpush.bf16.msrb.mxu2 %v14247_v10  ;;  %v4414_v10 = vadd.f32 %v4413_v50, %v4401_v20  ;;  %v12691_v56 = vor.u32 %v18379_v63, %v12690_v33  ;;  %v18470_v50 = vld [vmem:[%s29481_s2 + $0x600] sm:$0xf0]  ;;  %v13939_v20 = vor.u32 %v18691_v14, %v13938_v13  ;;  %v18652_v58 = vld [vmem:[%s29481_s2 + $0xbb0] sm:$0xf0]  ;;  %v12430_v13 = vld [vmem:[%s29481_s2 + $0xf0] sm:$0xf] }
 0x177   :  { %4693 = vmatpush.bf16.msra.mxu3 %v13779_v34  ;;  %v4402_v34 = vpop.f32.mrf.mxu1  ;;  %v4389_v47 = vpop.f32.mrf.mxu3  ;;  %v13055_v25 = vor.u32 %v18470_v50, %v13054_v15  ;;  %v18314_v14 = vld [vmem:[%s29481_s2 + $0x120] sm:$0xf0] }
 0x178   :  { %4718 = vmatpush.bf16.msra.mxu0 %v14663_v43  ;;  %v22346_v42 = vadd.f32 %v4426_v62, %v4414_v10  ;;  %v14039_v43 = vor.u32 %v18710_v26, %v14036_v28  ;;  %v18587_v62 = vld [vmem:[%s29481_s2 + $0x9a8] sm:$0xf0]  ;;  %v13471_v26 = vor.u32 %v18574_v17, %v13470_v16  ;;  %v13002_v28 = vld [vmem:[%s29481_s2 + $0x568] sm:$0xf]  ;;  %v18561_v10 = vld [vmem:[%s29481_s2 + $0x8d8] sm:$0xf0] }
 0x179   :  { %4681 = vmatpush.bf16.msra.mxu1 %v13311_v49  ;;  %v13571_v49 = vor.u32 %v18593_v32, %v13568_v22  ;;  %v13523_v12 = vor.u32 %v18587_v62, %v13522_v60  ;;  %v12534_v34 = vld [vmem:[%s29481_s2 + $0x1c0] sm:$0xf]  ;;  %v13419_v63 = vor.u32 %v18561_v10, %v13418_v31  ;;  %v18548_v47 = vld [vmem:[%s29481_s2 + $0x870] sm:$0xf0]  ;;  %v18431_v60 = vld [vmem:[%s29481_s2 + $0x4c8] sm:$0xf0] }
 0x17a   :  { %4706 = vmatpush.bf16.msrb.mxu2 %v14195_v44  ;;  %v18814_v44 = vld [vmem:[%s29481_s2 + $0x10c4] sm:$0xf]  ;;  %v13314_v62 = vld [vmem:[%s29481_s2 + $0x7d8] sm:$0xf]  ;;  %v18639_v17 = vld [vmem:[%s29481_s2 + $0xb48] sm:$0xf0] }
 0x17b   :  { %4694 = vmatpush.bf16.msra.mxu3 %v13727_v51  ;;  %v18697_v51 = vld [vmem:[%s29481_s2 + $0xd1c] sm:$0xf]  ;;  %v13678_v10 = vld [vmem:[%s29481_s2 + $0xab0] sm:$0xf] }
 0x17c   :  { %4719 = vmatpush.bf16.msra.mxu0 %v14611_v0  ;;  %v14455_v0 = vor.u32 %v18814_v44, %v14452_v46  ;;  %v13987_v2 = vor.u32 %v18697_v51, %v13984_v52  ;;  %v22428_v32 = vpop.f32.mrf.mxu2  ;;  %v18444_v44 = vld [vmem:[%s29481_s2 + $0x530] sm:$0xf0]  ;;  %v13366_v46 = vld [vmem:[%s29481_s2 + $0x840] sm:$0xf]  ;;  %v12482_v51 = vld [vmem:[%s29481_s2 + $0x158] sm:$0xf] }
 0x17d   :  { %4682 = vmatpush.bf16.msra.mxu1 %v13259_v9  ;;  %v14400_v9 = vld [vmem:[%s29481_s2 + $0x108c] sm:$0xf0]  ;;  %v18327_v52 = vld [vmem:[%s29481_s2 + $0x188] sm:$0xf0] }
 0x17e   :  { %4707 = vmatpush.bf16.msrb.mxu2 %v14143_v1  ;;  %v12638_v1 = vld [vmem:[%s29481_s2 + $0x290] sm:$0xf] }
 0x17f   :  { %4695 = vmatpush.bf16.msra.mxu3 %v13675_v11  ;;  %v13107_v11 = vor.u32 %v18483_v59, %v13106_v55  ;;  %v12639_v18 = vor.u32 %v18366_v3, %v12638_v1  ;;  %v12898_v59 = vld [vmem:[%s29481_s2 + $0x498] sm:$0xf]  ;;  %v12483_v3 = vor.u32 %v18327_v52, %v12482_v51  ;;  %v18795_v51 = vld [vmem:[%s29481_s2 + $0x1028] sm:$0xf0]  ;;  %v13626_v52 = vld [vmem:[%s29481_s2 + $0xa48] sm:$0xf] }
 0x180   :  { %4720 = vmatpush.bf16.msra.mxu0 %v14559_v19  ;;  %v14403_v19 = vor.u32 %v18801_v5, %v14400_v9  ;;  %v755_v5 = vperm.slane %v21878_v54, 5  ;;  %v12899_v50 = vor.u32 %v18431_v60, %v12898_v59  ;;  %v13730_v54 = vld [vmem:[%s29481_s2 + $0xb18] sm:$0xf]  ;;  %v18392_v59 = vld [vmem:[%s29481_s2 + $0x390] sm:$0xf0] }
 0x181   :  { %4683 = vmatpush.bf16.msra.mxu1 %v13207_v8  ;;  %v13886_v8 = vld [vmem:[%s29481_s2 + $0xc50] sm:$0xf]  ;;  %v13158_v60 = vld [vmem:[%s29481_s2 + $0x6a0] sm:$0xf] }
 0x182   :  { %4708 = vmatpush.bf16.msrb.mxu2 %v14091_v21  ;;  %v12586_v21 = vld [vmem:[%s29481_s2 + $0x228] sm:$0xf] }
 0x183   :  { %4696 = vmatpush.bf16.msra.mxu3 %v13623_v27  ;;  %v18678_v27 = vld [vmem:[%s29481_s2 + $0xc80] sm:$0xf0]  ;;  %v12587_v22 = vor.u32 %v18353_v23, %v12586_v21  ;;  %v12431_v23 = vor.u32 %v18314_v14, %v12430_v13 }
 0x184   :  { %4721 = vmatpush.bf16.msra.mxu0 %v14507_v37  ;;  %v13887_v33 = vor.u32 %v18678_v27, %v13886_v8  ;;  %v13003_v37 = vor.u32 %v18457_v29, %v13002_v28  ;;  %v4467_v1 = vpop.f32.mrf.mxu2  ;;  %v12378_v8 = vld [vmem:[%s29481_s2 + $0x88] sm:$0xf]  ;;  %v18301_v27 = vld [vmem:[%s29481_s2 + $0xb8] sm:$0xf0] }
 0x185   :  { %4684 = vmatpush.bf16.msra.mxu1 %v13155_v48  ;;  %v12535_v48 = vor.u32 %v18340_v24, %v12534_v34  ;;  %v13210_v34 = vld [vmem:[%s29481_s2 + $0x708] sm:$0xf]  ;;  %v18509_v24 = vld [vmem:[%s29481_s2 + $0x738] sm:$0xf0] }
 0x186   :  { %4709 = vmatpush.bf16.msrb.mxu2 %v14039_v43  ;;  %v12950_v43 = vld [vmem:[%s29481_s2 + $0x500] sm:$0xf] }
 0x187   :  { %4697 = vmatpush.bf16.msra.mxu3 %v13571_v49  ;;  %v13835_v49 = vor.u32 %v18665_v41, %v13834_v39  ;;  %v12951_v55 = vor.u32 %v18444_v44, %v12950_v43  ;;  %v12326_v39 = vld [vmem:[%s29481_s2 + $0x20] sm:$0xf]  ;;  %v18288_v41 = vld [vmem:[%s29481_s2 + $0x50] sm:$0xf0] }
 0x188   :  { %4722 = vmatpush.bf16.msra.mxu0 %v14455_v0  ;;  %4685 = vmatmul.bf16.vlgmr.msra.gmra.mxu1 %v20118_v53  ;;  %v18535_v0 = vld [vmem:[%s29481_s2 + $0x808] sm:$0xf0]  ;;  %v4478_v9 = vpop.f32.mrf.mxu0  ;;  %v12327_v1 = vor.u32 %v18288_v41, %v12326_v39 }
 0x189   :  { %4736 = vmatpush.bf16.msrb.mxu1 %v14819_v57  ;;  %v13782_v57 = vld [vmem:[%s29481_s2 + $0xb80] sm:$0xf]  ;;  %v13315_v16 = vor.u32 %v18535_v0, %v13314_v62  ;;  %v18496_v62 = vld [vmem:[%s29481_s2 + $0x6d0] sm:$0xf0]  ;;  %v14770_v0 = vld [vmem:[%s29481_s2 + $0x1338] sm:$0xf] }
 0x18a   :  { %4710 = vmatpush.bf16.msrb.mxu2 %v13987_v2  ;;  %4698 = vmatmul.bf16.vlgmr.msra.gmra.mxu3 %v20159_v7  ;;  %v4452_v2 = vpop.f32.mrf.mxu1  ;;  %v13159_v14 = vor.u32 %v18496_v62, %v13158_v60  ;;  %v14146_v60 = vld [vmem:[%s29481_s2 + $0xe58] sm:$0xf]  ;;  %v18743_v62 = vld [vmem:[%s29481_s2 + $0xe88] sm:$0xf0] }
 0x18b   :  { %4742 = vmatpush.bf16.msrb.mxu3 %v12691_v56  ;;  %v13367_v56 = vor.u32 %v18548_v47, %v13366_v46 }
 0x18c   :  { %4723 = vmatpush.bf16.msra.mxu0 %v14403_v19  ;;  %v13262_v19 = vld [vmem:[%s29481_s2 + $0x770] sm:$0xf] }
 0x18d   :  { %4755 = vmatpush.bf16.msra.mxu1 %v13107_v11  ;;  %4711 = vmatmul.bf16.vlgmr.msrb.gmra.mxu2 %v20329_v30  ;;  %v4439_v11 = vpop.f32.mrf.mxu3 }
 0x18e   :  { %4768 = vmatpush.bf16.msra.mxu2 %v13523_v12  ;;  %v13783_v12 = vor.u32 %v18652_v58, %v13782_v57  ;;  %v4440_v15 = vadd.f32 %v4439_v11, %v22346_v42  ;;  %v18418_v42 = vld [vmem:[%s29481_s2 + $0x460] sm:$0xf0]  ;;  %v18613_v57 = vld [vmem:[%s29481_s2 + $0xa78] sm:$0xf0]  ;;  %v12742_v58 = vld [vmem:[%s29481_s2 + $0x360] sm:$0xf] }
 0x18f   :  { %4743 = vmatpush.bf16.msrb.mxu3 %v12639_v18  ;;  %4724 = vmatmul.bf16.vlgmr.msra.gmra.mxu0 %v20340_v35  ;;  %v12846_v18 = vld [vmem:[%s29481_s2 + $0x430] sm:$0xf]  ;;  %v13627_v11 = vor.u32 %v18613_v57, %v13626_v52  ;;  %v12743_v13 = vor.u32 %v18392_v59, %v12742_v58  ;;  %v18451_v52 = vld [vmem:[%s29481_s2 + $0x56c] sm:$0xf]  ;;  %v18860_v57 = vld [vmem:[%s29481_s2 + $0x1230] sm:$0xf0] }
 0x190   :  { %4781 = vmatpush.bf16.msrb.mxu0 %v13939_v20  ;;  %v18522_v20 = vld [vmem:[%s29481_s2 + $0x7a0] sm:$0xf0]  ;;  %v4453_v21 = vadd.f32 %v4452_v2, %v4440_v15  ;;  %v12847_v29 = vor.u32 %v18418_v42, %v12846_v18  ;;  %v4480_v46 = vpop.f32.mrf.mxu0  ;;  %v18899_v2 = vld [vmem:[%s29481_s2 + $0x1368] sm:$0xf0]  ;;  %v18373_v18 = vld [vmem:[%s29481_s2 + $0x2fc] sm:$0xf] }
 0x191   :  { %4756 = vmatpush.bf16.msra.mxu1 %v13055_v25  ;;  %v4479_v25 = vadd.f32 %v4478_v9, %v755_v5  ;;  %v13263_v31 = vor.u32 %v18522_v20, %v13262_v19  ;;  %v18912_v5 = vld [vmem:[%s29481_s2 + $0x13d0] sm:$0xf0]  ;;  %v18782_v15 = vld [vmem:[%s29481_s2 + $0xfc0] sm:$0xf0]  ;;  %v12692_v42 = vld [vmem:[%s29481_s2 + $0x32c] sm:$0xf0] }
 0x192   :  { %4769 = vmatpush.bf16.msra.mxu2 %v13471_v26  ;;  %v13731_v26 = vor.u32 %v18639_v17, %v13730_v54  ;;  %v22515_v28 = vadd.f32 %v22428_v32, %v4453_v21  ;;  %v18405_v32 = vld [vmem:[%s29481_s2 + $0x3f8] sm:$0xf0]  ;;  %v4454_v44 = vpop.f32.mrf.mxu1  ;;  %v14771_v54 = vor.u32 %v18899_v2, %v14770_v0  ;;  %v13108_v21 = vld [vmem:[%s29481_s2 + $0x66c] sm:$0xf0]  ;;  %v18756_v46 = vld [vmem:[%s29481_s2 + $0xef0] sm:$0xf0] }
 0x193   :  { %4744 = vmatpush.bf16.msrb.mxu3 %v12587_v22  ;;  %v18626_v22 = vld [vmem:[%s29481_s2 + $0xae0] sm:$0xf0]  ;;  %v18477_v19 = vld [vmem:[%s29481_s2 + $0x63c] sm:$0xf]  ;;  %v14198_v44 = vld [vmem:[%s29481_s2 + $0xec0] sm:$0xf] }
 0x194   :  { %4782 = vmatpush.bf16.msrb.mxu0 %v13887_v33  ;;  %v12794_v33 = vld [vmem:[%s29481_s2 + $0x3c8] sm:$0xf]  ;;  %v13679_v47 = vor.u32 %v18626_v22, %v13678_v10  ;;  %v13111_v10 = vor.u32 %v18477_v19, %v13108_v21  ;;  %v14199_v58 = vor.u32 %v18756_v46, %v14198_v44  ;;  %v12484_v21 = vld [vmem:[%s29481_s2 + $0x18c] sm:$0xf0]  ;;  %v18821_v46 = vld [vmem:[%s29481_s2 + $0x10f8] sm:$0xf0] }
 0x195   :  { %4757 = vmatpush.bf16.msra.mxu1 %v13003_v37  ;;  %v4491_v37 = vpop.f32.mrf.mxu2  ;;  %v14458_v44 = vld [vmem:[%s29481_s2 + $0x10c8] sm:$0xf] }
 0x196   :  { %4770 = vmatpush.bf16.msra.mxu2 %v13419_v63  ;;  %v12379_v63 = vor.u32 %v18301_v27, %v12378_v8  ;;  %v22541_v43 = vadd.f32 %v4491_v37, %v4479_v25  ;;  %v18886_v25 = vld [vmem:[%s29481_s2 + $0x1300] sm:$0xf0]  ;;  %v12695_v27 = vor.u32 %v18373_v18, %v12692_v42  ;;  %v14666_v37 = vld [vmem:[%s29481_s2 + $0x1268] sm:$0xf] }
 0x197   :  { %4745 = vmatpush.bf16.msrb.mxu3 %v12535_v48  ;;  %v4441_v48 = vpop.f32.mrf.mxu3 }
 0x198   :  { %4783 = vmatpush.bf16.msrb.mxu0 %v13835_v49  ;;  %14847 = vmatmul.msk.bf16.vlgmr.msrb.gmra.mxu1 %vm4010_vm0, %v20238_v45  ;;  %v14354_v49 = vld [vmem:[%s29481_s2 + $0xff8] sm:$0xf] }
 0x199   :  { %4758 = vmatpush.bf16.msra.mxu1 %v12951_v55  ;;  %v12795_v55 = vor.u32 %v18405_v32, %v12794_v33  ;;  %v14355_v9 = vor.u32 %v18795_v51, %v14354_v49  ;;  %v18360_v33 = vld [vmem:[%s29481_s2 + $0x294] sm:$0xf]  ;;  %v12640_v32 = vld [vmem:[%s29481_s2 + $0x2c4] sm:$0xf0]  ;;  %v18347_v49 = vld [vmem:[%s29481_s2 + $0x22c] sm:$0xf] }
 0x19a   :  { %4771 = vmatpush.bf16.msra.mxu2 %v13367_v56  ;;  %v13211_v56 = vor.u32 %v18509_v24, %v13210_v34  ;;  %v18464_v34 = vld [vmem:[%s29481_s2 + $0x5d4] sm:$0xf]  ;;  %v13056_v24 = vld [vmem:[%s29481_s2 + $0x604] sm:$0xf0]  ;;  %v12643_v41 = vor.u32 %v18360_v33, %v12640_v32  ;;  %v12588_v51 = vld [vmem:[%s29481_s2 + $0x25c] sm:$0xf0] }
 0x19b   :  { %4746 = vmatpush.bf16.msrb.mxu3 %v12483_v3  ;;  %v14822_v3 = vld [vmem:[%s29481_s2 + $0x13a0] sm:$0xf]  ;;  %v12591_v59 = vor.u32 %v18347_v49, %v12588_v51 }
 0x19c   :  { %4784 = vmatpush.bf16.msrb.mxu0 %v13783_v12  ;;  %v14302_v12 = vld [vmem:[%s29481_s2 + $0xf90] sm:$0xf]  ;;  %v14823_v17 = vor.u32 %v18912_v5, %v14822_v3  ;;  %v18334_v3 = vld [vmem:[%s29481_s2 + $0x1c4] sm:$0xf]  ;;  %v12536_v5 = vld [vmem:[%s29481_s2 + $0x1f4] sm:$0xf0] }
 0x19d   :  { %4759 = vmatpush.bf16.msra.mxu1 %v12899_v50  ;;  %v13574_v50 = vld [vmem:[%s29481_s2 + $0x9e0] sm:$0xf]  ;;  %v4493_v20 = vpop.f32.mrf.mxu2 }
 0x19e   :  { %4772 = vmatpush.bf16.msra.mxu2 %v13315_v16  ;;  %v18600_v16 = vld [vmem:[%s29481_s2 + $0xa10] sm:$0xf0]  ;;  %v18321_v20 = vld [vmem:[%s29481_s2 + $0x15c] sm:$0xf]  ;;  %v13990_v49 = vld [vmem:[%s29481_s2 + $0xd20] sm:$0xf] }
 0x19f   :  { %4747 = vmatpush.bf16.msrb.mxu3 %v12431_v23  ;;  %v14718_v23 = vld [vmem:[%s29481_s2 + $0x12d0] sm:$0xf]  ;;  %v13575_v8 = vor.u32 %v18600_v16, %v13574_v50  ;;  %v12539_v16 = vor.u32 %v18334_v3, %v12536_v5  ;;  %v14406_v3 = vld [vmem:[%s29481_s2 + $0x1060] sm:$0xf]  ;;  %v18808_v5 = vld [vmem:[%s29481_s2 + $0x1090] sm:$0xf0] }
 0x1a0   :  { %4785 = vmatpush.bf16.msrb.mxu0 %v13731_v26  ;;  %v14303_v26 = vor.u32 %v18782_v15, %v14302_v12  ;;  %v14719_v22 = vor.u32 %v18886_v25, %v14718_v23  ;;  %v14562_v12 = vld [vmem:[%s29481_s2 + $0x1198] sm:$0xf]  ;;  %v18425_v23 = vld [vmem:[%s29481_s2 + $0x49c] sm:$0xf]  ;;  %v14510_v25 = vld [vmem:[%s29481_s2 + $0x1130] sm:$0xf] }
 0x1a1   :  { %4760 = vmatpush.bf16.msra.mxu1 %v12847_v29  ;;  %v14250_v29 = vld [vmem:[%s29481_s2 + $0xf28] sm:$0xf] }
 0x1a2   :  { %4773 = vmatpush.bf16.msra.mxu2 %v13263_v31  ;;  %v18769_v31 = vld [vmem:[%s29481_s2 + $0xf58] sm:$0xf0] }
 0x1a3   :  { %4748 = vmatpush.bf16.msrb.mxu3 %v12379_v63  ;;  %v18873_v63 = vld [vmem:[%s29481_s2 + $0x1298] sm:$0xf0]  ;;  %v14251_v39 = vor.u32 %v18769_v31, %v14250_v29  ;;  %v12487_v29 = vor.u32 %v18321_v20, %v12484_v21  ;;  %v14042_v31 = vld [vmem:[%s29481_s2 + $0xd88] sm:$0xf] }
 0x1a4   :  { %4786 = vmatpush.bf16.msrb.mxu0 %v13679_v47  ;;  %v13059_v47 = vor.u32 %v18464_v34, %v13056_v24  ;;  %v14667_v48 = vor.u32 %v18873_v63, %v14666_v37  ;;  %v18308_v24 = vld [vmem:[%s29481_s2 + $0xf4] sm:$0xf]  ;;  %v12432_v37 = vld [vmem:[%s29481_s2 + $0x124] sm:$0xf0]  ;;  %v18789_v21 = vld [vmem:[%s29481_s2 + $0xffc] sm:$0xf] }
 0x1a5   :  { %4761 = vmatpush.bf16.msra.mxu1 %v12795_v55  ;;  %v13004_v55 = vld [vmem:[%s29481_s2 + $0x59c] sm:$0xf0]  ;;  %v4517_v0 = vpop.f32.mrf.mxu1  ;;  %v18412_v63 = vld [vmem:[%s29481_s2 + $0x434] sm:$0xf] }
 0x1a6   :  { %4774 = vmatpush.bf16.msra.mxu2 %v13211_v56  ;;  %v14614_v56 = vld [vmem:[%s29481_s2 + $0x1200] sm:$0xf] }
 0x1a7   :  { %4749 = vmatpush.bf16.msrb.mxu3 %v12327_v1  ;;  %v13007_v1 = vor.u32 %v18451_v52, %v13004_v55  ;;  %v14615_v2 = vor.u32 %v18860_v57, %v14614_v56  ;;  %v12435_v55 = vor.u32 %v18308_v24, %v12432_v37  ;;  %v18704_v56 = vld [vmem:[%s29481_s2 + $0xd50] sm:$0xf0]  ;;  %v18581_v57 = vld [vmem:[%s29481_s2 + $0x97c] sm:$0xf]  ;;  %v13420_v24 = vld [vmem:[%s29481_s2 + $0x8dc] sm:$0xf0] }
 0x1a8   :  { %4787 = vmatpush.bf16.msrb.mxu0 %v13627_v11  ;;  %v12952_v11 = vld [vmem:[%s29481_s2 + $0x534] sm:$0xf0]  ;;  %v4530_v15 = vpop.f32.mrf.mxu0 }
 0x1a9   :  { %4762 = vmatpush.bf16.msra.mxu1 %v12743_v13  ;;  %v18847_v13 = vld [vmem:[%s29481_s2 + $0x11c8] sm:$0xf0]  ;;  %v4504_v50 = vpop.f32.mrf.mxu3 }
 0x1aa   :  { %4775 = vmatpush.bf16.msra.mxu2 %v13159_v14  ;;  %4750 = vmatmul.bf16.vlgmr.msrb.gmra.mxu3 %v20135_v61  ;;  %v14147_v14 = vor.u32 %v18743_v62, %v14146_v60  ;;  %v4505_v18 = vadd.f32 %v4504_v50, %v22541_v43  ;;  %v14563_v19 = vor.u32 %v18847_v13, %v14562_v12  ;;  %v12900_v43 = vld [vmem:[%s29481_s2 + $0x4cc] sm:$0xf0]  ;;  %v18295_v62 = vld [vmem:[%s29481_s2 + $0x8c] sm:$0xf]  ;;  %v13472_v50 = vld [vmem:[%s29481_s2 + $0x944] sm:$0xf0] }
 0x1ab   :  { %4794 = vmatpush.bf16.msra.mxu3 %v14355_v9  ;;  %v18438_v9 = vld [vmem:[%s29481_s2 + $0x504] sm:$0xf]  ;;  %v12903_v32 = vor.u32 %v18425_v23, %v12900_v43  ;;  %v14459_v60 = vor.u32 %v18821_v46, %v14458_v44  ;;  %v13940_v12 = vld [vmem:[%s29481_s2 + $0xcec] sm:$0xf0]  ;;  %v18893_v43 = vld [vmem:[%s29481_s2 + $0x133c] sm:$0xf] }
 0x1ac   :  { %4788 = vmatpush.bf16.msrb.mxu0 %v13575_v8  ;;  %4763 = vmatmul.bf16.vlgmr.msra.gmra.mxu1 %v20157_v6  ;;  %v12955_v42 = vor.u32 %v18438_v9, %v12952_v11  ;;  %v4518_v8 = vadd.f32 %v4517_v0, %v4505_v18  ;;  %v12380_v0 = vld [vmem:[%s29481_s2 + $0xbc] sm:$0xf0]  ;;  %v13991_v9 = vor.u32 %v18704_v56, %v13990_v49  ;;  %v18685_v11 = vld [vmem:[%s29481_s2 + $0xcbc] sm:$0xf]  ;;  %v12328_v18 = vld [vmem:[%s29481_s2 + $0x54] sm:$0xf0] }
 0x1ad   :  { %4807 = vmatpush.bf16.msrb.mxu1 %v14771_v54  ;;  %4776 = vmatmul.bf16.vlgmr.msra.gmra.mxu2 %v20118_v53  ;;  %v14094_v54 = vld [vmem:[%s29481_s2 + $0xdf0] sm:$0xf]  ;;  %v13943_v20 = vor.u32 %v18685_v11, %v13940_v12  ;;  %v18880_v44 = vld [vmem:[%s29481_s2 + $0x12d4] sm:$0xf]  ;;  %v14720_v46 = vld [vmem:[%s29481_s2 + $0x1304] sm:$0xf0] }
 0x1ae   :  { %4827 = vmatpush.bf16.msrb.mxu2 %v14823_v17  ;;  %v18730_v17 = vld [vmem:[%s29481_s2 + $0xe20] sm:$0xf0]  ;;  %v4531_v33 = vadd.f32 %v4530_v15, %v4518_v8  ;;  %v18568_v15 = vld [vmem:[%s29481_s2 + $0x914] sm:$0xf]  ;;  %v14356_v23 = vld [vmem:[%s29481_s2 + $0x102c] sm:$0xf0]  ;;  %v14723_v56 = vor.u32 %v18880_v44, %v14720_v46 }
 0x1af   :  { %4795 = vmatpush.bf16.msra.mxu3 %v14303_v26  ;;  %4789 = vmatmul.bf16.vlgmr.msrb.gmra.mxu0 %v20159_v7  ;;  %v18834_v26 = vld [vmem:[%s29481_s2 + $0x1160] sm:$0xf0]  ;;  %v18672_v8 = vld [vmem:[%s29481_s2 + $0xc54] sm:$0xf]  ;;  %v13316_v11 = vld [vmem:[%s29481_s2 + $0x80c] sm:$0xf0] }
 0x1b0   :  { %4833 = vmatpush.bf16.msra.mxu0 %v12695_v27  ;;  %v14095_v27 = vor.u32 %v18730_v17, %v14094_v54  ;;  %v14511_v34 = vor.u32 %v18834_v26, %v14510_v25  ;;  %v4532_v51 = vpop.f32.mrf.mxu0  ;;  %v14407_v17 = vor.u32 %v18808_v5, %v14406_v3  ;;  %v14772_v26 = vld [vmem:[%s29481_s2 + $0x136c] sm:$0xf0]  ;;  %v18750_v12 = vld [vmem:[%s29481_s2 + $0xec4] sm:$0xf] }
 0x1b1   :  { %4808 = vmatpush.bf16.msrb.mxu1 %v14719_v22  ;;  %v4519_v22 = vpop.f32.mrf.mxu1  ;;  %v4506_v52 = vpop.f32.mrf.mxu3  ;;  %v14775_v37 = vor.u32 %v18893_v43, %v14772_v26 }
 0x1b2   :  { %4846 = vmatpush.bf16.msra.mxu2 %v13111_v10  ;;  %v18717_v10 = vld [vmem:[%s29481_s2 + $0xdb8] sm:$0xf0]  ;;  %v18542_v52 = vld [vmem:[%s29481_s2 + $0x844] sm:$0xf] }
 0x1b3   :  { %4796 = vmatpush.bf16.msra.mxu3 %v14251_v39  ;;  %v4543_v39 = vpop.f32.mrf.mxu2 }
 0x1b4   :  { %4834 = vmatpush.bf16.msra.mxu0 %v12643_v41  ;;  %v12848_v41 = vld [vmem:[%s29481_s2 + $0x464] sm:$0xf0] }
 0x1b5   :  { %4809 = vmatpush.bf16.msrb.mxu1 %v14667_v48  ;;  %v14043_v48 = vor.u32 %v18717_v10, %v14042_v31  ;;  %v13475_v31 = vor.u32 %v18568_v15, %v13472_v50  ;;  %v14200_v15 = vld [vmem:[%s29481_s2 + $0xef4] sm:$0xf0]  ;;  %v18854_v50 = vld [vmem:[%s29481_s2 + $0x1204] sm:$0xf] }
 0x1b6   :  { %4847 = vmatpush.bf16.msra.mxu2 %v13059_v47  ;;  %v4544_v47 = vadd.f32 %v4543_v39, %v4531_v33  ;;  %v18776_v39 = vld [vmem:[%s29481_s2 + $0xf94] sm:$0xf] }
 0x1b7   :  { %4797 = vmatpush.bf16.msra.mxu3 %v14199_v58  ;;  %v13524_v58 = vld [vmem:[%s29481_s2 + $0x9ac] sm:$0xf0] }
 0x1b8   :  { %4835 = vmatpush.bf16.msra.mxu0 %v12591_v59  ;;  %v12851_v59 = vor.u32 %v18412_v63, %v12848_v41  ;;  %v13527_v13 = vor.u32 %v18581_v57, %v13524_v58  ;;  %v14304_v41 = vld [vmem:[%s29481_s2 + $0xfc4] sm:$0xf0]  ;;  %v18763_v58 = vld [vmem:[%s29481_s2 + $0xf2c] sm:$0xf] }
 0x1b9   :  { %4810 = vmatpush.bf16.msrb.mxu1 %v14615_v2  ;;  %v12796_v2 = vld [vmem:[%s29481_s2 + $0x3fc] sm:$0xf0]  ;;  %v14307_v51 = vor.u32 %v18776_v39, %v14304_v41 }
 0x1ba   :  { %4848 = vmatpush.bf16.msra.mxu2 %v13007_v1  ;;  %v18399_v1 = vld [vmem:[%s29481_s2 + $0x3cc] sm:$0xf]  ;;  %v13212_v39 = vld [vmem:[%s29481_s2 + $0x73c] sm:$0xf0] }
 0x1bb   :  { %4798 = vmatpush.bf16.msra.mxu3 %v14147_v14  ;;  %v12383_v14 = vor.u32 %v18295_v62, %v12380_v0  ;;  %v12799_v54 = vor.u32 %v18399_v1, %v12796_v2  ;;  %v4545_v25 = vpop.f32.mrf.mxu2  ;;  %v14668_v62 = vld [vmem:[%s29481_s2 + $0x129c] sm:$0xf0]  ;;  %v18646_v0 = vld [vmem:[%s29481_s2 + $0xb84] sm:$0xf]  ;;  %v13784_v1 = vld [vmem:[%s29481_s2 + $0xbb4] sm:$0xf0] }
 0x1bc   :  { %4836 = vmatpush.bf16.msra.mxu0 %v12539_v16  ;;  %v18282_v16 = vld [vmem:[%s29481_s2 + $0x24] sm:$0xf] }
 0x1bd   :  { %4811 = vmatpush.bf16.msrb.mxu1 %v14563_v19  ;;  %14848 = vmatmul.msk.bf16.vlgmr.msrb.gmra.mxu2 %vm4010_vm0, %v20238_v45  ;;  %v12744_v19 = vld [vmem:[%s29481_s2 + $0x394] sm:$0xf0]  ;;  %v12331_v10 = vor.u32 %v18282_v16, %v12328_v18  ;;  %v22880_v16 = vld [vmem:[%s29482_s3] sm:$0xff]  ;;  %v18633_v18 = vld [vmem:[%s29481_s2 + $0xb1c] sm:$0xf] }
 0x1be   :  { %4849 = vmatpush.bf16.msra.mxu2 %v12955_v42  ;;  %v18386_v42 = vld [vmem:[%s29481_s2 + $0x364] sm:$0xf] }
 0x1bf   :  { %4799 = vmatpush.bf16.msra.mxu3 %v14095_v27  ;;  %v13888_v27 = vld [vmem:[%s29481_s2 + $0xc84] sm:$0xf0]  ;;  %v12747_v33 = vor.u32 %v18386_v42, %v12744_v19  ;;  %v13732_v42 = vld [vmem:[%s29481_s2 + $0xb4c] sm:$0xf0] }
 0x1c0   :  { %4837 = vmatpush.bf16.msra.mxu0 %v12487_v29  ;;  %v4556_v29 = vpop.f32.mrf.mxu3  ;;  %v13891_v63 = vor.u32 %v18672_v8, %v13888_v27  ;;  %v13735_v8 = vor.u32 %v18633_v18, %v13732_v42  ;;  %v18737_v27 = vld [vmem:[%s29481_s2 + $0xe5c] sm:$0xf]  ;;  %v12698_v42 = vld [vmem:[%s29481_s2 + $0x300] sm:$0xf] }
 0x1c1   :  { %4812 = vmatpush.bf16.msrb.mxu1 %v14511_v34  ;;  %v22808_v22 = vadd.f32 %v4556_v29, %v4544_v47  ;;  %v18555_v34 = vld [vmem:[%s29481_s2 + $0x8ac] sm:$0xf]  ;;  %v14148_v29 = vld [vmem:[%s29481_s2 + $0xe8c] sm:$0xf0] }
 0x1c2   :  { %4850 = vmatpush.bf16.msra.mxu2 %v12903_v32  ;;  %v14359_v32 = vor.u32 %v18789_v21, %v14356_v23  ;;  %v18659_v47 = vld [vmem:[%s29481_s2 + $0xbec] sm:$0xf]  ;;  %v13423_v49 = vor.u32 %v18555_v34, %v13420_v24  ;;  %v18516_v21 = vld [vmem:[%s29481_s2 + $0x774] sm:$0xf]  ;;  %v13264_v23 = vld [vmem:[%s29481_s2 + $0x7a4] sm:$0xf0] }
 0x1c3   :  { %4800 = vmatpush.bf16.msra.mxu3 %v14043_v48  ;;  %v13836_v48 = vld [vmem:[%s29481_s2 + $0xc1c] sm:$0xf0]  ;;  %v13680_v34 = vld [vmem:[%s29481_s2 + $0xae4] sm:$0xf0]  ;;  %v13267_v24 = vor.u32 %v18516_v21, %v13264_v23 }
 0x1c4   :  { %4838 = vmatpush.bf16.msra.mxu0 %v12435_v55  ;;  %v13368_v55 = vld [vmem:[%s29481_s2 + $0x874] sm:$0xf0]  ;;  %v13839_v57 = vor.u32 %v18659_v47, %v13836_v48  ;;  %v18724_v47 = vld [vmem:[%s29481_s2 + $0xdf4] sm:$0xf]  ;;  %v14096_v48 = vld [vmem:[%s29481_s2 + $0xe24] sm:$0xf0] }
 0x1c5   :  { %4813 = vmatpush.bf16.msrb.mxu1 %v14459_v60  ;;  %v18867_v60 = vld [vmem:[%s29481_s2 + $0x126c] sm:$0xf]  ;;  %v13371_v2 = vor.u32 %v18542_v52, %v13368_v55  ;;  %v4569_v43 = vpop.f32.mrf.mxu1  ;;  %v14512_v52 = vld [vmem:[%s29481_s2 + $0x1164] sm:$0xf0]  ;;  %v13114_v23 = vld [vmem:[%s29481_s2 + $0x640] sm:$0xf] }
 0x1c6   :  { %4851 = vmatpush.bf16.msra.mxu2 %v12851_v59  ;;  %v14252_v59 = vld [vmem:[%s29481_s2 + $0xf5c] sm:$0xf0]  ;;  %v18607_v55 = vld [vmem:[%s29481_s2 + $0xa4c] sm:$0xf] }
 0x1c7   :  { %4801 = vmatpush.bf16.msra.mxu3 %v13991_v9  ;;  %v14255_v5 = vor.u32 %v18763_v58, %v14252_v59  ;;  %v18529_v9 = vld [vmem:[%s29481_s2 + $0x7dc] sm:$0xf]  ;;  %v18490_v58 = vld [vmem:[%s29481_s2 + $0x6a4] sm:$0xf] }
 0x1c8   :  { %4839 = vmatpush.bf16.msra.mxu0 %v12383_v14  ;;  %v4558_v3 = vpop.f32.mrf.mxu3  ;;  %v13787_v14 = vor.u32 %v18646_v0, %v13784_v1  ;;  %v13319_v19 = vor.u32 %v18529_v9, %v13316_v11  ;;  %v4595_v25 = vpop.f32.mrf.mxu0  ;;  %v13160_v0 = vld [vmem:[%s29481_s2 + $0x6d4] sm:$0xf0]  ;;  %v18711_v1 = vld [vmem:[%s29481_s2 + $0xd8c] sm:$0xf] }
 0x1c9   :  { %4814 = vmatpush.bf16.msrb.mxu1 %v14407_v17  ;;  %v14616_v17 = vld [vmem:[%s29481_s2 + $0x1234] sm:$0xf0]  ;;  %v13163_v18 = vor.u32 %v18490_v58, %v13160_v0  ;;  %v18575_v58 = vld [vmem:[%s29481_s2 + $0x948] sm:$0xf0]  ;;  %v12594_v0 = vld [vmem:[%s29481_s2 + $0x230] sm:$0xf] }
 0x1ca   :  { %4852 = vmatpush.bf16.msra.mxu2 %v12799_v54  ;;  %4802 = vmatmul.bf16.vlgmr.msra.gmra.mxu3 %v20329_v30  ;;  %v756_v54 = vperm.slane %v22880_v16, 6  ;;  %v14619_v26 = vor.u32 %v18854_v50, %v14616_v17  ;;  %v14460_v50 = vld [vmem:[%s29481_s2 + $0x10fc] sm:$0xf0]  ;;  %v13576_v17 = vld [vmem:[%s29481_s2 + $0xa14] sm:$0xf0] }
 0x1cb   :  { %4859 = vmatpush.bf16.msrb.mxu3 %v13527_v13  ;;  %v14671_v13 = vor.u32 %v18867_v60, %v14668_v62  ;;  %v14099_v62 = vor.u32 %v18724_v47, %v14096_v48  ;;  %v13062_v47 = vld [vmem:[%s29481_s2 + $0x5d8] sm:$0xf]  ;;  %v18471_v48 = vld [vmem:[%s29481_s2 + $0x608] sm:$0xf0] }
 0x1cc   :  { %4840 = vmatpush.bf16.msra.mxu0 %v12331_v10  ;;  %4815 = vmatmul.bf16.vlgmr.msrb.gmra.mxu1 %v20340_v35  ;;  %v4570_v10 = vadd.f32 %v4569_v43, %v756_v54  ;;  %v18594_v54 = vld [vmem:[%s29481_s2 + $0x9e4] sm:$0xf]  ;;  %v18484_v43 = vld [vmem:[%s29481_s2 + $0x670] sm:$0xf0] }
 0x1cd   :  { %4872 = vmatpush.bf16.msra.mxu1 %v13943_v20  ;;  %v14203_v20 = vor.u32 %v18750_v12, %v14200_v15  ;;  %v4571_v3 = vpop.f32.mrf.mxu1  ;;  %v18815_v12 = vld [vmem:[%s29481_s2 + $0x10cc] sm:$0xf] }
 0x1ce   :  { %4853 = vmatpush.bf16.msra.mxu2 %v12747_v33  ;;  %v14564_v33 = vld [vmem:[%s29481_s2 + $0x11cc] sm:$0xf0]  ;;  %v18458_v3 = vld [vmem:[%s29481_s2 + $0x5a0] sm:$0xf0] }
 0x1cf   :  { %4860 = vmatpush.bf16.msrb.mxu3 %v13475_v31  ;;  %4841 = vmatmul.bf16.vlgmr.msra.gmra.mxu0 %v20135_v61  ;;  %v18841_v31 = vld [vmem:[%s29481_s2 + $0x119c] sm:$0xf] }
 0x1d0   :  { %4885 = vmatpush.bf16.msrb.mxu0 %v14359_v32  ;;  %v18620_v32 = vld [vmem:[%s29481_s2 + $0xab4] sm:$0xf]  ;;  %v4582_v41 = vpop.f32.mrf.mxu3  ;;  %v14567_v44 = vor.u32 %v18841_v31, %v14564_v33  ;;  %v4608_v60 = vpop.f32.mrf.mxu2  ;;  %v18802_v31 = vld [vmem:[%s29481_s2 + $0x1064] sm:$0xf] }
 0x1d1   :  { %4873 = vmatpush.bf16.msra.mxu1 %v13891_v63  ;;  %4854 = vmatmul.bf16.vlgmr.msra.gmra.mxu2 %v20157_v6  ;;  %v18503_v63 = vld [vmem:[%s29481_s2 + $0x70c] sm:$0xf]  ;;  %v13683_v46 = vor.u32 %v18620_v32, %v13680_v34  ;;  %v13530_v32 = vld [vmem:[%s29481_s2 + $0x980] sm:$0xf]  ;;  %v18588_v34 = vld [vmem:[%s29481_s2 + $0x9b0] sm:$0xf0] }
 0x1d2   :  { %4898 = vmatpush.bf16.msrb.mxu2 %v14775_v37  ;;  %v14151_v37 = vor.u32 %v18737_v27, %v14148_v29  ;;  %v13579_v27 = vor.u32 %v18594_v54, %v13576_v17  ;;  %v13992_v29 = vld [vmem:[%s29481_s2 + $0xd54] sm:$0xf0]  ;;  %v18666_v54 = vld [vmem:[%s29481_s2 + $0xc20] sm:$0xf0]  ;;  %v12542_v17 = vld [vmem:[%s29481_s2 + $0x1c8] sm:$0xf] }
 0x1d3   :  { %4861 = vmatpush.bf16.msrb.mxu3 %v13423_v49  ;;  %v18828_v49 = vld [vmem:[%s29481_s2 + $0x1134] sm:$0xf] }
 0x1d4   :  { %4886 = vmatpush.bf16.msrb.mxu0 %v14307_v51  ;;  %v4583_v51 = vadd.f32 %v4582_v41, %v4570_v10  ;;  %v14515_v9 = vor.u32 %v18828_v49, %v14512_v52  ;;  %v14408_v10 = vld [vmem:[%s29481_s2 + $0x1094] sm:$0xf0]  ;;  %v18367_v41 = vld [vmem:[%s29481_s2 + $0x2c8] sm:$0xf0]  ;;  %v13531_v52 = vor.u32 %v18588_v34, %v13530_v32  ;;  %v18328_v32 = vld [vmem:[%s29481_s2 + $0x190] sm:$0xf0] }
 0x1d5   :  { %4874 = vmatpush.bf16.msra.mxu1 %v13839_v57  ;;  %v13215_v57 = vor.u32 %v18503_v63, %v13212_v39  ;;  %v18692_v63 = vld [vmem:[%s29481_s2 + $0xcf0] sm:$0xf0]  ;;  %v12646_v39 = vld [vmem:[%s29481_s2 + $0x298] sm:$0xf]  ;;  %v12906_v34 = vld [vmem:[%s29481_s2 + $0x4a0] sm:$0xf] }
 0x1d6   :  { %4899 = vmatpush.bf16.msrb.mxu2 %v14723_v56  ;;  %v13628_v56 = vld [vmem:[%s29481_s2 + $0xa7c] sm:$0xf0]  ;;  %v4596_v59 = vadd.f32 %v4595_v25, %v4583_v51  ;;  %v18698_v25 = vld [vmem:[%s29481_s2 + $0xd24] sm:$0xf]  ;;  %v14411_v51 = vor.u32 %v18802_v31, %v14408_v10  ;;  %v18653_v31 = vld [vmem:[%s29481_s2 + $0xbb8] sm:$0xf0] }
 0x1d7   :  { %4862 = vmatpush.bf16.msrb.mxu3 %v13371_v2  ;;  %v14044_v2 = vld [vmem:[%s29481_s2 + $0xdbc] sm:$0xf0]  ;;  %v13631_v11 = vor.u32 %v18607_v55, %v13628_v56  ;;  %v12647_v56 = vor.u32 %v18367_v41, %v12646_v39  ;;  %v18536_v39 = vld [vmem:[%s29481_s2 + $0x810] sm:$0xf0] }
 0x1d8   :  { %4887 = vmatpush.bf16.msrb.mxu0 %v14255_v5  ;;  %v4597_v5 = vpop.f32.mrf.mxu0  ;;  %v22961_v15 = vadd.f32 %v4608_v60, %v4596_v59  ;;  %v13894_v59 = vld [vmem:[%s29481_s2 + $0xc58] sm:$0xf]  ;;  %v13063_v60 = vor.u32 %v18471_v48, %v13062_v47  ;;  %v12490_v10 = vld [vmem:[%s29481_s2 + $0x160] sm:$0xf]  ;;  %v18640_v47 = vld [vmem:[%s29481_s2 + $0xb50] sm:$0xf0] }
 0x1d9   :  { %4875 = vmatpush.bf16.msra.mxu1 %v13787_v14  ;;  %v14824_v14 = vld [vmem:[%s29481_s2 + $0x13d4] sm:$0xf0]  ;;  %v13738_v41 = vld [vmem:[%s29481_s2 + $0xb20] sm:$0xf] }
 0x1da   :  { %4900 = vmatpush.bf16.msrb.mxu2 %v14671_v13  ;;  %v18906_v13 = vld [vmem:[%s29481_s2 + $0x13a4] sm:$0xf]  ;;  %v12438_v48 = vld [vmem:[%s29481_s2 + $0xf8] sm:$0xf] }
 0x1db   :  { %4863 = vmatpush.bf16.msrb.mxu3 %v13319_v19  ;;  %v18380_v19 = vld [vmem:[%s29481_s2 + $0x330] sm:$0xf0]  ;;  %v14827_v21 = vor.u32 %v18906_v13, %v14824_v14  ;;  %v18562_v13 = vld [vmem:[%s29481_s2 + $0x8e0] sm:$0xf0]  ;;  %v13842_v14 = vld [vmem:[%s29481_s2 + $0xbf0] sm:$0xf] }
 0x1dc   :  { %4888 = vmatpush.bf16.msrb.mxu0 %v14203_v20  ;;  %v14047_v20 = vor.u32 %v18711_v1, %v14044_v2  ;;  %v12699_v33 = vor.u32 %v18380_v19, %v12698_v42  ;;  %v18354_v1 = vld [vmem:[%s29481_s2 + $0x260] sm:$0xf0]  ;;  %v13010_v2 = vld [vmem:[%s29481_s2 + $0x570] sm:$0xf]  ;;  %v12958_v42 = vld [vmem:[%s29481_s2 + $0x508] sm:$0xf] }
 0x1dd   :  { %4876 = vmatpush.bf16.msra.mxu1 %v13735_v8  ;;  %v14463_v8 = vor.u32 %v18815_v12, %v14460_v50  ;;  %v13426_v12 = vld [vmem:[%s29481_s2 + $0x8b0] sm:$0xf]  ;;  %v13011_v50 = vor.u32 %v18458_v3, %v13010_v2  ;;  %v18445_v19 = vld [vmem:[%s29481_s2 + $0x538] sm:$0xf0] }
 0x1de   :  { %4901 = vmatpush.bf16.msrb.mxu2 %v14619_v26  ;;  %v4584_v26 = vpop.f32.mrf.mxu3 }
 0x1df   :  { %4864 = vmatpush.bf16.msrb.mxu3 %v13267_v24  ;;  %v13946_v24 = vld [vmem:[%s29481_s2 + $0xcc0] sm:$0xf]  ;;  %v18549_v26 = vld [vmem:[%s29481_s2 + $0x878] sm:$0xf0] }
 0x1e0   :  { %4889 = vmatpush.bf16.msrb.mxu0 %v14151_v37  ;;  %v13115_v37 = vor.u32 %v18484_v43, %v13114_v23  ;;  %v23020_v49 = vpop.f32.mrf.mxu0  ;;  %v13947_v55 = vor.u32 %v18692_v63, %v13946_v24  ;;  %v13843_v23 = vor.u32 %v18666_v54, %v13842_v14  ;;  %v18432_v24 = vld [vmem:[%s29481_s2 + $0x4d0] sm:$0xf0]  ;;  %v12802_v14 = vld [vmem:[%s29481_s2 + $0x3d0] sm:$0xf] }
 0x1e1   :  { %4877 = vmatpush.bf16.msra.mxu1 %v13683_v46  ;;  %v13995_v46 = vor.u32 %v18698_v25, %v13992_v29  ;;  %v13374_v25 = vld [vmem:[%s29481_s2 + $0x848] sm:$0xf] }
 0x1e2   :  { %4902 = vmatpush.bf16.msrb.mxu2 %v14567_v44  ;;  %v4610_v44 = vpop.f32.mrf.mxu2  ;;  %v13790_v29 = vld [vmem:[%s29481_s2 + $0xb88] sm:$0xf] }
 0x1e3   :  { %4865 = vmatpush.bf16.msrb.mxu3 %v13215_v57  ;;  %v13478_v57 = vld [vmem:[%s29481_s2 + $0x918] sm:$0xf]  ;;  %v13791_v63 = vor.u32 %v18653_v31, %v13790_v29  ;;  %v12491_v44 = vor.u32 %v18328_v32, %v12490_v10  ;;  %v18393_v29 = vld [vmem:[%s29481_s2 + $0x398] sm:$0xf0]  ;;  %v14362_v31 = vld [vmem:[%s29481_s2 + $0x1000] sm:$0xf] }
 0x1e4   :  { %4890 = vmatpush.bf16.msrb.mxu0 %v14099_v62  ;;  %v18679_v62 = vld [vmem:[%s29481_s2 + $0xc88] sm:$0xf0]  ;;  %v13479_v5 = vor.u32 %v18575_v58, %v13478_v57  ;;  %v757_v57 = vperm.slane %v22880_v16, 7  ;;  %v18796_v32 = vld [vmem:[%s29481_s2 + $0x1030] sm:$0xf0] }
 0x1e5   :  { %4878 = vmatpush.bf16.msra.mxu1 %v13631_v11  ;;  %v12595_v11 = vor.u32 %v18354_v1, %v12594_v0  ;;  %v13270_v0 = vld [vmem:[%s29481_s2 + $0x778] sm:$0xf]  ;;  %v18523_v1 = vld [vmem:[%s29481_s2 + $0x7a8] sm:$0xf0] }
 0x1e6   :  { %4903 = vmatpush.bf16.msrb.mxu2 %v14515_v9  ;;  %v13895_v9 = vor.u32 %v18679_v62, %v13894_v59  ;;  %v13739_v62 = vor.u32 %v18640_v47, %v13738_v41  ;;  %v13582_v41 = vld [vmem:[%s29481_s2 + $0x9e8] sm:$0xf]  ;;  %v18601_v47 = vld [vmem:[%s29481_s2 + $0xa18] sm:$0xf0] }
 0x1e7   :  { %4866 = vmatpush.bf16.msrb.mxu3 %v13163_v18  ;;  %v18341_v18 = vld [vmem:[%s29481_s2 + $0x1f8] sm:$0xf0] }
 0x1e8   :  { %4891 = vmatpush.bf16.msrb.mxu0 %v14047_v20  ;;  %v4649_v20 = vpop.f32.mrf.mxu0  ;;  %v12543_v43 = vor.u32 %v18341_v18, %v12542_v17  ;;  %v13271_v17 = vor.u32 %v18523_v1, %v13270_v0  ;;  %v14726_v0 = vld [vmem:[%s29481_s2 + $0x12d8] sm:$0xf]  ;;  %v18887_v1 = vld [vmem:[%s29481_s2 + $0x1308] sm:$0xf0] }
 0x1e9   :  { %4879 = vmatpush.bf16.msra.mxu1 %v13579_v27  ;;  %v4621_v27 = vpop.f32.mrf.mxu1  ;;  %v13634_v20 = vld [vmem:[%s29481_s2 + $0xa50] sm:$0xf] }
 0x1ea   :  { %4904 = vmatpush.bf16.msrb.mxu2 %v14463_v8  ;;  %4867 = vmatmul.bf16.vlgmr.msrb.gmra.mxu3 %v20118_v53  ;;  %v12959_v8 = vor.u32 %v18445_v19, %v12958_v42  ;;  %v13218_v42 = vld [vmem:[%s29481_s2 + $0x710] sm:$0xf]  ;;  %v18510_v19 = vld [vmem:[%s29481_s2 + $0x740] sm:$0xf0] }
 0x1eb   :  { %4918 = vmatpush.bf16.msra.mxu3 %v14827_v21  ;;  %v13427_v21 = vor.u32 %v18562_v13, %v13426_v12 }
 0x1ec   :  { %4892 = vmatpush.bf16.msrb.mxu0 %v13995_v46  ;;  %4880 = vmatmul.bf16.vlgmr.msra.gmra.mxu1 %v20159_v7  ;;  %v12907_v46 = vor.u32 %v18432_v24, %v12906_v34  ;;  %v14778_v34 = vld [vmem:[%s29481_s2 + $0x1340] sm:$0xf]  ;;  %v18900_v24 = vld [vmem:[%s29481_s2 + $0x1370] sm:$0xf0] }
 0x1ed   :  { %4924 = vmatpush.bf16.msrb.mxu1 %v12699_v33  ;;  %v4622_v33 = vadd.f32 %v4621_v27, %v22961_v15  ;;  %v13322_v15 = vld [vmem:[%s29481_s2 + $0x7e0] sm:$0xf]  ;;  %v12750_v27 = vld [vmem:[%s29481_s2 + $0x368] sm:$0xf] }
 0x1ee   :  { %4905 = vmatpush.bf16.msrb.mxu2 %v14411_v51  ;;  %v18315_v51 = vld [vmem:[%s29481_s2 + $0x128] sm:$0xf0]  ;;  %v13323_v59 = vor.u32 %v18536_v39, %v13322_v15  ;;  %v13166_v15 = vld [vmem:[%s29481_s2 + $0x6a8] sm:$0xf]  ;;  %v18497_v39 = vld [vmem:[%s29481_s2 + $0x6d8] sm:$0xf0] }
 0x1ef   :  { %4937 = vmatpush.bf16.msrb.mxu3 %v13115_v37  ;;  %4893 = vmatmul.bf16.vlgmr.msrb.gmra.mxu0 %v20329_v30  ;;  %v13375_v37 = vor.u32 %v18549_v26, %v13374_v25  ;;  %v12439_v2 = vor.u32 %v18315_v51, %v12438_v48  ;;  %v18614_v25 = vld [vmem:[%s29481_s2 + $0xa80] sm:$0xf0]  ;;  %v12334_v26 = vld [vmem:[%s29481_s2 + $0x28] sm:$0xf]  ;;  %v18913_v51 = vld [vmem:[%s29481_s2 + $0x13d8] sm:$0xf0] }
 0x1f0   :  { %4950 = vmatpush.bf16.msra.mxu0 %v13531_v52  ;;  %v4634_v52 = vpop.f32.mrf.mxu3  ;;  %v4660_v13 = vpop.f32.mrf.mxu2  ;;  %v14830_v48 = vld [vmem:[%s29481_s2 + $0x13a8] sm:$0xf] }
 0x1f1   :  { %4925 = vmatpush.bf16.msrb.mxu1 %v12647_v56  ;;  %4906 = vmatmul.bf16.vlgmr.msrb.gmra.mxu2 %v20340_v35  ;;  %v18419_v56 = vld [vmem:[%s29481_s2 + $0x468] sm:$0xf0]  ;;  %v4635_v58 = vadd.f32 %v4634_v52, %v4622_v33  ;;  %v4623_v12 = vpop.f32.mrf.mxu1  ;;  %v4661_v54 = vadd.f32 %v4660_v13, %v757_v57  ;;  %v13219_v33 = vor.u32 %v18510_v19, %v13218_v42  ;;  %v18374_v57 = vld [vmem:[%s29481_s2 + $0x304] sm:$0xf] }
 0x1f2   :  { %4963 = vmatpush.bf16.msra.mxu2 %v13947_v55  ;;  %v12854_v55 = vld [vmem:[%s29481_s2 + $0x438] sm:$0xf]  ;;  %v14727_v13 = vor.u32 %v18887_v1, %v14726_v0  ;;  %v18731_v1 = vld [vmem:[%s29481_s2 + $0xe28] sm:$0xf0] }
 0x1f3   :  { %4938 = vmatpush.bf16.msrb.mxu3 %v13063_v60  ;;  %v4673_v60 = vpop.f32.mrf.mxu0  ;;  %v23133_v16 = vadd.f32 %v23020_v49, %v4635_v58  ;;  %v12855_v3 = vor.u32 %v18419_v56, %v12854_v55  ;;  %v18302_v49 = vld [vmem:[%s29481_s2 + $0xc0] sm:$0xf0]  ;;  %v14363_v55 = vor.u32 %v18796_v32, %v14362_v31  ;;  %v14779_v56 = vor.u32 %v18900_v24, %v14778_v34  ;;  %v12700_v58 = vld [vmem:[%s29481_s2 + $0x334] sm:$0xf0]  ;;  %v14622_v31 = vld [vmem:[%s29481_s2 + $0x1208] sm:$0xf] }
 0x1f4   :  { %4951 = vmatpush.bf16.msra.mxu0 %v13479_v5  ;;  %v13686_v5 = vld [vmem:[%s29481_s2 + $0xab8] sm:$0xf]  ;;  %v18452_v24 = vld [vmem:[%s29481_s2 + $0x574] sm:$0xf] }
 0x1f5   :  { %4926 = vmatpush.bf16.msrb.mxu1 %v12595_v11  ;;  %v12386_v11 = vld [vmem:[%s29481_s2 + $0x90] sm:$0xf] }
 0x1f6   :  { %4964 = vmatpush.bf16.msra.mxu2 %v13895_v9  ;;  %v18627_v9 = vld [vmem:[%s29481_s2 + $0xae8] sm:$0xf0] }
 0x1f7   :  { %4939 = vmatpush.bf16.msrb.mxu3 %v13011_v50  ;;  %v18406_v50 = vld [vmem:[%s29481_s2 + $0x400] sm:$0xf0]  ;;  %v13687_v18 = vor.u32 %v18627_v9, %v13686_v5  ;;  %v12703_v5 = vor.u32 %v18374_v57, %v12700_v58 }
 0x1f8   :  { %4952 = vmatpush.bf16.msra.mxu0 %v13427_v21  ;;  %v23162_v21 = vadd.f32 %v4673_v60, %v4661_v54  ;;  %v4636_v10 = vpop.f32.mrf.mxu3  ;;  %v4662_v52 = vpop.f32.mrf.mxu2  ;;  %v13167_v60 = vor.u32 %v18497_v39, %v13166_v15  ;;  %v18478_v9 = vld [vmem:[%s29481_s2 + $0x644] sm:$0xf] }
 0x1f9   :  { %4927 = vmatpush.bf16.msrb.mxu1 %v12543_v43  ;;  %v12803_v43 = vor.u32 %v18406_v50, %v12802_v14  ;;  %v12648_v14 = vld [vmem:[%s29481_s2 + $0x2cc] sm:$0xf0]  ;;  %v18770_v54 = vld [vmem:[%s29481_s2 + $0xf60] sm:$0xf0]  ;;  %v18861_v10 = vld [vmem:[%s29481_s2 + $0x1238] sm:$0xf0] }
 0x1fa   :  { %4965 = vmatpush.bf16.msra.mxu2 %v13843_v23  ;;  %14849 = vmatmul.msk.bf16.vlgmr.msra.gmra.mxu3 %vm4010_vm0, %v20238_v45  ;;  %v12387_v23 = vor.u32 %v18302_v49, %v12386_v11  ;;  %v13116_v11 = vld [vmem:[%s29481_s2 + $0x674] sm:$0xf0]  ;;  %v18361_v49 = vld [vmem:[%s29481_s2 + $0x29c] sm:$0xf]  ;;  %v14258_v50 = vld [vmem:[%s29481_s2 + $0xf30] sm:$0xf]  ;;  %v14623_v39 = vor.u32 %v18861_v10, %v14622_v31 }
 0x1fb   :  { %4940 = vmatpush.bf16.msrb.mxu3 %v12959_v8  ;;  %v18289_v8 = vld [vmem:[%s29481_s2 + $0x58] sm:$0xf0]  ;;  %v13119_v42 = vor.u32 %v18478_v9, %v13116_v11  ;;  %v12651_v19 = vor.u32 %v18361_v49, %v12648_v14  ;;  %v12908_v49 = vld [vmem:[%s29481_s2 + $0x4d4] sm:$0xf0]  ;;  %v18296_v31 = vld [vmem:[%s29481_s2 + $0x94] sm:$0xf] }
 0x1fc   :  { %4953 = vmatpush.bf16.msra.mxu0 %v13375_v37  ;;  %v4675_v37 = vpop.f32.mrf.mxu0 }
 0x1fd   :  { %4928 = vmatpush.bf16.msrb.mxu1 %v12491_v44  ;;  %v12335_v44 = vor.u32 %v18289_v8, %v12334_v26  ;;  %v18348_v26 = vld [vmem:[%s29481_s2 + $0x234] sm:$0xf]  ;;  %v12596_v8 = vld [vmem:[%s29481_s2 + $0x264] sm:$0xf0] }
 0x1fe   :  { %4966 = vmatpush.bf16.msra.mxu2 %v13791_v63  ;;  %v13635_v63 = vor.u32 %v18614_v25, %v13634_v20  ;;  %v18465_v20 = vld [vmem:[%s29481_s2 + $0x5dc] sm:$0xf]  ;;  %v12599_v34 = vor.u32 %v18348_v26, %v12596_v8  ;;  %v13012_v37 = vld [vmem:[%s29481_s2 + $0x5a4] sm:$0xf0] }
 0x1ff   :  { %4941 = vmatpush.bf16.msrb.mxu3 %v12907_v46  ;;  %v12751_v46 = vor.u32 %v18393_v29, %v12750_v27  ;;  %v14206_v27 = vld [vmem:[%s29481_s2 + $0xec8] sm:$0xf]  ;;  %v18757_v29 = vld [vmem:[%s29481_s2 + $0xef8] sm:$0xf0] }
 0x200   :  { %4954 = vmatpush.bf16.msra.mxu0 %v13323_v59  ;;  %v14310_v59 = vld [vmem:[%s29481_s2 + $0xf98] sm:$0xf]  ;;  %v14207_v15 = vor.u32 %v18757_v29, %v14206_v27  ;;  %v18413_v27 = vld [vmem:[%s29481_s2 + $0x43c] sm:$0xf]  ;;  %v12856_v29 = vld [vmem:[%s29481_s2 + $0x46c] sm:$0xf0] }
 0x201   :  { %4929 = vmatpush.bf16.msrb.mxu1 %v12439_v2  ;;  %v13583_v2 = vor.u32 %v18601_v47, %v13582_v41  ;;  %v18335_v41 = vld [vmem:[%s29481_s2 + $0x1cc] sm:$0xf]  ;;  %v14570_v47 = vld [vmem:[%s29481_s2 + $0x11a0] sm:$0xf] }
 0x202   :  { %4967 = vmatpush.bf16.msra.mxu2 %v13739_v62  ;;  %v18783_v62 = vld [vmem:[%s29481_s2 + $0xfc8] sm:$0xf0] }
 0x203   :  { %4942 = vmatpush.bf16.msrb.mxu3 %v12855_v3  ;;  %v14831_v3 = vor.u32 %v18913_v51, %v14830_v48  ;;  %v14311_v12 = vor.u32 %v18783_v62, %v14310_v59  ;;  %v18848_v48 = vld [vmem:[%s29481_s2 + $0x11d0] sm:$0xf0]  ;;  %v13015_v51 = vor.u32 %v18452_v24, %v13012_v37  ;;  %v18322_v59 = vld [vmem:[%s29481_s2 + $0x164] sm:$0xf]  ;;  %v14102_v62 = vld [vmem:[%s29481_s2 + $0xdf8] sm:$0xf] }
 0x204   :  { %4955 = vmatpush.bf16.msra.mxu0 %v13271_v17  ;;  %v14674_v17 = vld [vmem:[%s29481_s2 + $0x1270] sm:$0xf]  ;;  %v14571_v58 = vor.u32 %v18848_v48, %v14570_v47  ;;  %v13998_v24 = vld [vmem:[%s29481_s2 + $0xd28] sm:$0xf]  ;;  %v18705_v37 = vld [vmem:[%s29481_s2 + $0xd58] sm:$0xf0] }
 0x205   :  { %4930 = vmatpush.bf16.msrb.mxu1 %v12387_v23  ;;  %v13064_v23 = vld [vmem:[%s29481_s2 + $0x60c] sm:$0xf0]  ;;  %v4686_v32 = vpop.f32.mrf.mxu1  ;;  %v13948_v47 = vld [vmem:[%s29481_s2 + $0xcf4] sm:$0xf0] }
 0x206   :  { %4968 = vmatpush.bf16.msra.mxu2 %v13687_v18  ;;  %v18874_v18 = vld [vmem:[%s29481_s2 + $0x12a0] sm:$0xf0] }
 0x207   :  { %4943 = vmatpush.bf16.msrb.mxu3 %v12803_v43  ;;  %v14259_v43 = vor.u32 %v18770_v54, %v14258_v50  ;;  %v14675_v25 = vor.u32 %v18874_v18, %v14674_v17  ;;  %v14103_v50 = vor.u32 %v18731_v1, %v14102_v62  ;;  %v18309_v17 = vld [vmem:[%s29481_s2 + $0xfc] sm:$0xf]  ;;  %v12440_v18 = vld [vmem:[%s29481_s2 + $0x12c] sm:$0xf0]  ;;  %v12336_v62 = vld [vmem:[%s29481_s2 + $0x5c] sm:$0xf0] }
 0x208   :  { %4956 = vmatpush.bf16.msra.mxu0 %v13219_v33  ;;  %v13067_v33 = vor.u32 %v18465_v20, %v13064_v23  ;;  %v18718_v20 = vld [vmem:[%s29481_s2 + $0xdc0] sm:$0xf0]  ;;  %v14466_v23 = vld [vmem:[%s29481_s2 + $0x10d0] sm:$0xf]  ;;  %v12443_v8 = vor.u32 %v18309_v17, %v12440_v18 }
 0x209   :  { %4931 = vmatpush.bf16.msrb.mxu1 %v12335_v44  ;;  %v12544_v44 = vld [vmem:[%s29481_s2 + $0x1fc] sm:$0xf0]  ;;  %v18894_v18 = vld [vmem:[%s29481_s2 + $0x1344] sm:$0xf] }
 0x20a   :  { %4969 = vmatpush.bf16.msra.mxu2 %v13635_v63  ;;  %v4687_v63 = vadd.f32 %v4686_v32, %v23162_v21  ;;  %v18744_v21 = vld [vmem:[%s29481_s2 + $0xe90] sm:$0xf0]  ;;  %v12547_v52 = vor.u32 %v18335_v41, %v12544_v44  ;;  %v12859_v44 = vor.u32 %v18413_v27, %v12856_v29  ;;  %v13844_v29 = vld [vmem:[%s29481_s2 + $0xc24] sm:$0xf0] }
 0x20b   :  { %4944 = vmatpush.bf16.msrb.mxu3 %v12751_v46  ;;  %v14154_v46 = vld [vmem:[%s29481_s2 + $0xe60] sm:$0xf]  ;;  %v18660_v27 = vld [vmem:[%s29481_s2 + $0xbf4] sm:$0xf] }
 0x20c   :  { %4957 = vmatpush.bf16.msra.mxu0 %v13167_v60  ;;  %4932 = vmatmul.bf16.vlgmr.msrb.gmra.mxu1 %v20135_v61  ;;  %v14155_v57 = vor.u32 %v18744_v21, %v14154_v46  ;;  %v12492_v60 = vld [vmem:[%s29481_s2 + $0x194] sm:$0xf0]  ;;  %v4725_v0 = vpop.f32.mrf.mxu0  ;;  %v18686_v21 = vld [vmem:[%s29481_s2 + $0xcc4] sm:$0xf] }
 0x20d   :  { %4976 = vmatpush.bf16.msra.mxu1 %v14363_v55  ;;  %v18439_v55 = vld [vmem:[%s29481_s2 + $0x50c] sm:$0xf]  ;;  %v4688_v9 = vpop.f32.mrf.mxu1  ;;  %v4699_v11 = vpop.f32.mrf.mxu3  ;;  %v13532_v46 = vld [vmem:[%s29481_s2 + $0x9b4] sm:$0xf0]  ;;  %v13951_v1 = vor.u32 %v18686_v21, %v13948_v47 }
 0x20e   :  { %4970 = vmatpush.bf16.msra.mxu2 %v13583_v2  ;;  %4945 = vmatmul.bf16.vlgmr.msrb.gmra.mxu3 %v20157_v6  ;;  %v14518_v2 = vld [vmem:[%s29481_s2 + $0x1138] sm:$0xf]  ;;  %v4700_v14 = vadd.f32 %v4699_v11, %v4687_v63  ;;  %v14414_v63 = vld [vmem:[%s29481_s2 + $0x1068] sm:$0xf] }
 0x20f   :  { %4989 = vmatpush.bf16.msra.mxu3 %v14779_v56  ;;  %4958 = vmatmul.bf16.vlgmr.msra.gmra.mxu0 %v20118_v53  ;;  %v12960_v56 = vld [vmem:[%s29481_s2 + $0x53c] sm:$0xf0] }
 0x210   :  { %5009 = vmatpush.bf16.msrb.mxu0 %v14831_v3  ;;  %v18835_v3 = vld [vmem:[%s29481_s2 + $0x1168] sm:$0xf0] }
 0x211   :  { %4977 = vmatpush.bf16.msra.mxu1 %v14311_v12  ;;  %4971 = vmatmul.bf16.vlgmr.msra.gmra.mxu2 %v20159_v7  ;;  %v12495_v12 = vor.u32 %v18322_v59, %v12492_v60  ;;  %v14519_v54 = vor.u32 %v18835_v3, %v14518_v2  ;;  %v18283_v60 = vld [vmem:[%s29481_s2 + $0x2c] sm:$0xf]  ;;  %v18790_v2 = vld [vmem:[%s29481_s2 + $0x1004] sm:$0xf]  ;;  %v14364_v3 = vld [vmem:[%s29481_s2 + $0x1034] sm:$0xf0] }
 0x212   :  { %5015 = vmatpush.bf16.msrb.mxu2 %v12703_v5  ;;  %v12963_v5 = vor.u32 %v18439_v55, %v12960_v56  ;;  %v12804_v55 = vld [vmem:[%s29481_s2 + $0x404] sm:$0xf0]  ;;  %v14367_v17 = vor.u32 %v18790_v2, %v14364_v3 }
 0x213   :  { %4990 = vmatpush.bf16.msra.mxu3 %v14727_v13  ;;  %v18426_v13 = vld [vmem:[%s29481_s2 + $0x4a4] sm:$0xf] }
 0x214   :  { %5028 = vmatpush.bf16.msra.mxu0 %v13119_v42  ;;  %v14050_v42 = vld [vmem:[%s29481_s2 + $0xd90] sm:$0xf]  ;;  %v12911_v26 = vor.u32 %v18426_v13, %v12908_v49  ;;  %v4727_v41 = vpop.f32.mrf.mxu0  ;;  %v18673_v13 = vld [vmem:[%s29481_s2 + $0xc5c] sm:$0xf] }
 0x215   :  { %4978 = vmatpush.bf16.msra.mxu1 %v14259_v43  ;;  %v18822_v43 = vld [vmem:[%s29481_s2 + $0x1100] sm:$0xf0]  ;;  %v4738_v48 = vpop.f32.mrf.mxu1  ;;  %v4701_v56 = vpop.f32.mrf.mxu3  ;;  %v13896_v49 = vld [vmem:[%s29481_s2 + $0xc8c] sm:$0xf0]  ;;  %v13376_v41 = vld [vmem:[%s29481_s2 + $0x87c] sm:$0xf0] }
 0x216   :  { %5016 = vmatpush.bf16.msrb.mxu2 %v12651_v19  ;;  %v4712_v19 = vpop.f32.mrf.mxu2  ;;  %v14467_v32 = vor.u32 %v18822_v43, %v14466_v23  ;;  %v18777_v23 = vld [vmem:[%s29481_s2 + $0xf9c] sm:$0xf]  ;;  %v14312_v43 = vld [vmem:[%s29481_s2 + $0xfcc] sm:$0xf0] }
 0x217   :  { %4991 = vmatpush.bf16.msra.mxu3 %v14675_v25  ;;  %v4713_v25 = vadd.f32 %v4712_v19, %v4700_v14  ;;  %v12339_v14 = vor.u32 %v18283_v60, %v12336_v62  ;;  %v13324_v60 = vld [vmem:[%s29481_s2 + $0x814] sm:$0xf0]  ;;  %v18634_v62 = vld [vmem:[%s29481_s2 + $0xb24] sm:$0xf] }
 0x218   :  { %5029 = vmatpush.bf16.msra.mxu0 %v13067_v33  ;;  %v14051_v33 = vor.u32 %v18718_v20, %v14050_v42  ;;  %v14780_v42 = vld [vmem:[%s29481_s2 + $0x1374] sm:$0xf0]  ;;  %v13899_v20 = vor.u32 %v18673_v13, %v13896_v49 }
 0x219   :  { %4979 = vmatpush.bf16.msra.mxu1 %v14207_v15  ;;  %v4726_v10 = vadd.f32 %v4725_v0, %v4713_v25  ;;  %v18809_v15 = vld [vmem:[%s29481_s2 + $0x1098] sm:$0xf0]  ;;  %v18556_v25 = vld [vmem:[%s29481_s2 + $0x8b4] sm:$0xf]  ;;  %v14156_v49 = vld [vmem:[%s29481_s2 + $0xe94] sm:$0xf0] }
 0x21a   :  { %5017 = vmatpush.bf16.msrb.mxu2 %v12599_v34  ;;  %v12388_v34 = vld [vmem:[%s29481_s2 + $0xc4] sm:$0xf0]  ;;  %v14415_v59 = vor.u32 %v18809_v15, %v14414_v63  ;;  %v18764_v63 = vld [vmem:[%s29481_s2 + $0xf34] sm:$0xf] }
 0x21b   :  { %4992 = vmatpush.bf16.msra.mxu3 %v14623_v39  ;;  %v18582_v39 = vld [vmem:[%s29481_s2 + $0x984] sm:$0xf]  ;;  %v14260_v15 = vld [vmem:[%s29481_s2 + $0xf64] sm:$0xf0] }
 0x21c   :  { %5030 = vmatpush.bf16.msra.mxu0 %v13015_v51  ;;  %v12391_v51 = vor.u32 %v18296_v31, %v12388_v34  ;;  %v13535_v0 = vor.u32 %v18582_v39, %v13532_v46  ;;  %v14783_v31 = vor.u32 %v18894_v18, %v14780_v42  ;;  %v14728_v34 = vld [vmem:[%s29481_s2 + $0x130c] sm:$0xf0]  ;;  %v18543_v39 = vld [vmem:[%s29481_s2 + $0x84c] sm:$0xf]  ;;  %v13792_v46 = vld [vmem:[%s29481_s2 + $0xbbc] sm:$0xf0]  ;;  %v14263_v47 = vor.u32 %v18764_v63, %v14260_v15 }
 0x21d   :  { %4980 = vmatpush.bf16.msra.mxu1 %v14155_v57  ;;  %v23396_v57 = vadd.f32 %v4738_v48, %v4726_v10  ;;  %v4740_v10 = vpop.f32.mrf.mxu1  ;;  %v18868_v48 = vld [vmem:[%s29481_s2 + $0x1274] sm:$0xf]  ;;  %v13688_v18 = vld [vmem:[%s29481_s2 + $0xaec] sm:$0xf0] }
 0x21e   :  { %5018 = vmatpush.bf16.msrb.mxu2 %v12547_v52  ;;  %v18400_v52 = vld [vmem:[%s29481_s2 + $0x3d4] sm:$0xf]  ;;  %v4714_v9 = vpop.f32.mrf.mxu2 }
 0x21f   :  { %4993 = vmatpush.bf16.msra.mxu3 %v14571_v58  ;;  %14850 = vmatmul.msk.bf16.vlgmr.msrb.gmra.mxu0 %vm4010_vm0, %v20238_v45  ;;  %v13999_v58 = vor.u32 %v18705_v37, %v13998_v24  ;;  %v12807_v11 = vor.u32 %v18400_v52, %v12804_v55  ;;  %v13847_v37 = vor.u32 %v18660_v27, %v13844_v29  ;;  %v18751_v52 = vld [vmem:[%s29481_s2 + $0xecc] sm:$0xf]  ;;  %v14624_v9 = vld [vmem:[%s29481_s2 + $0x123c] sm:$0xf0]  ;;  %v18725_v29 = vld [vmem:[%s29481_s2 + $0xdfc] sm:$0xf] }
 0x220   :  { %5031 = vmatpush.bf16.msra.mxu0 %v12963_v5  ;;  %v18569_v5 = vld [vmem:[%s29481_s2 + $0x91c] sm:$0xf]  ;;  %v13379_v55 = vor.u32 %v18543_v39, %v13376_v41  ;;  %v18504_v10 = vld [vmem:[%s29481_s2 + $0x714] sm:$0xf] }
 0x221   :  { %4981 = vmatpush.bf16.msra.mxu1 %v14103_v50  ;;  %v18387_v50 = vld [vmem:[%s29481_s2 + $0x36c] sm:$0xf]  ;;  %v18829_v41 = vld [vmem:[%s29481_s2 + $0x113c] sm:$0xf] }
 0x222   :  { %5019 = vmatpush.bf16.msrb.mxu2 %v12495_v12  ;;  %v13480_v12 = vld [vmem:[%s29481_s2 + $0x94c] sm:$0xf0] }
 0x223   :  { %4994 = vmatpush.bf16.msra.mxu3 %v14519_v54  ;;  %v12752_v54 = vld [vmem:[%s29481_s2 + $0x39c] sm:$0xf0]  ;;  %v13483_v19 = vor.u32 %v18569_v5, %v13480_v12  ;;  %v18855_v5 = vld [vmem:[%s29481_s2 + $0x120c] sm:$0xf] }
 0x224   :  { %5032 = vmatpush.bf16.msra.mxu0 %v12911_v26  ;;  %v12755_v26 = vor.u32 %v18387_v50, %v12752_v54  ;;  %v13272_v54 = vld [vmem:[%s29481_s2 + $0x7ac] sm:$0xf0] }
 0x225   :  { %4982 = vmatpush.bf16.msra.mxu1 %v14051_v33  ;;  %v14315_v33 = vor.u32 %v18777_v23, %v14312_v43  ;;  %v18842_v43 = vld [vmem:[%s29481_s2 + $0x11a4] sm:$0xf] }
 0x226   :  { %5020 = vmatpush.bf16.msrb.mxu2 %v12443_v8  ;;  %v13428_v8 = vld [vmem:[%s29481_s2 + $0x8e4] sm:$0xf0] }
 0x227   :  { %4995 = vmatpush.bf16.msra.mxu3 %v14467_v32  ;;  %v18881_v32 = vld [vmem:[%s29481_s2 + $0x12dc] sm:$0xf]  ;;  %v13431_v24 = vor.u32 %v18556_v25, %v13428_v8  ;;  %v14572_v25 = vld [vmem:[%s29481_s2 + $0x11d4] sm:$0xf0] }
 0x228   :  { %5033 = vmatpush.bf16.msra.mxu0 %v12859_v44  ;;  %v18647_v44 = vld [vmem:[%s29481_s2 + $0xb8c] sm:$0xf]  ;;  %v14731_v21 = vor.u32 %v18881_v32, %v14728_v34  ;;  %v13220_v34 = vld [vmem:[%s29481_s2 + $0x744] sm:$0xf0]  ;;  %v14575_v63 = vor.u32 %v18842_v43, %v14572_v25  ;;  %v18589_v25 = vld [vmem:[%s29481_s2 + $0x9b8] sm:$0xf0] }
 0x229   :  { %4983 = vmatpush.bf16.msra.mxu1 %v13999_v58  ;;  %v13795_v56 = vor.u32 %v18647_v44, %v13792_v46  ;;  %v14208_v58 = vld [vmem:[%s29481_s2 + $0xefc] sm:$0xf0]  ;;  %v4764_v42 = vpop.f32.mrf.mxu1  ;;  %v14520_v44 = vld [vmem:[%s29481_s2 + $0x116c] sm:$0xf0]  ;;  %v18712_v46 = vld [vmem:[%s29481_s2 + $0xd94] sm:$0xf] }
 0x22a   :  { %5021 = vmatpush.bf16.msrb.mxu2 %v12391_v51  ;;  %v14676_v51 = vld [vmem:[%s29481_s2 + $0x12a4] sm:$0xf0]  ;;  %v14211_v3 = vor.u32 %v18751_v52, %v14208_v58  ;;  %v13168_v52 = vld [vmem:[%s29481_s2 + $0x6dc] sm:$0xf0] }
 0x22b   :  { %4996 = vmatpush.bf16.msra.mxu3 %v14415_v59  ;;  %v18530_v59 = vld [vmem:[%s29481_s2 + $0x7e4] sm:$0xf]  ;;  %v14679_v2 = vor.u32 %v18868_v48, %v14676_v51  ;;  %v14052_v48 = vld [vmem:[%s29481_s2 + $0xdc4] sm:$0xf0]  ;;  %v18491_v51 = vld [vmem:[%s29481_s2 + $0x6ac] sm:$0xf] }
 0x22c   :  { %5034 = vmatpush.bf16.msra.mxu0 %v12807_v11  ;;  %4984 = vmatmul.bf16.vlgmr.msra.gmra.mxu1 %v20329_v30  ;;  %v18738_v11 = vld [vmem:[%s29481_s2 + $0xe64] sm:$0xf]  ;;  %v13327_v12 = vor.u32 %v18530_v59, %v13324_v60  ;;  %v13584_v58 = vld [vmem:[%s29481_s2 + $0xa1c] sm:$0xf0]  ;;  %v12706_v59 = vld [vmem:[%s29481_s2 + $0x308] sm:$0xf] }
 0x22d   :  { %5041 = vmatpush.bf16.msrb.mxu1 %v13535_v0  ;;  %v13740_v0 = vld [vmem:[%s29481_s2 + $0xb54] sm:$0xf0]  ;;  %v14159_v23 = vor.u32 %v18738_v11, %v14156_v49  ;;  %v14055_v11 = vor.u32 %v18712_v46, %v14052_v48  ;;  %v13538_v43 = vld [vmem:[%s29481_s2 + $0x988] sm:$0xf] }
 0x22e   :  { %5022 = vmatpush.bf16.msrb.mxu2 %v12339_v14  ;;  %4997 = vmatmul.bf16.vlgmr.msra.gmra.mxu3 %v20340_v35  ;;  %v13743_v13 = vor.u32 %v18634_v62, %v13740_v0  ;;  %v18517_v14 = vld [vmem:[%s29481_s2 + $0x77c] sm:$0xf]  ;;  %v14523_v0 = vor.u32 %v18829_v41, %v14520_v44 }
 0x22f   :  { %5054 = vmatpush.bf16.msrb.mxu3 %v13951_v1  ;;  %v23506_v1 = vld [vmem:[%s29482_s3 + $0x8] sm:$0x1f]  ;;  %v13275_v8 = vor.u32 %v18517_v14, %v13272_v54  ;;  %v13171_v14 = vor.u32 %v18491_v51, %v13168_v52  ;;  %v13902_v52 = vld [vmem:[%s29481_s2 + $0xc60] sm:$0xf] }
 0x230   :  { %5035 = vmatpush.bf16.msra.mxu0 %v12755_v26  ;;  %v758_v50 = vperm.slane %v23506_v1, 0  ;;  %v4751_v26 = vpop.f32.mrf.mxu3  ;;  %v4777_v32 = vpop.f32.mrf.mxu2  ;;  %v18699_v54 = vld [vmem:[%s29481_s2 + $0xd2c] sm:$0xf] }
 0x231   :  { %5042 = vmatpush.bf16.msrb.mxu1 %v13483_v19  ;;  %5023 = vmatmul.bf16.vlgmr.msrb.gmra.mxu2 %v20135_v61  ;;  %v4790_v19 = vpop.f32.mrf.mxu0  ;;  %v4766_v60 = vpop.f32.mrf.mxu1 }
 0x232   :  { %5067 = vmatpush.bf16.msra.mxu2 %v14367_v17  ;;  %v18621_v17 = vld [vmem:[%s29481_s2 + $0xabc] sm:$0xf]  ;;  %v18563_v60 = vld [vmem:[%s29481_s2 + $0x8e8] sm:$0xf0] }
 0x233   :  { %5055 = vmatpush.bf16.msrb.mxu3 %v13899_v20  ;;  %5036 = vmatmul.bf16.vlgmr.msra.gmra.mxu0 %v20157_v6  ;;  %v14627_v20 = vor.u32 %v18855_v5, %v14624_v9  ;;  %v13691_v27 = vor.u32 %v18621_v17, %v13688_v18  ;;  %v14832_v5 = vld [vmem:[%s29481_s2 + $0x13dc] sm:$0xf0]  ;;  %v13122_v18 = vld [vmem:[%s29481_s2 + $0x648] sm:$0xf] }
 0x234   :  { %5080 = vmatpush.bf16.msrb.mxu0 %v14783_v31  ;;  %v14104_v31 = vld [vmem:[%s29481_s2 + $0xe2c] sm:$0xf0]  ;;  %v14000_v17 = vld [vmem:[%s29481_s2 + $0xd5c] sm:$0xf0] }
 0x235   :  { %5043 = vmatpush.bf16.msrb.mxu1 %v13431_v24  ;;  %v18608_v24 = vld [vmem:[%s29481_s2 + $0xa54] sm:$0xf]  ;;  %v14107_v39 = vor.u32 %v18725_v29, %v14104_v31  ;;  %v18803_v31 = vld [vmem:[%s29481_s2 + $0x106c] sm:$0xf] }
 0x236   :  { %5068 = vmatpush.bf16.msra.mxu2 %v14315_v33  ;;  %v4752_v33 = vadd.f32 %v4751_v26, %v758_v50  ;;  %v18368_v29 = vld [vmem:[%s29481_s2 + $0x2d0] sm:$0xf0] }
 0x237   :  { %5056 = vmatpush.bf16.msrb.mxu3 %v13847_v37  ;;  %v13636_v37 = vld [vmem:[%s29481_s2 + $0xa84] sm:$0xf0] }
 0x238   :  { %5081 = vmatpush.bf16.msrb.mxu0 %v14731_v21  ;;  %v4765_v15 = vadd.f32 %v4764_v42, %v4752_v33  ;;  %v13223_v21 = vor.u32 %v18504_v10, %v13220_v34  ;;  %v4753_v49 = vpop.f32.mrf.mxu3  ;;  %v14416_v10 = vld [vmem:[%s29481_s2 + $0x109c] sm:$0xf0]  ;;  %v13954_v34 = vld [vmem:[%s29481_s2 + $0xcc8] sm:$0xf] }
 0x239   :  { %5044 = vmatpush.bf16.msrb.mxu1 %v13379_v55  ;;  %v4792_v62 = vpop.f32.mrf.mxu0  ;;  %v14419_v44 = vor.u32 %v18803_v31, %v14416_v10  ;;  %v18667_v49 = vld [vmem:[%s29481_s2 + $0xc28] sm:$0xf0]  ;;  %v18537_v31 = vld [vmem:[%s29481_s2 + $0x818] sm:$0xf0] }
 0x23a   :  { %5069 = vmatpush.bf16.msra.mxu2 %v14263_v47  ;;  %v13639_v47 = vor.u32 %v18608_v24, %v13636_v37  ;;  %v4778_v55 = vadd.f32 %v4777_v32, %v4765_v15  ;;  %v13539_v32 = vor.u32 %v18589_v25, %v13538_v43  ;;  %v18693_v24 = vld [vmem:[%s29481_s2 + $0xcf8] sm:$0xf0]  ;;  %v13070_v37 = vld [vmem:[%s29481_s2 + $0x5e0] sm:$0xf]  ;;  %v13798_v25 = vld [vmem:[%s29481_s2 + $0xb90] sm:$0xf] }
 0x23b   :  { %5057 = vmatpush.bf16.msrb.mxu3 %v13795_v56  ;;  %v18595_v56 = vld [vmem:[%s29481_s2 + $0x9ec] sm:$0xf]  ;;  %v13486_v15 = vld [vmem:[%s29481_s2 + $0x920] sm:$0xf]  ;;  %v13955_v46 = vor.u32 %v18693_v24, %v13954_v34  ;;  %v759_v34 = vperm.slane %v23506_v1, 1 }
 0x23c   :  { %5082 = vmatpush.bf16.msrb.mxu0 %v14679_v2  ;;  %v18381_v2 = vld [vmem:[%s29481_s2 + $0x338] sm:$0xf0]  ;;  %v23594_v9 = vadd.f32 %v4790_v19, %v4778_v55  ;;  %v13587_v50 = vor.u32 %v18595_v56, %v13584_v58  ;;  %v18680_v55 = vld [vmem:[%s29481_s2 + $0xc90] sm:$0xf0]  ;;  %v13018_v56 = vld [vmem:[%s29481_s2 + $0x578] sm:$0xf] }
 0x23d   :  { %5045 = vmatpush.bf16.msrb.mxu1 %v13327_v12  ;;  %v18816_v12 = vld [vmem:[%s29481_s2 + $0x10d4] sm:$0xf]  ;;  %v12707_v42 = vor.u32 %v18381_v2, %v12706_v59  ;;  %v18459_v58 = vld [vmem:[%s29481_s2 + $0x5a8] sm:$0xf0]  ;;  %v13434_v59 = vld [vmem:[%s29481_s2 + $0x8b8] sm:$0xf]  ;;  %v13903_v2 = vor.u32 %v18680_v55, %v13902_v52 }
 0x23e   :  { %5070 = vmatpush.bf16.msra.mxu2 %v14211_v3  ;;  %v18907_v3 = vld [vmem:[%s29481_s2 + $0x13ac] sm:$0xf]  ;;  %v13746_v1 = vld [vmem:[%s29481_s2 + $0xb28] sm:$0xf] }
 0x23f   :  { %5058 = vmatpush.bf16.msrb.mxu3 %v13743_v13  ;;  %v14468_v13 = vld [vmem:[%s29481_s2 + $0x1104] sm:$0xf0]  ;;  %v14835_v19 = vor.u32 %v18907_v3, %v14832_v5  ;;  %v12550_v3 = vld [vmem:[%s29481_s2 + $0x1d0] sm:$0xf]  ;;  %v18342_v5 = vld [vmem:[%s29481_s2 + $0x200] sm:$0xf0] }
 0x240   :  { %5083 = vmatpush.bf16.msrb.mxu0 %v14627_v20  ;;  %v4779_v20 = vpop.f32.mrf.mxu2  ;;  %v14471_v26 = vor.u32 %v18816_v12, %v14468_v13  ;;  %v13435_v12 = vor.u32 %v18563_v60, %v13434_v59  ;;  %v13850_v13 = vld [vmem:[%s29481_s2 + $0xbf8] sm:$0xf]  ;;  %v18303_v60 = vld [vmem:[%s29481_s2 + $0xc8] sm:$0xf0] }
 0x241   :  { %5046 = vmatpush.bf16.msrb.mxu1 %v13275_v8  ;;  %v12654_v8 = vld [vmem:[%s29481_s2 + $0x2a0] sm:$0xf]  ;;  %v18329_v20 = vld [vmem:[%s29481_s2 + $0x198] sm:$0xf0]  ;;  %v12394_v59 = vld [vmem:[%s29481_s2 + $0x98] sm:$0xf] }
 0x242   :  { %5071 = vmatpush.bf16.msra.mxu2 %v14159_v23  ;;  %v18485_v23 = vld [vmem:[%s29481_s2 + $0x678] sm:$0xf0]  ;;  %v12655_v41 = vor.u32 %v18368_v29, %v12654_v8  ;;  %v12914_v8 = vld [vmem:[%s29481_s2 + $0x4a8] sm:$0xf] }
 0x243   :  { %5059 = vmatpush.bf16.msrb.mxu3 %v13691_v27  ;;  %v14003_v27 = vor.u32 %v18699_v54, %v14000_v17  ;;  %v13123_v33 = vor.u32 %v18485_v23, %v13122_v18  ;;  %v13382_v54 = vld [vmem:[%s29481_s2 + $0x850] sm:$0xf]  ;;  %v18550_v17 = vld [vmem:[%s29481_s2 + $0x880] sm:$0xf0]  ;;  %v12551_v18 = vor.u32 %v18342_v5, %v12550_v3  ;;  %v13330_v29 = vld [vmem:[%s29481_s2 + $0x7e8] sm:$0xf] }
 0x244   :  { %5084 = vmatpush.bf16.msrb.mxu0 %v14575_v63  ;;  %v18472_v63 = vld [vmem:[%s29481_s2 + $0x610] sm:$0xf0]  ;;  %v13383_v43 = vor.u32 %v18550_v17, %v13382_v54  ;;  %v13694_v5 = vld [vmem:[%s29481_s2 + $0xac0] sm:$0xf]  ;;  %v12342_v54 = vld [vmem:[%s29481_s2 + $0x30] sm:$0xf] }
 0x245   :  { %5047 = vmatpush.bf16.msrb.mxu1 %v13223_v21  ;;  %v12602_v21 = vld [vmem:[%s29481_s2 + $0x238] sm:$0xf]  ;;  %v13071_v48 = vor.u32 %v18472_v63, %v13070_v37  ;;  %v18290_v17 = vld [vmem:[%s29481_s2 + $0x60] sm:$0xf0] }
 0x246   :  { %5072 = vmatpush.bf16.msra.mxu2 %v14107_v39  ;;  %v18576_v39 = vld [vmem:[%s29481_s2 + $0x950] sm:$0xf0] }
 0x247   :  { %5060 = vmatpush.bf16.msrb.mxu3 %v13639_v47  ;;  %v18355_v47 = vld [vmem:[%s29481_s2 + $0x268] sm:$0xf0]  ;;  %v13487_v51 = vor.u32 %v18576_v39, %v13486_v15  ;;  %v12446_v15 = vld [vmem:[%s29481_s2 + $0x100] sm:$0xf]  ;;  %v18316_v39 = vld [vmem:[%s29481_s2 + $0x130] sm:$0xf0] }
 0x248   :  { %5085 = vmatpush.bf16.msrb.mxu0 %v14523_v0  ;;  %v23676_v62 = vpop.f32.mrf.mxu2  ;;  %v12603_v0 = vor.u32 %v18355_v47, %v12602_v21  ;;  %v18641_v21 = vld [vmem:[%s29481_s2 + $0xb58] sm:$0xf0]  ;;  %v12862_v47 = vld [vmem:[%s29481_s2 + $0x440] sm:$0xf]  ;;  %v12447_v55 = vor.u32 %v18316_v39, %v12446_v15  ;;  %v18914_v15 = vld [vmem:[%s29481_s2 + $0x13e0] sm:$0xf0] }
 0x249   :  { %5048 = vmatpush.bf16.msrb.mxu1 %v13171_v14  ;;  %v12966_v14 = vld [vmem:[%s29481_s2 + $0x510] sm:$0xf] }
 0x24a   :  { %5073 = vmatpush.bf16.msra.mxu2 %v14055_v11  ;;  %v13019_v11 = vor.u32 %v18459_v58, %v13018_v56  ;;  %v13747_v58 = vor.u32 %v18641_v21, %v13746_v1  ;;  %v18784_v21 = vld [vmem:[%s29481_s2 + $0xfd0] sm:$0xf0] }
 0x24b   :  { %5061 = vmatpush.bf16.msrb.mxu3 %v13587_v50  ;;  %v18446_v50 = vld [vmem:[%s29481_s2 + $0x540] sm:$0xf0] }
 0x24c   :  { %5086 = vmatpush.bf16.msrb.mxu0 %v14471_v26  ;;  %5049 = vmatmul.bf16.vlgmr.msrb.gmra.mxu1 %v20118_v53  ;;  %v12967_v23 = vor.u32 %v18446_v50, %v12966_v14  ;;  %v18654_v26 = vld [vmem:[%s29481_s2 + $0xbc0] sm:$0xf0]  ;;  %v4842_v24 = vpop.f32.mrf.mxu0  ;;  %v12395_v50 = vor.u32 %v18303_v60, %v12394_v59  ;;  %v14734_v60 = vld [vmem:[%s29481_s2 + $0x12e0] sm:$0xf] }
 0x24d   :  { %5100 = vmatpush.bf16.msra.mxu1 %v14835_v19  ;;  %v12498_v19 = vld [vmem:[%s29481_s2 + $0x168] sm:$0xf]  ;;  %v4803_v37 = vpop.f32.mrf.mxu3  ;;  %v13799_v63 = vor.u32 %v18654_v26, %v13798_v25  ;;  %v4843_v56 = vadd.f32 %v4842_v24, %v759_v34  ;;  %v18797_v25 = vld [vmem:[%s29481_s2 + $0x1038] sm:$0xf0]  ;;  %v13642_v26 = vld [vmem:[%s29481_s2 + $0xa58] sm:$0xf]  ;;  %v12343_v24 = vor.u32 %v18290_v17, %v12342_v54 }
 0x24e   :  { %5074 = vmatpush.bf16.msra.mxu2 %v14003_v27  ;;  %5062 = vmatmul.bf16.vlgmr.msrb.gmra.mxu3 %v20159_v7  ;;  %v18433_v27 = vld [vmem:[%s29481_s2 + $0x4d8] sm:$0xf0]  ;;  %v14786_v34 = vld [vmem:[%s29481_s2 + $0x1348] sm:$0xf]  ;;  %v18967_v59 = vld [vmem:[%s29483_s4 + $0x1a0] sm:$0xf0] }
 0x24f   :  { %5106 = vmatpush.bf16.msra.mxu3 %v12707_v42  ;;  %v13851_v42 = vor.u32 %v18667_v49, %v13850_v13  ;;  %v13226_v13 = vld [vmem:[%s29481_s2 + $0x718] sm:$0xf]  ;;  %v18511_v49 = vld [vmem:[%s29481_s2 + $0x748] sm:$0xf0] }
 0x250   :  { %5087 = vmatpush.bf16.msrb.mxu0 %v14419_v44  ;;  %v4831_v10 = vpop.f32.mrf.mxu2  ;;  %v12915_v44 = vor.u32 %v18433_v27, %v12914_v8  ;;  %v13227_v27 = vor.u32 %v18511_v49, %v13226_v13  ;;  %v19016_v54 = vld [vmem:[%s29483_s4 + $0x328] sm:$0xf0] }
 0x251   :  { %5119 = vmatpush.bf16.msrb.mxu1 %v13123_v33  ;;  %5075 = vmatmul.bf16.vlgmr.msra.gmra.mxu2 %v20329_v30  ;;  %v4816_v33 = vpop.f32.mrf.mxu1  ;;  %v18394_v10 = vld [vmem:[%s29481_s2 + $0x3a0] sm:$0xf0]  ;;  %v18960_v17 = vld [vmem:[%s29483_s4 + $0x168] sm:$0xf0] }
 0x252   :  { %5132 = vmatpush.bf16.msrb.mxu2 %v13539_v32  ;;  %v12499_v32 = vor.u32 %v18329_v20, %v12498_v19 }
 0x253   :  { %5107 = vmatpush.bf16.msra.mxu3 %v12655_v41  ;;  %5088 = vmatmul.bf16.vlgmr.msrb.gmra.mxu0 %v20340_v35  ;;  %v4804_v41 = vadd.f32 %v4803_v37, %v23594_v9  ;;  %v18420_v9 = vld [vmem:[%s29481_s2 + $0x470] sm:$0xf0]  ;;  %v18901_v37 = vld [vmem:[%s29481_s2 + $0x1378] sm:$0xf0] }
 0x254   :  { %5145 = vmatpush.bf16.msra.mxu0 %v13955_v46  ;;  %v13331_v46 = vor.u32 %v18537_v31, %v13330_v29  ;;  %v4844_v19 = vpop.f32.mrf.mxu0  ;;  %v18615_v29 = vld [vmem:[%s29481_s2 + $0xa88] sm:$0xf0]  ;;  %v12758_v31 = vld [vmem:[%s29481_s2 + $0x370] sm:$0xf] }
 0x255   :  { %5120 = vmatpush.bf16.msrb.mxu1 %v13071_v48  ;;  %v13278_v48 = vld [vmem:[%s29481_s2 + $0x780] sm:$0xf]  ;;  %v4817_v52 = vadd.f32 %v4816_v33, %v4804_v41  ;;  %v13174_v33 = vld [vmem:[%s29481_s2 + $0x6b0] sm:$0xf]  ;;  %v13643_v41 = vor.u32 %v18615_v29, %v13642_v26  ;;  %v18875_v19 = vld [vmem:[%s29481_s2 + $0x12a8] sm:$0xf0] }
 0x256   :  { %5133 = vmatpush.bf16.msrb.mxu2 %v13487_v51  ;;  %v18524_v51 = vld [vmem:[%s29481_s2 + $0x7b0] sm:$0xf0] }
 0x257   :  { %5108 = vmatpush.bf16.msra.mxu3 %v12603_v0  ;;  %v23763_v0 = vadd.f32 %v23676_v62, %v4817_v52  ;;  %v13279_v3 = vor.u32 %v18524_v51, %v13278_v48  ;;  %v18407_v62 = vld [vmem:[%s29481_s2 + $0x408] sm:$0xf0]  ;;  %v14787_v48 = vor.u32 %v18901_v37, %v14786_v34  ;;  %v15051_v52 = vld [vmem:[%s29483_s4 + $0x188] sm:$0xf]  ;;  %v18953_v29 = vld [vmem:[%s29483_s4 + $0x130] sm:$0xf0] }
 0x258   :  { %5146 = vmatpush.bf16.msra.mxu0 %v13903_v2  ;;  %v12863_v2 = vor.u32 %v18420_v9, %v12862_v47  ;;  %v4855_v14 = vpop.f32.mrf.mxu2  ;;  %v13590_v47 = vld [vmem:[%s29481_s2 + $0x9f0] sm:$0xf]  ;;  %v18602_v9 = vld [vmem:[%s29481_s2 + $0xa20] sm:$0xf0]  ;;  %v15052_v13 = vor.u32 %v18967_v59, %v15051_v52  ;;  %v14162_v34 = vld [vmem:[%s29481_s2 + $0xe68] sm:$0xf] }
 0x259   :  { %5121 = vmatpush.bf16.msrb.mxu1 %v13019_v11  ;;  %v18628_v11 = vld [vmem:[%s29481_s2 + $0xaf0] sm:$0xf0]  ;;  %v15163_v59 = vld [vmem:[%s29483_s4 + $0x268] sm:$0xf] }
 0x25a   :  { %5134 = vmatpush.bf16.msrb.mxu2 %v13435_v12  ;;  %v12810_v12 = vld [vmem:[%s29481_s2 + $0x3d8] sm:$0xf]  ;;  %v13695_v20 = vor.u32 %v18628_v11, %v13694_v5  ;;  %v13591_v5 = vor.u32 %v18602_v9, %v13590_v47 }
 0x25b   :  { %5109 = vmatpush.bf16.msra.mxu3 %v12551_v18  ;;  %v23789_v18 = vadd.f32 %v4855_v14, %v4843_v56  ;;  %v12811_v8 = vor.u32 %v18407_v62, %v12810_v12  ;;  %v19023_v56 = vld [vmem:[%s29483_s4 + $0x360] sm:$0xf0]  ;;  %v14266_v12 = vld [vmem:[%s29481_s2 + $0xf38] sm:$0xf]  ;;  %v18771_v62 = vld [vmem:[%s29481_s2 + $0xf68] sm:$0xf0] }
 0x25c   :  { %5147 = vmatpush.bf16.msra.mxu0 %v13851_v42  ;;  %14851 = vmatmul.msk.bf16.vlgmr.msra.gmra.mxu1 %vm4010_vm0, %v20238_v45  ;;  %v4818_v42 = vpop.f32.mrf.mxu1  ;;  %v15023_v14 = vld [vmem:[%s29483_s4 + $0x150] sm:$0xf] }
 0x25d   :  { %5122 = vmatpush.bf16.msrb.mxu1 %v12967_v23  ;;  %v4805_v23 = vpop.f32.mrf.mxu3  ;;  %v14682_v42 = vld [vmem:[%s29481_s2 + $0x1278] sm:$0xf] }
 0x25e   :  { %5135 = vmatpush.bf16.msrb.mxu2 %v13383_v43  ;;  %v14370_v43 = vld [vmem:[%s29481_s2 + $0x1008] sm:$0xf]  ;;  %v14683_v26 = vor.u32 %v18875_v19, %v14682_v42  ;;  %v15135_v42 = vld [vmem:[%s29483_s4 + $0x230] sm:$0xf]  ;;  %v18988_v19 = vld [vmem:[%s29483_s4 + $0x248] sm:$0xf0] }
 0x25f   :  { %5110 = vmatpush.bf16.msra.mxu3 %v12499_v32  ;;  %v18498_v32 = vld [vmem:[%s29481_s2 + $0x6e0] sm:$0xf0]  ;;  %v14371_v39 = vor.u32 %v18797_v25, %v14370_v43  ;;  %v15024_v25 = vor.u32 %v18960_v17, %v15023_v14  ;;  %v14911_v17 = vld [vmem:[%s29483_s4 + $0x70] sm:$0xf] }
 0x260   :  { %5148 = vmatpush.bf16.msra.mxu0 %v13799_v63  ;;  %v14838_v63 = vld [vmem:[%s29481_s2 + $0x13b0] sm:$0xf]  ;;  %v13175_v1 = vor.u32 %v18498_v32, %v13174_v33  ;;  %v18758_v43 = vld [vmem:[%s29481_s2 + $0xf00] sm:$0xf0] }
 0x261   :  { %5123 = vmatpush.bf16.msrb.mxu1 %v12915_v44  ;;  %v14318_v44 = vld [vmem:[%s29481_s2 + $0xfa0] sm:$0xf]  ;;  %v14839_v51 = vor.u32 %v18914_v15, %v14838_v63 }
 0x262   :  { %5136 = vmatpush.bf16.msrb.mxu2 %v13331_v46  ;;  %v12759_v46 = vor.u32 %v18394_v10, %v12758_v31  ;;  %v14630_v31 = vld [vmem:[%s29481_s2 + $0x1210] sm:$0xf]  ;;  %v18862_v10 = vld [vmem:[%s29481_s2 + $0x1240] sm:$0xf0]  ;;  %v14967_v15 = vld [vmem:[%s29483_s4 + $0xe0] sm:$0xf] }
 0x263   :  { %5111 = vmatpush.bf16.msra.mxu3 %v12447_v55  ;;  %v15275_v55 = vld [vmem:[%s29483_s4 + $0x348] sm:$0xf]  ;;  %v14631_v63 = vor.u32 %v18862_v10, %v14630_v31  ;;  %v18706_v31 = vld [vmem:[%s29481_s2 + $0xd60] sm:$0xf0] }
 0x264   :  { %5149 = vmatpush.bf16.msra.mxu0 %v13747_v58  ;;  %v4857_v58 = vpop.f32.mrf.mxu2  ;;  %v15276_v11 = vor.u32 %v19023_v56, %v15275_v55  ;;  %v15499_v10 = vld [vmem:[%s29483_s4 + $0x508] sm:$0xf] }
 0x265   :  { %5124 = vmatpush.bf16.msrb.mxu1 %v12863_v2  ;;  %v18888_v2 = vld [vmem:[%s29481_s2 + $0x1310] sm:$0xf0]  ;;  %v14939_v58 = vld [vmem:[%s29483_s4 + $0xa8] sm:$0xf] }
 0x266   :  { %5137 = vmatpush.bf16.msrb.mxu2 %v13279_v3  ;;  %v14319_v3 = vor.u32 %v18784_v21, %v14318_v44  ;;  %v14735_v49 = vor.u32 %v18888_v2, %v14734_v60  ;;  %v14578_v44 = vld [vmem:[%s29481_s2 + $0x11a8] sm:$0xf]  ;;  %v18995_v60 = vld [vmem:[%s29483_s4 + $0x280] sm:$0xf0]  ;;  %v14526_v2 = vld [vmem:[%s29481_s2 + $0x1140] sm:$0xf] }
 0x267   :  { %5112 = vmatpush.bf16.msra.mxu3 %v12395_v50  ;;  %v15247_v50 = vld [vmem:[%s29483_s4 + $0x310] sm:$0xf] }
 0x268   :  { %5150 = vmatpush.bf16.msra.mxu0 %v13695_v20  ;;  %v14267_v20 = vor.u32 %v18771_v62, %v14266_v12  ;;  %v15248_v23 = vor.u32 %v19016_v54, %v15247_v50  ;;  %v15164_v12 = vor.u32 %v18995_v60, %v15163_v59  ;;  %v14058_v62 = vld [vmem:[%s29481_s2 + $0xd98] sm:$0xf]  ;;  %v19191_v60 = vld [vmem:[%s29483_s4 + $0x8a0] sm:$0xf0] }
 0x269   :  { %5125 = vmatpush.bf16.msrb.mxu1 %v12811_v8  ;;  %v15219_v8 = vld [vmem:[%s29483_s4 + $0x2d8] sm:$0xf] }
 0x26a   :  { %5138 = vmatpush.bf16.msrb.mxu2 %v13227_v27  ;;  %v19009_v27 = vld [vmem:[%s29483_s4 + $0x2f0] sm:$0xf0] }
 0x26b   :  { %5113 = vmatpush.bf16.msra.mxu3 %v12343_v24  ;;  %v15220_v32 = vor.u32 %v19009_v27, %v15219_v8  ;;  %v4881_v24 = vpop.f32.mrf.mxu1 }
 0x26c   :  { %5151 = vmatpush.bf16.msra.mxu0 %v13643_v41  ;;  %v18946_v41 = vld [vmem:[%s29483_s4 + $0xf8] sm:$0xf0]  ;;  %v4894_v21 = vpop.f32.mrf.mxu0 }
 0x26d   :  { %5126 = vmatpush.bf16.msrb.mxu1 %v12759_v46  ;;  %v18849_v46 = vld [vmem:[%s29481_s2 + $0x11d8] sm:$0xf0]  ;;  %v4868_v47 = vpop.f32.mrf.mxu3  ;;  %v14968_v55 = vor.u32 %v18946_v41, %v14967_v15  ;;  %v18810_v15 = vld [vmem:[%s29481_s2 + $0x10a0] sm:$0xf0] }
 0x26e   :  { %5139 = vmatpush.bf16.msrb.mxu2 %v13175_v1  ;;  %5114 = vmatmul.bf16.vlgmr.msra.gmra.mxu3 %v20135_v61  ;;  %v14214_v61 = vld [vmem:[%s29481_s2 + $0xed0] sm:$0xf]  ;;  %v4869_v52 = vadd.f32 %v4868_v47, %v23789_v18  ;;  %v14579_v56 = vor.u32 %v18849_v46, %v14578_v44  ;;  %v18939_v18 = vld [vmem:[%s29483_s4 + $0xc0] sm:$0xf0] }
 0x26f   :  { %5158 = vmatpush.bf16.msrb.mxu3 %v14371_v39  ;;  %v14215_v33 = vor.u32 %v18758_v43, %v14214_v61  ;;  %v19002_v39 = vld [vmem:[%s29483_s4 + $0x2b8] sm:$0xf0]  ;;  %v14940_v50 = vor.u32 %v18939_v18, %v14939_v58  ;;  %v14474_v61 = vld [vmem:[%s29481_s2 + $0x10d8] sm:$0xf]  ;;  %v18823_v43 = vld [vmem:[%s29481_s2 + $0x1108] sm:$0xf0] }
 0x270   :  { %5152 = vmatpush.bf16.msra.mxu0 %v13591_v5  ;;  %5127 = vmatmul.bf16.vlgmr.msrb.gmra.mxu1 %v20157_v6  ;;  %v18745_v6 = vld [vmem:[%s29481_s2 + $0xe98] sm:$0xf0]  ;;  %v4882_v5 = vadd.f32 %v4881_v24, %v4869_v52  ;;  %v18981_v24 = vld [vmem:[%s29483_s4 + $0x210] sm:$0xf0]  ;;  %v19135_v41 = vld [vmem:[%s29483_s4 + $0x6e0] sm:$0xf0] }
 0x271   :  { %5171 = vmatpush.bf16.msra.mxu1 %v14787_v48  ;;  %5140 = vmatmul.bf16.vlgmr.msrb.gmra.mxu2 %v20118_v53  ;;  %v14995_v53 = vld [vmem:[%s29483_s4 + $0x118] sm:$0xf]  ;;  %v14163_v1 = vor.u32 %v18745_v6, %v14162_v34  ;;  %v14110_v48 = vld [vmem:[%s29481_s2 + $0xe00] sm:$0xf]  ;;  %v15947_v58 = vld [vmem:[%s29483_s4 + $0x888] sm:$0xf] }
 0x272   :  { %5191 = vmatpush.bf16.msra.mxu2 %v14839_v51  ;;  %v14996_v37 = vor.u32 %v18953_v29, %v14995_v53  ;;  %v18732_v51 = vld [vmem:[%s29481_s2 + $0xe30] sm:$0xf0]  ;;  %v4895_v14 = vadd.f32 %v4894_v21, %v4882_v5  ;;  %v14006_v53 = vld [vmem:[%s29481_s2 + $0xd30] sm:$0xf]  ;;  %v15136_v29 = vor.u32 %v18988_v19, %v15135_v42  ;;  %v14883_v34 = vld [vmem:[%s29483_s4 + $0x38] sm:$0xf] }
 0x273   :  { %5159 = vmatpush.bf16.msrb.mxu3 %v14319_v3  ;;  %5153 = vmatmul.bf16.vlgmr.msra.gmra.mxu0 %v20159_v7  ;;  %v15191_v7 = vld [vmem:[%s29483_s4 + $0x2a0] sm:$0xf]  ;;  %v18836_v3 = vld [vmem:[%s29481_s2 + $0x1170] sm:$0xf0]  ;;  %v15107_v6 = vld [vmem:[%s29483_s4 + $0x1f8] sm:$0xf] }
 0x274   :  { %9555 = vmatpush.bf16.msrb.mxu0 %v15052_v13  ;;  %v15192_v9 = vor.u32 %v19002_v39, %v15191_v7  ;;  %v18719_v13 = vld [vmem:[%s29481_s2 + $0xdc8] sm:$0xf0]  ;;  %v14527_v54 = vor.u32 %v18836_v3, %v14526_v2  ;;  %v4896_v8 = vpop.f32.mrf.mxu0  ;;  %v14007_v7 = vor.u32 %v18706_v31, %v14006_v53  ;;  %v15723_v39 = vld [vmem:[%s29483_s4 + $0x6c8] sm:$0xf]  ;;  %v15108_v46 = vor.u32 %v18981_v24, %v15107_v6  ;;  %v19247_v2 = vld [vmem:[%s29483_s4 + $0xa60] sm:$0xf0] }
 0x275   :  { %5172 = vmatpush.bf16.msra.mxu1 %v14735_v49  ;;  %v4883_v49 = vpop.f32.mrf.mxu1  ;;  %v4870_v27 = vpop.f32.mrf.mxu3  ;;  %v15724_v52 = vor.u32 %v19135_v41, %v15723_v39  ;;  %v16171_v18 = vld [vmem:[%s29483_s4 + $0xa48] sm:$0xf]  ;;  %v19065_v42 = vld [vmem:[%s29483_s4 + $0x4b0] sm:$0xf0]  ;;  %v16143_v19 = vld [vmem:[%s29483_s4 + $0xa10] sm:$0xf] }
 0x276   :  { %9568 = vmatpush.bf16.msrb.mxu2 %v15276_v11  ;;  %v14111_v11 = vor.u32 %v18732_v51, %v14110_v48  ;;  %v14855_v48 = vld [vmem:[%s29483_s4] sm:$0xf]  ;;  %v18918_v51 = vld [vmem:[%s29483_s4 + $0x18] sm:$0xf0]  ;;  %v15891_v31 = vld [vmem:[%s29483_s4 + $0x818] sm:$0xf] }
 0x277   :  { %5160 = vmatpush.bf16.msrb.mxu3 %v14267_v20  ;;  %v4907_v20 = vpop.f32.mrf.mxu2  ;;  %v14856_v49 = vor.u32 %v18918_v51, %v14855_v48  ;;  %v15639_v6 = vld [vmem:[%s29483_s4 + $0x620] sm:$0xf]  ;;  %v19114_v24 = vld [vmem:[%s29483_s4 + $0x638] sm:$0xf0]  ;;  %v19051_v39 = vld [vmem:[%s29483_s4 + $0x440] sm:$0xf0] }
 0x278   :  { %9556 = vmatpush.bf16.msrb.mxu0 %v15024_v25  ;;  %v23982_v25 = vadd.f32 %v4907_v20, %v4895_v14  ;;  %v19240_v20 = vld [vmem:[%s29483_s4 + $0xa28] sm:$0xf0]  ;;  %v15863_v41 = vld [vmem:[%s29483_s4 + $0x7e0] sm:$0xf] }
 0x279   :  { %5173 = vmatpush.bf16.msra.mxu1 %v14683_v26  ;;  %v14059_v26 = vor.u32 %v18719_v13, %v14058_v62  ;;  %v5197_v62 = vmax.f32 %v21248_v38, 0.0  ;;  %v5198_v13 = vmax.f32 %v21547_v36, 0.0  ;;  %v15919_v38 = vld [vmem:[%s29483_s4 + $0x850] sm:$0xf]  ;;  %v16144_v27 = vor.u32 %v19240_v20, %v16143_v19  ;;  %v19212_v19 = vld [vmem:[%s29483_s4 + $0x948] sm:$0xf0] }
 0x27a   :  { %9569 = vmatpush.bf16.msrb.mxu2 %v15248_v23  ;;  %v18932_v23 = vld [vmem:[%s29483_s4 + $0x88] sm:$0xf0]  ;;  %v15555_v20 = vld [vmem:[%s29483_s4 + $0x578] sm:$0xf] }
 0x27b   :  { %5161 = vmatpush.bf16.msrb.mxu3 %v14215_v33  ;;  %v14912_v33 = vor.u32 %v18932_v23, %v14911_v17  ;;  %v15443_v17 = vld [vmem:[%s29483_s4 + $0x498] sm:$0xf]  ;;  %v24090_v53 = vpack.c.bf16 %v5198_v13, %v5198_v13 }
 0x27c   :  { %9557 = vmatpush.bf16.msrb.mxu0 %v14996_v37  ;;  %v18925_v37 = vld [vmem:[%s29483_s4 + $0x50] sm:$0xf0]  ;;  %v15667_v23 = vld [vmem:[%s29483_s4 + $0x658] sm:$0xf] }
 0x27d   :  { %5174 = vmatpush.bf16.msra.mxu1 %v14631_v63  ;;  %v14422_v63 = vld [vmem:[%s29481_s2 + $0x1070] sm:$0xf]  ;;  %v14884_v21 = vor.u32 %v18925_v37, %v14883_v34  ;;  %v24052_v3 = vpop.f32.mrf.mxu3 }
 0x27e   :  { %9570 = vmatpush.bf16.msrb.mxu2 %v15220_v32  ;;  %v14475_v32 = vor.u32 %v18823_v43, %v14474_v61  ;;  %v14423_v47 = vor.u32 %v18810_v15, %v14422_v63  ;;  %v19121_v61 = vld [vmem:[%s29483_s4 + $0x670] sm:$0xf0]  ;;  %v24088_v43 = vpack.c.bf16 %v5197_v62, %v5197_v62  ;;  %v19100_v62 = vld [vmem:[%s29483_s4 + $0x5c8] sm:$0xf0] }
 0x27f   :  { %5162 = vmatpush.bf16.msrb.mxu3 %v14163_v1  ;;  %v15471_v1 = vld [vmem:[%s29483_s4 + $0x4d0] sm:$0xf]  ;;  %v4909_v59 = vpop.f32.mrf.mxu2 }
 0x280   :  { %9558 = vmatpush.bf16.msrb.mxu0 %v14968_v55  ;;  %v15079_v55 = vld [vmem:[%s29483_s4 + $0x1c0] sm:$0xf]  ;;  %v19044_v59 = vld [vmem:[%s29483_s4 + $0x408] sm:$0xf0] }
 0x281   :  { %5175 = vmatpush.bf16.msra.mxu1 %v14579_v56  ;;  %14852 = vmatmul.msk.bf16.vlgmr.msra.gmra.mxu2 %vm4010_vm0, %v20238_v45  ;;  %v19079_v45 = vld [vmem:[%s29483_s4 + $0x520] sm:$0xf0]  ;;  %v18974_v56 = vld [vmem:[%s29483_s4 + $0x1d8] sm:$0xf0] }
 0x282   :  { %9571 = vmatpush.bf16.msrb.mxu2 %v15192_v9  ;;  %v15500_v44 = vor.u32 %v19079_v45, %v15499_v10  ;;  %v19072_v9 = vld [vmem:[%s29483_s4 + $0x4e8] sm:$0xf0]  ;;  %v15080_v14 = vor.u32 %v18974_v56, %v15079_v55  ;;  %v15668_v10 = vor.u32 %v19121_v61, %v15667_v23  ;;  %v19177_v45 = vld [vmem:[%s29483_s4 + $0x830] sm:$0xf0] }
 0x283   :  { %5163 = vmatpush.bf16.msrb.mxu3 %v14111_v11  ;;  %v15472_v5 = vor.u32 %v19072_v9, %v15471_v1  ;;  %v15695_v11 = vld [vmem:[%s29483_s4 + $0x690] sm:$0xf]  ;;  %v15892_v63 = vor.u32 %v19177_v45, %v15891_v31  ;;  %v16087_v1 = vld [vmem:[%s29483_s4 + $0x9a0] sm:$0xf]  ;;  %v19107_v9 = vld [vmem:[%s29483_s4 + $0x600] sm:$0xf0] }
 0x284   :  { %9559 = vmatpush.bf16.msrb.mxu0 %v14940_v50  ;;  %v15948_v50 = vor.u32 %v19191_v60, %v15947_v58  ;;  %v15359_v58 = vld [vmem:[%s29483_s4 + $0x3f0] sm:$0xf]  ;;  %v15835_v60 = vld [vmem:[%s29483_s4 + $0x7a8] sm:$0xf]  ;;  %v19093_v23 = vld [vmem:[%s29483_s4 + $0x590] sm:$0xf0] }
 0x285   :  { %5176 = vmatpush.bf16.msra.mxu1 %v14527_v54  ;;  %v16172_v54 = vor.u32 %v19247_v2, %v16171_v18  ;;  %v4922_v34 = vpop.f32.mrf.mxu3  ;;  %v19163_v2 = vld [vmem:[%s29483_s4 + $0x7c0] sm:$0xf0]  ;;  %v15360_v13 = vor.u32 %v19044_v59, %v15359_v58  ;;  %v16395_v45 = vld [vmem:[%s29483_s4 + $0xc08] sm:$0xf]  ;;  %v15975_v59 = vld [vmem:[%s29483_s4 + $0x8c0] sm:$0xf] }
 0x286   :  { %9572 = vmatpush.bf16.msrb.mxu2 %v15164_v12  ;;  %v19128_v12 = vld [vmem:[%s29483_s4 + $0x6a8] sm:$0xf0]  ;;  %v15779_v34 = vld [vmem:[%s29483_s4 + $0x738] sm:$0xf] }
 0x287   :  { %5164 = vmatpush.bf16.msrb.mxu3 %v14059_v26  ;;  %v15696_v36 = vor.u32 %v19128_v12, %v15695_v11  ;;  %v15444_v26 = vor.u32 %v19065_v42, %v15443_v17  ;;  %v19219_v11 = vld [vmem:[%s29483_s4 + $0x980] sm:$0xf0]  ;;  %v15583_v12 = vld [vmem:[%s29483_s4 + $0x5b0] sm:$0xf]  ;;  %v19037_v17 = vld [vmem:[%s29483_s4 + $0x3d0] sm:$0xf0] }
 0x288   :  { %9560 = vmatpush.bf16.msrb.mxu0 %v14912_v33  ;;  %v16115_v33 = vld [vmem:[%s29483_s4 + $0x9d8] sm:$0xf]  ;;  %v15807_v42 = vld [vmem:[%s29483_s4 + $0x770] sm:$0xf] }
 0x289   :  { %5177 = vmatpush.bf16.msra.mxu1 %v14475_v32  ;;  %v19233_v32 = vld [vmem:[%s29483_s4 + $0x9f0] sm:$0xf0]  ;;  %v24142_v51 = vpop.f32.mrf.mxu1 }
 0x28a   :  { %9573 = vmatpush.bf16.msrb.mxu2 %v15136_v29  ;;  %v19058_v29 = vld [vmem:[%s29483_s4 + $0x478] sm:$0xf0]  ;;  %v16116_v15 = vor.u32 %v19233_v32, %v16115_v33  ;;  %v19303_v33 = vld [vmem:[%s29483_s4 + $0xc20] sm:$0xf0]  ;;  %v15556_v32 = vor.u32 %v19093_v23, %v15555_v20  ;;  %v16339_v23 = vld [vmem:[%s29483_s4 + $0xb98] sm:$0xf] }
 0x28b   :  { %5165 = vmatpush.bf16.msrb.mxu3 %v14007_v7  ;;  %v15387_v7 = vld [vmem:[%s29483_s4 + $0x428] sm:$0xf] }
 0x28c   :  { %9561 = vmatpush.bf16.msrb.mxu0 %v14884_v21  ;;  %v19226_v21 = vld [vmem:[%s29483_s4 + $0x9b8] sm:$0xf0]  ;;  %v15388_v48 = vor.u32 %v19051_v39, %v15387_v7  ;;  %v16619_v39 = vld [vmem:[%s29483_s4 + $0xdc8] sm:$0xf] }
 0x28d   :  { %5178 = vmatpush.bf16.msra.mxu1 %v14423_v47  ;;  %v15611_v47 = vld [vmem:[%s29483_s4 + $0x5e8] sm:$0xf]  ;;  %v16088_v56 = vor.u32 %v19226_v21, %v16087_v1  ;;  %v5200_v1 = vmax.f32 %v22153_v40, 0.0  ;;  %v16396_v21 = vor.u32 %v19303_v33, %v16395_v45  ;;  %v19142_v40 = vld [vmem:[%s29483_s4 + $0x718] sm:$0xf0] }
 0x28e   :  { %9574 = vmatpush.bf16.msrb.mxu2 %v15108_v46  ;;  %5166 = vmatmul.bf16.vlgmr.msrb.gmra.mxu3 %v20329_v30  ;;  %v19184_v30 = vld [vmem:[%s29483_s4 + $0x868] sm:$0xf0]  ;;  %v19170_v46 = vld [vmem:[%s29483_s4 + $0x7f8] sm:$0xf0]  ;;  %v15612_v18 = vor.u32 %v19107_v9, %v15611_v47  ;;  %v16367_v9 = vld [vmem:[%s29483_s4 + $0xbd0] sm:$0xf] }
 0x28f   :  { %9581 = vmatpush.bf16.msra.mxu3 %v15500_v44  ;;  %v15920_v8 = vor.u32 %v19184_v30, %v15919_v38  ;;  %v15640_v44 = vor.u32 %v19114_v24, %v15639_v6  ;;  %v15864_v55 = vor.u32 %v19170_v46, %v15863_v41  ;;  %v15584_v38 = vor.u32 %v19100_v62, %v15583_v12  ;;  %v16031_v30 = vld [vmem:[%s29483_s4 + $0x930] sm:$0xf]  ;;  %v19149_v6 = vld [vmem:[%s29483_s4 + $0x750] sm:$0xf0]  ;;  %v16003_v24 = vld [vmem:[%s29483_s4 + $0x8f8] sm:$0xf] }
 0x290   :  { %5179 = vmatmul.bf16.vlgmr.msra.gmra.mxu1 %v20340_v35  ;;  %9562 = vmatpush.bf16.msrb.mxu0 %v14856_v49  ;;  %v15415_v35 = vld [vmem:[%s29483_s4 + $0x460] sm:$0xf]  ;;  %v16032_v31 = vor.u32 %v19212_v19, %v16031_v30  ;;  %v19359_v41 = vld [vmem:[%s29483_s4 + $0xde0] sm:$0xf0]  ;;  %v5199_v46 = vmax.f32 %v21899_v4, 0.0  ;;  %v15780_v47 = vor.u32 %v19149_v6, %v15779_v34  ;;  %v24278_v30 = vpack.c.bf16 %v5200_v1, %v5200_v1 }
 0x291   :  { %9594 = vmatpush.bf16.msrb.mxu1 %v15724_v52  ;;  %v15416_v37 = vor.u32 %v19058_v29, %v15415_v35  ;;  %v24144_v52 = vpop.f32.mrf.mxu0  ;;  %v24170_v49 = vpop.f32.mrf.mxu3  ;;  %v15751_v4 = vld [vmem:[%s29483_s4 + $0x700] sm:$0xf]  ;;  %v16620_v58 = vor.u32 %v19359_v41, %v16619_v39  ;;  %v19471_v12 = vld [vmem:[%s29483_s4 + $0x1160] sm:$0xf0]  ;;  %v19457_v39 = vld [vmem:[%s29483_s4 + $0x10f0] sm:$0xf0] }
 0x292   :  { %9575 = vmatpush.bf16.msrb.mxu2 %v15080_v14  ;;  %v15836_v14 = vor.u32 %v19163_v2, %v15835_v60  ;;  %v19198_v60 = vld [vmem:[%s29483_s4 + $0x8d8] sm:$0xf0]  ;;  %v16311_v6 = vld [vmem:[%s29483_s4 + $0xb60] sm:$0xf] }
 0x293   :  { %9582 = vmatpush.bf16.msra.mxu3 %v15472_v5  ;;  %9563 = vmatmul.bf16.vlgmr.msrb.gmra.mxu0 %v24088_v43  ;;  %v16059_v5 = vld [vmem:[%s29483_s4 + $0x968] sm:$0xf] }
 0x294   :  { %9607 = vmatpush.bf16.msra.mxu0 %v15948_v50  ;;  %v16060_v50 = vor.u32 %v19219_v11, %v16059_v5  ;;  %v24196_v61 = vpop.f32.mrf.mxu2  ;;  %v19415_v5 = vld [vmem:[%s29483_s4 + $0xfa0] sm:$0xf0]  ;;  %v17067_v11 = vld [vmem:[%s29483_s4 + $0x1148] sm:$0xf] }
 0x295   :  { %9595 = vmatpush.bf16.msrb.mxu1 %v15696_v36  ;;  %9576 = vmatmul.bf16.vlgmr.msrb.gmra.mxu2 %v24090_v53  ;;  %v19156_v36 = vld [vmem:[%s29483_s4 + $0x788] sm:$0xf0]  ;;  %v17068_v20 = vor.u32 %v19471_v12, %v17067_v11  ;;  %v16255_v12 = vld [vmem:[%s29483_s4 + $0xaf0] sm:$0xf] }
 0x296   :  { %9620 = vmatpush.bf16.msra.mxu2 %v16172_v54  ;;  %v15331_v54 = vld [vmem:[%s29483_s4 + $0x3b8] sm:$0xf]  ;;  %v15808_v29 = vor.u32 %v19156_v36, %v15807_v42  ;;  %v5202_v42 = vmax.f32 %v22808_v22, 0.0  ;;  %v15976_v36 = vor.u32 %v19198_v60, %v15975_v59  ;;  %v16815_v22 = vld [vmem:[%s29483_s4 + $0xf50] sm:$0xf] }
 0x297   :  { %9583 = vmatpush.bf16.msra.mxu3 %v15444_v26  ;;  %v15332_v26 = vor.u32 %v19037_v17, %v15331_v54  ;;  %v19352_v54 = vld [vmem:[%s29483_s4 + $0xda8] sm:$0xf0]  ;;  %v5201_v17 = vmax.f32 %v22515_v28, 0.0  ;;  %v19289_v28 = vld [vmem:[%s29483_s4 + $0xbb0] sm:$0xf0] }
 0x298   :  { %9608 = vmatpush.bf16.msra.mxu0 %v15920_v8  ;;  %v15303_v8 = vld [vmem:[%s29483_s4 + $0x380] sm:$0xf]  ;;  %v16340_v45 = vor.u32 %v19289_v28, %v16339_v23  ;;  %v24308_v33 = vpack.c.bf16 %v5202_v42, %v5202_v42  ;;  %v19450_v59 = vld [vmem:[%s29483_s4 + $0x10b8] sm:$0xf0]  ;;  %v16507_v60 = vld [vmem:[%s29483_s4 + $0xce8] sm:$0xf] }
 0x299   :  { %9596 = vmatpush.bf16.msrb.mxu1 %v15668_v10  ;;  %v4961_v35 = vpop.f32.mrf.mxu0  ;;  %v19030_v10 = vld [vmem:[%s29483_s4 + $0x398] sm:$0xf0]  ;;  %v19387_v42 = vld [vmem:[%s29483_s4 + $0xec0] sm:$0xf0] }
 0x29a   :  { %9621 = vmatpush.bf16.msra.mxu2 %v16144_v27  ;;  %v4935_v27 = vpop.f32.mrf.mxu1  ;;  %v15304_v7 = vor.u32 %v19030_v10, %v15303_v8  ;;  %v19408_v8 = vld [vmem:[%s29483_s4 + $0xf68] sm:$0xf0]  ;;  %v24306_v10 = vpack.c.bf16 %v5201_v17, %v5201_v17 }
 0x29b   :  { %9584 = vmatpush.bf16.msra.mxu3 %v15416_v37  ;;  %v19205_v37 = vld [vmem:[%s29483_s4 + $0x910] sm:$0xf0]  ;;  %v17039_v27 = vld [vmem:[%s29483_s4 + $0x1110] sm:$0xf]  ;;  %v19464_v35 = vld [vmem:[%s29483_s4 + $0x1128] sm:$0xf0] }
 0x29c   :  { %9609 = vmatpush.bf16.msra.mxu0 %v15892_v63  ;;  %v15527_v63 = vld [vmem:[%s29483_s4 + $0x540] sm:$0xf]  ;;  %v4974_v2 = vpop.f32.mrf.mxu2  ;;  %v17040_v34 = vor.u32 %v19464_v35, %v17039_v27  ;;  %v19261_v27 = vld [vmem:[%s29483_s4 + $0xad0] sm:$0xf0]  ;;  %v16703_v35 = vld [vmem:[%s29483_s4 + $0xe70] sm:$0xf] }
 0x29d   :  { %9597 = vmatpush.bf16.msrb.mxu1 %v15640_v44  ;;  %v4948_v44 = vpop.f32.mrf.mxu3 }
 0x29e   :  { %9622 = vmatpush.bf16.msra.mxu2 %v16116_v15  ;;  %v19086_v15 = vld [vmem:[%s29483_s4 + $0x558] sm:$0xf0]  ;;  %v16535_v44 = vld [vmem:[%s29483_s4 + $0xd20] sm:$0xf] }
 0x29f   :  { %9585 = vmatpush.bf16.msra.mxu3 %v15388_v48  ;;  %v16004_v48 = vor.u32 %v19205_v37, %v16003_v24  ;;  %v19282_v24 = vld [vmem:[%s29483_s4 + $0xb78] sm:$0xf0]  ;;  %v16787_v37 = vld [vmem:[%s29483_s4 + $0xf18] sm:$0xf] }
 0x2a0   :  { %9610 = vmatpush.bf16.msra.mxu0 %v15864_v55  ;;  %v15528_v55 = vor.u32 %v19086_v15, %v15527_v63  ;;  %v19401_v15 = vld [vmem:[%s29483_s4 + $0xf30] sm:$0xf0]  ;;  %v16312_v1 = vor.u32 %v19282_v24, %v16311_v6  ;;  %v19436_v6 = vld [vmem:[%s29483_s4 + $0x1048] sm:$0xf0]  ;;  %v16451_v24 = vld [vmem:[%s29483_s4 + $0xc78] sm:$0xf] }
 0x2a1   :  { %9598 = vmatpush.bf16.msrb.mxu1 %v15612_v18  ;;  %v16843_v18 = vld [vmem:[%s29483_s4 + $0xf88] sm:$0xf]  ;;  %v24266_v62 = vpop.f32.mrf.mxu0 }
 0x2a2   :  { %9623 = vmatpush.bf16.msra.mxu2 %v16088_v56  ;;  %v19296_v56 = vld [vmem:[%s29483_s4 + $0xbe8] sm:$0xf0]  ;;  %v16844_v19 = vor.u32 %v19415_v5, %v16843_v18  ;;  %v19331_v18 = vld [vmem:[%s29483_s4 + $0xd00] sm:$0xf0] }
 0x2a3   :  { %9586 = vmatpush.bf16.msra.mxu3 %v15360_v13  ;;  %v24268_v13 = vpack.c.bf16 %v5199_v46, %v5199_v46  ;;  %v19338_v46 = vld [vmem:[%s29483_s4 + $0xd38] sm:$0xf0]  ;;  %v16508_v17 = vor.u32 %v19331_v18, %v16507_v60 }
 0x2a4   :  { %9611 = vmatpush.bf16.msra.mxu0 %v15836_v14  ;;  %v16368_v14 = vor.u32 %v19296_v56, %v16367_v9  ;;  %v16283_v9 = vld [vmem:[%s29483_s4 + $0xb28] sm:$0xf]  ;;  %v16759_v56 = vld [vmem:[%s29483_s4 + $0xee0] sm:$0xf] }
 0x2a5   :  { %9599 = vmatpush.bf16.msrb.mxu1 %v15584_v38  ;;  %v15752_v38 = vor.u32 %v19142_v40, %v15751_v4  ;;  %v16536_v4 = vor.u32 %v19338_v46, %v16535_v44  ;;  %v19394_v40 = vld [vmem:[%s29483_s4 + $0xef8] sm:$0xf0] }
 0x2a6   :  { %9624 = vmatpush.bf16.msra.mxu2 %v16060_v50  ;;  %v16591_v50 = vld [vmem:[%s29483_s4 + $0xd90] sm:$0xf]  ;;  %v16760_v5 = vor.u32 %v19394_v40, %v16759_v56  ;;  %v19254_v46 = vld [vmem:[%s29483_s4 + $0xa98] sm:$0xf0]  ;;  %v16899_v56 = vld [vmem:[%s29483_s4 + $0xff8] sm:$0xf] }
 0x2a7   :  { %9587 = vmatpush.bf16.msra.mxu3 %v15332_v26  ;;  %v16592_v26 = vor.u32 %v19352_v54, %v16591_v50  ;;  %v16731_v50 = vld [vmem:[%s29483_s4 + $0xea8] sm:$0xf]  ;;  %v19429_v40 = vld [vmem:[%s29483_s4 + $0x1010] sm:$0xf0] }
 0x2a8   :  { %9612 = vmatpush.bf16.msra.mxu0 %v15808_v29  ;;  %v16563_v29 = vld [vmem:[%s29483_s4 + $0xd58] sm:$0xf] }
 0x2a9   :  { %9600 = vmatpush.bf16.msrb.mxu1 %v15556_v32  ;;  %v16816_v32 = vor.u32 %v19408_v8, %v16815_v22  ;;  %v5013_v41 = vpop.f32.mrf.mxu0  ;;  %v16732_v22 = vor.u32 %v19387_v42, %v16731_v50  ;;  %v16227_v8 = vld [vmem:[%s29483_s4 + $0xab8] sm:$0xf] }
 0x2aa   :  { %9625 = vmatpush.bf16.msra.mxu2 %v16032_v31  ;;  %v19345_v31 = vld [vmem:[%s29483_s4 + $0xd70] sm:$0xf0] }
 0x2ab   :  { %9588 = vmatpush.bf16.msra.mxu3 %v15304_v7  ;;  %v16564_v63 = vor.u32 %v19345_v31, %v16563_v29  ;;  %v17011_v7 = vld [vmem:[%s29483_s4 + $0x10d8] sm:$0xf] }
 0x2ac   :  { %9613 = vmatpush.bf16.msra.mxu0 %v15780_v47  ;;  %v17012_v47 = vor.u32 %v19457_v39, %v17011_v7  ;;  %v16228_v7 = vor.u32 %v19261_v27, %v16227_v8  ;;  %v16199_v39 = vld [vmem:[%s29483_s4 + $0xa80] sm:$0xf]  ;;  %v15053_v8 = vld [vmem:[%s29483_s4 + $0x1a4] sm:$0xf0]  ;;  %v19576_v27 = vld [vmem:[%s29483_s4 + $0x14a8] sm:$0xf0] }
 0x2ad   :  { %9601 = vmatpush.bf16.msrb.mxu1 %v15528_v55  ;;  %v24342_v55 = vpop.f32.mrf.mxu1  ;;  %v16200_v18 = vor.u32 %v19254_v46, %v16199_v39  ;;  %v17459_v46 = vld [vmem:[%s29483_s4 + $0x1458] sm:$0xf] }
 0x2ae   :  { %9626 = vmatpush.bf16.msra.mxu2 %v16004_v48  ;;  %9589 = vmatmul.bf16.vlgmr.msra.gmra.mxu3 %v24268_v13  ;;  %v19275_v48 = vld [vmem:[%s29483_s4 + $0xb40] sm:$0xf0] }
 0x2af   :  { %9633 = vmatpush.bf16.msrb.mxu3 %v16396_v21  ;;  %v16788_v21 = vor.u32 %v19401_v15, %v16787_v37  ;;  %v16284_v2 = vor.u32 %v19275_v48, %v16283_v9  ;;  %v19317_v37 = vld [vmem:[%s29483_s4 + $0xc90] sm:$0xf0]  ;;  %v16675_v9 = vld [vmem:[%s29483_s4 + $0xe38] sm:$0xf] }
 0x2b0   :  { %9602 = vmatmul.bf16.vlgmr.msrb.gmra.mxu1 %v24278_v30  ;;  %9614 = vmatpush.bf16.msra.mxu0 %v15752_v38  ;;  %v16955_v38 = vld [vmem:[%s29483_s4 + $0x1068] sm:$0xf]  ;;  %v19373_v48 = vld [vmem:[%s29483_s4 + $0xe50] sm:$0xf0] }
 0x2b1   :  { %9646 = vmatpush.bf16.msra.mxu1 %v16620_v58  ;;  %v16983_v58 = vld [vmem:[%s29483_s4 + $0x10a0] sm:$0xf]  ;;  %v24371_v54 = vpop.f32.mrf.mxu3  ;;  %v24388_v23 = vpop.f32.mrf.mxu0  ;;  %v16676_v50 = vor.u32 %v19373_v48, %v16675_v9 }
 0x2b2   :  { %9627 = vmatpush.bf16.msra.mxu2 %v15976_v36  ;;  %v16984_v11 = vor.u32 %v19450_v59, %v16983_v58  ;;  %v19443_v36 = vld [vmem:[%s29483_s4 + $0x1080] sm:$0xf0]  ;;  %v16423_v58 = vld [vmem:[%s29483_s4 + $0xc40] sm:$0xf]  ;;  %v19310_v59 = vld [vmem:[%s29483_s4 + $0xc58] sm:$0xf0] }
 0x2b3   :  { %9634 = vmatpush.bf16.msrb.mxu3 %v16368_v14  ;;  %9615 = vmatmul.bf16.vlgmr.msra.gmra.mxu0 %v24306_v10  ;;  %v19268_v14 = vld [vmem:[%s29483_s4 + $0xb08] sm:$0xf0] }
 0x2b4   :  { %9659 = vmatpush.bf16.msrb.mxu0 %v16844_v19  ;;  %v16479_v19 = vld [vmem:[%s29483_s4 + $0xcb0] sm:$0xf]  ;;  %v16256_v28 = vor.u32 %v19268_v14, %v16255_v12  ;;  %v24399_v31 = vpop.f32.mrf.mxu2  ;;  %v5204_v12 = vmax.f32 %v23396_v57, 0.0  ;;  %v16647_v57 = vld [vmem:[%s29483_s4 + $0xe00] sm:$0xf] }
 0x2b5   :  { %9647 = vmatpush.bf16.msra.mxu1 %v16592_v26  ;;  %9628 = vmatmul.bf16.vlgmr.msra.gmra.mxu2 %v24308_v33  ;;  %v16956_v26 = vor.u32 %v19443_v36, %v16955_v38  ;;  %v4987_v29 = vpop.f32.mrf.mxu1  ;;  %v4921_v38 = vadd.f32 %v24052_v3, %v23982_v25  ;;  %v16900_v36 = vor.u32 %v19429_v40, %v16899_v56  ;;  %v16871_v25 = vld [vmem:[%s29483_s4 + $0xfc0] sm:$0xf]  ;;  %v19422_v3 = vld [vmem:[%s29483_s4 + $0xfd8] sm:$0xf0] }
 0x2b6   :  { %9672 = vmatpush.bf16.msrb.mxu2 %v17068_v20  ;;  %v19324_v20 = vld [vmem:[%s29483_s4 + $0xcc8] sm:$0xf0]  ;;  %v24495_v29 = vpack.c.bf16 %v5204_v12, %v5204_v12 }
 0x2b7   :  { %9635 = vmatpush.bf16.msrb.mxu3 %v16340_v45  ;;  %v16480_v45 = vor.u32 %v19324_v20, %v16479_v19  ;;  %v16424_v19 = vor.u32 %v19310_v59, %v16423_v58  ;;  %v19366_v20 = vld [vmem:[%s29483_s4 + $0xe18] sm:$0xf0]  ;;  %v17207_v58 = vld [vmem:[%s29483_s4 + $0x1260] sm:$0xf] }
 0x2b8   :  { %9660 = vmatpush.bf16.msrb.mxu0 %v16816_v32  ;;  %v19380_v32 = vld [vmem:[%s29483_s4 + $0xe88] sm:$0xf0]  ;;  %v19506_v59 = vld [vmem:[%s29483_s4 + $0x1278] sm:$0xf0] }
 0x2b9   :  { %9648 = vmatpush.bf16.msra.mxu1 %v16564_v63  ;;  %v24419_v63 = vld [vmem:[%s29482_s3 + $0x8] sm:$0x1f]  ;;  %v16704_v41 = vor.u32 %v19380_v32, %v16703_v35  ;;  %v5039_v60 = vpop.f32.mrf.mxu0  ;;  %s19804_s3 = smov [#allocation2]  }
 0x2ba   :  { %9673 = vmatpush.bf16.msrb.mxu2 %v17040_v34  ;;  %v16927_v34 = vld [vmem:[%s29483_s4 + $0x1030] sm:$0xf]  ;;  %v760_v15 = vperm.slane %v24419_v63, 2  ;;  %v17431_v60 = vld [vmem:[%s29483_s4 + $0x1420] sm:$0xf] }
 0x2bb   :  { %9636 = vmatpush.bf16.msrb.mxu3 %v16312_v1  ;;  %v16928_v44 = vor.u32 %v19436_v6, %v16927_v34  ;;  %v17291_v1 = vld [vmem:[%s29483_s4 + $0x1308] sm:$0xf]  ;;  %v5206_v34 = vmax.f32 %v4921_v38, 0.0  ;;  %v761_v6 = vperm.slane %v24419_v63, 3 }
 0x2bc   :  { %9661 = vmatpush.bf16.msrb.mxu0 %v16788_v21  ;;  %v19527_v21 = vld [vmem:[%s29483_s4 + $0x1320] sm:$0xf0]  ;;  %v5026_v42 = vpop.f32.mrf.mxu2  ;;  %v17403_v38 = vld [vmem:[%s29483_s4 + $0x13e8] sm:$0xf] }
 0x2bd   :  { %9649 = vmatpush.bf16.msra.mxu1 %v16536_v4  ;;  %v5000_v4 = vpop.f32.mrf.mxu3  ;;  %v17292_v14 = vor.u32 %v19527_v21, %v17291_v1  ;;  %v19569_v1 = vld [vmem:[%s29483_s4 + $0x1470] sm:$0xf0]  ;;  %v5025_v9 = vadd.f32 %v24399_v31, %v761_v6  ;;  %v18950_v31 = vld [vmem:[%s29483_s4 + $0x11c] sm:$0xf]  ;;  %v19499_v42 = vld [vmem:[%s29483_s4 + $0x1240] sm:$0xf0] }
 0x2be   :  { %9674 = vmatpush.bf16.msrb.mxu2 %v17012_v47  ;;  %v16452_v47 = vor.u32 %v19317_v37, %v16451_v24  ;;  %v16648_v24 = vor.u32 %v19366_v20, %v16647_v57  ;;  %v16872_v37 = vor.u32 %v19422_v3, %v16871_v25  ;;  %v17460_v40 = vor.u32 %v19569_v1, %v17459_v46  ;;  %v19492_v25 = vld [vmem:[%s29483_s4 + $0x1208] sm:$0xf0]  ;;  %v17123_v6 = vld [vmem:[%s29483_s4 + $0x11b8] sm:$0xf]  ;;  %v19541_v1 = vld [vmem:[%s29483_s4 + $0x1390] sm:$0xf0] }
 0x2bf   :  { %9637 = vmatpush.bf16.msrb.mxu3 %v16284_v2  ;;  %v17515_v2 = vld [vmem:[%s29483_s4 + $0x14c8] sm:$0xf]  ;;  %v18936_v3 = vld [vmem:[%s29483_s4 + $0xac] sm:$0xf]  ;;  %v17347_v46 = vld [vmem:[%s29483_s4 + $0x1378] sm:$0xf] }
 0x2c0   :  { %9662 = vmatpush.bf16.msrb.mxu0 %v16760_v5  ;;  %v19583_v5 = vld [vmem:[%s29483_s4 + $0x14e0] sm:$0xf0] }
 0x2c1   :  { %9650 = vmatpush.bf16.msra.mxu1 %v16508_v17  ;;  %v17263_v17 = vld [vmem:[%s29483_s4 + $0x12d0] sm:$0xf] }
 0x2c2   :  { %9675 = vmatpush.bf16.msrb.mxu2 %v16984_v11  ;;  %v5203_v11 = vmax.f32 %v23133_v16, 0.0  ;;  %v19520_v16 = vld [vmem:[%s29483_s4 + $0x12e8] sm:$0xf0] }
 0x2c3   :  { %9638 = vmatpush.bf16.msrb.mxu3 %v16256_v28  ;;  %v4934_v28 = vadd.f32 %v24142_v51, %v760_v15  ;;  %v17487_v51 = vld [vmem:[%s29483_s4 + $0x1490] sm:$0xf]  ;;  %v17264_v32 = vor.u32 %v19520_v16, %v17263_v17  ;;  %v17179_v17 = vld [vmem:[%s29483_s4 + $0x1228] sm:$0xf] }
 0x2c4   :  { %9663 = vmatpush.bf16.msrb.mxu0 %v16732_v22  ;;  %v17516_v22 = vor.u32 %v19583_v5, %v17515_v2  ;;  %v24493_v35 = vpack.c.bf16 %v5203_v11, %v5203_v11  ;;  %v17488_v39 = vor.u32 %v19576_v27, %v17487_v51  ;;  %v5038_v5 = vadd.f32 %v24388_v23, %v5025_v9  ;;  %v18943_v23 = vld [vmem:[%s29483_s4 + $0xe4] sm:$0xf]  ;;  %v19548_v51 = vld [vmem:[%s29483_s4 + $0x13c8] sm:$0xf0] }
 0x2c5   :  { %9651 = vmatpush.bf16.msra.mxu1 %v16480_v45  ;;  %v5205_v45 = vmax.f32 %v23763_v0, 0.0  ;;  %v4947_v15 = vadd.f32 %v24170_v49, %v4934_v28  ;;  %v17235_v0 = vld [vmem:[%s29483_s4 + $0x1298] sm:$0xf]  ;;  %v15025_v49 = vld [vmem:[%s29483_s4 + $0x16c] sm:$0xf0]  ;;  %v17208_v11 = vor.u32 %v19506_v59, %v17207_v58  ;;  %v17180_v16 = vor.u32 %v19499_v42, %v17179_v17 }
 0x2c6   :  { %9676 = vmatpush.bf16.msrb.mxu2 %v16956_v26  ;;  %v18964_v26 = vld [vmem:[%s29483_s4 + $0x18c] sm:$0xf]  ;;  %v19534_v17 = vld [vmem:[%s29483_s4 + $0x1358] sm:$0xf0] }
 0x2c7   :  { %9639 = vmatpush.bf16.msrb.mxu3 %v16228_v7  ;;  %v15056_v7 = vor.u32 %v18964_v26, %v15053_v8  ;;  %v24519_v21 = vpack.c.bf16 %v5205_v45, %v5205_v45  ;;  %v4960_v56 = vadd.f32 %v24144_v52, %v4947_v15  ;;  %v14997_v52 = vld [vmem:[%s29483_s4 + $0x134] sm:$0xf0]  ;;  %v17375_v8 = vld [vmem:[%s29483_s4 + $0x13b0] sm:$0xf] }
 0x2c8   :  { %9664 = vmatpush.bf16.msrb.mxu0 %v16704_v41  ;;  %v19513_v41 = vld [vmem:[%s29483_s4 + $0x12b0] sm:$0xf0] }
 0x2c9   :  { %9652 = vmatpush.bf16.msra.mxu1 %v16452_v47  ;;  %v24522_v47 = vpack.c.bf16 %v5206_v34, %v5206_v34  ;;  %v17236_v48 = vor.u32 %v19513_v41, %v17235_v0  ;;  %v5050_v2 = vpop.f32.mrf.mxu1  ;;  %v4973_v12 = vadd.f32 %v24196_v61, %v4960_v56  ;;  %v14969_v61 = vld [vmem:[%s29483_s4 + $0xfc] sm:$0xf0]  ;;  %v18929_v0 = vld [vmem:[%s29483_s4 + $0x74] sm:$0xf]  ;;  %v17571_v41 = vld [vmem:[%s29483_s4 + $0x1538] sm:$0xf] }
 0x2ca   :  { %9677 = vmatpush.bf16.msrb.mxu2 %v16928_v44  ;;  %v18957_v44 = vld [vmem:[%s29483_s4 + $0x154] sm:$0xf]  ;;  %v14972_v20 = vor.u32 %v18943_v23, %v14969_v61  ;;  %v17095_v56 = vld [vmem:[%s29483_s4 + $0x1180] sm:$0xf]  ;;  %v19076_v23 = vld [vmem:[%s29483_s4 + $0x50c] sm:$0xf] }
 0x2cb   :  { %9640 = vmatpush.bf16.msrb.mxu3 %v16200_v18  ;;  %v15028_v4 = vor.u32 %v18957_v44, %v15025_v49  ;;  %v19562_v18 = vld [vmem:[%s29483_s4 + $0x1438] sm:$0xf0]  ;;  %v4986_v57 = vadd.f32 %v24342_v55, %v4973_v12  ;;  %v14941_v55 = vld [vmem:[%s29483_s4 + $0xc4] sm:$0xf0]  ;;  %v19597_v44 = vld [vmem:[%s29483_s4 + $0x1550] sm:$0xf0] }
 0x2cc   :  { %9665 = vmatpush.bf16.msrb.mxu0 %v16676_v50  ;;  %v17432_v50 = vor.u32 %v19562_v18, %v17431_v60  ;;  %v17572_v9 = vor.u32 %v19597_v44, %v17571_v41  ;;  %v17543_v18 = vld [vmem:[%s29483_s4 + $0x1500] sm:$0xf]  ;;  %v15501_v61 = vld [vmem:[%s29483_s4 + $0x524] sm:$0xf0]  ;;  %v19006_v44 = vld [vmem:[%s29483_s4 + $0x2dc] sm:$0xf] }
 0x2cd   :  { %9653 = vmatpush.bf16.msra.mxu1 %v16424_v19  ;;  %v5051_v19 = vadd.f32 %v5050_v2, %v5038_v5  ;;  %v19590_v2 = vld [vmem:[%s29483_s4 + $0x1518] sm:$0xf0]  ;;  %v17319_v12 = vld [vmem:[%s29483_s4 + $0x1340] sm:$0xf] }
 0x2ce   :  { %9678 = vmatpush.bf16.msrb.mxu2 %v16900_v36  ;;  %9641 = vmatmul.bf16.vlgmr.msrb.gmra.mxu3 %v24493_v35  ;;  %v19555_v36 = vld [vmem:[%s29483_s4 + $0x1400] sm:$0xf0] }
 0x2cf   :  { %9685 = vmatpush.bf16.msra.mxu3 %v17292_v14  ;;  %v15000_v14 = vor.u32 %v18950_v31, %v14997_v52  ;;  %v17404_v28 = vor.u32 %v19555_v36, %v17403_v38  ;;  %v17348_v31 = vor.u32 %v19541_v1, %v17347_v46  ;;  %v15277_v52 = vld [vmem:[%s29483_s4 + $0x364] sm:$0xf0]  ;;  %v19062_v46 = vld [vmem:[%s29483_s4 + $0x49c] sm:$0xf]  ;;  %v15445_v1 = vld [vmem:[%s29483_s4 + $0x4b4] sm:$0xf0] }
 0x2d0   :  { %9654 = vmatmul.bf16.vlgmr.msra.gmra.mxu1 %v24495_v29  ;;  %9666 = vmatpush.bf16.msrb.mxu0 %v16648_v24  ;;  %v5089_v26 = vpop.f32.mrf.mxu0  ;;  %v19485_v24 = vld [vmem:[%s29483_s4 + $0x11d0] sm:$0xf0] }
 0x2d1   :  { %9698 = vmatpush.bf16.msrb.mxu1 %v17516_v22  ;;  %v17151_v22 = vld [vmem:[%s29483_s4 + $0x11f0] sm:$0xf]  ;;  %v5052_v27 = vpop.f32.mrf.mxu1  ;;  %v5063_v45 = vpop.f32.mrf.mxu3 }
 0x2d2   :  { %9679 = vmatpush.bf16.msrb.mxu2 %v16872_v37  ;;  %v17152_v34 = vor.u32 %v19492_v25, %v17151_v22  ;;  %v4999_v37 = vadd.f32 %v24371_v54, %v4986_v57  ;;  %v14913_v54 = vld [vmem:[%s29483_s4 + $0x8c] sm:$0xf0]  ;;  %v15504_v57 = vor.u32 %v19076_v23, %v15501_v61  ;;  %v19013_v25 = vld [vmem:[%s29483_s4 + $0x314] sm:$0xf]  ;;  %v18992_v61 = vld [vmem:[%s29483_s4 + $0x26c] sm:$0xf] }
 0x2d3   :  { %9686 = vmatpush.bf16.msra.mxu3 %v17264_v32  ;;  %9667 = vmatmul.bf16.vlgmr.msrb.gmra.mxu0 %v24519_v21  ;;  %v5064_v32 = vadd.f32 %v5063_v45, %v5051_v19  ;;  %v14916_v59 = vor.u32 %v18929_v0, %v14913_v54  ;;  %v19132_v19 = vld [vmem:[%s29483_s4 + $0x6cc] sm:$0xf]  ;;  %v15473_v27 = vld [vmem:[%s29483_s4 + $0x4ec] sm:$0xf0]  ;;  %v15221_v54 = vld [vmem:[%s29483_s4 + $0x2f4] sm:$0xf0] }
 0x2d4   :  { %v5076_v15 = vpop.f32.mrf.mxu2  ;;  %9717 = vmatpush.bf16.msra.mxu0 %v17572_v9  ;;  %v5012_v58 = vadd.f32 %v24266_v62, %v4999_v37  ;;  %v18922_v62 = vld [vmem:[%s29483_s4 + $0x3c] sm:$0xf]  ;;  %v15949_v37 = vld [vmem:[%s29483_s4 + $0x8a4] sm:$0xf0] }
 0x2d5   :  { %9699 = vmatpush.bf16.msrb.mxu1 %v17488_v39  ;;  %9680 = vmatmul.bf16.vlgmr.msrb.gmra.mxu2 %v24522_v47  ;;  %v17376_v39 = vor.u32 %v19548_v51, %v17375_v8  ;;  %v5077_v49 = vadd.f32 %v5076_v15, %v5064_v32  ;;  %v17320_v8 = vor.u32 %v19534_v17, %v17319_v12  ;;  %v19069_v51 = vld [vmem:[%s29483_s4 + $0x4d4] sm:$0xf]  ;;  %v18915_v32 = vld [vmem:[%s29483_s4 + $0x4] sm:$0xf]  ;;  %v19174_v12 = vld [vmem:[%s29483_s4 + $0x81c] sm:$0xf] }
 0x2d6   :  { %9724 = vmatpush.bf16.msra.mxu2 %v15056_v7  ;;  %v14944_v7 = vor.u32 %v18936_v3, %v14941_v55  ;;  %v15249_v3 = vld [vmem:[%s29483_s4 + $0x32c] sm:$0xf0]  ;;  %v19125_v15 = vld [vmem:[%s29483_s4 + $0x694] sm:$0xf]  ;;  %v19111_v17 = vld [vmem:[%s29483_s4 + $0x624] sm:$0xf] }
 0x2d7   :  { %9687 = vmatpush.bf16.msra.mxu3 %v17236_v48  ;;  %v17124_v48 = vor.u32 %v19485_v24, %v17123_v6  ;;  %v5090_v5 = vadd.f32 %v5089_v26, %v5077_v49  ;;  %v19188_v6 = vld [vmem:[%s29483_s4 + $0x88c] sm:$0xf]  ;;  %v15476_v24 = vor.u32 %v19069_v51, %v15473_v27  ;;  %v15252_v41 = vor.u32 %v19013_v25, %v15249_v3  ;;  %v15613_v3 = vld [vmem:[%s29483_s4 + $0x604] sm:$0xf0]  ;;  %v19041_v27 = vld [vmem:[%s29483_s4 + $0x3f4] sm:$0xf] }
 0x2d8   :  { %v5091_v60 = vpop.f32.mrf.mxu0  ;;  %v15952_v9 = vor.u32 %v19188_v6, %v15949_v37  ;;  %v19104_v25 = vld [vmem:[%s29483_s4 + $0x5ec] sm:$0xf] }
 0x2d9   :  { %9700 = vmatpush.bf16.msrb.mxu1 %v17460_v40  ;;  %v19020_v40 = vld [vmem:[%s29483_s4 + $0x34c] sm:$0xf]  ;;  %v5065_v42 = vpop.f32.mrf.mxu3  ;;  %v18999_v60 = vld [vmem:[%s29483_s4 + $0x2a4] sm:$0xf] }
 0x2da   :  { %9725 = vmatpush.bf16.msra.mxu2 %v15028_v4  ;;  %v19478_v4 = vld [vmem:[%s29483_s4 + $0x1198] sm:$0xf0]  ;;  %v15641_v42 = vld [vmem:[%s29483_s4 + $0x63c] sm:$0xf0]  ;;  %v19160_v6 = vld [vmem:[%s29483_s4 + $0x7ac] sm:$0xf] }
 0x2db   :  { %9688 = vmatpush.bf16.msra.mxu3 %v17208_v11  ;;  %v14885_v11 = vld [vmem:[%s29483_s4 + $0x54] sm:$0xf0]  ;;  %v17096_v36 = vor.u32 %v19478_v4, %v17095_v56  ;;  %v19181_v56 = vld [vmem:[%s29483_s4 + $0x854] sm:$0xf] }
 0x2dc   :  { %v14888_v22 = vor.u32 %v18922_v62, %v14885_v11  ;;  %v5078_v26 = vpop.f32.mrf.mxu2 }
 0x2dd   :  { %9701 = vmatpush.bf16.msrb.mxu1 %v17432_v50  ;;  %v5102_v50 = vpop.f32.mrf.mxu1 }
 0x2de   :  { %9726 = vmatpush.bf16.msra.mxu2 %v15000_v14  ;;  %v17544_v14 = vor.u32 %v19590_v2, %v17543_v18  ;;  %v5103_v38 = vadd.f32 %v5102_v50, %v5090_v5  ;;  %v15193_v18 = vld [vmem:[%s29483_s4 + $0x2bc] sm:$0xf0]  ;;  %v19055_v2 = vld [vmem:[%s29483_s4 + $0x464] sm:$0xf]  ;;  %v15893_v50 = vld [vmem:[%s29483_s4 + $0x834] sm:$0xf0] }
 0x2df   :  { %9689 = vmatpush.bf16.msra.mxu3 %v17180_v16  ;;  %v15725_v16 = vld [vmem:[%s29483_s4 + $0x6e4] sm:$0xf0]  ;;  %v15417_v5 = vld [vmem:[%s29483_s4 + $0x47c] sm:$0xf0]  ;;  %v15196_v23 = vor.u32 %v18999_v60, %v15193_v18  ;;  %v18971_v18 = vld [vmem:[%s29483_s4 + $0x1c4] sm:$0xf] }
 0x2e0   :  { %9718 = vmatpush.bf16.msra.mxu0 %v17544_v14  ;;  %v5208_v55 = vmax.f32 %v5103_v38, 0.0  ;;  %v15728_v45 = vor.u32 %v19132_v19, %v15725_v16  ;;  %v15420_v14 = vor.u32 %v19055_v2, %v15417_v5  ;;  %v15165_v38 = vld [vmem:[%s29483_s4 + $0x284] sm:$0xf0]  ;;  %v15896_v16 = vor.u32 %v19174_v12, %v15893_v50  ;;  %v15081_v2 = vld [vmem:[%s29483_s4 + $0x1dc] sm:$0xf0] }
 0x2e1   :  { %9702 = vmatpush.bf16.msrb.mxu1 %v17404_v28  ;;  %v15280_v28 = vor.u32 %v19020_v40, %v15277_v52  ;;  %v15448_v40 = vor.u32 %v19062_v46, %v15445_v1  ;;  %v15224_v52 = vor.u32 %v19006_v44, %v15221_v54  ;;  %v15389_v19 = vld [vmem:[%s29483_s4 + $0x444] sm:$0xf0]  ;;  %v15168_v26 = vor.u32 %v18992_v61, %v15165_v38  ;;  %v15585_v44 = vld [vmem:[%s29483_s4 + $0x5cc] sm:$0xf0]  ;;  %v18978_v46 = vld [vmem:[%s29483_s4 + $0x1fc] sm:$0xf] }
 0x2e2   :  { %9727 = vmatpush.bf16.msra.mxu2 %v14972_v20  ;;  %v5207_v20 = vmax.f32 %v5012_v58, 0.0  ;;  %v24685_v0 = vpack.c.bf16 %v5208_v55, %v5208_v55  ;;  %v15921_v58 = vld [vmem:[%s29483_s4 + $0x86c] sm:$0xf0]  ;;  %v18985_v55 = vld [vmem:[%s29483_s4 + $0x234] sm:$0xf] }
 0x2e3   :  { %9690 = vmatpush.bf16.msra.mxu3 %v17152_v34  ;;  %v14857_v34 = vld [vmem:[%s29483_s4 + $0x1c] sm:$0xf0]  ;;  %v15924_v62 = vor.u32 %v19181_v56, %v15921_v58  ;;  %v15109_v1 = vld [vmem:[%s29483_s4 + $0x214] sm:$0xf0]  ;;  %v19244_v50 = vld [vmem:[%s29483_s4 + $0xa4c] sm:$0xf] }
 0x2e4   :  { %9750 = vmatpush.bf16.msrb.mxu0 %v15504_v57  ;;  %v14860_v49 = vor.u32 %v18915_v32, %v14857_v34  ;;  %v15644_v57 = vor.u32 %v19111_v17, %v15641_v42  ;;  %v15616_v34 = vor.u32 %v19104_v25, %v15613_v3  ;;  %v15112_v60 = vor.u32 %v18978_v46, %v15109_v1  ;;  %v16173_v17 = vld [vmem:[%s29483_s4 + $0xa64] sm:$0xf0]  ;;  %v19146_v42 = vld [vmem:[%s29483_s4 + $0x73c] sm:$0xf]  ;;  %v16117_v1 = vld [vmem:[%s29483_s4 + $0x9f4] sm:$0xf0] }
 0x2e5   :  { %9703 = vmatpush.bf16.msrb.mxu1 %v17376_v39  ;;  %v24683_v39 = vpack.c.bf16 %v5207_v20, %v5207_v20  ;;  %v5104_v4 = vpop.f32.mrf.mxu1  ;;  %v19167_v20 = vld [vmem:[%s29483_s4 + $0x7e4] sm:$0xf]  ;;  %v16176_v25 = vor.u32 %v19244_v50, %v16173_v17  ;;  %v762_v3 = vperm.slane %v24419_v63, 4  ;;  %v15753_v63 = vld [vmem:[%s29483_s4 + $0x71c] sm:$0xf0] }
 0x2e6   :  { %9728 = vmatpush.bf16.msra.mxu2 %v14944_v7  ;;  %v15697_v7 = vld [vmem:[%s29483_s4 + $0x6ac] sm:$0xf0]  ;;  %v19230_v46 = vld [vmem:[%s29483_s4 + $0x9dc] sm:$0xf]  ;;  %v19216_v50 = vld [vmem:[%s29483_s4 + $0x96c] sm:$0xf] }
 0x2e7   :  { %9691 = vmatpush.bf16.msra.mxu3 %v17124_v48  ;;  %v15700_v48 = vor.u32 %v19125_v15, %v15697_v7  ;;  %v15837_v7 = vld [vmem:[%s29483_s4 + $0x7c4] sm:$0xf0] }
 0x2e8   :  { %9751 = vmatpush.bf16.msrb.mxu0 %v15476_v24  ;;  %v15840_v56 = vor.u32 %v19160_v6, %v15837_v7  ;;  %v16845_v6 = vld [vmem:[%s29483_s4 + $0xfa4] sm:$0xf0]  ;;  %v16593_v7 = vld [vmem:[%s29483_s4 + $0xdac] sm:$0xf0] }
 0x2e9   :  { %9704 = vmatpush.bf16.msrb.mxu1 %v17348_v31  ;;  %v15669_v31 = vld [vmem:[%s29483_s4 + $0x674] sm:$0xf0]  ;;  %v16061_v17 = vld [vmem:[%s29483_s4 + $0x984] sm:$0xf0] }
 0x2ea   :  { %9729 = vmatpush.bf16.msra.mxu2 %v14916_v59  ;;  %v19118_v59 = vld [vmem:[%s29483_s4 + $0x65c] sm:$0xf] }
 0x2eb   :  { %9692 = vmatpush.bf16.msra.mxu3 %v17096_v36  ;;  %v15672_v11 = vor.u32 %v19118_v59, %v15669_v31  ;;  %v19048_v36 = vld [vmem:[%s29483_s4 + $0x42c] sm:$0xf]  ;;  %v15809_v59 = vld [vmem:[%s29483_s4 + $0x78c] sm:$0xf0]  ;;  %v19090_v31 = vld [vmem:[%s29483_s4 + $0x57c] sm:$0xf] }
 0x2ec   :  { %9752 = vmatpush.bf16.msrb.mxu0 %v15448_v40  ;;  %v19153_v40 = vld [vmem:[%s29483_s4 + $0x774] sm:$0xf] }
 0x2ed   :  { %9705 = vmatpush.bf16.msrb.mxu1 %v17320_v8  ;;  %v15137_v8 = vld [vmem:[%s29483_s4 + $0x24c] sm:$0xf0]  ;;  %v24768_v51 = vpop.f32.mrf.mxu1  ;;  %v15812_v12 = vor.u32 %v19153_v40, %v15809_v59  ;;  %v19342_v40 = vld [vmem:[%s29483_s4 + $0xd5c] sm:$0xf]  ;;  %v16120_v59 = vor.u32 %v19230_v46, %v16117_v1  ;;  %v19377_v1 = vld [vmem:[%s29483_s4 + $0xe74] sm:$0xf] }
 0x2ee   :  { %9730 = vmatpush.bf16.msra.mxu2 %v14888_v22  ;;  %9693 = vmatmul.bf16.vlgmr.msra.gmra.mxu3 %v24683_v39  ;;  %v15865_v22 = vld [vmem:[%s29483_s4 + $0x7fc] sm:$0xf0]  ;;  %v15140_v54 = vor.u32 %v18985_v55, %v15137_v8  ;;  %v19237_v8 = vld [vmem:[%s29483_s4 + $0xa14] sm:$0xf] }
 0x2ef   :  { %9737 = vmatpush.bf16.msrb.mxu3 %v15280_v28  ;;  %v15392_v28 = vor.u32 %v19048_v36, %v15389_v19  ;;  %v15868_v32 = vor.u32 %v19167_v20, %v15865_v22  ;;  %v15781_v36 = vld [vmem:[%s29483_s4 + $0x754] sm:$0xf0]  ;;  %v19083_v19 = vld [vmem:[%s29483_s4 + $0x544] sm:$0xf]  ;;  %v15084_v20 = vor.u32 %v18971_v18, %v15081_v2  ;;  %v16621_v22 = vld [vmem:[%s29483_s4 + $0xde4] sm:$0xf0] }
 0x2f0   :  { %9706 = vmatmul.bf16.vlgmr.msrb.gmra.mxu1 %v24685_v0  ;;  %9753 = vmatpush.bf16.msrb.mxu0 %v15420_v14  ;;  %v24779_v24 = vpop.f32.mrf.mxu0 }
 0x2f1   :  { %9763 = vmatpush.bf16.msra.mxu1 %v15728_v45  ;;  %v15361_v45 = vld [vmem:[%s29483_s4 + $0x40c] sm:$0xf0]  ;;  %v24781_v15 = vpop.f32.mrf.mxu3 }
 0x2f2   :  { %9731 = vmatpush.bf16.msra.mxu2 %v14860_v49  ;;  %v15364_v37 = vor.u32 %v19041_v27, %v15361_v45  ;;  %v16145_v27 = vld [vmem:[%s29483_s4 + $0xa2c] sm:$0xf0] }
 0x2f3   :  { %9738 = vmatpush.bf16.msrb.mxu3 %v15252_v41  ;;  %v19097_v41 = vld [vmem:[%s29483_s4 + $0x5b4] sm:$0xf] }
 0x2f4   :  { %9754 = vmatpush.bf16.msrb.mxu0 %v15392_v28  ;;  %v24792_v49 = vpop.f32.mrf.mxu2  ;;  %v15588_v4 = vor.u32 %v19097_v41, %v15585_v44  ;;  %v19356_v28 = vld [vmem:[%s29483_s4 + $0xdcc] sm:$0xf]  ;;  %v16148_v41 = vor.u32 %v19237_v8, %v16145_v27  ;;  %v5116_v44 = vadd.f32 %v24781_v15, %v762_v3  ;;  %v19405_v15 = vld [vmem:[%s29483_s4 + $0xf54] sm:$0xf] }
 0x2f5   :  { %9764 = vmatpush.bf16.msra.mxu1 %v15700_v48  ;;  %9732 = vmatmul.bf16.vlgmr.msra.gmra.mxu2 %v24088_v43  ;;  %v15333_v48 = vld [vmem:[%s29483_s4 + $0x3d4] sm:$0xf0]  ;;  %v5130_v5 = vpop.f32.mrf.mxu1  ;;  %v16624_v45 = vor.u32 %v19356_v28, %v16621_v22  ;;  %v19209_v22 = vld [vmem:[%s29483_s4 + $0x934] sm:$0xf] }
 0x2f6   :  { %9776 = vmatpush.bf16.msrb.mxu2 %v15952_v9  ;;  %v19034_v9 = vld [vmem:[%s29483_s4 + $0x3bc] sm:$0xf] }
 0x2f7   :  { %9739 = vmatpush.bf16.msrb.mxu3 %v15224_v52  ;;  %v15336_v58 = vor.u32 %v19034_v9, %v15333_v48  ;;  %v15557_v52 = vld [vmem:[%s29483_s4 + $0x594] sm:$0xf0]  ;;  %v19398_v5 = vld [vmem:[%s29483_s4 + $0xf1c] sm:$0xf] }
 0x2f8   :  { %9755 = vmatpush.bf16.msrb.mxu0 %v15364_v37  ;;  %v15560_v14 = vor.u32 %v19090_v31, %v15557_v52  ;;  %v19349_v37 = vld [vmem:[%s29483_s4 + $0xd94] sm:$0xf]  ;;  %v5129_v31 = vadd.f32 %v24768_v51, %v5116_v44  ;;  %v19223_v52 = vld [vmem:[%s29483_s4 + $0x9a4] sm:$0xf]  ;;  %v16789_v51 = vld [vmem:[%s29483_s4 + $0xf34] sm:$0xf0] }
 0x2f9   :  { %9765 = vmatpush.bf16.msra.mxu1 %v15672_v11  ;;  %v15305_v11 = vld [vmem:[%s29483_s4 + $0x39c] sm:$0xf0]  ;;  %v5117_v38 = vpop.f32.mrf.mxu3  ;;  %v16596_v48 = vor.u32 %v19349_v37, %v16593_v7  ;;  %v19202_v7 = vld [vmem:[%s29483_s4 + $0x8fc] sm:$0xf] }
 0x2fa   :  { %9777 = vmatpush.bf16.msrb.mxu2 %v15924_v62  ;;  %v19027_v62 = vld [vmem:[%s29483_s4 + $0x384] sm:$0xf] }
 0x2fb   :  { %9740 = vmatpush.bf16.msrb.mxu3 %v15196_v23  ;;  %v5156_v23 = vpop.f32.mrf.mxu0  ;;  %v15308_v61 = vor.u32 %v19027_v62, %v15305_v11  ;;  %v19335_v62 = vld [vmem:[%s29483_s4 + $0xd24] sm:$0xf]  ;;  %v16537_v11 = vld [vmem:[%s29483_s4 + $0xd3c] sm:$0xf0] }
 0x2fc   :  { %9756 = vmatpush.bf16.msrb.mxu0 %v15336_v58  ;;  %v16565_v58 = vld [vmem:[%s29483_s4 + $0xd74] sm:$0xf0]  ;;  %v16792_v23 = vor.u32 %v19398_v5, %v16789_v51  ;;  %v6007_v38 = vld [vmem:[%s29484_s5] sm:$0x7f] }
 0x2fd   :  { %9766 = vmatpush.bf16.msra.mxu1 %v15644_v57  ;;  %v5143_v57 = vpop.f32.mrf.mxu2  ;;  %v16568_v2 = vor.u32 %v19342_v40, %v16565_v58  ;;  %v16453_v40 = vld [vmem:[%s29483_s4 + $0xc94] sm:$0xf0] }
 0x2fe   :  { %9778 = vmatpush.bf16.msrb.mxu2 %v15896_v16  ;;  %v15529_v16 = vld [vmem:[%s29483_s4 + $0x55c] sm:$0xf0]  ;;  %v16509_v57 = vld [vmem:[%s29483_s4 + $0xd04] sm:$0xf0] }
 0x2ff   :  { %9741 = vmatpush.bf16.msrb.mxu3 %v15168_v26  ;;  %v15784_v26 = vor.u32 %v19146_v42, %v15781_v36  ;;  %v15532_v55 = vor.u32 %v19083_v19, %v15529_v16  ;;  %v16761_v19 = vld [vmem:[%s29483_s4 + $0xefc] sm:$0xf0]  ;;  %v19328_v16 = vld [vmem:[%s29483_s4 + $0xcec] sm:$0xf] }
 0x300   :  { %9757 = vmatpush.bf16.msrb.mxu0 %v15308_v61  ;;  %v16540_v61 = vor.u32 %v19335_v62, %v16537_v11  ;;  %v16512_v27 = vor.u32 %v19328_v16, %v16509_v57  ;;  %v19580_v57 = vld [vmem:[%s29483_s4 + $0x14cc] sm:$0xf] }
 0x301   :  { %9767 = vmatpush.bf16.msra.mxu1 %v15616_v34  ;;  %v19412_v34 = vld [vmem:[%s29483_s4 + $0xf8c] sm:$0xf] }
 0x302   :  { %9779 = vmatpush.bf16.msrb.mxu2 %v15868_v32  ;;  %v19139_v32 = vld [vmem:[%s29483_s4 + $0x704] sm:$0xf]  ;;  %v16848_v9 = vor.u32 %v19412_v34, %v16845_v6  ;;  %v16481_v34 = vld [vmem:[%s29483_s4 + $0xccc] sm:$0xf0] }
 0x303   :  { %9742 = vmatpush.bf16.msrb.mxu3 %v15140_v54  ;;  %v15756_v54 = vor.u32 %v19139_v32, %v15753_v63  ;;  %v16733_v32 = vld [vmem:[%s29483_s4 + $0xec4] sm:$0xf0]  ;;  %v19321_v63 = vld [vmem:[%s29483_s4 + $0xcb4] sm:$0xf] }
 0x304   :  { %v16484_v46 = vor.u32 %v19321_v63, %v16481_v34  ;;  %v19286_v63 = vld [vmem:[%s29483_s4 + $0xb9c] sm:$0xf]  ;;  %v16341_v34 = vld [vmem:[%s29483_s4 + $0xbb4] sm:$0xf0] }
 0x305   :  { %9768 = vmatpush.bf16.msra.mxu1 %v15588_v4  ;;  %v16817_v4 = vld [vmem:[%s29483_s4 + $0xf6c] sm:$0xf0] }
 0x306   :  { %9780 = vmatpush.bf16.msrb.mxu2 %v15840_v56  ;;  %v24890_v56 = vpop.f32.mrf.mxu2  ;;  %v16820_v18 = vor.u32 %v19405_v15, %v16817_v4  ;;  %v16705_v15 = vld [vmem:[%s29483_s4 + $0xe8c] sm:$0xf0]  ;;  %v19314_v4 = vld [vmem:[%s29483_s4 + $0xc7c] sm:$0xf] }
 0x307   :  { %9743 = vmatpush.bf16.msrb.mxu3 %v15112_v60  ;;  %v16089_v60 = vld [vmem:[%s29483_s4 + $0x9bc] sm:$0xf0]  ;;  %v16708_v62 = vor.u32 %v19377_v1, %v16705_v15  ;;  %v16456_v11 = vor.u32 %v19314_v4, %v16453_v40  ;;  %v16344_v1 = vor.u32 %v19286_v63, %v16341_v34  ;;  %v19279_v4 = vld [vmem:[%s29483_s4 + $0xb64] sm:$0xf] }
 0x308   :  { %v16313_v40 = vld [vmem:[%s29483_s4 + $0xb7c] sm:$0xf0] }
 0x309   :  { %9769 = vmatpush.bf16.msra.mxu1 %v15560_v14  ;;  %v5142_v14 = vadd.f32 %v24792_v49, %v5129_v31  ;;  %v19391_v49 = vld [vmem:[%s29483_s4 + $0xee4] sm:$0xf]  ;;  %v16397_v31 = vld [vmem:[%s29483_s4 + $0xc24] sm:$0xf0] }
 0x30a   :  { %9781 = vmatpush.bf16.msrb.mxu2 %v15812_v12  ;;  %v16092_v12 = vor.u32 %v19223_v52, %v16089_v60  ;;  %v16764_v8 = vor.u32 %v19391_v49, %v16761_v19  ;;  %v16369_v19 = vld [vmem:[%s29483_s4 + $0xbec] sm:$0xf0] }
 0x30b   :  { %9744 = vmatpush.bf16.msrb.mxu3 %v15084_v20  ;;  %v16064_v20 = vor.u32 %v19216_v50, %v16061_v17  ;;  %v5155_v28 = vadd.f32 %v24779_v24, %v5142_v14  ;;  %v17069_v14 = vld [vmem:[%s29483_s4 + $0x1164] sm:$0xf0]  ;;  %v19370_v50 = vld [vmem:[%s29483_s4 + $0xe3c] sm:$0xf] }
 0x30d   :  { %9770 = vmatpush.bf16.msra.mxu1 %v15532_v55  ;;  %v5180_v42 = vpop.f32.mrf.mxu1 }
 0x30e   :  { %9782 = vmatpush.bf16.msrb.mxu2 %v15784_v26  ;;  %9745 = vmatmul.bf16.vlgmr.msrb.gmra.mxu3 %v24090_v53  ;;  %v5195_v36 = vpop.f32.mrf.mxu2  ;;  %v6009_v26 = vperm.slane %v6007_v38, 0  ;;  %v16425_v38 = vld [vmem:[%s29483_s4 + $0xc5c] sm:$0xf0] }
 0x30f   :  { %9789 = vmatpush.bf16.msra.mxu3 %v16176_v25  ;;  %v16033_v25 = vld [vmem:[%s29483_s4 + $0x94c] sm:$0xf0]  ;;  %v19293_v36 = vld [vmem:[%s29483_s4 + $0xbd4] sm:$0xf] }
 0x310   :  { %9771 = vmatmul.bf16.vlgmr.msra.gmra.mxu1 %v24278_v30  ;;  %v9564_v55 = vpop.f32.mrf.mxu0  ;;  %v16036_v6 = vor.u32 %v19209_v22, %v16033_v25  ;;  %v19461_v25 = vld [vmem:[%s29483_s4 + $0x1114] sm:$0xf] }
 0x311   :  { %9815 = vmatpush.bf16.msrb.mxu1 %v16624_v45  ;;  %v5167_v3 = vpop.f32.mrf.mxu3  ;;  %v19384_v45 = vld [vmem:[%s29483_s4 + $0xeac] sm:$0xf] }
 0x312   :  { %9783 = vmatpush.bf16.msrb.mxu2 %v15756_v54  ;;  %v5168_v24 = vadd.f32 %v5167_v3, %v5155_v28  ;;  %v16736_v54 = vor.u32 %v19384_v45, %v16733_v32  ;;  %v17041_v3 = vld [vmem:[%s29483_s4 + $0x112c] sm:$0xf0]  ;;  %v17573_v32 = vld [vmem:[%s29483_s4 + $0x1554] sm:$0xf0] }
 0x313   :  { %9790 = vmatpush.bf16.msra.mxu3 %v16148_v41  ;;  %v16005_v41 = vld [vmem:[%s29483_s4 + $0x914] sm:$0xf0] }
 0x314   :  { %v5181_v37 = vadd.f32 %v5180_v42, %v5168_v24 }
 0x315   :  { %9816 = vmatpush.bf16.msrb.mxu1 %v16596_v48  ;;  %9784 = vmatmul.bf16.vlgmr.msrb.gmra.mxu2 %v24306_v10  ;;  %v5182_v44 = vpop.f32.mrf.mxu1  ;;  %v9565_v48 = vadd.f32 %v9564_v55, %v6009_v26  ;;  %v16372_v26 = vor.u32 %v19293_v36, %v16369_v19  ;;  %v19363_v55 = vld [vmem:[%s29483_s4 + $0xe04] sm:$0xf]  ;;  %v16957_v36 = vld [vmem:[%s29483_s4 + $0x1084] sm:$0xf0] }
 0x316   :  { %9828 = vmatpush.bf16.msra.mxu2 %v16848_v9  ;;  %v5194_v9 = vadd.f32 %v24890_v56, %v5181_v37  ;;  %v19300_v56 = vld [vmem:[%s29483_s4 + $0xc0c] sm:$0xf]  ;;  %v19573_v37 = vld [vmem:[%s29483_s4 + $0x1494] sm:$0xf]  ;;  %v19454_v44 = vld [vmem:[%s29483_s4 + $0x10dc] sm:$0xf] }
 0x317   :  { %9791 = vmatpush.bf16.msra.mxu3 %v16120_v59  ;;  %v16008_v59 = vor.u32 %v19202_v7, %v16005_v41  ;;  %v16400_v42 = vor.u32 %v19300_v56, %v16397_v31  ;;  %v17489_v7 = vld [vmem:[%s29483_s4 + $0x14ac] sm:$0xf0]  ;;  %v17461_v56 = vld [vmem:[%s29483_s4 + $0x1474] sm:$0xf0] }
 0x318   :  { %v9577_v58 = vpop.f32.mrf.mxu2  ;;  %v5209_v52 = vmax.f32 %v5194_v9, 0.0  ;;  %v9566_v51 = vpop.f32.mrf.mxu0  ;;  %v19587_v9 = vld [vmem:[%s29483_s4 + $0x1504] sm:$0xf]  ;;  %v17492_v15 = vor.u32 %v19573_v37, %v17489_v7  ;;  %v15731_v31 = vld [vmem:[%s29483_s4 + $0x6d0] sm:$0xf] }
 0x319   :  { %9817 = vmatpush.bf16.msrb.mxu1 %v16568_v2  ;;  %v24988_v60 = vadd.f32 %v9577_v58, %v9565_v48  ;;  %v15977_v2 = vld [vmem:[%s29483_s4 + $0x8dc] sm:$0xf0]  ;;  %v5169_v5 = vpop.f32.mrf.mxu3  ;;  %v19566_v58 = vld [vmem:[%s29483_s4 + $0x145c] sm:$0xf]  ;;  %v16316_v51 = vor.u32 %v19279_v4, %v16313_v40  ;;  %v16229_v7 = vld [vmem:[%s29483_s4 + $0xad4] sm:$0xf0] }
 0x31a   :  { %9829 = vmatpush.bf16.msra.mxu2 %v16820_v18  ;;  %v19195_v18 = vld [vmem:[%s29483_s4 + $0x8c4] sm:$0xf]  ;;  %v25005_v17 = vpack.c.bf16 %v5209_v52, %v5209_v52  ;;  %v17545_v48 = vld [vmem:[%s29483_s4 + $0x151c] sm:$0xf0]  ;;  %v19136_v52 = vld [vmem:[%s29483_s4 + $0x6e8] sm:$0xf0] }
 0x31b   :  { %9792 = vmatpush.bf16.msra.mxu3 %v16092_v12  ;;  %v19468_v12 = vld [vmem:[%s29483_s4 + $0x114c] sm:$0xf]  ;;  %v15980_v49 = vor.u32 %v19195_v18, %v15977_v2  ;;  %v19447_v18 = vld [vmem:[%s29483_s4 + $0x10a4] sm:$0xf]  ;;  %v16985_v2 = vld [vmem:[%s29483_s4 + $0x10bc] sm:$0xf0]  ;;  %v17548_v5 = vor.u32 %v19587_v9, %v17545_v48 }
 0x31c   :  { %17597 = vmatmul.msk.bf16.vlgmr.msra.gmra.mxu0 %vm9551_vm1, %v25005_v17  ;;  %v17072_v16 = vor.u32 %v19468_v12, %v17069_v14  ;;  %v19272_v12 = vld [vmem:[%s29483_s4 + $0xb2c] sm:$0xf]  ;;  %v16285_v14 = vld [vmem:[%s29483_s4 + $0xb44] sm:$0xf0]  ;;  %v19258_v37 = vld [vmem:[%s29483_s4 + $0xabc] sm:$0xf] }
 0x31d   :  { %9818 = vmatpush.bf16.msrb.mxu1 %v16540_v61  ;;  %v19307_v61 = vld [vmem:[%s29483_s4 + $0xc44] sm:$0xf]  ;;  %9802 = vmatpush.bf16.msra.mxu0 %v16400_v42  ;;  %v16988_v42 = vor.u32 %v19447_v18, %v16985_v2  ;;  %v16288_v19 = vor.u32 %v19272_v12, %v16285_v14  ;;  %v19426_v48 = vld [vmem:[%s29483_s4 + $0xffc] sm:$0xf]  ;;  %v16232_v4 = vor.u32 %v19258_v37, %v16229_v7  ;;  %v17349_v18 = vld [vmem:[%s29483_s4 + $0x1394] sm:$0xf0] }
 0x31e   :  { %9830 = vmatpush.bf16.msra.mxu2 %v16792_v23  ;;  %v16677_v23 = vld [vmem:[%s29483_s4 + $0xe54] sm:$0xf0]  ;;  %v16428_v22 = vor.u32 %v19307_v61, %v16425_v38  ;;  %v19129_v38 = vld [vmem:[%s29483_s4 + $0x6b0] sm:$0xf0]  ;;  %v19115_v9 = vld [vmem:[%s29483_s4 + $0x640] sm:$0xf0] }
 0x31f   :  { %9793 = vmatpush.bf16.msra.mxu3 %v16064_v20  ;;  %v17517_v20 = vld [vmem:[%s29483_s4 + $0x14e4] sm:$0xf0]  ;;  %v16680_v28 = vor.u32 %v19370_v50, %v16677_v23  ;;  %v19559_v50 = vld [vmem:[%s29483_s4 + $0x1424] sm:$0xf]  ;;  %v17433_v23 = vld [vmem:[%s29483_s4 + $0x143c] sm:$0xf0] }
 0x320   :  { %v9579_v45 = vpop.f32.mrf.mxu2  ;;  %v17520_v24 = vor.u32 %v19580_v57, %v17517_v20  ;;  %v15703_v61 = vld [vmem:[%s29483_s4 + $0x698] sm:$0xf]  ;;  %v17436_v57 = vor.u32 %v19559_v50, %v17433_v23  ;;  %v19251_v40 = vld [vmem:[%s29483_s4 + $0xa84] sm:$0xf]  ;;  %v16873_v14 = vld [vmem:[%s29483_s4 + $0xfdc] sm:$0xf0] }
 0x321   :  { %9819 = vmatpush.bf16.msrb.mxu1 %v16512_v27  ;;  %v19594_v27 = vld [vmem:[%s29483_s4 + $0x153c] sm:$0xf]  ;;  %9803 = vmatpush.bf16.msra.mxu0 %v16372_v26  ;;  %v15704_v20 = vor.u32 %v19129_v38, %v15703_v61  ;;  %v17405_v26 = vld [vmem:[%s29483_s4 + $0x1404] sm:$0xf0]  ;;  %v16929_v45 = vld [vmem:[%s29483_s4 + $0x104c] sm:$0xf0] }
 0x322   :  { %9831 = vmatpush.bf16.msra.mxu2 %v16764_v8  ;;  %v16649_v8 = vld [vmem:[%s29483_s4 + $0xe1c] sm:$0xf0]  ;;  %v19524_v50 = vld [vmem:[%s29483_s4 + $0x130c] sm:$0xf]  ;;  %v15059_v38 = vld [vmem:[%s29483_s4 + $0x190] sm:$0xf] }
 0x323   :  { %9794 = vmatpush.bf16.msra.mxu3 %v16036_v6  ;;  %v17044_v6 = vor.u32 %v19461_v25, %v17041_v3  ;;  %v16652_v41 = vor.u32 %v19363_v55, %v16649_v8  ;;  %v19552_v25 = vld [vmem:[%s29483_s4 + $0x13ec] sm:$0xf]  ;;  %v15675_v55 = vld [vmem:[%s29483_s4 + $0x660] sm:$0xf]  ;;  %v19122_v8 = vld [vmem:[%s29483_s4 + $0x678] sm:$0xf0] }
 0x324   :  { %v17408_v34 = vor.u32 %v19552_v25, %v17405_v26  ;;  %v17321_v25 = vld [vmem:[%s29483_s4 + $0x135c] sm:$0xf0]  ;;  %v19101_v26 = vld [vmem:[%s29483_s4 + $0x5d0] sm:$0xf0] }
 0x325   :  { %9820 = vmatpush.bf16.msrb.mxu1 %v16484_v46  ;;  %v17576_v46 = vor.u32 %v19594_v27, %v17573_v32  ;;  %9804 = vmatpush.bf16.msra.mxu0 %v16344_v1  ;;  %v19433_v27 = vld [vmem:[%s29483_s4 + $0x1034] sm:$0xf]  ;;  %v15647_v1 = vld [vmem:[%s29483_s4 + $0x628] sm:$0xf]  ;;  %v15563_v7 = vld [vmem:[%s29483_s4 + $0x580] sm:$0xf] }
 0x326   :  { %9832 = vmatpush.bf16.msra.mxu2 %v16736_v54  ;;  %v17013_v54 = vld [vmem:[%s29483_s4 + $0x10f4] sm:$0xf0] }
 0x327   :  { %9795 = vmatpush.bf16.msra.mxu3 %v16008_v59  ;;  %v17016_v59 = vor.u32 %v19454_v44, %v17013_v54  ;;  %v16932_v54 = vor.u32 %v19433_v27, %v16929_v45  ;;  %v17265_v27 = vld [vmem:[%s29483_s4 + $0x12ec] sm:$0xf0] }
 0x328   :  { %v15507_v45 = vld [vmem:[%s29483_s4 + $0x510] sm:$0xf] }
 0x329   :  { %9821 = vmatpush.bf16.msrb.mxu1 %v16456_v11  ;;  %v15732_v11 = vor.u32 %v19136_v52, %v15731_v31  ;;  %9805 = vmatpush.bf16.msra.mxu0 %v16316_v51  ;;  %v16201_v31 = vld [vmem:[%s29483_s4 + $0xa9c] sm:$0xf0]  ;;  %v19538_v52 = vld [vmem:[%s29483_s4 + $0x137c] sm:$0xf]  ;;  %v15619_v51 = vld [vmem:[%s29483_s4 + $0x5f0] sm:$0xf] }
 0x32a   :  { %9833 = vmatpush.bf16.msra.mxu2 %v16708_v62  ;;  %v17464_v62 = vor.u32 %v19566_v58, %v17461_v56  ;;  %v15648_v56 = vor.u32 %v19115_v9, %v15647_v1  ;;  %v16204_v61 = vor.u32 %v19251_v40, %v16201_v31  ;;  %v19510_v1 = vld [vmem:[%s29483_s4 + $0x129c] sm:$0xf]  ;;  %v17237_v9 = vld [vmem:[%s29483_s4 + $0x12b4] sm:$0xf0] }
 0x32b   :  { %9796 = vmatpush.bf16.msra.mxu3 %v15980_v49  ;;  %v19440_v49 = vld [vmem:[%s29483_s4 + $0x106c] sm:$0xf] }
 0x32c   :  { %9758 = vmatmul.bf16.vlgmr.msrb.gmra.mxu0 %v24268_v13  ;;  %v16960_v3 = vor.u32 %v19440_v49, %v16957_v36  ;;  %v18968_v49 = vld [vmem:[%s29483_s4 + $0x1a8] sm:$0xf0] }
 0x32d   :  { %9822 = vmatpush.bf16.msrb.mxu1 %v16428_v22  ;;  %v16257_v22 = vld [vmem:[%s29483_s4 + $0xb0c] sm:$0xf0]  ;;  %9806 = vmatpush.bf16.msra.mxu0 %v16288_v19 }
 0x32e   :  { %9834 = vmatpush.bf16.msra.mxu2 %v16680_v28  ;;  %9797 = vmatmul.bf16.vlgmr.msra.gmra.mxu3 %v24308_v33  ;;  %v19265_v28 = vld [vmem:[%s29483_s4 + $0xaf4] sm:$0xf] }
 0x32f   :  { %9841 = vmatpush.bf16.msrb.mxu3 %v17072_v16  ;;  %v9603_v16 = vpop.f32.mrf.mxu1 }
 0x330   :  { %9823 = vmatmul.bf16.vlgmr.msrb.gmra.mxu1 %v24495_v29  ;;  %v9616_v63 = vpop.f32.mrf.mxu0 }
 0x331   :  { %9867 = vmatpush.bf16.msra.mxu1 %v17520_v24  ;;  %v16260_v24 = vor.u32 %v19265_v28, %v16257_v22  ;;  %v9590_v32 = vpop.f32.mrf.mxu3 }
 0x332   :  { %9835 = vmatpush.bf16.msra.mxu2 %v16652_v41  ;;  %v19545_v41 = vld [vmem:[%s29483_s4 + $0x13b4] sm:$0xf]  ;;  %v9591_v44 = vadd.f32 %v9590_v32, %v24988_v60  ;;  %v16901_v60 = vld [vmem:[%s29483_s4 + $0x1014] sm:$0xf0] }
 0x333   :  { %9842 = vmatpush.bf16.msrb.mxu3 %v17044_v6  ;;  %v15676_v6 = vor.u32 %v19122_v8, %v15675_v55  ;;  %9807 = vmatpush.bf16.msra.mxu0 %v16260_v24  ;;  %v15060_v55 = vor.u32 %v18968_v49, %v15059_v38  ;;  %v19517_v8 = vld [vmem:[%s29483_s4 + $0x12d4] sm:$0xf]  ;;  %v19080_v24 = vld [vmem:[%s29483_s4 + $0x528] sm:$0xf0]  ;;  %v15031_v32 = vld [vmem:[%s29483_s4 + $0x158] sm:$0xf] }
 0x334   :  { %v17268_v37 = vor.u32 %v19517_v8, %v17265_v27  ;;  %v19496_v49 = vld [vmem:[%s29483_s4 + $0x122c] sm:$0xf]  ;;  %v19489_v27 = vld [vmem:[%s29483_s4 + $0x11f4] sm:$0xf] }
 0x335   :  { %9868 = vmatpush.bf16.msra.mxu1 %v17492_v15  ;;  %9836 = vmatmul.bf16.vlgmr.msra.gmra.mxu2 %v24519_v21  ;;  %v9604_v15 = vadd.f32 %v9603_v16, %v9591_v44  ;;  %v17352_v16 = vor.u32 %v19538_v52, %v17349_v18  ;;  %v19503_v18 = vld [vmem:[%s29483_s4 + $0x1264] sm:$0xf] }
 0x336   :  { %9886 = vmatpush.bf16.msrb.mxu2 %v17576_v46  ;;  %v17377_v46 = vld [vmem:[%s29483_s4 + $0x13cc] sm:$0xf0] }
 0x337   :  { %9843 = vmatpush.bf16.msrb.mxu3 %v17016_v59  ;;  %v9605_v58 = vpop.f32.mrf.mxu1  ;;  %v17380_v59 = vor.u32 %v19545_v41, %v17377_v46  ;;  %v9617_v2 = vadd.f32 %v9616_v63, %v9604_v15  ;;  %9808 = vmatpush.bf16.msra.mxu0 %v16232_v4  ;;  %v18961_v63 = vld [vmem:[%s29483_s4 + $0x170] sm:$0xf0]  ;;  %v19094_v41 = vld [vmem:[%s29483_s4 + $0x598] sm:$0xf0]  ;;  %v15003_v15 = vld [vmem:[%s29483_s4 + $0x120] sm:$0xf] }
 0x338   :  { %v9629_v12 = vpop.f32.mrf.mxu2  ;;  %v9618_v19 = vpop.f32.mrf.mxu0  ;;  %v15032_v46 = vor.u32 %v18961_v63, %v15031_v32  ;;  %v18954_v4 = vld [vmem:[%s29483_s4 + $0x138] sm:$0xf0]  ;;  %v15564_v40 = vor.u32 %v19094_v41, %v15563_v7  ;;  %v17240_v58 = vor.u32 %v19510_v1, %v17237_v9  ;;  %v19052_v63 = vld [vmem:[%s29483_s4 + $0x448] sm:$0xf0]  ;;  %v18933_v7 = vld [vmem:[%s29483_s4 + $0x90] sm:$0xf0] }
 0x339   :  { %9869 = vmatpush.bf16.msra.mxu1 %v17464_v62  ;;  %v19108_v62 = vld [vmem:[%s29483_s4 + $0x608] sm:$0xf0]  ;;  %v25203_v23 = vadd.f32 %v9629_v12, %v9617_v2  ;;  %v9592_v36 = vpop.f32.mrf.mxu3  ;;  %v15004_v52 = vor.u32 %v18954_v4, %v15003_v15  ;;  %v17209_v2 = vld [vmem:[%s29483_s4 + $0x127c] sm:$0xf0]  ;;  %v14975_v12 = vld [vmem:[%s29483_s4 + $0xe8] sm:$0xf] }
 0x33a   :  { %9887 = vmatpush.bf16.msrb.mxu2 %v17548_v5  ;;  %v16904_v5 = vor.u32 %v19426_v48, %v16901_v60  ;;  %v15479_v48 = vld [vmem:[%s29483_s4 + $0x4d8] sm:$0xf]  ;;  %v19073_v60 = vld [vmem:[%s29483_s4 + $0x4f0] sm:$0xf0]  ;;  %v17181_v36 = vld [vmem:[%s29483_s4 + $0x1244] sm:$0xf0] }
 0x33b   :  { %9844 = vmatpush.bf16.msrb.mxu3 %v16988_v42  ;;  %v17293_v42 = vld [vmem:[%s29483_s4 + $0x1324] sm:$0xf0]  ;;  %9809 = vmatpush.bf16.msra.mxu0 %v16204_v61  ;;  %v15480_v31 = vor.u32 %v19073_v60, %v15479_v48  ;;  %v19482_v9 = vld [vmem:[%s29483_s4 + $0x11bc] sm:$0xf]  ;;  %v17125_v48 = vld [vmem:[%s29483_s4 + $0x11d4] sm:$0xf0] }
 0x33c   :  { %v17296_v22 = vor.u32 %v19524_v50, %v17293_v42  ;;  %v17212_v42 = vor.u32 %v19503_v18, %v17209_v2  ;;  %v15423_v19 = vld [vmem:[%s29483_s4 + $0x468] sm:$0xf]  ;;  %v15367_v60 = vld [vmem:[%s29483_s4 + $0x3f8] sm:$0xf]  ;;  %v19475_v18 = vld [vmem:[%s29483_s4 + $0x1184] sm:$0xf] }
 0x33d   :  { %9870 = vmatpush.bf16.msra.mxu1 %v17436_v57  ;;  %v15620_v57 = vor.u32 %v19108_v62, %v15619_v51  ;;  %v19066_v51 = vld [vmem:[%s29483_s4 + $0x4b8] sm:$0xf0]  ;;  %v16627_v62 = vld [vmem:[%s29483_s4 + $0xdd0] sm:$0xf] }
 0x33e   :  { %9932 = vmatpush.bf16.msra.mxu2 %v15732_v11  ;;  %v19419_v11 = vld [vmem:[%s29483_s4 + $0xfc4] sm:$0xf]  ;;  %9810 = vmatmul.bf16.vlgmr.msra.gmra.mxu0 %v24493_v35 }
 0x33f   :  { %9845 = vmatpush.bf16.msrb.mxu3 %v16960_v3  ;;  %v16876_v28 = vor.u32 %v19419_v11, %v16873_v14  ;;  %v15591_v3 = vld [vmem:[%s29483_s4 + $0x5b8] sm:$0xf]  ;;  %9854 = vmatpush.bf16.msrb.mxu0 %v17296_v22  ;;  %v19360_v11 = vld [vmem:[%s29483_s4 + $0xde8] sm:$0xf0]  ;;  %v18947_v14 = vld [vmem:[%s29483_s4 + $0x100] sm:$0xf0] }
 0x340   :  { %v9631_v44 = vpop.f32.mrf.mxu2  ;;  %v16628_v38 = vor.u32 %v19360_v11, %v16627_v62  ;;  %v14947_v22 = vld [vmem:[%s29483_s4 + $0xb0] sm:$0xf]  ;;  %v17097_v62 = vld [vmem:[%s29483_s4 + $0x119c] sm:$0xf0] }
 0x341   :  { %9871 = vmatpush.bf16.msra.mxu1 %v17408_v34  ;;  %v15339_v11 = vld [vmem:[%s29483_s4 + $0x3c0] sm:$0xf] }
 0x342   :  { %9933 = vmatpush.bf16.msra.mxu2 %v15704_v20  ;;  %v19531_v20 = vld [vmem:[%s29483_s4 + $0x1344] sm:$0xf] }
 0x343   :  { %9846 = vmatpush.bf16.msrb.mxu3 %v16932_v54  ;;  %v17324_v34 = vor.u32 %v19531_v20, %v17321_v25  ;;  %v15508_v54 = vor.u32 %v19080_v24, %v15507_v45  ;;  %9855 = vmatpush.bf16.msrb.mxu0 %v17268_v37  ;;  %v16599_v20 = vld [vmem:[%s29483_s4 + $0xd98] sm:$0xf]  ;;  %v18940_v25 = vld [vmem:[%s29483_s4 + $0xc8] sm:$0xf0]  ;;  %v17153_v45 = vld [vmem:[%s29483_s4 + $0x120c] sm:$0xf0] }
 0x344   :  { %v15395_v24 = vld [vmem:[%s29483_s4 + $0x430] sm:$0xf]  ;;  %v14948_v32 = vor.u32 %v18940_v25, %v14947_v22  ;;  %v14919_v37 = vld [vmem:[%s29483_s4 + $0x78] sm:$0xf]  ;;  %v17156_v41 = vor.u32 %v19489_v27, %v17153_v45  ;;  %v19192_v22 = vld [vmem:[%s29483_s4 + $0x8a8] sm:$0xf0] }
 0x345   :  { %9872 = vmatpush.bf16.msra.mxu1 %v17380_v59  ;;  %17598 = vmatmul.msk.bf16.vlgmr.msrb.gmra.mxu2 %vm9551_vm1, %v25005_v17  ;;  %v15535_v59 = vld [vmem:[%s29483_s4 + $0x548] sm:$0xf]  ;;  %v14920_v4 = vor.u32 %v18933_v7, %v14919_v37  ;;  %v19017_v37 = vld [vmem:[%s29483_s4 + $0x330] sm:$0xf0]  ;;  %v16403_v7 = vld [vmem:[%s29483_s4 + $0xc10] sm:$0xf] }
 0x346   :  { %9934 = vmatpush.bf16.msra.mxu2 %v15676_v6  ;;  %v15592_v6 = vor.u32 %v19101_v26, %v15591_v3  ;;  %v17184_v3 = vor.u32 %v19496_v49, %v17181_v36  ;;  %v18919_v36 = vld [vmem:[%s29483_s4 + $0x20] sm:$0xf0] }
 0x347   :  { %9847 = vmatpush.bf16.msrb.mxu3 %v16904_v5  ;;  %v15451_v5 = vld [vmem:[%s29483_s4 + $0x4a0] sm:$0xf]  ;;  %9856 = vmatpush.bf16.msrb.mxu0 %v17240_v58  ;;  %v16543_v58 = vld [vmem:[%s29483_s4 + $0xd28] sm:$0xf] }
 0x348   :  { %v15452_v61 = vor.u32 %v19066_v51, %v15451_v5 }
 0x349   :  { %9873 = vmatpush.bf16.msra.mxu1 %v17352_v16  ;;  %v14976_v16 = vor.u32 %v18947_v14, %v14975_v12  ;;  %v19038_v12 = vld [vmem:[%s29483_s4 + $0x3d8] sm:$0xf0] }
 0x34a   :  { %9935 = vmatpush.bf16.msra.mxu2 %v15648_v56  ;;  %v19087_v56 = vld [vmem:[%s29483_s4 + $0x560] sm:$0xf0] }
 0x34b   :  { %9848 = vmatpush.bf16.msrb.mxu3 %v16876_v28  ;;  %v15536_v50 = vor.u32 %v19087_v56, %v15535_v59  ;;  %v19353_v28 = vld [vmem:[%s29483_s4 + $0xdb0] sm:$0xf0]  ;;  %9857 = vmatpush.bf16.msrb.mxu0 %v17212_v42  ;;  %v19339_v59 = vld [vmem:[%s29483_s4 + $0xd40] sm:$0xf0]  ;;  %v14891_v56 = vld [vmem:[%s29483_s4 + $0x40] sm:$0xf] }
 0x34c   :  { %v16600_v8 = vor.u32 %v19353_v28, %v16599_v20  ;;  %v16544_v51 = vor.u32 %v19339_v59, %v16543_v58  ;;  %v16515_v42 = vld [vmem:[%s29483_s4 + $0xcf0] sm:$0xf]  ;;  %v17100_v20 = vor.u32 %v19475_v18, %v17097_v62  ;;  %v15227_v58 = vld [vmem:[%s29483_s4 + $0x2e0] sm:$0xf]  ;;  %v19010_v59 = vld [vmem:[%s29483_s4 + $0x2f8] sm:$0xf0] }
 0x34d   :  { %9874 = vmatpush.bf16.msra.mxu1 %v17324_v34  ;;  %v9655_v26 = vpop.f32.mrf.mxu1  ;;  %v16571_v34 = vld [vmem:[%s29483_s4 + $0xd60] sm:$0xf]  ;;  %v15955_v28 = vld [vmem:[%s29483_s4 + $0x890] sm:$0xf] }
 0x34e   :  { %9936 = vmatpush.bf16.msra.mxu2 %v15620_v57  ;;  %9849 = vmatmul.bf16.vlgmr.msrb.gmra.mxu3 %v24522_v47  ;;  %v19059_v57 = vld [vmem:[%s29483_s4 + $0x480] sm:$0xf0] }
 0x34f   :  { %9893 = vmatpush.bf16.msra.mxu3 %v15060_v55  ;;  %v15424_v55 = vor.u32 %v19059_v57, %v15423_v19  ;;  %9858 = vmatpush.bf16.msrb.mxu0 %v17184_v3  ;;  %v15283_v19 = vld [vmem:[%s29483_s4 + $0x350] sm:$0xf] }
 0x350   :  { %9875 = vmatmul.bf16.vlgmr.msra.gmra.mxu1 %v24685_v0 }
 0x351   :  { %9919 = vmatpush.bf16.msrb.mxu1 %v15508_v54  ;;  %v9642_v44 = vpop.f32.mrf.mxu3  ;;  %v9668_v54 = vpop.f32.mrf.mxu0 }
 0x352   :  { %9937 = vmatpush.bf16.msra.mxu2 %v15592_v6  ;;  %v19346_v6 = vld [vmem:[%s29483_s4 + $0xd78] sm:$0xf0]  ;;  %v9643_v15 = vadd.f32 %v9642_v44, %v25203_v23  ;;  %v15927_v44 = vld [vmem:[%s29483_s4 + $0x858] sm:$0xf] }
 0x353   :  { %9894 = vmatpush.bf16.msra.mxu3 %v15032_v46  ;;  %v15396_v46 = vor.u32 %v19052_v63, %v15395_v24  ;;  %v16572_v1 = vor.u32 %v19346_v6, %v16571_v34  ;;  %v18926_v23 = vld [vmem:[%s29483_s4 + $0x58] sm:$0xf0]  ;;  %9859 = vmatpush.bf16.msrb.mxu0 %v17156_v41  ;;  %v19031_v24 = vld [vmem:[%s29483_s4 + $0x3a0] sm:$0xf0]  ;;  %v19325_v63 = vld [vmem:[%s29483_s4 + $0xcd0] sm:$0xf0]  ;;  %v15956_v34 = vor.u32 %v19192_v22, %v15955_v28 }
 0x354   :  { %v15255_v6 = vld [vmem:[%s29483_s4 + $0x318] sm:$0xf]  ;;  %v19304_v41 = vld [vmem:[%s29483_s4 + $0xc28] sm:$0xf0]  ;;  %v15171_v22 = vld [vmem:[%s29483_s4 + $0x270] sm:$0xf] }
 0x355   :  { %9920 = vmatpush.bf16.msrb.mxu1 %v15480_v31  ;;  %v9656_v31 = vadd.f32 %v9655_v26, %v9643_v15  ;;  %v9657_v2 = vpop.f32.mrf.mxu1  ;;  %v15340_v26 = vor.u32 %v19038_v12, %v15339_v11  ;;  %v15199_v12 = vld [vmem:[%s29483_s4 + $0x2a8] sm:$0xf] }
 0x356   :  { %9938 = vmatpush.bf16.msra.mxu2 %v15564_v40  ;;  %v19045_v40 = vld [vmem:[%s29483_s4 + $0x410] sm:$0xf0]  ;;  %v15228_v2 = vor.u32 %v19010_v59, %v15227_v58  ;;  %v15115_v58 = vld [vmem:[%s29483_s4 + $0x200] sm:$0xf]  ;;  %v18982_v59 = vld [vmem:[%s29483_s4 + $0x218] sm:$0xf0] }
 0x357   :  { %9895 = vmatpush.bf16.msra.mxu3 %v15004_v52  ;;  %v17128_v52 = vor.u32 %v19482_v9, %v17125_v48  ;;  %v15368_v5 = vor.u32 %v19045_v40, %v15367_v60  ;;  %v9669_v14 = vadd.f32 %v9668_v54, %v9656_v31  ;;  %v19185_v54 = vld [vmem:[%s29483_s4 + $0x870] sm:$0xf0]  ;;  %v15256_v9 = vor.u32 %v19017_v37, %v15255_v6  ;;  %v16459_v48 = vld [vmem:[%s29483_s4 + $0xc80] sm:$0xf]  ;;  %v19318_v60 = vld [vmem:[%s29483_s4 + $0xc98] sm:$0xf0] }
 0x358   :  { %v9681_v49 = vpop.f32.mrf.mxu2  ;;  %v15928_v40 = vor.u32 %v19185_v54, %v15927_v44  ;;  %v15899_v31 = vld [vmem:[%s29483_s4 + $0x820] sm:$0xf]  ;;  %v16460_v18 = vor.u32 %v19318_v60, %v16459_v48  ;;  %v15143_v37 = vld [vmem:[%s29483_s4 + $0x238] sm:$0xf]  ;;  %v19276_v54 = vld [vmem:[%s29483_s4 + $0xb48] sm:$0xf0] }
 0x359   :  { %9921 = vmatpush.bf16.msrb.mxu1 %v15452_v61  ;;  %v19332_v61 = vld [vmem:[%s29483_s4 + $0xd08] sm:$0xf0]  ;;  %v25404_v57 = vadd.f32 %v9681_v49, %v9669_v14  ;;  %9860 = vmatpush.bf16.msrb.mxu0 %v17128_v52  ;;  %v9644_v25 = vpop.f32.mrf.mxu3  ;;  %v9670_v3 = vpop.f32.mrf.mxu0  ;;  %v19178_v52 = vld [vmem:[%s29483_s4 + $0x838] sm:$0xf0]  ;;  %v19003_v14 = vld [vmem:[%s29483_s4 + $0x2c0] sm:$0xf0] }
 0x35a   :  { %9939 = vmatpush.bf16.msra.mxu2 %v15536_v50  ;;  %v14892_v50 = vor.u32 %v18926_v23, %v14891_v56  ;;  %v16375_v56 = vld [vmem:[%s29483_s4 + $0xbd8] sm:$0xf]  ;;  %v19297_v23 = vld [vmem:[%s29483_s4 + $0xbf0] sm:$0xf0]  ;;  %v15900_v11 = vor.u32 %v19178_v52, %v15899_v31  ;;  %v15871_v49 = vld [vmem:[%s29483_s4 + $0x7e8] sm:$0xf] }
 0x35b   :  { %9896 = vmatpush.bf16.msra.mxu3 %v14976_v16  ;;  %v19024_v16 = vld [vmem:[%s29483_s4 + $0x368] sm:$0xf0]  ;;  %v16376_v62 = vor.u32 %v19297_v23, %v16375_v56  ;;  %v16319_v3 = vld [vmem:[%s29483_s4 + $0xb68] sm:$0xf]  ;;  %v19157_v48 = vld [vmem:[%s29483_s4 + $0x790] sm:$0xf0] }
 0x35c   :  { %v15284_v45 = vor.u32 %v19024_v16, %v15283_v19  ;;  %v15200_v16 = vor.u32 %v19003_v14, %v15199_v12  ;;  %v18996_v25 = vld [vmem:[%s29483_s4 + $0x288] sm:$0xf0]  ;;  %v16263_v56 = vld [vmem:[%s29483_s4 + $0xaf8] sm:$0xf]  ;;  %v19269_v52 = vld [vmem:[%s29483_s4 + $0xb10] sm:$0xf0] }
 0x35d   :  { %9940 = vmatmul.bf16.vlgmr.msra.gmra.mxu2 %v24278_v30  ;;  %9922 = vmatpush.bf16.msrb.mxu1 %v15424_v55  ;;  %v16516_v55 = vor.u32 %v19332_v61, %v16515_v42  ;;  %v19290_v42 = vld [vmem:[%s29483_s4 + $0xbb8] sm:$0xf0]  ;;  %v17523_v61 = vld [vmem:[%s29483_s4 + $0x14d0] sm:$0xf]  ;;  %v16264_v14 = vor.u32 %v19269_v52, %v16263_v56  ;;  %v17271_v52 = vld [vmem:[%s29483_s4 + $0x12d8] sm:$0xf] }
 0x35e   :  { %9984 = vmatpush.bf16.msrb.mxu2 %v16628_v38  ;;  %v14863_v38 = vld [vmem:[%s29483_s4 + $0x8] sm:$0xf]  ;;  %9861 = vmatpush.bf16.msrb.mxu0 %v17100_v20 }
 0x35f   :  { %9897 = vmatpush.bf16.msra.mxu3 %v14948_v32  ;;  %v14864_v27 = vor.u32 %v18919_v36, %v14863_v38  ;;  %v16487_v32 = vld [vmem:[%s29483_s4 + $0xcb8] sm:$0xf]  ;;  %v19584_v38 = vld [vmem:[%s29483_s4 + $0x14e8] sm:$0xf0]  ;;  %v19171_v36 = vld [vmem:[%s29483_s4 + $0x800] sm:$0xf0] }
 0x360   :  { %v9683_v15 = vpop.f32.mrf.mxu2  ;;  %v17524_v28 = vor.u32 %v19584_v38, %v17523_v61  ;;  %v16235_v61 = vld [vmem:[%s29483_s4 + $0xac0] sm:$0xf]  ;;  %v19262_v38 = vld [vmem:[%s29483_s4 + $0xad8] sm:$0xf0] }
 0x361   :  { %9923 = vmatpush.bf16.msrb.mxu1 %v15396_v46  ;;  %9862 = vmatmul.bf16.vlgmr.msrb.gmra.mxu0 %v24683_v39 }
 0x362   :  { %9985 = vmatpush.bf16.msrb.mxu2 %v16600_v8  ;;  %v15311_v8 = vld [vmem:[%s29483_s4 + $0x388] sm:$0xf]  ;;  %9906 = vmatpush.bf16.msra.mxu0 %v15284_v45  ;;  %v15843_v45 = vld [vmem:[%s29483_s4 + $0x7b0] sm:$0xf] }
 0x363   :  { %9898 = vmatpush.bf16.msra.mxu3 %v14920_v4  ;;  %v15312_v46 = vor.u32 %v19031_v24, %v15311_v8  ;;  %v16404_v4 = vor.u32 %v19304_v41, %v16403_v7  ;;  %v17495_v8 = vld [vmem:[%s29483_s4 + $0x1498] sm:$0xf]  ;;  %v19164_v24 = vld [vmem:[%s29483_s4 + $0x7c8] sm:$0xf0]  ;;  %v18989_v7 = vld [vmem:[%s29483_s4 + $0x250] sm:$0xf0] }
 0x364   :  { %v16291_v41 = vld [vmem:[%s29483_s4 + $0xb30] sm:$0xf]  ;;  %v15844_v44 = vor.u32 %v19164_v24, %v15843_v45  ;;  %v15144_v60 = vor.u32 %v18989_v7, %v15143_v37  ;;  %v16207_v24 = vld [vmem:[%s29483_s4 + $0xa88] sm:$0xf]  ;;  %v19549_v37 = vld [vmem:[%s29483_s4 + $0x13d0] sm:$0xf0] }
 0x365   :  { %9924 = vmatpush.bf16.msrb.mxu1 %v15368_v5  ;;  %v16431_v5 = vld [vmem:[%s29483_s4 + $0xc48] sm:$0xf] }
 0x366   :  { %9986 = vmatpush.bf16.msrb.mxu2 %v16572_v1  ;;  %v16488_v1 = vor.u32 %v19325_v63, %v16487_v32  ;;  %9907 = vmatpush.bf16.msra.mxu0 %v15256_v9  ;;  %v15172_v32 = vor.u32 %v18996_v25, %v15171_v22  ;;  %v15815_v9 = vld [vmem:[%s29483_s4 + $0x778] sm:$0xf]  ;;  %v16179_v22 = vld [vmem:[%s29483_s4 + $0xa50] sm:$0xf]  ;;  %v19248_v25 = vld [vmem:[%s29483_s4 + $0xa68] sm:$0xf0] }
 0x367   :  { %9899 = vmatpush.bf16.msra.mxu3 %v14892_v50  ;;  %v16347_v50 = vld [vmem:[%s29483_s4 + $0xba0] sm:$0xf]  ;;  %v15816_v31 = vor.u32 %v19157_v48, %v15815_v9  ;;  %v19409_v9 = vld [vmem:[%s29483_s4 + $0xf70] sm:$0xf0] }
 0x368   :  { %v16348_v20 = vor.u32 %v19290_v42, %v16347_v50  ;;  %v18975_v42 = vld [vmem:[%s29483_s4 + $0x1e0] sm:$0xf0] }
 0x369   :  { %9925 = vmatpush.bf16.msrb.mxu1 %v15340_v26  ;;  %v15872_v26 = vor.u32 %v19171_v36, %v15871_v49  ;;  %v17411_v36 = vld [vmem:[%s29483_s4 + $0x13f0] sm:$0xf] }
 0x36a   :  { %9987 = vmatpush.bf16.msrb.mxu2 %v16544_v51  ;;  %v19311_v51 = vld [vmem:[%s29483_s4 + $0xc60] sm:$0xf0]  ;;  %9908 = vmatpush.bf16.msra.mxu0 %v15228_v2 }
 0x36b   :  { %9900 = vmatpush.bf16.msra.mxu3 %v14864_v27  ;;  %v16432_v19 = vor.u32 %v19311_v51, %v16431_v5  ;;  %v19577_v27 = vld [vmem:[%s29483_s4 + $0x14b0] sm:$0xf0]  ;;  %v19563_v2 = vld [vmem:[%s29483_s4 + $0x1440] sm:$0xf0]  ;;  %v15787_v5 = vld [vmem:[%s29483_s4 + $0x740] sm:$0xf]  ;;  %v15116_v51 = vor.u32 %v18982_v59, %v15115_v58 }
 0x36c   :  { %v17496_v6 = vor.u32 %v19577_v27, %v17495_v8  ;;  %v16236_v27 = vor.u32 %v19262_v38, %v16235_v61  ;;  %v19227_v61 = vld [vmem:[%s29483_s4 + $0x9c0] sm:$0xf0]  ;;  %v17243_v38 = vld [vmem:[%s29483_s4 + $0x12a0] sm:$0xf] }
 0x36d   :  { %9926 = vmatpush.bf16.msrb.mxu1 %v15312_v46  ;;  %v9707_v63 = vpop.f32.mrf.mxu1  ;;  %v17467_v46 = vld [vmem:[%s29483_s4 + $0x1460] sm:$0xf] }
 0x36e   :  { %9988 = vmatpush.bf16.msrb.mxu2 %v16516_v55  ;;  %9901 = vmatmul.bf16.vlgmr.msra.gmra.mxu3 %v24088_v43  ;;  %v19283_v55 = vld [vmem:[%s29483_s4 + $0xb80] sm:$0xf0] }
 0x36f   :  { %9945 = vmatpush.bf16.msrb.mxu3 %v15956_v34  ;;  %9909 = vmatpush.bf16.msra.mxu0 %v15200_v16  ;;  %v16320_v34 = vor.u32 %v19283_v55, %v16319_v3  ;;  %v15759_v16 = vld [vmem:[%s29483_s4 + $0x708] sm:$0xf]  ;;  %v19416_v55 = vld [vmem:[%s29483_s4 + $0xfa8] sm:$0xf0] }
 0x370   :  { %9927 = vmatmul.bf16.vlgmr.msrb.gmra.mxu1 %v24268_v13 }
 0x371   :  { %9971 = vmatpush.bf16.msra.mxu1 %v16404_v4  ;;  %v9694_v15 = vpop.f32.mrf.mxu3  ;;  %v16292_v4 = vor.u32 %v19276_v54, %v16291_v41  ;;  %v16151_v41 = vld [vmem:[%s29483_s4 + $0xa18] sm:$0xf]  ;;  %v17299_v54 = vld [vmem:[%s29483_s4 + $0x1310] sm:$0xf] }
 0x372   :  { %9989 = vmatpush.bf16.msrb.mxu2 %v16488_v1  ;;  %v19570_v1 = vld [vmem:[%s29483_s4 + $0x1478] sm:$0xf0]  ;;  %v9695_v23 = vadd.f32 %v9694_v15, %v25404_v57 }
 0x373   :  { %9946 = vmatpush.bf16.msrb.mxu3 %v15928_v40  ;;  %9910 = vmatpush.bf16.msra.mxu0 %v15172_v32  ;;  %v17468_v40 = vor.u32 %v19570_v1, %v17467_v46  ;;  %v19150_v57 = vld [vmem:[%s29483_s4 + $0x758] sm:$0xf0]  ;;  %v19528_v46 = vld [vmem:[%s29483_s4 + $0x1328] sm:$0xf0]  ;;  %v16823_v1 = vld [vmem:[%s29483_s4 + $0xf58] sm:$0xf] }
 0x374   :  { %v15788_v49 = vor.u32 %v19150_v57, %v15787_v5  ;;  %v17300_v59 = vor.u32 %v19528_v46, %v17299_v54  ;;  %v16824_v56 = vor.u32 %v19409_v9, %v16823_v1  ;;  %v19402_v5 = vld [vmem:[%s29483_s4 + $0xf38] sm:$0xf0]  ;;  %v16039_v1 = vld [vmem:[%s29483_s4 + $0x938] sm:$0xf]  ;;  %v19213_v9 = vld [vmem:[%s29483_s4 + $0x950] sm:$0xf0] }
 0x375   :  { %9972 = vmatpush.bf16.msra.mxu1 %v16376_v62  ;;  %v15087_v62 = vld [vmem:[%s29483_s4 + $0x1c8] sm:$0xf]  ;;  %v9709_v12 = vpop.f32.mrf.mxu1 }
 0x376   :  { %9990 = vmatpush.bf16.msrb.mxu2 %v16460_v18  ;;  %v17439_v18 = vld [vmem:[%s29483_s4 + $0x1428] sm:$0xf]  ;;  %v15088_v3 = vor.u32 %v18975_v42, %v15087_v62  ;;  %v19535_v12 = vld [vmem:[%s29483_s4 + $0x1360] sm:$0xf0] }
 0x377   :  { %9947 = vmatpush.bf16.msrb.mxu3 %v15900_v11  ;;  %9911 = vmatpush.bf16.msra.mxu0 %v15144_v60  ;;  %v25576_v11 = vadd.f32 %v9707_v63, %v9695_v23  ;;  %v17440_v50 = vor.u32 %v19563_v2, %v17439_v18  ;;  %v16180_v63 = vor.u32 %v19248_v25, %v16179_v22  ;;  %v16123_v23 = vld [vmem:[%s29483_s4 + $0x9e0] sm:$0xf]  ;;  %v19521_v18 = vld [vmem:[%s29483_s4 + $0x12f0] sm:$0xf0]  ;;  %v17327_v62 = vld [vmem:[%s29483_s4 + $0x1348] sm:$0xf] }
 0x378   :  { %v16795_v2 = vld [vmem:[%s29483_s4 + $0xf20] sm:$0xf]  ;;  %v16095_v42 = vld [vmem:[%s29483_s4 + $0x9a8] sm:$0xf]  ;;  %v17328_v22 = vor.u32 %v19535_v12, %v17327_v62  ;;  %v19493_v62 = vld [vmem:[%s29483_s4 + $0x1210] sm:$0xf0] }
 0x379   :  { %9973 = vmatpush.bf16.msra.mxu1 %v16348_v20  ;;  %v25596_v20 = vpop.f32.mrf.mxu2  ;;  %v9696_v8 = vpop.f32.mrf.mxu3  ;;  %v16096_v25 = vor.u32 %v19227_v61, %v16095_v42  ;;  %v19056_v12 = vld [vmem:[%s29483_s4 + $0x46c] sm:$0xf]  ;;  %v19374_v42 = vld [vmem:[%s29483_s4 + $0xe58] sm:$0xf0] }
 0x37a   :  { %9991 = vmatpush.bf16.msrb.mxu2 %v16432_v19  ;;  %v19556_v19 = vld [vmem:[%s29483_s4 + $0x1408] sm:$0xf0] }
 0x37b   :  { %9948 = vmatpush.bf16.msrb.mxu3 %v15872_v26  ;;  %9912 = vmatpush.bf16.msra.mxu0 %v15116_v51  ;;  %v16851_v26 = vld [vmem:[%s29483_s4 + $0xf90] sm:$0xf]  ;;  %v17412_v45 = vor.u32 %v19556_v19, %v17411_v36  ;;  %v19077_v36 = vld [vmem:[%s29483_s4 + $0x514] sm:$0xf]  ;;  %v19220_v8 = vld [vmem:[%s29483_s4 + $0x988] sm:$0xf0] }
 0x37c   :  { %v16852_v7 = vor.u32 %v19416_v55, %v16851_v26  ;;  %v15509_v19 = vld [vmem:[%s29483_s4 + $0x52c] sm:$0xf0] }
 0x37d   :  { %9992 = vmatmul.bf16.vlgmr.msrb.gmra.mxu2 %v24495_v29  ;;  %9974 = vmatpush.bf16.msra.mxu1 %v16320_v34  ;;  %v19255_v34 = vld [vmem:[%s29483_s4 + $0xaa0] sm:$0xf0]  ;;  %v15512_v26 = vor.u32 %v19077_v36, %v15509_v19  ;;  %v16067_v55 = vld [vmem:[%s29483_s4 + $0x970] sm:$0xf] }
 0x37e   :  { %10036 = vmatpush.bf16.msra.mxu2 %v17524_v28  ;;  %v19143_v28 = vld [vmem:[%s29483_s4 + $0x720] sm:$0xf0]  ;;  %v16208_v48 = vor.u32 %v19255_v34, %v16207_v24 }
 0x37f   :  { %9949 = vmatpush.bf16.msrb.mxu3 %v15844_v44  ;;  %v15760_v32 = vor.u32 %v19143_v28, %v15759_v16  ;;  %v19241_v44 = vld [vmem:[%s29483_s4 + $0xa30] sm:$0xf0]  ;;  %9913 = vmatpush.bf16.msra.mxu0 %v15088_v3  ;;  %v16767_v16 = vld [vmem:[%s29483_s4 + $0xee8] sm:$0xf]  ;;  %v19395_v28 = vld [vmem:[%s29483_s4 + $0xf00] sm:$0xf0] }
 0x380   :  { %v16152_v15 = vor.u32 %v19241_v44, %v16151_v41  ;;  %v19507_v24 = vld [vmem:[%s29483_s4 + $0x1280] sm:$0xf0]  ;;  %v16068_v44 = vor.u32 %v19220_v8, %v16067_v55  ;;  %v15397_v55 = vld [vmem:[%s29483_s4 + $0x44c] sm:$0xf0]  ;;  %v16655_v8 = vld [vmem:[%s29483_s4 + $0xe08] sm:$0xf] }
 0x381   :  { %9975 = vmatpush.bf16.msra.mxu1 %v16292_v4  ;;  %v17355_v4 = vld [vmem:[%s29483_s4 + $0x1380] sm:$0xf]  ;;  %v9735_v58 = vpop.f32.mrf.mxu2 }
 0x382   :  { %10037 = vmatpush.bf16.msra.mxu2 %v17496_v6  ;;  %v17383_v6 = vld [vmem:[%s29483_s4 + $0x13b8] sm:$0xf]  ;;  %9914 = vmatmul.bf16.vlgmr.msra.gmra.mxu0 %v24090_v53  ;;  %v19774_v34 = vld [vmem:[%s29484_s5] sm:$0x7f] }
 0x383   :  { %9950 = vmatpush.bf16.msrb.mxu3 %v15816_v31  ;;  %9958 = vmatpush.bf16.msrb.mxu0 %v16180_v63  ;;  %v17384_v60 = vor.u32 %v19549_v37, %v17383_v6  ;;  %v19234_v31 = vld [vmem:[%s29483_s4 + $0x9f8] sm:$0xf0]  ;;  %v15481_v63 = vld [vmem:[%s29483_s4 + $0x4f4] sm:$0xf0]  ;;  %v6010_v6 = vperm.slane %v19774_v34, 1 }
 0x384   :  { %v16124_v51 = vor.u32 %v19234_v31, %v16123_v23  ;;  %v16739_v37 = vld [vmem:[%s29483_s4 + $0xeb0] sm:$0xf]  ;;  %v16040_v31 = vor.u32 %v19213_v9, %v16039_v1  ;;  %v17579_v34 = vld [vmem:[%s29483_s4 + $0x1540] sm:$0xf]  ;;  %v19479_v1 = vld [vmem:[%s29483_s4 + $0x11a0] sm:$0xf0] }
 0x385   :  { %9976 = vmatpush.bf16.msra.mxu1 %v16264_v14  ;;  %v17272_v14 = vor.u32 %v19521_v18, %v17271_v52  ;;  %v9734_v58 = vadd.f32 %v25596_v20, %v6010_v6  ;;  %v16011_v20 = vld [vmem:[%s29483_s4 + $0x900] sm:$0xf]  ;;  %v19598_v6 = vld [vmem:[%s29483_s4 + $0x1558] sm:$0xf0] }
 0x386   :  { %10038 = vmatpush.bf16.msra.mxu2 %v17468_v40  ;;  %v19542_v40 = vld [vmem:[%s29483_s4 + $0x1398] sm:$0xf0] }
 0x387   :  { %9951 = vmatpush.bf16.msrb.mxu3 %v15788_v49  ;;  %9959 = vmatpush.bf16.msrb.mxu0 %v16152_v15  ;;  %v17356_v57 = vor.u32 %v19542_v40, %v17355_v4  ;;  %v19514_v49 = vld [vmem:[%s29483_s4 + $0x12b8] sm:$0xf0]  ;;  %v19500_v15 = vld [vmem:[%s29483_s4 + $0x1248] sm:$0xf0]  ;;  %v19063_v4 = vld [vmem:[%s29483_s4 + $0x4a4] sm:$0xf] }
 0x388   :  { %v17244_v3 = vor.u32 %v19514_v49, %v17243_v38  ;;  %v15453_v40 = vld [vmem:[%s29483_s4 + $0x4bc] sm:$0xf0]  ;;  %v15983_v49 = vld [vmem:[%s29483_s4 + $0x8c8] sm:$0xf]  ;;  %v19042_v9 = vld [vmem:[%s29483_s4 + $0x3fc] sm:$0xf] }
 0x389   :  { %9977 = vmatpush.bf16.msra.mxu1 %v16236_v27  ;;  %v17215_v27 = vld [vmem:[%s29483_s4 + $0x1268] sm:$0xf] }
 0x38a   :  { %10039 = vmatpush.bf16.msra.mxu2 %v17440_v50  ;;  %v16796_v50 = vor.u32 %v19402_v5, %v16795_v2  ;;  %v17216_v54 = vor.u32 %v19507_v24, %v17215_v27  ;;  %v15456_v2 = vor.u32 %v19063_v4, %v15453_v40  ;;  %v19206_v5 = vld [vmem:[%s29483_s4 + $0x918] sm:$0xf0]  ;;  %v19367_v27 = vld [vmem:[%s29483_s4 + $0xe20] sm:$0xf0]  ;;  %v19472_v24 = vld [vmem:[%s29483_s4 + $0x1168] sm:$0xf0] }
 0x38b   :  { %9952 = vmatpush.bf16.msrb.mxu3 %v15760_v32  ;;  %9960 = vmatpush.bf16.msrb.mxu0 %v16124_v51  ;;  %v19070_v32 = vld [vmem:[%s29483_s4 + $0x4dc] sm:$0xf]  ;;  %v16012_v38 = vor.u32 %v19206_v5, %v16011_v20  ;;  %v19465_v4 = vld [vmem:[%s29483_s4 + $0x1130] sm:$0xf0] }
 0x38c   :  { %v15484_v46 = vor.u32 %v19070_v32, %v15481_v63  ;;  %v19021_v40 = vld [vmem:[%s29483_s4 + $0x354] sm:$0xf] }
 0x38d   :  { %9978 = vmatpush.bf16.msra.mxu1 %v16208_v48  ;;  %v25727_v41 = vpop.f32.mrf.mxu1  ;;  %v17187_v48 = vld [vmem:[%s29483_s4 + $0x1230] sm:$0xf] }
 0x38e   :  { %10040 = vmatpush.bf16.msra.mxu2 %v17412_v45  ;;  %9953 = vmatmul.bf16.vlgmr.msrb.gmra.mxu3 %v24306_v10  ;;  %v16768_v45 = vor.u32 %v19395_v28, %v16767_v16  ;;  %v17188_v18 = vor.u32 %v19500_v15, %v17187_v48  ;;  %v19199_v16 = vld [vmem:[%s29483_s4 + $0x8e0] sm:$0xf0]  ;;  %v17131_v28 = vld [vmem:[%s29483_s4 + $0x11c0] sm:$0xf]  ;;  %v15369_v48 = vld [vmem:[%s29483_s4 + $0x414] sm:$0xf0] }
 0x38f   :  { %9997 = vmatpush.bf16.msra.mxu3 %v16852_v7  ;;  %v19388_v7 = vld [vmem:[%s29483_s4 + $0xec8] sm:$0xf0]  ;;  %9961 = vmatpush.bf16.msrb.mxu0 %v16096_v25  ;;  %v15984_v63 = vor.u32 %v19199_v16, %v15983_v49  ;;  %v17047_v15 = vld [vmem:[%s29483_s4 + $0x1118] sm:$0xf]  ;;  %v15372_v20 = vor.u32 %v19042_v9, %v15369_v48 }
 0x390   :  { %9979 = vmatmul.bf16.vlgmr.msra.gmra.mxu1 %v24493_v35  ;;  %v17048_v5 = vor.u32 %v19465_v4, %v17047_v15  ;;  %v19000_v9 = vld [vmem:[%s29483_s4 + $0x2ac] sm:$0xf]  ;;  %v19294_v15 = vld [vmem:[%s29483_s4 + $0xbdc] sm:$0xf]  ;;  %v16377_v4 = vld [vmem:[%s29483_s4 + $0xbf4] sm:$0xf0] }
 0x391   :  { %10023 = vmatpush.bf16.msrb.mxu1 %v17300_v59  ;;  %v16711_v59 = vld [vmem:[%s29483_s4 + $0xe78] sm:$0xf]  ;;  %v9746_v23 = vpop.f32.mrf.mxu3 }
 0x392   :  { %10041 = vmatpush.bf16.msra.mxu2 %v17384_v60  ;;  %v16740_v60 = vor.u32 %v19388_v7, %v16739_v37  ;;  %v25755_v52 = vadd.f32 %v9746_v23, %v9734_v58  ;;  %v15285_v58 = vld [vmem:[%s29483_s4 + $0x36c] sm:$0xf0] }
 0x393   :  { %9998 = vmatpush.bf16.msra.mxu3 %v16824_v56  ;;  %v19381_v56 = vld [vmem:[%s29483_s4 + $0xe90] sm:$0xf0]  ;;  %9962 = vmatpush.bf16.msrb.mxu0 %v16068_v44  ;;  %v17103_v44 = vld [vmem:[%s29483_s4 + $0x1188] sm:$0xf] }
 0x394   :  { %v16712_v51 = vor.u32 %v19381_v56, %v16711_v59  ;;  %v17551_v59 = vld [vmem:[%s29483_s4 + $0x1508] sm:$0xf]  ;;  %v19591_v56 = vld [vmem:[%s29483_s4 + $0x1520] sm:$0xf0]  ;;  %v17104_v23 = vor.u32 %v19479_v1, %v17103_v44  ;;  %v19444_v1 = vld [vmem:[%s29483_s4 + $0x1088] sm:$0xf0] }
 0x395   :  { %10024 = vmatpush.bf16.msrb.mxu1 %v17272_v14  ;;  %v15425_v14 = vld [vmem:[%s29483_s4 + $0x484] sm:$0xf0]  ;;  %v9774_v61 = vpop.f32.mrf.mxu1 }
 0x396   :  { %10042 = vmatpush.bf16.msra.mxu2 %v17356_v57  ;;  %v17159_v57 = vld [vmem:[%s29483_s4 + $0x11f8] sm:$0xf]  ;;  %v15428_v19 = vor.u32 %v19056_v12, %v15425_v14  ;;  %v15341_v12 = vld [vmem:[%s29483_s4 + $0x3dc] sm:$0xf0]  ;;  %v19014_v61 = vld [vmem:[%s29483_s4 + $0x31c] sm:$0xf] }
 0x397   :  { %9999 = vmatpush.bf16.msra.mxu3 %v16796_v50  ;;  %v16683_v50 = vld [vmem:[%s29483_s4 + $0xe40] sm:$0xf]  ;;  %9963 = vmatpush.bf16.msrb.mxu0 %v16040_v31  ;;  %v17160_v36 = vor.u32 %v19493_v62, %v17159_v57  ;;  %v19133_v31 = vld [vmem:[%s29483_s4 + $0x6d4] sm:$0xf]  ;;  %v19035_v57 = vld [vmem:[%s29483_s4 + $0x3c4] sm:$0xf]  ;;  %v17552_v62 = vor.u32 %v19591_v56, %v17551_v59 }
 0x398   :  { %v25793_v25 = vpop.f32.mrf.mxu2  ;;  %v17019_v14 = vld [vmem:[%s29483_s4 + $0x10e0] sm:$0xf]  ;;  %v15344_v16 = vor.u32 %v19035_v57, %v15341_v12  ;;  %v19112_v59 = vld [vmem:[%s29483_s4 + $0x62c] sm:$0xf]  ;;  %v15649_v56 = vld [vmem:[%s29483_s4 + $0x644] sm:$0xf0] }
 0x399   :  { %10025 = vmatpush.bf16.msrb.mxu1 %v17244_v3  ;;  %v16684_v3 = vor.u32 %v19374_v42, %v16683_v50  ;;  %v9748_v32 = vpop.f32.mrf.mxu3  ;;  %v19458_v50 = vld [vmem:[%s29483_s4 + $0x10f8] sm:$0xf0]  ;;  %v9720_v49 = vpop.f32.mrf.mxu0  ;;  %v15652_v57 = vor.u32 %v19112_v59, %v15649_v56  ;;  %v16349_v12 = vld [vmem:[%s29483_s4 + $0xbbc] sm:$0xf0] }
 0x39a   :  { %10043 = vmatpush.bf16.msra.mxu2 %v17328_v22  ;;  %v19486_v22 = vld [vmem:[%s29483_s4 + $0x11d8] sm:$0xf0]  ;;  %v19301_v32 = vld [vmem:[%s29483_s4 + $0xc14] sm:$0xf] }
 0x39b   :  { %10000 = vmatpush.bf16.msra.mxu3 %v16768_v45  ;;  %v17075_v45 = vld [vmem:[%s29483_s4 + $0x1150] sm:$0xf]  ;;  %9964 = vmatpush.bf16.msrb.mxu0 %v16012_v38  ;;  %v17132_v37 = vor.u32 %v19486_v22, %v17131_v28  ;;  %v15257_v38 = vld [vmem:[%s29483_s4 + $0x334] sm:$0xf0]  ;;  %v17020_v28 = vor.u32 %v19458_v50, %v17019_v14  ;;  %v25882_v22 = vadd.f32 %v9720_v49, %v25576_v11  ;;  %v19451_v11 = vld [vmem:[%s29483_s4 + $0x10c0] sm:$0xf0] }
 0x39c   :  { %v19105_v50 = vld [vmem:[%s29483_s4 + $0x5f4] sm:$0xf] }
 0x39d   :  { %10044 = vmatmul.bf16.vlgmr.msra.gmra.mxu2 %v24685_v0  ;;  %10026 = vmatpush.bf16.msrb.mxu1 %v17216_v54  ;;  %v16656_v54 = vor.u32 %v19367_v27, %v16655_v8  ;;  %v16991_v8 = vld [vmem:[%s29483_s4 + $0x10a8] sm:$0xf]  ;;  %v19007_v27 = vld [vmem:[%s29483_s4 + $0x2e4] sm:$0xf] }
 0x39e   :  { %10088 = vmatpush.bf16.msrb.mxu2 %v15512_v26  ;;  %v19049_v26 = vld [vmem:[%s29483_s4 + $0x434] sm:$0xf] }
 0x39f   :  { %10001 = vmatpush.bf16.msra.mxu3 %v16740_v60  ;;  %v15400_v7 = vor.u32 %v19049_v26, %v15397_v55  ;;  %v17580_v60 = vor.u32 %v19598_v6, %v17579_v34  ;;  %9965 = vmatpush.bf16.msrb.mxu0 %v15984_v63  ;;  %v15313_v26 = vld [vmem:[%s29483_s4 + $0x3a4] sm:$0xf0]  ;;  %v15260_v55 = vor.u32 %v19014_v61, %v15257_v38  ;;  %v16405_v63 = vld [vmem:[%s29483_s4 + $0xc2c] sm:$0xf0]  ;;  %v19119_v34 = vld [vmem:[%s29483_s4 + $0x664] sm:$0xf] }
 0x3a0   :  { %v15677_v6 = vld [vmem:[%s29483_s4 + $0x67c] sm:$0xf0] }
 0x3a1   :  { %10027 = vmatpush.bf16.msrb.mxu1 %v17188_v18  ;;  %v15733_v18 = vld [vmem:[%s29483_s4 + $0x6ec] sm:$0xf0]  ;;  %v15680_v48 = vor.u32 %v19119_v34, %v15677_v6 }
 0x3a2   :  { %10089 = vmatpush.bf16.msrb.mxu2 %v15484_v46  ;;  %v17076_v46 = vor.u32 %v19472_v24, %v17075_v45  ;;  %9966 = vmatmul.bf16.vlgmr.msrb.gmra.mxu0 %v24308_v33  ;;  %v15736_v42 = vor.u32 %v19133_v31, %v15733_v18  ;;  %v15229_v24 = vld [vmem:[%s29483_s4 + $0x2fc] sm:$0xf0]  ;;  %v16380_v18 = vor.u32 %v19294_v15, %v16377_v4  ;;  %v15061_v15 = vld [vmem:[%s29483_s4 + $0x1ac] sm:$0xf0] }
 0x3a3   :  { %10002 = vmatpush.bf16.msra.mxu3 %v16712_v51  ;;  %v15288_v51 = vor.u32 %v19021_v40, %v15285_v58  ;;  %v15232_v44 = vor.u32 %v19007_v27, %v15229_v24  ;;  %v9722_v58 = vpop.f32.mrf.mxu0  ;;  %v19098_v27 = vld [vmem:[%s29483_s4 + $0x5bc] sm:$0xf]  ;;  %v15565_v4 = vld [vmem:[%s29483_s4 + $0x59c] sm:$0xf0] }
 0x3a4   :  { %10010 = vmatpush.bf16.msra.mxu0 %v17076_v46  ;;  %v16963_v46 = vld [vmem:[%s29483_s4 + $0x1070] sm:$0xf] }
 0x3a5   :  { %10028 = vmatpush.bf16.msrb.mxu1 %v17160_v36  ;;  %v19126_v36 = vld [vmem:[%s29483_s4 + $0x69c] sm:$0xf] }
 0x3a6   :  { %10090 = vmatpush.bf16.msrb.mxu2 %v15456_v2  ;;  %v9787_v2 = vpop.f32.mrf.mxu2 }
 0x3a7   :  { %10003 = vmatpush.bf16.msra.mxu3 %v16684_v3  ;;  %v19028_v3 = vld [vmem:[%s29483_s4 + $0x38c] sm:$0xf]  ;;  %v16935_v2 = vld [vmem:[%s29483_s4 + $0x1038] sm:$0xf] }
 0x3a8   :  { %10011 = vmatpush.bf16.msra.mxu0 %v17048_v5  ;;  %v18993_v5 = vld [vmem:[%s29483_s4 + $0x274] sm:$0xf] }
 0x3a9   :  { %10029 = vmatpush.bf16.msrb.mxu1 %v17132_v37  ;;  %v15316_v37 = vor.u32 %v19028_v3, %v15313_v26  ;;  %v15145_v3 = vld [vmem:[%s29483_s4 + $0x254] sm:$0xf0]  ;;  %v19280_v26 = vld [vmem:[%s29483_s4 + $0xb6c] sm:$0xf] }
 0x3aa   :  { %10091 = vmatpush.bf16.msrb.mxu2 %v15428_v19  ;;  %v15705_v19 = vld [vmem:[%s29483_s4 + $0x6b4] sm:$0xf0] }
 0x3ab   :  { %10004 = vmatpush.bf16.msra.mxu3 %v16656_v54  ;;  %v15708_v45 = vor.u32 %v19126_v36, %v15705_v19  ;;  %v16408_v54 = vor.u32 %v19301_v32, %v16405_v63  ;;  %v16907_v36 = vld [vmem:[%s29483_s4 + $0x1000] sm:$0xf]  ;;  %v19430_v19 = vld [vmem:[%s29483_s4 + $0x1018] sm:$0xf0]  ;;  %v16879_v63 = vld [vmem:[%s29483_s4 + $0xfc8] sm:$0xf] }
 0x3ac   :  { %10012 = vmatpush.bf16.msra.mxu0 %v17020_v28  ;;  %v16908_v24 = vor.u32 %v19430_v19, %v16907_v36  ;;  %v19357_v19 = vld [vmem:[%s29483_s4 + $0xdd4] sm:$0xf] }
 0x3ad   :  { %10030 = vmatpush.bf16.msrb.mxu1 %v17104_v23  ;;  %v25933_v40 = vpop.f32.mrf.mxu1  ;;  %v16964_v23 = vor.u32 %v19444_v1, %v16963_v46  ;;  %v19273_v1 = vld [vmem:[%s29483_s4 + $0xb34] sm:$0xf] }
 0x3ae   :  { %10092 = vmatpush.bf16.msrb.mxu2 %v15400_v7  ;;  %10005 = vmatmul.bf16.vlgmr.msra.gmra.mxu3 %v24519_v21  ;;  %v16992_v7 = vor.u32 %v19451_v11, %v16991_v8  ;;  %v9759_v11 = vpop.f32.mrf.mxu0 }
 0x3af   :  { %10055 = vmatpush.bf16.msrb.mxu3 %v17580_v60  ;;  %v15201_v60 = vld [vmem:[%s29483_s4 + $0x2c4] sm:$0xf0]  ;;  %v9760_v32 = vadd.f32 %v9759_v11, %v25755_v52  ;;  %v15117_v52 = vld [vmem:[%s29483_s4 + $0x21c] sm:$0xf0]  ;;  %v18951_v11 = vld [vmem:[%s29483_s4 + $0x124] sm:$0xf] }
 0x3b0   :  { %10031 = vmatmul.bf16.vlgmr.msrb.gmra.mxu1 %v24683_v39  ;;  %10013 = vmatpush.bf16.msra.mxu0 %v16992_v7  ;;  %v15204_v31 = vor.u32 %v19000_v9, %v15201_v60  ;;  %v19423_v7 = vld [vmem:[%s29483_s4 + $0xfe0] sm:$0xf0]  ;;  %v16293_v9 = vld [vmem:[%s29483_s4 + $0xb4c] sm:$0xf0] }
 0x3b1   :  { %10075 = vmatpush.bf16.msra.mxu1 %v15288_v51  ;;  %v15173_v51 = vld [vmem:[%s29483_s4 + $0x28c] sm:$0xf0]  ;;  %v9798_v14 = vpop.f32.mrf.mxu3  ;;  %v16880_v58 = vor.u32 %v19423_v7, %v16879_v63 }
 0x3b2   :  { %10093 = vmatpush.bf16.msrb.mxu2 %v15372_v20  ;;  %v19437_v20 = vld [vmem:[%s29483_s4 + $0x1050] sm:$0xf0]  ;;  %v15176_v38 = vor.u32 %v18993_v5, %v15173_v51  ;;  %v19266_v5 = vld [vmem:[%s29483_s4 + $0xafc] sm:$0xf] }
 0x3b3   :  { %10056 = vmatpush.bf16.msrb.mxu3 %v17552_v62  ;;  %v19287_v62 = vld [vmem:[%s29483_s4 + $0xba4] sm:$0xf]  ;;  %v16936_v61 = vor.u32 %v19437_v20, %v16935_v2 }
 0x3b4   :  { %10014 = vmatpush.bf16.msra.mxu0 %v16964_v23  ;;  %v16352_v49 = vor.u32 %v19287_v62, %v16349_v12  ;;  %v16296_v23 = vor.u32 %v19273_v1, %v16293_v9  ;;  %v15033_v12 = vld [vmem:[%s29483_s4 + $0x174] sm:$0xf0]  ;;  %v14977_v1 = vld [vmem:[%s29483_s4 + $0x104] sm:$0xf0]  ;;  %v19525_v9 = vld [vmem:[%s29483_s4 + $0x1314] sm:$0xf] }
 0x3b5   :  { %10076 = vmatpush.bf16.msra.mxu1 %v15260_v55  ;;  %v16321_v55 = vld [vmem:[%s29483_s4 + $0xb84] sm:$0xf0]  ;;  %v9826_v8 = vpop.f32.mrf.mxu1 }
 0x3b6   :  { %10094 = vmatpush.bf16.msrb.mxu2 %v15344_v16  ;;  %v18986_v16 = vld [vmem:[%s29483_s4 + $0x23c] sm:$0xf]  ;;  %v9761_v62 = vpop.f32.mrf.mxu0 }
 0x3b7   :  { %10101 = vmatpush.bf16.msra.mxu3 %v15736_v42  ;;  %v15621_v42 = vld [vmem:[%s29483_s4 + $0x60c] sm:$0xf0]  ;;  %v15148_v6 = vor.u32 %v18986_v16, %v15145_v3  ;;  %v17273_v62 = vld [vmem:[%s29483_s4 + $0x12f4] sm:$0xf0] }
 0x3b8   :  { %v15624_v28 = vor.u32 %v19105_v50, %v15621_v42  ;;  %10015 = vmatpush.bf16.msra.mxu0 %v16936_v61  ;;  %v25996_v34 = vpop.f32.mrf.mxu2  ;;  %v19245_v50 = vld [vmem:[%s29483_s4 + $0xa54] sm:$0xf]  ;;  %v16181_v42 = vld [vmem:[%s29483_s4 + $0xa6c] sm:$0xf0]  ;;  %v19084_v61 = vld [vmem:[%s29483_s4 + $0x54c] sm:$0xf] }
 0x3b9   :  { %10077 = vmatpush.bf16.msra.mxu1 %v15232_v44  ;;  %v18979_v44 = vld [vmem:[%s29483_s4 + $0x204] sm:$0xf]  ;;  %v9800_v60 = vpop.f32.mrf.mxu3  ;;  %v16629_v16 = vld [vmem:[%s29483_s4 + $0xdec] sm:$0xf0]  ;;  %v16184_v3 = vor.u32 %v19245_v50, %v16181_v42  ;;  %v19224_v50 = vld [vmem:[%s29483_s4 + $0x9ac] sm:$0xf] }
 0x3ba   :  { %10095 = vmatpush.bf16.msrb.mxu2 %v15316_v37  ;;  %v16324_v37 = vor.u32 %v19280_v26, %v16321_v55  ;;  %v15120_v56 = vor.u32 %v18979_v44, %v15117_v52  ;;  %v19259_v26 = vld [vmem:[%s29483_s4 + $0xac4] sm:$0xf]  ;;  %v16237_v55 = vld [vmem:[%s29483_s4 + $0xadc] sm:$0xf0]  ;;  %v19252_v44 = vld [vmem:[%s29483_s4 + $0xa8c] sm:$0xf] }
 0x3bb   :  { %10102 = vmatpush.bf16.msra.mxu3 %v15708_v45  ;;  %v15593_v45 = vld [vmem:[%s29483_s4 + $0x5d4] sm:$0xf0]  ;;  %v16240_v63 = vor.u32 %v19259_v26, %v16237_v55  ;;  %v16209_v52 = vld [vmem:[%s29483_s4 + $0xaa4] sm:$0xf0] }
 0x3bc   :  { %v15596_v46 = vor.u32 %v19098_v27, %v15593_v45  ;;  %10016 = vmatpush.bf16.msra.mxu0 %v16908_v24  ;;  %v15005_v27 = vld [vmem:[%s29483_s4 + $0x13c] sm:$0xf0]  ;;  %v16632_v45 = vor.u32 %v19357_v19, %v16629_v16  ;;  %v19238_v24 = vld [vmem:[%s29483_s4 + $0xa1c] sm:$0xf] }
 0x3bd   :  { %10096 = vmatmul.bf16.vlgmr.msrb.gmra.mxu2 %v24268_v13  ;;  %10078 = vmatpush.bf16.msra.mxu1 %v15204_v31  ;;  %v18972_v31 = vld [vmem:[%s29483_s4 + $0x1cc] sm:$0xf]  ;;  %v15008_v7 = vor.u32 %v18951_v11, %v15005_v27  ;;  %v18930_v19 = vld [vmem:[%s29483_s4 + $0x7c] sm:$0xf]  ;;  %v19217_v11 = vld [vmem:[%s29483_s4 + $0x974] sm:$0xf] }
 0x3be   :  { %10140 = vmatpush.bf16.msra.mxu2 %v16408_v54  ;;  %17599 = vmatmul.msk.bf16.vlgmr.msrb.gmra.mxu3 %vm9551_vm1, %v25005_v17  ;;  %v9773_v54 = vadd.f32 %v25727_v41, %v9760_v32  ;;  %v19091_v41 = vld [vmem:[%s29483_s4 + $0x584] sm:$0xf]  ;;  %v16153_v32 = vld [vmem:[%s29483_s4 + $0xa34] sm:$0xf0]  ;;  %v16069_v27 = vld [vmem:[%s29483_s4 + $0x98c] sm:$0xf0] }
 0x3bf   :  { %10103 = vmatpush.bf16.msra.mxu3 %v15680_v48  ;;  %v18965_v48 = vld [vmem:[%s29483_s4 + $0x194] sm:$0xf]  ;;  %v15568_v20 = vor.u32 %v19091_v41, %v15565_v4  ;;  %v19231_v41 = vld [vmem:[%s29483_s4 + $0x9e4] sm:$0xf]  ;;  %v16125_v4 = vld [vmem:[%s29483_s4 + $0x9fc] sm:$0xf0] }
 0x3c0   :  { %v9786_v59 = vadd.f32 %v25793_v25, %v9773_v54  ;;  %v15064_v2 = vor.u32 %v18965_v48, %v15061_v15  ;;  %v16265_v25 = vld [vmem:[%s29483_s4 + $0xb14] sm:$0xf0]  ;;  %10017 = vmatpush.bf16.msra.mxu0 %v16880_v58  ;;  %v18944_v54 = vld [vmem:[%s29483_s4 + $0xec] sm:$0xf]  ;;  %v17301_v48 = vld [vmem:[%s29483_s4 + $0x132c] sm:$0xf0]  ;;  %v9811_v15 = vpop.f32.mrf.mxu0 }
 0x3c1   :  { %10079 = vmatpush.bf16.msra.mxu1 %v15176_v38  ;;  %v9839_v38 = vpop.f32.mrf.mxu2  ;;  %v16268_v36 = vor.u32 %v19266_v5, %v16265_v25  ;;  %v16128_v25 = vor.u32 %v19231_v41, %v16125_v4  ;;  %v16489_v41 = vld [vmem:[%s29483_s4 + $0xcd4] sm:$0xf0] }
 0x3c2   :  { %10141 = vmatpush.bf16.msra.mxu2 %v16380_v18  ;;  %v15089_v18 = vld [vmem:[%s29483_s4 + $0x1e4] sm:$0xf0]  ;;  %v9799_v51 = vadd.f32 %v9798_v14, %v9786_v59  ;;  %v16212_v59 = vor.u32 %v19252_v44, %v16209_v52  ;;  %v16072_v44 = vor.u32 %v19217_v11, %v16069_v27  ;;  %v14893_v52 = vld [vmem:[%s29483_s4 + $0x5c] sm:$0xf0]  ;;  %v19308_v11 = vld [vmem:[%s29483_s4 + $0xc4c] sm:$0xf] }
 0x3c3   :  { %10104 = vmatpush.bf16.msra.mxu3 %v15652_v57  ;;  %v18958_v57 = vld [vmem:[%s29483_s4 + $0x15c] sm:$0xf]  ;;  %v15537_v14 = vld [vmem:[%s29483_s4 + $0x564] sm:$0xf0]  ;;  %10018 = vmatmul.bf16.vlgmr.msra.gmra.mxu0 %v24522_v47 }
 0x3c4   :  { %10062 = vmatpush.bf16.msrb.mxu0 %v15064_v2  ;;  %v15540_v8 = vor.u32 %v19084_v61, %v15537_v14  ;;  %v17304_v2 = vor.u32 %v19525_v9, %v17301_v48  ;;  %v19336_v14 = vld [vmem:[%s29483_s4 + $0xd2c] sm:$0xf]  ;;  %v16545_v38 = vld [vmem:[%s29483_s4 + $0xd44] sm:$0xf0]  ;;  %v19210_v9 = vld [vmem:[%s29483_s4 + $0x93c] sm:$0xf] }
 0x3c5   :  { %10080 = vmatpush.bf16.msra.mxu1 %v15148_v6  ;;  %v19350_v6 = vld [vmem:[%s29483_s4 + $0xd9c] sm:$0xf]  ;;  %v16548_v55 = vor.u32 %v19336_v14, %v16545_v38  ;;  %v16041_v48 = vld [vmem:[%s29483_s4 + $0x954] sm:$0xf0]  ;;  %v19196_v14 = vld [vmem:[%s29483_s4 + $0x8cc] sm:$0xf] }
 0x3c6   :  { %10142 = vmatpush.bf16.msra.mxu2 %v16352_v49  ;;  %v15092_v49 = vor.u32 %v18972_v31, %v15089_v18  ;;  %v16573_v31 = vld [vmem:[%s29483_s4 + $0xd7c] sm:$0xf0]  ;;  %v14980_v18 = vor.u32 %v18944_v54, %v14977_v1  ;;  %v19504_v54 = vld [vmem:[%s29483_s4 + $0x126c] sm:$0xf]  ;;  %v16433_v27 = vld [vmem:[%s29483_s4 + $0xc64] sm:$0xf0] }
 0x3c7   :  { %10105 = vmatpush.bf16.msra.mxu3 %v15624_v28  ;;  %v15036_v28 = vor.u32 %v18958_v57, %v15033_v12  ;;  %v14949_v57 = vld [vmem:[%s29483_s4 + $0xcc] sm:$0xf0] }
 0x3c9   :  { %10081 = vmatpush.bf16.msra.mxu1 %v15120_v56  ;;  %10063 = vmatpush.bf16.msrb.mxu0 %v15036_v28  ;;  %v26113_v58 = vpop.f32.mrf.mxu2  ;;  %v9812_v56 = vadd.f32 %v9811_v15, %v9799_v51  ;;  %v19518_v51 = vld [vmem:[%s29483_s4 + $0x12dc] sm:$0xf]  ;;  %v19511_v28 = vld [vmem:[%s29483_s4 + $0x12a4] sm:$0xf] }
 0x3ca   :  { %10143 = vmatpush.bf16.msra.mxu2 %v16324_v37  ;;  %v16601_v37 = vld [vmem:[%s29483_s4 + $0xdb4] sm:$0xf0]  ;;  %v19322_v15 = vld [vmem:[%s29483_s4 + $0xcbc] sm:$0xf] }
 0x3cb   :  { %10106 = vmatpush.bf16.msra.mxu3 %v15596_v46  ;;  %v16156_v46 = vor.u32 %v19238_v24, %v16153_v32  ;;  %v16604_v60 = vor.u32 %v19350_v6, %v16601_v37  ;;  %v9825_v5 = vadd.f32 %v25933_v40, %v9812_v56  ;;  %v16097_v40 = vld [vmem:[%s29483_s4 + $0x9c4] sm:$0xf0]  ;;  %v19329_v32 = vld [vmem:[%s29483_s4 + $0xcf4] sm:$0xf]  ;;  %v18916_v56 = vld [vmem:[%s29483_s4 + $0xc] sm:$0xf] }
 0x3cc   :  { %v16100_v16 = vor.u32 %v19224_v50, %v16097_v40  ;;  %v16461_v50 = vld [vmem:[%s29483_s4 + $0xc9c] sm:$0xf0] }
 0x3cd   :  { %10082 = vmatpush.bf16.msra.mxu1 %v15092_v49  ;;  %10064 = vmatpush.bf16.msrb.mxu0 %v15008_v7  ;;  %v26141_v42 = vpop.f32.mrf.mxu1  ;;  %v9838_v61 = vadd.f32 %v25996_v34, %v9825_v5  ;;  %v14921_v34 = vld [vmem:[%s29483_s4 + $0x94] sm:$0xf0]  ;;  %v18923_v7 = vld [vmem:[%s29483_s4 + $0x44] sm:$0xf] }
 0x3ce   :  { %10144 = vmatpush.bf16.msra.mxu2 %v16296_v23  ;;  %v19343_v23 = vld [vmem:[%s29483_s4 + $0xd64] sm:$0xf]  ;;  %v14924_v6 = vor.u32 %v18930_v19, %v14921_v34  ;;  %v14896_v4 = vor.u32 %v18923_v7, %v14893_v52  ;;  %v19490_v19 = vld [vmem:[%s29483_s4 + $0x11fc] sm:$0xf] }
 0x3cf   :  { %10107 = vmatpush.bf16.msra.mxu3 %v15568_v20  ;;  %v18937_v20 = vld [vmem:[%s29483_s4 + $0xb4] sm:$0xf]  ;;  %v16576_v12 = vor.u32 %v19343_v23, %v16573_v31  ;;  %v14865_v23 = vld [vmem:[%s29483_s4 + $0x24] sm:$0xf0]  ;;  %v16044_v31 = vor.u32 %v19210_v9, %v16041_v48  ;;  %v19483_v7 = vld [vmem:[%s29483_s4 + $0x11c4] sm:$0xf] }
 0x3d0   :  { %10083 = vmatmul.bf16.vlgmr.msra.gmra.mxu1 %v24090_v53  ;;  %v14952_v49 = vor.u32 %v18937_v20, %v14949_v57  ;;  %v17189_v20 = vld [vmem:[%s29483_s4 + $0x124c] sm:$0xf0]  ;;  %v16013_v57 = vld [vmem:[%s29483_s4 + $0x91c] sm:$0xf0]  ;;  %v14868_v40 = vor.u32 %v18916_v56, %v14865_v23  ;;  %v19462_v48 = vld [vmem:[%s29483_s4 + $0x111c] sm:$0xf] }
 0x3d1   :  { %10127 = vmatpush.bf16.msrb.mxu1 %v16184_v3  ;;  %10065 = vmatpush.bf16.msrb.mxu0 %v14980_v18  ;;  %v17245_v3 = vld [vmem:[%s29483_s4 + $0x12bc] sm:$0xf0]  ;;  %v9850_v26 = vpop.f32.mrf.mxu3  ;;  %v9891_v24 = vpop.f32.mrf.mxu2  ;;  %v19203_v18 = vld [vmem:[%s29483_s4 + $0x904] sm:$0xf]  ;;  %v19476_v56 = vld [vmem:[%s29483_s4 + $0x118c] sm:$0xf] }
 0x3d2   :  { %10145 = vmatpush.bf16.msra.mxu2 %v16268_v36  ;;  %v17276_v36 = vor.u32 %v19518_v51, %v17273_v62  ;;  %v17248_v37 = vor.u32 %v19511_v28, %v17245_v3  ;;  %v19189_v51 = vld [vmem:[%s29483_s4 + $0x894] sm:$0xf]  ;;  %v15957_v62 = vld [vmem:[%s29483_s4 + $0x8ac] sm:$0xf0]  ;;  %v16016_v38 = vor.u32 %v19203_v18, %v16013_v57  ;;  %v19182_v3 = vld [vmem:[%s29483_s4 + $0x85c] sm:$0xf] }
 0x3d3   :  { %10108 = vmatpush.bf16.msra.mxu3 %v15540_v8  ;;  %v9813_v8 = vpop.f32.mrf.mxu0  ;;  %v17105_v23 = vld [vmem:[%s29483_s4 + $0x11a4] sm:$0xf0] }
 0x3d4   :  { %v17077_v8 = vld [vmem:[%s29483_s4 + $0x116c] sm:$0xf0] }
 0x3d5   :  { %10128 = vmatpush.bf16.msrb.mxu1 %v16156_v46  ;;  %10066 = vmatpush.bf16.msrb.mxu0 %v14952_v49  ;;  %v17217_v46 = vld [vmem:[%s29483_s4 + $0x1284] sm:$0xf0]  ;;  %v15960_v49 = vor.u32 %v19189_v51, %v15957_v62  ;;  %v19455_v51 = vld [vmem:[%s29483_s4 + $0x10e4] sm:$0xf]  ;;  %v17021_v62 = vld [vmem:[%s29483_s4 + $0x10fc] sm:$0xf0] }
 0x3d6   :  { %10146 = vmatpush.bf16.msra.mxu2 %v16240_v63  ;;  %10109 = vmatmul.bf16.vlgmr.msra.gmra.mxu3 %v24278_v30  ;;  %v16517_v63 = vld [vmem:[%s29483_s4 + $0xd0c] sm:$0xf0] }
 0x3d7   :  { %10153 = vmatpush.bf16.msrb.mxu3 %v16632_v45  ;;  %v26169_v45 = vadd.f32 %v9850_v26, %v9838_v61  ;;  %v16520_v1 = vor.u32 %v19329_v32, %v16517_v63  ;;  %v15929_v26 = vld [vmem:[%s29483_s4 + $0x874] sm:$0xf0]  ;;  %v19581_v32 = vld [vmem:[%s29483_s4 + $0x14d4] sm:$0xf]  ;;  %v17525_v63 = vld [vmem:[%s29483_s4 + $0x14ec] sm:$0xf0] }
 0x3d8   :  { %v17528_v9 = vor.u32 %v19581_v32, %v17525_v63 }
 0x3d9   :  { %10129 = vmatpush.bf16.msrb.mxu1 %v16128_v25  ;;  %10067 = vmatpush.bf16.msrb.mxu0 %v14924_v6  ;;  %v9852_v5 = vpop.f32.mrf.mxu3  ;;  %v16492_v25 = vor.u32 %v19322_v15, %v16489_v41  ;;  %v19574_v41 = vld [vmem:[%s29483_s4 + $0x149c] sm:$0xf] }
 0x3da   :  { %10147 = vmatpush.bf16.msra.mxu2 %v16212_v59  ;;  %v17220_v59 = vor.u32 %v19504_v54, %v17217_v46  ;;  %v16436_v54 = vor.u32 %v19308_v11, %v16433_v27  ;;  %v19175_v46 = vld [vmem:[%s29483_s4 + $0x824] sm:$0xf]  ;;  %v15291_v5 = vld [vmem:[%s29483_s4 + $0x358] sm:$0xf]  ;;  %v19560_v11 = vld [vmem:[%s29483_s4 + $0x142c] sm:$0xf] }
 0x3db   :  { %10154 = vmatpush.bf16.msrb.mxu3 %v16604_v60  ;;  %v9878_v60 = vpop.f32.mrf.mxu1  ;;  %v17441_v27 = vld [vmem:[%s29483_s4 + $0x1444] sm:$0xf0] }
 0x3dc   :  { %v17049_v60 = vld [vmem:[%s29483_s4 + $0x1134] sm:$0xf0] }
 0x3dd   :  { %10148 = vmatmul.bf16.vlgmr.msra.gmra.mxu2 %v24493_v35  ;;  %10130 = vmatpush.bf16.msrb.mxu1 %v16100_v16  ;;  %v17161_v16 = vld [vmem:[%s29483_s4 + $0x1214] sm:$0xf0] }
 0x3de   :  { %10192 = vmatpush.bf16.msrb.mxu2 %v17304_v2  ;;  %v19497_v2 = vld [vmem:[%s29483_s4 + $0x1234] sm:$0xf]  ;;  %10068 = vmatpush.bf16.msrb.mxu0 %v14896_v4  ;;  %v17164_v24 = vor.u32 %v19490_v19, %v17161_v16  ;;  %v17497_v4 = vld [vmem:[%s29483_s4 + $0x14b4] sm:$0xf0]  ;;  %v17024_v19 = vor.u32 %v19455_v51, %v17021_v62  ;;  %v15845_v16 = vld [vmem:[%s29483_s4 + $0x7cc] sm:$0xf0] }
 0x3df   :  { %10155 = vmatpush.bf16.msrb.mxu3 %v16576_v12  ;;  %v19315_v12 = vld [vmem:[%s29483_s4 + $0xc84] sm:$0xf]  ;;  %v17192_v61 = vor.u32 %v19497_v2, %v17189_v20  ;;  %v17052_v2 = vor.u32 %v19462_v48, %v17049_v60  ;;  %v15873_v20 = vld [vmem:[%s29483_s4 + $0x804] sm:$0xf0]  ;;  %v17500_v57 = vor.u32 %v19574_v41, %v17497_v4  ;;  %v19553_v48 = vld [vmem:[%s29483_s4 + $0x13f4] sm:$0xf] }
 0x3e0   :  { %v26243_v34 = vpop.f32.mrf.mxu2  ;;  %v16464_v28 = vor.u32 %v19315_v12, %v16461_v50  ;;  %v9863_v12 = vpop.f32.mrf.mxu0  ;;  %v17108_v50 = vor.u32 %v19476_v56, %v17105_v23  ;;  %v17413_v60 = vld [vmem:[%s29483_s4 + $0x140c] sm:$0xf0]  ;;  %v19147_v4 = vld [vmem:[%s29483_s4 + $0x744] sm:$0xf]  ;;  %v15789_v56 = vld [vmem:[%s29483_s4 + $0x75c] sm:$0xf0] }
 0x3e1   :  { %10131 = vmatpush.bf16.msrb.mxu1 %v16072_v44  ;;  %v17133_v44 = vld [vmem:[%s29483_s4 + $0x11dc] sm:$0xf0]  ;;  %v15207_v23 = vld [vmem:[%s29483_s4 + $0x2b0] sm:$0xf]  ;;  %v15792_v51 = vor.u32 %v19147_v4, %v15789_v56  ;;  %v18983_v56 = vld [vmem:[%s29483_s4 + $0x220] sm:$0xf0] }
 0x3e2   :  { %10193 = vmatpush.bf16.msrb.mxu2 %v17276_v36  ;;  %v15985_v36 = vld [vmem:[%s29483_s4 + $0x8e4] sm:$0xf0]  ;;  %10069 = vmatpush.bf16.msrb.mxu0 %v14868_v40  ;;  %v17136_v15 = vor.u32 %v19483_v7, %v17133_v44  ;;  %v19567_v40 = vld [vmem:[%s29483_s4 + $0x1464] sm:$0xf]  ;;  %v15817_v7 = vld [vmem:[%s29483_s4 + $0x794] sm:$0xf0] }
 0x3e3   :  { %10156 = vmatpush.bf16.msrb.mxu3 %v16548_v55  ;;  %v19469_v55 = vld [vmem:[%s29483_s4 + $0x1154] sm:$0xf]  ;;  %v15988_v6 = vor.u32 %v19196_v14, %v15985_v36  ;;  %v9864_v14 = vadd.f32 %v9863_v12, %v26169_v45  ;;  %v19018_v45 = vld [vmem:[%s29483_s4 + $0x338] sm:$0xf0]  ;;  %v19011_v44 = vld [vmem:[%s29483_s4 + $0x300] sm:$0xf0] }
 0x3e4   :  { %v17080_v52 = vor.u32 %v19469_v55, %v17077_v8  ;;  %v19161_v36 = vld [vmem:[%s29483_s4 + $0x7b4] sm:$0xf]  ;;  %v19448_v55 = vld [vmem:[%s29483_s4 + $0x10ac] sm:$0xf]  ;;  %v16993_v8 = vld [vmem:[%s29483_s4 + $0x10c4] sm:$0xf0] }
 0x3e5   :  { %10132 = vmatpush.bf16.msrb.mxu1 %v16044_v31  ;;  %10070 = vmatmul.bf16.vlgmr.msrb.gmra.mxu0 %v24088_v43  ;;  %v19168_v31 = vld [vmem:[%s29483_s4 + $0x7ec] sm:$0xf]  ;;  %v15848_v32 = vor.u32 %v19161_v36, %v15845_v16  ;;  %v16909_v36 = vld [vmem:[%s29483_s4 + $0x101c] sm:$0xf0]  ;;  %v16853_v16 = vld [vmem:[%s29483_s4 + $0xfac] sm:$0xf0] }
 0x3e6   :  { %10194 = vmatpush.bf16.msrb.mxu2 %v17248_v37  ;;  %10114 = vmatpush.bf16.msra.mxu0 %v15960_v49  ;;  %v15932_v37 = vor.u32 %v19182_v3, %v15929_v26  ;;  %v9877_v3 = vadd.f32 %v26141_v42, %v9864_v14  ;;  %v19140_v12 = vld [vmem:[%s29483_s4 + $0x70c] sm:$0xf]  ;;  %v15179_v14 = vld [vmem:[%s29483_s4 + $0x278] sm:$0xf] }
 0x3e7   :  { %10157 = vmatpush.bf16.msrb.mxu3 %v16520_v1  ;;  %v15901_v1 = vld [vmem:[%s29483_s4 + $0x83c] sm:$0xf0] }
 0x3e8   :  { %v9943_v18 = vpop.f32.mrf.mxu2  ;;  %v26353_v42 = vadd.f32 %v26113_v58, %v9877_v3  ;;  %v15235_v58 = vld [vmem:[%s29483_s4 + $0x2e8] sm:$0xf]  ;;  %v17357_v3 = vld [vmem:[%s29483_s4 + $0x139c] sm:$0xf0] }
 0x3e9   :  { %10133 = vmatpush.bf16.msrb.mxu1 %v16016_v38  ;;  %v15876_v38 = vor.u32 %v19168_v31, %v15873_v20  ;;  %v15236_v41 = vor.u32 %v19011_v44, %v15235_v58  ;;  %v19004_v31 = vld [vmem:[%s29483_s4 + $0x2c8] sm:$0xf0]  ;;  %v17416_v18 = vor.u32 %v19553_v48, %v17413_v60  ;;  %v16937_v20 = vld [vmem:[%s29483_s4 + $0x1054] sm:$0xf0] }
 0x3ea   :  { %10195 = vmatpush.bf16.msrb.mxu2 %v17220_v59  ;;  %10115 = vmatpush.bf16.msra.mxu0 %v15932_v37  ;;  %v15904_v59 = vor.u32 %v19175_v46, %v15901_v1  ;;  %v16996_v37 = vor.u32 %v19448_v55, %v16993_v8  ;;  %v16965_v46 = vld [vmem:[%s29483_s4 + $0x108c] sm:$0xf0]  ;;  %v15208_v62 = vor.u32 %v19004_v31, %v15207_v23  ;;  %v19420_v8 = vld [vmem:[%s29483_s4 + $0xfcc] sm:$0xf]  ;;  %v16825_v58 = vld [vmem:[%s29483_s4 + $0xf74] sm:$0xf0] }
 0x3eb   :  { %10158 = vmatpush.bf16.msrb.mxu3 %v16492_v25  ;;  %v19025_v25 = vld [vmem:[%s29483_s4 + $0x370] sm:$0xf0]  ;;  %v15067_v44 = vld [vmem:[%s29483_s4 + $0x198] sm:$0xf] }
 0x3ec   :  { %v15292_v49 = vor.u32 %v19025_v25, %v15291_v5  ;;  %v19546_v5 = vld [vmem:[%s29483_s4 + $0x13bc] sm:$0xf]  ;;  %v17385_v25 = vld [vmem:[%s29483_s4 + $0x13d4] sm:$0xf0] }
 0x3ed   :  { %10134 = vmatpush.bf16.msrb.mxu1 %v15988_v6  ;;  %v19154_v6 = vld [vmem:[%s29483_s4 + $0x77c] sm:$0xf]  ;;  %v15515_v60 = vld [vmem:[%s29483_s4 + $0x518] sm:$0xf] }
 0x3ee   :  { %10196 = vmatpush.bf16.msrb.mxu2 %v17192_v61  ;;  %v17469_v61 = vld [vmem:[%s29483_s4 + $0x147c] sm:$0xf0]  ;;  %10116 = vmatpush.bf16.msra.mxu0 %v15904_v59 }
 0x3ef   :  { %10159 = vmatpush.bf16.msrb.mxu3 %v16464_v28  ;;  %v15263_v28 = vld [vmem:[%s29483_s4 + $0x320] sm:$0xf]  ;;  %v17472_v26 = vor.u32 %v19567_v40, %v17469_v61  ;;  %v19427_v61 = vld [vmem:[%s29483_s4 + $0x1004] sm:$0xf] }
 0x3f0   :  { %10135 = vmatmul.bf16.vlgmr.msrb.gmra.mxu1 %v24308_v33  ;;  %v15264_v63 = vor.u32 %v19018_v45, %v15263_v28  ;;  %v19539_v45 = vld [vmem:[%s29483_s4 + $0x1384] sm:$0xf] }
 0x3f1   :  { %10179 = vmatpush.bf16.msra.mxu1 %v17080_v52  ;;  %v17444_v52 = vor.u32 %v19560_v11, %v17441_v27  ;;  %v26376_v1 = vpop.f32.mrf.mxu3  ;;  %v16912_v11 = vor.u32 %v19427_v61, %v16909_v36  ;;  %v15095_v61 = vld [vmem:[%s29483_s4 + $0x1d0] sm:$0xf]  ;;  %v16769_v36 = vld [vmem:[%s29483_s4 + $0xf04] sm:$0xf0] }
 0x3f2   :  { %10197 = vmatpush.bf16.msrb.mxu2 %v17164_v24  ;;  %10117 = vmatpush.bf16.msra.mxu0 %v15876_v38  ;;  %v26355_v24 = vpop.f32.mrf.mxu1  ;;  %v18997_v38 = vld [vmem:[%s29483_s4 + $0x290] sm:$0xf0] }
 0x3f3   :  { %10160 = vmatpush.bf16.msrb.mxu3 %v16436_v54  ;;  %v19441_v54 = vld [vmem:[%s29483_s4 + $0x1074] sm:$0xf]  ;;  %v15180_v55 = vor.u32 %v18997_v38, %v15179_v14  ;;  %v18976_v14 = vld [vmem:[%s29483_s4 + $0x1e8] sm:$0xf0] }
 0x3f4   :  { %v16968_v59 = vor.u32 %v19441_v54, %v16965_v46  ;;  %v18969_v54 = vld [vmem:[%s29483_s4 + $0x1b0] sm:$0xf0]  ;;  %v19532_v46 = vld [vmem:[%s29483_s4 + $0x134c] sm:$0xf] }
 0x3f5   :  { %10180 = vmatpush.bf16.msra.mxu1 %v17052_v2  ;;  %v19434_v2 = vld [vmem:[%s29483_s4 + $0x103c] sm:$0xf]  ;;  %v15068_v23 = vor.u32 %v18969_v54, %v15067_v44  ;;  %v19392_v38 = vld [vmem:[%s29483_s4 + $0xeec] sm:$0xf]  ;;  %v16159_v44 = vld [vmem:[%s29483_s4 + $0xa20] sm:$0xf] }
 0x3f6   :  { %10198 = vmatpush.bf16.msrb.mxu2 %v17136_v15  ;;  %10161 = vmatmul.bf16.vlgmr.msrb.gmra.mxu3 %v24495_v29  ;;  %v15820_v15 = vor.u32 %v19154_v6, %v15817_v7  ;;  %v16940_v40 = vor.u32 %v19434_v2, %v16937_v20  ;;  %v18990_v6 = vld [vmem:[%s29483_s4 + $0x258] sm:$0xf0]  ;;  %v16797_v2 = vld [vmem:[%s29483_s4 + $0xf3c] sm:$0xf0] }
 0x3f7   :  { %10205 = vmatpush.bf16.msra.mxu3 %v17528_v9  ;;  %v9865_v9 = vpop.f32.mrf.mxu0  ;;  %10118 = vmatpush.bf16.msra.mxu0 %v15848_v32  ;;  %v16881_v32 = vld [vmem:[%s29483_s4 + $0xfe4] sm:$0xf0]  ;;  %v19406_v7 = vld [vmem:[%s29483_s4 + $0xf5c] sm:$0xf] }
 0x3f8   :  { %v17329_v9 = vld [vmem:[%s29483_s4 + $0x1364] sm:$0xf0]  ;;  %v16828_v4 = vor.u32 %v19406_v7, %v16825_v58  ;;  %v16741_v58 = vld [vmem:[%s29483_s4 + $0xecc] sm:$0xf0]  ;;  %v19242_v54 = vld [vmem:[%s29483_s4 + $0xa38] sm:$0xf0] }
 0x3f9   :  { %10181 = vmatpush.bf16.msra.mxu1 %v17024_v19  ;;  %v19413_v19 = vld [vmem:[%s29483_s4 + $0xf94] sm:$0xf]  ;;  %v9904_v28 = vpop.f32.mrf.mxu3  ;;  %v17332_v31 = vor.u32 %v19532_v46, %v17329_v9  ;;  %v14983_v9 = vld [vmem:[%s29483_s4 + $0xf0] sm:$0xf] }
 0x3fa   :  { %10199 = vmatpush.bf16.msrb.mxu2 %v17108_v50  ;;  %v15761_v50 = vld [vmem:[%s29483_s4 + $0x724] sm:$0xf0]  ;;  %v16856_v27 = vor.u32 %v19413_v19, %v16853_v16  ;;  %v16187_v19 = vld [vmem:[%s29483_s4 + $0xa58] sm:$0xf]  ;;  %v19249_v16 = vld [vmem:[%s29483_s4 + $0xa70] sm:$0xf0] }
 0x3fb   :  { %10206 = vmatpush.bf16.msra.mxu3 %v17500_v57  ;;  %10119 = vmatpush.bf16.msra.mxu0 %v15820_v15  ;;  %v9930_v57 = vpop.f32.mrf.mxu1  ;;  %v19081_v15 = vld [vmem:[%s29483_s4 + $0x530] sm:$0xf0] }
 0x3fc   :  { %v15516_v20 = vor.u32 %v19081_v15, %v15515_v60  ;;  %v26498_v57 = vld [vmem:[%s29484_s5] sm:$0x7f]  ;;  %v15431_v15 = vld [vmem:[%s29483_s4 + $0x470] sm:$0xf] }
 0x3fd   :  { %10200 = vmatmul.bf16.vlgmr.msrb.gmra.mxu2 %v24683_v39  ;;  %10182 = vmatpush.bf16.msra.mxu1 %v16996_v37  ;;  %v17360_v37 = vor.u32 %v19539_v45, %v17357_v3  ;;  %v15011_v3 = vld [vmem:[%s29483_s4 + $0x128] sm:$0xf] }
 0x3fe   :  { %10244 = vmatpush.bf16.msra.mxu2 %v15292_v49  ;;  %v17388_v49 = vor.u32 %v19546_v5, %v17385_v25  ;;  %v15039_v5 = vld [vmem:[%s29483_s4 + $0x160] sm:$0xf]  ;;  %v18962_v25 = vld [vmem:[%s29483_s4 + $0x178] sm:$0xf0] }
 0x3ff   :  { %10207 = vmatpush.bf16.msra.mxu3 %v17472_v26  ;;  %10120 = vmatpush.bf16.msra.mxu0 %v15792_v51  ;;  %v15764_v26 = vor.u32 %v19140_v12, %v15761_v50  ;;  %v6011_v51 = vperm.slane %v26498_v57, 2  ;;  %v15487_v12 = vld [vmem:[%s29483_s4 + $0x4e0] sm:$0xf]  ;;  %v19074_v50 = vld [vmem:[%s29483_s4 + $0x4f8] sm:$0xf0] }
 0x400   :  { %v15488_v45 = vor.u32 %v19074_v50, %v15487_v12 }
 0x401   :  { %10183 = vmatpush.bf16.msra.mxu1 %v16968_v59  ;;  %v15123_v59 = vld [vmem:[%s29483_s4 + $0x208] sm:$0xf] }
 0x402   :  { %10245 = vmatpush.bf16.msra.mxu2 %v15264_v63  ;;  %v15151_v63 = vld [vmem:[%s29483_s4 + $0x240] sm:$0xf] }
 0x403   :  { %10208 = vmatpush.bf16.msra.mxu3 %v17444_v52  ;;  %v26459_v52 = vpop.f32.mrf.mxu2  ;;  %10121 = vmatpush.bf16.msra.mxu0 %v15764_v26  ;;  %v15152_v48 = vor.u32 %v18990_v6, %v15151_v63  ;;  %v18955_v26 = vld [vmem:[%s29483_s4 + $0x140] sm:$0xf0]  ;;  %v16772_v63 = vor.u32 %v19392_v38, %v16769_v36  ;;  %v16188_v6 = vor.u32 %v19249_v16, %v16187_v19  ;;  %v16685_v36 = vld [vmem:[%s29483_s4 + $0xe5c] sm:$0xf0]  ;;  %v16103_v19 = vld [vmem:[%s29483_s4 + $0x9b0] sm:$0xf] }
 0x404   :  { %v15012_v7 = vor.u32 %v18955_v26, %v15011_v3  ;;  %v19228_v16 = vld [vmem:[%s29483_s4 + $0x9c8] sm:$0xf0]  ;;  %v18934_v3 = vld [vmem:[%s29483_s4 + $0x98] sm:$0xf0]  ;;  %v15375_v26 = vld [vmem:[%s29483_s4 + $0x400] sm:$0xf] }
 0x405   :  { %10184 = vmatpush.bf16.msra.mxu1 %v16940_v40 }
 0x406   :  { %10246 = vmatpush.bf16.msra.mxu2 %v15236_v41  ;;  %v16884_v41 = vor.u32 %v19420_v8, %v16881_v32  ;;  %10122 = vmatmul.bf16.vlgmr.msra.gmra.mxu0 %v24306_v10  ;;  %v15096_v8 = vor.u32 %v18976_v14, %v15095_v61  ;;  %v9915_v32 = vpop.f32.mrf.mxu0  ;;  %v19371_v14 = vld [vmem:[%s29483_s4 + $0xe44] sm:$0xf] }
 0x407   :  { %10209 = vmatpush.bf16.msra.mxu3 %v17416_v18  ;;  %10166 = vmatpush.bf16.msrb.mxu0 %v16856_v27  ;;  %v19399_v18 = vld [vmem:[%s29483_s4 + $0xf24] sm:$0xf] }
 0x408   :  { %v16800_v40 = vor.u32 %v19399_v18, %v16797_v2  ;;  %v19067_v27 = vld [vmem:[%s29483_s4 + $0x4c0] sm:$0xf0]  ;;  %v16713_v18 = vld [vmem:[%s29483_s4 + $0xe94] sm:$0xf0]  ;;  %v16131_v2 = vld [vmem:[%s29483_s4 + $0x9e8] sm:$0xf] }
 0x409   :  { %10185 = vmatpush.bf16.msra.mxu1 %v16912_v11  ;;  %v15459_v11 = vld [vmem:[%s29483_s4 + $0x4a8] sm:$0xf] }
 0x40a   :  { %10247 = vmatpush.bf16.msra.mxu2 %v15208_v62  ;;  %v15124_v62 = vor.u32 %v18983_v56, %v15123_v59  ;;  %v15460_v46 = vor.u32 %v19067_v27, %v15459_v11  ;;  %v16160_v59 = vor.u32 %v19242_v54, %v16159_v44  ;;  %v19378_v56 = vld [vmem:[%s29483_s4 + $0xe7c] sm:$0xf]  ;;  %v16104_v11 = vor.u32 %v19228_v16, %v16103_v19  ;;  %v19364_v27 = vld [vmem:[%s29483_s4 + $0xe0c] sm:$0xf]  ;;  %v18927_v44 = vld [vmem:[%s29483_s4 + $0x60] sm:$0xf0] }
 0x40b   :  { %10210 = vmatpush.bf16.msra.mxu3 %v17388_v49  ;;  %10167 = vmatpush.bf16.msrb.mxu0 %v16828_v4  ;;  %v15040_v49 = vor.u32 %v18962_v25, %v15039_v5  ;;  %v9995_v28 = vpop.f32.mrf.mxu2  ;;  %v18941_v25 = vld [vmem:[%s29483_s4 + $0xd0] sm:$0xf0]  ;;  %v19595_v54 = vld [vmem:[%s29483_s4 + $0x1544] sm:$0xf]  ;;  %v16019_v16 = vld [vmem:[%s29483_s4 + $0x908] sm:$0xf] }
 0x40d   :  { %10186 = vmatpush.bf16.msra.mxu1 %v16884_v41  ;;  %v19060_v41 = vld [vmem:[%s29483_s4 + $0x488] sm:$0xf0] }
 0x40e   :  { %10248 = vmatpush.bf16.msra.mxu2 %v15180_v55  ;;  %v9903_v55 = vadd.f32 %v26376_v1, %v6011_v51  ;;  %v19385_v1 = vld [vmem:[%s29483_s4 + $0xeb4] sm:$0xf]  ;;  %v15432_v5 = vor.u32 %v19060_v41, %v15431_v15  ;;  %v15403_v51 = vld [vmem:[%s29483_s4 + $0x438] sm:$0xf]  ;;  %v9917_v50 = vpop.f32.mrf.mxu0 }
 0x40f   :  { %10211 = vmatpush.bf16.msra.mxu3 %v17360_v37  ;;  %10168 = vmatpush.bf16.msrb.mxu0 %v16800_v40  ;;  %v16744_v4 = vor.u32 %v19385_v1, %v16741_v58  ;;  %v16716_v40 = vor.u32 %v19378_v56, %v16713_v18  ;;  %v14899_v1 = vld [vmem:[%s29483_s4 + $0x48] sm:$0xf]  ;;  %v19214_v18 = vld [vmem:[%s29483_s4 + $0x958] sm:$0xf0] }
 0x410   :  { %10187 = vmatmul.bf16.vlgmr.msra.gmra.mxu1 %v24522_v47  ;;  %v9916_v37 = vadd.f32 %v9915_v32, %v9903_v55  ;;  %v19046_v55 = vld [vmem:[%s29483_s4 + $0x418] sm:$0xf0]  ;;  %v16657_v32 = vld [vmem:[%s29483_s4 + $0xe24] sm:$0xf0]  ;;  %v14900_v56 = vor.u32 %v18927_v44, %v14899_v1  ;;  %v17083_v44 = vld [vmem:[%s29483_s4 + $0x1158] sm:$0xf] }
 0x411   :  { %10231 = vmatpush.bf16.msrb.mxu1 %v15068_v23  ;;  %v26568_v23 = vpop.f32.mrf.mxu1  ;;  %v9954_v12 = vpop.f32.mrf.mxu3  ;;  %v15376_v58 = vor.u32 %v19046_v55, %v15375_v26  ;;  %v16660_v15 = vor.u32 %v19364_v27, %v16657_v32  ;;  %v15711_v27 = vld [vmem:[%s29483_s4 + $0x6a0] sm:$0xf]  ;;  %v19298_v1 = vld [vmem:[%s29483_s4 + $0xbf8] sm:$0xf0] }
 0x412   :  { %10249 = vmatpush.bf16.msra.mxu2 %v15152_v48  ;;  %v18948_v48 = vld [vmem:[%s29483_s4 + $0x108] sm:$0xf0]  ;;  %v9929_v60 = vadd.f32 %v26355_v24, %v9916_v37  ;;  %v16075_v37 = vld [vmem:[%s29483_s4 + $0x978] sm:$0xf] }
 0x413   :  { %10212 = vmatpush.bf16.msra.mxu3 %v17332_v31  ;;  %10169 = vmatpush.bf16.msrb.mxu0 %v16772_v63  ;;  %v14984_v24 = vor.u32 %v18948_v48, %v14983_v9  ;;  %v15347_v9 = vld [vmem:[%s29483_s4 + $0x3c8] sm:$0xf]  ;;  %v19039_v48 = vld [vmem:[%s29483_s4 + $0x3e0] sm:$0xf0] }
 0x414   :  { %v9942_v31 = vadd.f32 %v26243_v34, %v9929_v60  ;;  %v14955_v34 = vld [vmem:[%s29483_s4 + $0xb8] sm:$0xf] }
 0x415   :  { %10232 = vmatpush.bf16.msrb.mxu1 %v15040_v49  ;;  %v14956_v49 = vor.u32 %v18941_v25, %v14955_v34  ;;  %v15963_v34 = vld [vmem:[%s29483_s4 + $0x898] sm:$0xf]  ;;  %v19193_v25 = vld [vmem:[%s29483_s4 + $0x8b0] sm:$0xf0] }
 0x416   :  { %10250 = vmatpush.bf16.msra.mxu2 %v15124_v62  ;;  %10213 = vmatmul.bf16.vlgmr.msra.gmra.mxu3 %v24685_v0  ;;  %v19053_v62 = vld [vmem:[%s29483_s4 + $0x450] sm:$0xf0]  ;;  %v26596_v38 = vadd.f32 %v9954_v12, %v9942_v31  ;;  %v16047_v31 = vld [vmem:[%s29483_s4 + $0x940] sm:$0xf]  ;;  %v15739_v12 = vld [vmem:[%s29483_s4 + $0x6d8] sm:$0xf] }
 0x417   :  { %10257 = vmatpush.bf16.msrb.mxu3 %v15516_v20  ;;  %v19235_v20 = vld [vmem:[%s29483_s4 + $0xa00] sm:$0xf0]  ;;  %10170 = vmatpush.bf16.msrb.mxu0 %v16744_v4  ;;  %v15404_v28 = vor.u32 %v19053_v62, %v15403_v51  ;;  %v14871_v4 = vld [vmem:[%s29483_s4 + $0x10] sm:$0xf]  ;;  %v19032_v62 = vld [vmem:[%s29483_s4 + $0x3a8] sm:$0xf0] }
 0x418   :  { %v16132_v61 = vor.u32 %v19235_v20, %v16131_v2  ;;  %v19588_v2 = vld [vmem:[%s29483_s4 + $0x150c] sm:$0xf]  ;;  %v15348_v20 = vor.u32 %v19039_v48, %v15347_v9  ;;  %v15319_v51 = vld [vmem:[%s29483_s4 + $0x390] sm:$0xf]  ;;  %v15907_v48 = vld [vmem:[%s29483_s4 + $0x828] sm:$0xf] }
 0x419   :  { %10233 = vmatpush.bf16.msrb.mxu1 %v15012_v7  ;;  %v9982_v63 = vpop.f32.mrf.mxu1  ;;  %v19221_v7 = vld [vmem:[%s29483_s4 + $0x990] sm:$0xf0]  ;;  %v9956_v60 = vpop.f32.mrf.mxu3 }
 0x41a   :  { %10251 = vmatpush.bf16.msra.mxu2 %v15096_v8  ;;  %v16688_v8 = vor.u32 %v19371_v14, %v16685_v36  ;;  %v16076_v41 = vor.u32 %v19221_v7, %v16075_v37  ;;  %v16411_v14 = vld [vmem:[%s29483_s4 + $0xc18] sm:$0xf]  ;;  %v19130_v63 = vld [vmem:[%s29483_s4 + $0x6b8] sm:$0xf0]  ;;  %v15991_v37 = vld [vmem:[%s29483_s4 + $0x8d0] sm:$0xf] }
 0x41b   :  { %10258 = vmatpush.bf16.msrb.mxu3 %v15488_v45  ;;  %v14927_v45 = vld [vmem:[%s29483_s4 + $0x80] sm:$0xf]  ;;  %10171 = vmatpush.bf16.msrb.mxu0 %v16716_v40  ;;  %v16048_v40 = vor.u32 %v19214_v18, %v16047_v31  ;;  %v19200_v7 = vld [vmem:[%s29483_s4 + $0x8e8] sm:$0xf0]  ;;  %v19179_v60 = vld [vmem:[%s29483_s4 + $0x840] sm:$0xf0] }
 0x41c   :  { %v19291_v31 = vld [vmem:[%s29483_s4 + $0xbc0] sm:$0xf0] }
 0x41d   :  { %10252 = vmatmul.bf16.vlgmr.msra.gmra.mxu2 %v24090_v53  ;;  %10234 = vmatpush.bf16.msrb.mxu1 %v14984_v24 }
 0x41e   :  { %10296 = vmatpush.bf16.msrb.mxu2 %v16188_v6  ;;  %v14928_v6 = vor.u32 %v18934_v3, %v14927_v45  ;;  %v15964_v45 = vor.u32 %v19193_v25, %v15963_v34  ;;  %v15320_v3 = vor.u32 %v19032_v62, %v15319_v51  ;;  %v15879_v51 = vld [vmem:[%s29483_s4 + $0x7f0] sm:$0xf]  ;;  %v19172_v62 = vld [vmem:[%s29483_s4 + $0x808] sm:$0xf0] }
 0x41f   :  { %10259 = vmatpush.bf16.msrb.mxu3 %v15460_v46  ;;  %v17581_v46 = vld [vmem:[%s29483_s4 + $0x155c] sm:$0xf0]  ;;  %10172 = vmatpush.bf16.msrb.mxu0 %v16688_v8  ;;  %v9967_v18 = vpop.f32.mrf.mxu0 }
 0x420   :  { %v17584_v24 = vor.u32 %v19595_v54, %v17581_v46  ;;  %v26682_v50 = vpop.f32.mrf.mxu2  ;;  %v15935_v8 = vld [vmem:[%s29483_s4 + $0x860] sm:$0xf]  ;;  %v19473_v54 = vld [vmem:[%s29483_s4 + $0x1170] sm:$0xf0]  ;;  %v15712_v46 = vor.u32 %v19130_v63, %v15711_v27  ;;  %v9968_v34 = vadd.f32 %v9967_v18, %v26596_v38 }
 0x421   :  { %10235 = vmatpush.bf16.msrb.mxu1 %v14956_v49  ;;  %v19305_v49 = vld [vmem:[%s29483_s4 + $0xc30] sm:$0xf0] }
 0x422   :  { %10297 = vmatpush.bf16.msrb.mxu2 %v16160_v59  ;;  %v18920_v59 = vld [vmem:[%s29483_s4 + $0x28] sm:$0xf0]  ;;  %v16412_v55 = vor.u32 %v19305_v49, %v16411_v14  ;;  %v9981_v38 = vadd.f32 %v26568_v23, %v9968_v34  ;;  %v16327_v49 = vld [vmem:[%s29483_s4 + $0xb70] sm:$0xf]  ;;  %v19459_v23 = vld [vmem:[%s29483_s4 + $0x1100] sm:$0xf0] }
 0x423   :  { %10260 = vmatpush.bf16.msrb.mxu3 %v15432_v5  ;;  %v17553_v5 = vld [vmem:[%s29483_s4 + $0x1524] sm:$0xf0]  ;;  %10173 = vmatpush.bf16.msrb.mxu0 %v16660_v15  ;;  %v14872_v36 = vor.u32 %v18920_v59, %v14871_v4  ;;  %v19123_v59 = vld [vmem:[%s29483_s4 + $0x680] sm:$0xf0]  ;;  %v19109_v27 = vld [vmem:[%s29483_s4 + $0x610] sm:$0xf0] }
 0x424   :  { %v17556_v19 = vor.u32 %v19588_v2, %v17553_v5  ;;  %v15683_v4 = vld [vmem:[%s29483_s4 + $0x668] sm:$0xf]  ;;  %v15908_v2 = vor.u32 %v19179_v60, %v15907_v48  ;;  %v19466_v5 = vld [vmem:[%s29483_s4 + $0x1138] sm:$0xf0]  ;;  %v19277_v63 = vld [vmem:[%s29483_s4 + $0xb50] sm:$0xf0] }
 0x425   :  { %10236 = vmatpush.bf16.msrb.mxu1 %v14928_v6  ;;  %v16383_v6 = vld [vmem:[%s29483_s4 + $0xbe0] sm:$0xf]  ;;  %v15684_v25 = vor.u32 %v19123_v59, %v15683_v4  ;;  %v19270_v59 = vld [vmem:[%s29483_s4 + $0xb18] sm:$0xf0] }
 0x426   :  { %10298 = vmatpush.bf16.msrb.mxu2 %v16132_v61  ;;  %v19137_v61 = vld [vmem:[%s29483_s4 + $0x6f0] sm:$0xf0]  ;;  %10174 = vmatmul.bf16.vlgmr.msrb.gmra.mxu0 %v24519_v21  ;;  %v16384_v9 = vor.u32 %v19298_v1, %v16383_v6  ;;  %v15599_v60 = vld [vmem:[%s29483_s4 + $0x5c0] sm:$0xf] }
 0x427   :  { %10261 = vmatpush.bf16.msrb.mxu3 %v15404_v28  ;;  %10224 = vmatpush.bf16.msra.mxu0 %v17584_v24  ;;  %v19207_v28 = vld [vmem:[%s29483_s4 + $0x920] sm:$0xf0]  ;;  %v15740_v26 = vor.u32 %v19137_v61, %v15739_v12  ;;  %v16355_v24 = vld [vmem:[%s29483_s4 + $0xba8] sm:$0xf]  ;;  %v19116_v61 = vld [vmem:[%s29483_s4 + $0x648] sm:$0xf0]  ;;  %v9969_v1 = vpop.f32.mrf.mxu0 }
 0x428   :  { %v16020_v32 = vor.u32 %v19207_v28, %v16019_v16  ;;  %v10047_v15 = vpop.f32.mrf.mxu2  ;;  %v16356_v12 = vor.u32 %v19291_v31, %v16355_v24  ;;  %v17027_v16 = vld [vmem:[%s29483_s4 + $0x10e8] sm:$0xf]  ;;  %v16271_v4 = vld [vmem:[%s29483_s4 + $0xb00] sm:$0xf]  ;;  %v16971_v24 = vld [vmem:[%s29483_s4 + $0x1078] sm:$0xf] }
 0x429   :  { %10237 = vmatpush.bf16.msrb.mxu1 %v14900_v56  ;;  %v17084_v56 = vor.u32 %v19473_v54, %v17083_v44  ;;  %v19102_v15 = vld [vmem:[%s29483_s4 + $0x5d8] sm:$0xf0]  ;;  %v19445_v31 = vld [vmem:[%s29483_s4 + $0x1090] sm:$0xf0]  ;;  %v16272_v34 = vor.u32 %v19270_v59, %v16271_v4  ;;  %v17307_v1 = vld [vmem:[%s29483_s4 + $0x1318] sm:$0xf] }
 0x42a   :  { %10299 = vmatpush.bf16.msrb.mxu2 %v16104_v11  ;;  %v19186_v11 = vld [vmem:[%s29483_s4 + $0x878] sm:$0xf0]  ;;  %v16607_v4 = vld [vmem:[%s29483_s4 + $0xda0] sm:$0xf] }
 0x42b   :  { %10262 = vmatpush.bf16.msrb.mxu3 %v15376_v58  ;;  %10225 = vmatpush.bf16.msra.mxu0 %v17556_v19  ;;  %v15936_v58 = vor.u32 %v19186_v11, %v15935_v8  ;;  %v15880_v19 = vor.u32 %v19172_v62, %v15879_v51  ;;  %v15627_v11 = vld [vmem:[%s29483_s4 + $0x5f8] sm:$0xf]  ;;  %v19095_v51 = vld [vmem:[%s29483_s4 + $0x5a0] sm:$0xf0]  ;;  %v16972_v62 = vor.u32 %v19445_v31, %v16971_v24  ;;  %v19354_v59 = vld [vmem:[%s29483_s4 + $0xdb8] sm:$0xf0] }
 0x42c   :  { %v15628_v54 = vor.u32 %v19109_v27, %v15627_v11  ;;  %v19256_v27 = vld [vmem:[%s29483_s4 + $0xaa8] sm:$0xf0]  ;;  %v17279_v31 = vld [vmem:[%s29483_s4 + $0x12e0] sm:$0xf] }
 0x42d   :  { %10238 = vmatpush.bf16.msrb.mxu1 %v14872_v36  ;;  %v19284_v36 = vld [vmem:[%s29483_s4 + $0xb88] sm:$0xf0]  ;;  %v26783_v28 = vpop.f32.mrf.mxu1 }
 0x42e   :  { %10300 = vmatpush.bf16.msrb.mxu2 %v16076_v41  ;;  %v15992_v41 = vor.u32 %v19200_v7, %v15991_v37  ;;  %v16328_v8 = vor.u32 %v19284_v36, %v16327_v49  ;;  %v16999_v7 = vld [vmem:[%s29483_s4 + $0x10b0] sm:$0xf]  ;;  %v16943_v49 = vld [vmem:[%s29483_s4 + $0x1040] sm:$0xf]  ;;  %v19438_v36 = vld [vmem:[%s29483_s4 + $0x1058] sm:$0xf0] }
 0x42f   :  { %10263 = vmatpush.bf16.msrb.mxu3 %v15348_v20  ;;  %10270 = vmatpush.bf16.msrb.mxu0 %v15740_v26  ;;  %v17055_v20 = vld [vmem:[%s29483_s4 + $0x1120] sm:$0xf]  ;;  %v15851_v26 = vld [vmem:[%s29483_s4 + $0x7b8] sm:$0xf]  ;;  %v16944_v11 = vor.u32 %v19438_v36, %v16943_v49  ;;  %v17251_v36 = vld [vmem:[%s29483_s4 + $0x12a8] sm:$0xf] }
 0x430   :  { %10239 = vmatmul.bf16.vlgmr.msrb.gmra.mxu1 %v24088_v43  ;;  %v17056_v14 = vor.u32 %v19466_v5, %v17055_v20  ;;  %v15795_v20 = vld [vmem:[%s29483_s4 + $0x748] sm:$0xf]  ;;  %v19151_v5 = vld [vmem:[%s29483_s4 + $0x760] sm:$0xf0] }
 0x431   :  { %10283 = vmatpush.bf16.msra.mxu1 %v15964_v45  ;;  %v10006_v6 = vpop.f32.mrf.mxu3 }
 0x432   :  { %10301 = vmatpush.bf16.msrb.mxu2 %v16048_v40  ;;  %v15655_v40 = vld [vmem:[%s29483_s4 + $0x630] sm:$0xf] }
 0x433   :  { %10264 = vmatpush.bf16.msrb.mxu3 %v15320_v3  ;;  %10271 = vmatpush.bf16.msrb.mxu0 %v15712_v46  ;;  %v15656_v45 = vor.u32 %v19116_v61, %v15655_v40  ;;  %v9994_v3 = vadd.f32 %v26459_v52, %v9981_v38  ;;  %v17028_v52 = vor.u32 %v19459_v23, %v17027_v16  ;;  %v15823_v46 = vld [vmem:[%s29483_s4 + $0x780] sm:$0xf]  ;;  %v19263_v40 = vld [vmem:[%s29483_s4 + $0xae0] sm:$0xf0]  ;;  %v19144_v16 = vld [vmem:[%s29483_s4 + $0x728] sm:$0xf0] }
 0x434   :  { %v15796_v38 = vor.u32 %v19151_v5, %v15795_v20  ;;  %v15543_v23 = vld [vmem:[%s29483_s4 + $0x550] sm:$0xf]  ;;  %v19424_v5 = vld [vmem:[%s29483_s4 + $0xfe8] sm:$0xf0] }
 0x435   :  { %10284 = vmatpush.bf16.msra.mxu1 %v15936_v58  ;;  %v19452_v58 = vld [vmem:[%s29483_s4 + $0x10c8] sm:$0xf0]  ;;  %v26810_v44 = vadd.f32 %v10006_v6, %v9994_v3  ;;  %v10034_v18 = vpop.f32.mrf.mxu1  ;;  %v16887_v20 = vld [vmem:[%s29483_s4 + $0xfd0] sm:$0xf] }
 0x436   :  { %10302 = vmatpush.bf16.msrb.mxu2 %v16020_v32  ;;  %10265 = vmatmul.bf16.vlgmr.msrb.gmra.mxu3 %v24268_v13  ;;  %v16299_v32 = vld [vmem:[%s29483_s4 + $0xb38] sm:$0xf]  ;;  %v19522_v18 = vld [vmem:[%s29483_s4 + $0x12f8] sm:$0xf0]  ;;  %v16888_v49 = vor.u32 %v19424_v5, %v16887_v20  ;;  %v16719_v5 = vld [vmem:[%s29483_s4 + $0xe80] sm:$0xf] }
 0x437   :  { %10309 = vmatpush.bf16.msra.mxu3 %v16412_v55  ;;  %10272 = vmatpush.bf16.msrb.mxu0 %v15684_v25  ;;  %v19165_v55 = vld [vmem:[%s29483_s4 + $0x7d0] sm:$0xf0]  ;;  %v16300_v48 = vor.u32 %v19277_v63, %v16299_v32  ;;  %v15571_v25 = vld [vmem:[%s29483_s4 + $0x588] sm:$0xf] }
 0x438   :  { %v15852_v37 = vor.u32 %v19165_v55, %v15851_v26  ;;  %17600 = vmatmul.msk.bf16.vlgmr.msra.gmra.mxu0 %vm9551_vm1, %v25005_v17  ;;  %v16859_v26 = vld [vmem:[%s29483_s4 + $0xf98] sm:$0xf]  ;;  %v19417_v55 = vld [vmem:[%s29483_s4 + $0xfb0] sm:$0xf0] }
 0x439   :  { %10285 = vmatpush.bf16.msra.mxu1 %v15908_v2  ;;  %v15600_v2 = vor.u32 %v19102_v15, %v15599_v60  ;;  %v10008_v61 = vpop.f32.mrf.mxu3  ;;  %v19361_v32 = vld [vmem:[%s29483_s4 + $0xdf0] sm:$0xf0]  ;;  %v16831_v60 = vld [vmem:[%s29483_s4 + $0xf60] sm:$0xf]  ;;  %v19410_v15 = vld [vmem:[%s29483_s4 + $0xf78] sm:$0xf0] }
 0x43a   :  { %10303 = vmatpush.bf16.msrb.mxu2 %v15992_v41  ;;  %v17000_v41 = vor.u32 %v19452_v58, %v16999_v7  ;;  %v16860_v58 = vor.u32 %v19417_v55, %v16859_v26  ;;  %v16579_v61 = vld [vmem:[%s29483_s4 + $0xd68] sm:$0xf]  ;;  %v19396_v55 = vld [vmem:[%s29483_s4 + $0xf08] sm:$0xf0] }
 0x43b   :  { %10310 = vmatpush.bf16.msra.mxu3 %v16384_v9  ;;  %10273 = vmatpush.bf16.msrb.mxu0 %v15656_v45  ;;  %v19158_v9 = vld [vmem:[%s29483_s4 + $0x798] sm:$0xf0]  ;;  %v19088_v45 = vld [vmem:[%s29483_s4 + $0x568] sm:$0xf0] }
 0x43c   :  { %v15544_v7 = vor.u32 %v19088_v45, %v15543_v23  ;;  %v16775_v45 = vld [vmem:[%s29483_s4 + $0xef0] sm:$0xf] }
 0x43d   :  { %10304 = vmatmul.bf16.vlgmr.msrb.gmra.mxu2 %v24308_v33  ;;  %10286 = vmatpush.bf16.msra.mxu1 %v15880_v19  ;;  %v15572_v19 = vor.u32 %v19095_v51, %v15571_v25  ;;  %v16608_v25 = vor.u32 %v19354_v59, %v16607_v4  ;;  %v19403_v51 = vld [vmem:[%s29483_s4 + $0xf40] sm:$0xf0]  ;;  %v16523_v59 = vld [vmem:[%s29483_s4 + $0xcf8] sm:$0xf] }
 0x43e   :  { %10348 = vmatpush.bf16.msra.mxu2 %v17084_v56  ;;  %v15824_v56 = vor.u32 %v19158_v9, %v15823_v46  ;;  %v19431_v46 = vld [vmem:[%s29483_s4 + $0x1020] sm:$0xf0] }
 0x43f   :  { %10311 = vmatpush.bf16.msra.mxu3 %v16356_v12  ;;  %10274 = vmatpush.bf16.msrb.mxu0 %v15628_v54  ;;  %v16243_v12 = vld [vmem:[%s29483_s4 + $0xac8] sm:$0xf] }
 0x440   :  { %v16244_v3 = vor.u32 %v19263_v40, %v16243_v12  ;;  %v26892_v63 = vpop.f32.mrf.mxu2  ;;  %v16915_v54 = vld [vmem:[%s29483_s4 + $0x1008] sm:$0xf]  ;;  %v15069_v12 = vld [vmem:[%s29483_s4 + $0x1b4] sm:$0xf0]  ;;  %v17280_v40 = vor.u32 %v19522_v18, %v17279_v31 }
 0x441   :  { %10287 = vmatpush.bf16.msra.mxu1 %v15852_v37  ;;  %v19529_v37 = vld [vmem:[%s29483_s4 + $0x1330] sm:$0xf0]  ;;  %v16916_v24 = vor.u32 %v19431_v46, %v16915_v54  ;;  %v16747_v46 = vld [vmem:[%s29483_s4 + $0xeb8] sm:$0xf] }
 0x442   :  { %10349 = vmatpush.bf16.msra.mxu2 %v17056_v14  ;;  %v15767_v14 = vld [vmem:[%s29483_s4 + $0x710] sm:$0xf]  ;;  %v17195_v31 = vld [vmem:[%s29483_s4 + $0x1238] sm:$0xf] }
 0x443   :  { %10312 = vmatpush.bf16.msra.mxu3 %v16328_v8  ;;  %10275 = vmatpush.bf16.msrb.mxu0 %v15600_v2  ;;  %v16215_v8 = vld [vmem:[%s29483_s4 + $0xa90] sm:$0xf]  ;;  %v15768_v6 = vor.u32 %v19144_v16, %v15767_v14  ;;  %v16832_v2 = vor.u32 %v19410_v15, %v16831_v60  ;;  %v18952_v60 = vld [vmem:[%s29483_s4 + $0x12c] sm:$0xf] }
 0x444   :  { %v16216_v9 = vor.u32 %v19256_v27, %v16215_v8  ;;  %v18959_v8 = vld [vmem:[%s29483_s4 + $0x164] sm:$0xf] }
 0x445   :  { %10288 = vmatpush.bf16.msra.mxu1 %v15824_v56  ;;  %v26918_v56 = vpop.f32.mrf.mxu3 }
 0x446   :  { %10350 = vmatpush.bf16.msra.mxu2 %v17028_v52  ;;  %v16635_v52 = vld [vmem:[%s29483_s4 + $0xdd8] sm:$0xf] }
 0x447   :  { %10313 = vmatpush.bf16.msra.mxu3 %v16300_v48  ;;  %10276 = vmatpush.bf16.msrb.mxu0 %v15572_v19  ;;  %v16636_v48 = vor.u32 %v19361_v32, %v16635_v52  ;;  %v19515_v19 = vld [vmem:[%s29483_s4 + $0x12c0] sm:$0xf0]  ;;  %v16551_v32 = vld [vmem:[%s29483_s4 + $0xd30] sm:$0xf] }
 0x448   :  { %v10099_v14 = vpop.f32.mrf.mxu2  ;;  %v17252_v52 = vor.u32 %v19515_v19, %v17251_v36  ;;  %v16691_v19 = vld [vmem:[%s29483_s4 + $0xe48] sm:$0xf] }
 0x449   :  { %10289 = vmatpush.bf16.msra.mxu1 %v15796_v38  ;;  %v19347_v38 = vld [vmem:[%s29483_s4 + $0xd80] sm:$0xf0]  ;;  %v19494_v14 = vld [vmem:[%s29483_s4 + $0x1218] sm:$0xf0] }
 0x44a   :  { %10351 = vmatpush.bf16.msra.mxu2 %v17000_v41  ;;  %v17308_v41 = vor.u32 %v19529_v37, %v17307_v1  ;;  %v16580_v26 = vor.u32 %v19347_v38, %v16579_v61  ;;  %v17223_v37 = vld [vmem:[%s29483_s4 + $0x1270] sm:$0xf]  ;;  %v19326_v61 = vld [vmem:[%s29483_s4 + $0xcd8] sm:$0xf0]  ;;  %v17167_v38 = vld [vmem:[%s29483_s4 + $0x1200] sm:$0xf] }
 0x44b   :  { %10314 = vmatpush.bf16.msra.mxu3 %v16272_v34  ;;  %10277 = vmatpush.bf16.msrb.mxu0 %v15544_v7  ;;  %v16803_v34 = vld [vmem:[%s29483_s4 + $0xf28] sm:$0xf]  ;;  %v19508_v7 = vld [vmem:[%s29483_s4 + $0x1288] sm:$0xf0] }
 0x44c   :  { %v16804_v16 = vor.u32 %v19403_v51, %v16803_v34  ;;  %v17224_v4 = vor.u32 %v19508_v7, %v17223_v37  ;;  %v19382_v51 = vld [vmem:[%s29483_s4 + $0xe98] sm:$0xf0]  ;;  %v16663_v37 = vld [vmem:[%s29483_s4 + $0xe10] sm:$0xf]  ;;  %v19368_v7 = vld [vmem:[%s29483_s4 + $0xe28] sm:$0xf0] }
 0x44d   :  { %10290 = vmatpush.bf16.msra.mxu1 %v15768_v6  ;;  %v19340_v6 = vld [vmem:[%s29483_s4 + $0xd48] sm:$0xf0]  ;;  %v10060_v1 = vpop.f32.mrf.mxu3 }
 0x44e   :  { %10352 = vmatpush.bf16.msra.mxu2 %v16972_v62  ;;  %v18966_v62 = vld [vmem:[%s29483_s4 + $0x19c] sm:$0xf]  ;;  %10278 = vmatmul.bf16.vlgmr.msrb.gmra.mxu0 %v24278_v30 }
 0x44f   :  { %10315 = vmatpush.bf16.msra.mxu3 %v16244_v3  ;;  %10322 = vmatpush.bf16.msra.mxu0 %v16636_v48  ;;  %v15072_v23 = vor.u32 %v18966_v62, %v15069_v12  ;;  %v10019_v3 = vpop.f32.mrf.mxu0  ;;  %v19389_v48 = vld [vmem:[%s29483_s4 + $0xed0] sm:$0xf0]  ;;  %v14985_v62 = vld [vmem:[%s29483_s4 + $0x10c] sm:$0xf0] }
 0x450   :  { %10291 = vmatmul.bf16.vlgmr.msra.gmra.mxu1 %v24306_v10  ;;  %v10020_v27 = vadd.f32 %v10019_v3, %v26810_v44  ;;  %v14957_v3 = vld [vmem:[%s29483_s4 + $0xd4] sm:$0xf0] }
 0x451   :  { %10335 = vmatpush.bf16.msrb.mxu1 %v16860_v58  ;;  %v16776_v58 = vor.u32 %v19396_v55, %v16775_v45  ;;  %v18938_v45 = vld [vmem:[%s29483_s4 + $0xbc] sm:$0xf] }
 0x452   :  { %10353 = vmatpush.bf16.msra.mxu2 %v16944_v11  ;;  %v15041_v11 = vld [vmem:[%s29483_s4 + $0x17c] sm:$0xf0]  ;;  %v10033_v44 = vadd.f32 %v26783_v28, %v10020_v27  ;;  %v15013_v28 = vld [vmem:[%s29483_s4 + $0x144] sm:$0xf0]  ;;  %v19319_v27 = vld [vmem:[%s29483_s4 + $0xca0] sm:$0xf0]  ;;  %v14960_v1 = vor.u32 %v18938_v45, %v14957_v3 }
 0x453   :  { %10316 = vmatpush.bf16.msra.mxu3 %v16216_v9  ;;  %10323 = vmatpush.bf16.msra.mxu0 %v16608_v25  ;;  %v15044_v54 = vor.u32 %v18959_v8, %v15041_v11  ;;  %v16552_v9 = vor.u32 %v19340_v6, %v16551_v32  ;;  %v15016_v20 = vor.u32 %v18952_v60, %v15013_v28  ;;  %v16467_v11 = vld [vmem:[%s29483_s4 + $0xc88] sm:$0xf]  ;;  %v19487_v32 = vld [vmem:[%s29483_s4 + $0x11e0] sm:$0xf0]  ;;  %v15265_v3 = vld [vmem:[%s29483_s4 + $0x33c] sm:$0xf0] }
 0x454   :  { %v10046_v15 = vadd.f32 %v26682_v50, %v10033_v44  ;;  %v19501_v50 = vld [vmem:[%s29483_s4 + $0x1250] sm:$0xf0]  ;;  %v17168_v8 = vor.u32 %v19494_v14, %v17167_v38  ;;  %v18931_v44 = vld [vmem:[%s29483_s4 + $0x84] sm:$0xf]  ;;  %v17587_v60 = vld [vmem:[%s29483_s4 + $0x1548] sm:$0xf] }
 0x455   :  { %10336 = vmatpush.bf16.msrb.mxu1 %v16832_v2  ;;  %v16748_v2 = vor.u32 %v19389_v48, %v16747_v46  ;;  %v17196_v12 = vor.u32 %v19501_v50, %v17195_v31  ;;  %v16439_v46 = vld [vmem:[%s29483_s4 + $0xc50] sm:$0xf]  ;;  %v19599_v28 = vld [vmem:[%s29483_s4 + $0x1560] sm:$0xf0]  ;;  %v16664_v50 = vor.u32 %v19368_v7, %v16663_v37  ;;  %v19592_v38 = vld [vmem:[%s29483_s4 + $0x1528] sm:$0xf0] }
 0x456   :  { %10354 = vmatpush.bf16.msra.mxu2 %v16916_v24  ;;  %10317 = vmatmul.bf16.vlgmr.msra.gmra.mxu3 %v24493_v35  ;;  %v19333_v24 = vld [vmem:[%s29483_s4 + $0xd10] sm:$0xf0]  ;;  %v27014_v18 = vadd.f32 %v26918_v56, %v10046_v15  ;;  %v17111_v15 = vld [vmem:[%s29483_s4 + $0x1190] sm:$0xf]  ;;  %v17503_v14 = vld [vmem:[%s29483_s4 + $0x14a0] sm:$0xf] }
 0x457   :  { %10361 = vmatpush.bf16.msrb.mxu3 %v17308_v41  ;;  %10324 = vmatpush.bf16.msra.mxu0 %v16580_v26  ;;  %v26999_v41 = vpop.f32.mrf.mxu1  ;;  %v10021_v34 = vpop.f32.mrf.mxu0  ;;  %v16524_v25 = vor.u32 %v19333_v24, %v16523_v59  ;;  %v18945_v56 = vld [vmem:[%s29483_s4 + $0xf4] sm:$0xf]  ;;  %v17531_v59 = vld [vmem:[%s29483_s4 + $0x14d8] sm:$0xf]  ;;  %v19015_v45 = vld [vmem:[%s29483_s4 + $0x324] sm:$0xf] }
 0x458   :  { %v14988_v36 = vor.u32 %v18945_v56, %v14985_v62  ;;  %v19585_v24 = vld [vmem:[%s29483_s4 + $0x14f0] sm:$0xf0]  ;;  %v14901_v56 = vld [vmem:[%s29483_s4 + $0x64] sm:$0xf0]  ;;  %v15268_v37 = vor.u32 %v19015_v45, %v15265_v3  ;;  %v19571_v7 = vld [vmem:[%s29483_s4 + $0x1480] sm:$0xf0] }
 0x459   :  { %10337 = vmatpush.bf16.msrb.mxu1 %v16804_v16  ;;  %v27052_v55 = vpop.f32.mrf.mxu3  ;;  %v18994_v45 = vld [vmem:[%s29483_s4 + $0x27c] sm:$0xf]  ;;  %v15181_v3 = vld [vmem:[%s29483_s4 + $0x294] sm:$0xf0] }
 0x45a   :  { %10355 = vmatpush.bf16.msra.mxu2 %v16888_v49  ;;  %v16720_v49 = vor.u32 %v19382_v51, %v16719_v5  ;;  %v15293_v5 = vld [vmem:[%s29483_s4 + $0x374] sm:$0xf0]  ;;  %v18924_v51 = vld [vmem:[%s29483_s4 + $0x4c] sm:$0xf] }
 0x45b   :  { %10362 = vmatpush.bf16.msrb.mxu3 %v17280_v40  ;;  %10325 = vmatpush.bf16.msra.mxu0 %v16552_v9  ;;  %v16495_v40 = vld [vmem:[%s29483_s4 + $0xcc0] sm:$0xf]  ;;  %v19312_v9 = vld [vmem:[%s29483_s4 + $0xc68] sm:$0xf0] }
 0x45c   :  { %v16496_v16 = vor.u32 %v19326_v61, %v16495_v40  ;;  %v16440_v34 = vor.u32 %v19312_v9, %v16439_v46  ;;  %v17532_v40 = vor.u32 %v19585_v24, %v17531_v59  ;;  %v17559_v61 = vld [vmem:[%s29483_s4 + $0x1510] sm:$0xf]  ;;  %v6012_v46 = vperm.slane %v26498_v57, 3  ;;  %v19183_v57 = vld [vmem:[%s29483_s4 + $0x864] sm:$0xf] }
 0x45d   :  { %10356 = vmatmul.bf16.vlgmr.msra.gmra.mxu2 %v24522_v47  ;;  %10338 = vmatpush.bf16.msrb.mxu1 %v16776_v58  ;;  %v16468_v58 = vor.u32 %v19319_v27, %v16467_v11  ;;  %v14873_v11 = vld [vmem:[%s29483_s4 + $0x2c] sm:$0xf0]  ;;  %v15937_v59 = vld [vmem:[%s29483_s4 + $0x87c] sm:$0xf0] }
 0x45e   :  { %10400 = vmatpush.bf16.msrb.mxu2 %v15072_v23  ;;  %v19375_v23 = vld [vmem:[%s29483_s4 + $0xe60] sm:$0xf0]  ;;  %v17447_v24 = vld [vmem:[%s29483_s4 + $0x1430] sm:$0xf] }
 0x45f   :  { %10363 = vmatpush.bf16.msrb.mxu3 %v17252_v52  ;;  %10326 = vmatpush.bf16.msra.mxu0 %v16524_v25  ;;  %v10086_v26 = vpop.f32.mrf.mxu1  ;;  %v17139_v52 = vld [vmem:[%s29483_s4 + $0x11c8] sm:$0xf]  ;;  %v16692_v6 = vor.u32 %v19375_v23, %v16691_v19  ;;  %v17588_v25 = vor.u32 %v19599_v28, %v17587_v60  ;;  %v19134_v19 = vld [vmem:[%s29483_s4 + $0x6dc] sm:$0xf]  ;;  %v14904_v23 = vor.u32 %v18924_v51, %v14901_v56  ;;  %v19001_v51 = vld [vmem:[%s29483_s4 + $0x2b4] sm:$0xf] }
 0x460   :  { %v17140_v48 = vor.u32 %v19487_v32, %v17139_v52  ;;  %v27102_v31 = vpop.f32.mrf.mxu2  ;;  %v17560_v26 = vor.u32 %v19592_v38, %v17559_v61  ;;  %v19190_v32 = vld [vmem:[%s29483_s4 + $0x89c] sm:$0xf]  ;;  %v15237_v60 = vld [vmem:[%s29483_s4 + $0x304] sm:$0xf0]  ;;  %v15209_v56 = vld [vmem:[%s29483_s4 + $0x2cc] sm:$0xf0] }
 0x461   :  { %10339 = vmatpush.bf16.msrb.mxu1 %v16748_v2  ;;  %v10112_v62 = vpop.f32.mrf.mxu3  ;;  %v19176_v38 = vld [vmem:[%s29483_s4 + $0x82c] sm:$0xf] }
 0x462   :  { %10401 = vmatpush.bf16.msrb.mxu2 %v15044_v54  ;;  %v14929_v54 = vld [vmem:[%s29483_s4 + $0x9c] sm:$0xf0]  ;;  %v15940_v62 = vor.u32 %v19183_v57, %v15937_v59  ;;  %v19543_v59 = vld [vmem:[%s29483_s4 + $0x13a0] sm:$0xf0] }
 0x463   :  { %10364 = vmatpush.bf16.msrb.mxu3 %v17224_v4  ;;  %10327 = vmatpush.bf16.msra.mxu0 %v16496_v16  ;;  %v19480_v4 = vld [vmem:[%s29483_s4 + $0x11a8] sm:$0xf0]  ;;  %v14932_v2 = vor.u32 %v18931_v44, %v14929_v54  ;;  %v15741_v16 = vld [vmem:[%s29483_s4 + $0x6f4] sm:$0xf0]  ;;  %v19127_v44 = vld [vmem:[%s29483_s4 + $0x6a4] sm:$0xf] }
 0x464   :  { %v15744_v52 = vor.u32 %v19134_v19, %v15741_v16  ;;  %v19113_v19 = vld [vmem:[%s29483_s4 + $0x634] sm:$0xf]  ;;  %v15657_v16 = vld [vmem:[%s29483_s4 + $0x64c] sm:$0xf0] }
 0x465   :  { %10340 = vmatpush.bf16.msrb.mxu1 %v16720_v49 }
 0x466   :  { %10402 = vmatpush.bf16.msrb.mxu2 %v15016_v20  ;;  %v19022_v20 = vld [vmem:[%s29483_s4 + $0x35c] sm:$0xf] }
 0x467   :  { %10365 = vmatpush.bf16.msrb.mxu3 %v17196_v12  ;;  %10328 = vmatpush.bf16.msra.mxu0 %v16468_v58  ;;  %v17112_v12 = vor.u32 %v19480_v4, %v17111_v15  ;;  %v15296_v49 = vor.u32 %v19022_v20, %v15293_v5  ;;  %v15713_v58 = vld [vmem:[%s29483_s4 + $0x6bc] sm:$0xf0]  ;;  %v19564_v20 = vld [vmem:[%s29483_s4 + $0x1448] sm:$0xf0] }
 0x468   :  { %v10151_v54 = vpop.f32.mrf.mxu2  ;;  %v15716_v4 = vor.u32 %v19127_v44, %v15713_v58  ;;  %v19120_v5 = vld [vmem:[%s29483_s4 + $0x66c] sm:$0xf]  ;;  %v19106_v44 = vld [vmem:[%s29483_s4 + $0x5fc] sm:$0xf]  ;;  %v15629_v58 = vld [vmem:[%s29483_s4 + $0x614] sm:$0xf0] }
 0x469   :  { %10341 = vmatpush.bf16.msrb.mxu1 %v16692_v6  ;;  %v15965_v6 = vld [vmem:[%s29483_s4 + $0x8b4] sm:$0xf0]  ;;  %v15153_v54 = vld [vmem:[%s29483_s4 + $0x25c] sm:$0xf0] }
 0x46a   :  { %10403 = vmatpush.bf16.msrb.mxu2 %v14988_v36  ;;  %v19578_v36 = vld [vmem:[%s29483_s4 + $0x14b8] sm:$0xf0]  ;;  %v15968_v28 = vor.u32 %v19190_v32, %v15965_v6  ;;  %v15881_v32 = vld [vmem:[%s29483_s4 + $0x80c] sm:$0xf0]  ;;  %v17391_v6 = vld [vmem:[%s29483_s4 + $0x13c0] sm:$0xf] }
 0x46b   :  { %10366 = vmatpush.bf16.msrb.mxu3 %v17168_v8  ;;  %10329 = vmatpush.bf16.msra.mxu0 %v16440_v34  ;;  %v18917_v8 = vld [vmem:[%s29483_s4 + $0x14] sm:$0xf]  ;;  %v17504_v27 = vor.u32 %v19578_v36, %v17503_v14  ;;  %v15685_v34 = vld [vmem:[%s29483_s4 + $0x684] sm:$0xf0] }
 0x46c   :  { %v14876_v9 = vor.u32 %v18917_v8, %v14873_v11  ;;  %v15688_v61 = vor.u32 %v19120_v5, %v15685_v34  ;;  %v15909_v14 = vld [vmem:[%s29483_s4 + $0x844] sm:$0xf0]  ;;  %v19557_v36 = vld [vmem:[%s29483_s4 + $0x1410] sm:$0xf0] }
 0x46d   :  { %10342 = vmatpush.bf16.msrb.mxu1 %v16664_v50  ;;  %v10071_v50 = vpop.f32.mrf.mxu0  ;;  %v15912_v8 = vor.u32 %v19176_v38, %v15909_v14  ;;  %v15125_v5 = vld [vmem:[%s29483_s4 + $0x224] sm:$0xf0]  ;;  %v19092_v38 = vld [vmem:[%s29483_s4 + $0x58c] sm:$0xf] }
 0x46e   :  { %10404 = vmatpush.bf16.msrb.mxu2 %v14960_v1  ;;  %v17475_v1 = vld [vmem:[%s29483_s4 + $0x1468] sm:$0xf]  ;;  %10330 = vmatmul.bf16.vlgmr.msra.gmra.mxu0 %v24495_v29 }
 0x46f   :  { %10367 = vmatpush.bf16.msrb.mxu3 %v17140_v48  ;;  %10374 = vmatpush.bf16.msrb.mxu0 %v17532_v40  ;;  %v19008_v48 = vld [vmem:[%s29483_s4 + $0x2ec] sm:$0xf]  ;;  %v17476_v15 = vor.u32 %v19571_v7, %v17475_v1  ;;  %v17448_v40 = vor.u32 %v19564_v20, %v17447_v24  ;;  %v19550_v7 = vld [vmem:[%s29483_s4 + $0x13d8] sm:$0xf0]  ;;  %v19099_v24 = vld [vmem:[%s29483_s4 + $0x5c4] sm:$0xf] }
 0x470   :  { %10343 = vmatmul.bf16.vlgmr.msrb.gmra.mxu1 %v24519_v21  ;;  %v18980_v20 = vld [vmem:[%s29483_s4 + $0x20c] sm:$0xf]  ;;  %v15573_v14 = vld [vmem:[%s29483_s4 + $0x5a4] sm:$0xf0] }
 0x471   :  { %10393 = vmatpush.bf16.msra.mxu1 %v17588_v25  ;;  %v10072_v25 = vadd.f32 %v10071_v50, %v6012_v46  ;;  %v15601_v50 = vld [vmem:[%s29483_s4 + $0x5dc] sm:$0xf0] }
 0x472   :  { %10405 = vmatpush.bf16.msrb.mxu2 %v14932_v2  ;;  %v15240_v2 = vor.u32 %v19008_v48, %v15237_v60  ;;  %v15632_v48 = vor.u32 %v19106_v44, %v15629_v58  ;;  %v19162_v60 = vld [vmem:[%s29483_s4 + $0x7bc] sm:$0xf]  ;;  %v19071_v44 = vld [vmem:[%s29483_s4 + $0x4e4] sm:$0xf] }
 0x473   :  { %10368 = vmatpush.bf16.msrb.mxu3 %v17112_v12  ;;  %10375 = vmatpush.bf16.msrb.mxu0 %v17504_v27  ;;  %v10085_v12 = vadd.f32 %v26999_v41, %v10072_v25  ;;  %v15212_v41 = vor.u32 %v19001_v51, %v15209_v56  ;;  %v15660_v27 = vor.u32 %v19113_v19, %v15657_v16  ;;  %v19155_v25 = vld [vmem:[%s29483_s4 + $0x784] sm:$0xf]  ;;  %v15517_v19 = vld [vmem:[%s29483_s4 + $0x534] sm:$0xf0] }
 0x474   :  { %v15604_v56 = vor.u32 %v19099_v24, %v15601_v50  ;;  %v19414_v50 = vld [vmem:[%s29483_s4 + $0xf9c] sm:$0xf] }
 0x475   :  { %10394 = vmatpush.bf16.msra.mxu1 %v17560_v26  ;;  %v10098_v26 = vadd.f32 %v26892_v63, %v10085_v12  ;;  %v10073_v1 = vpop.f32.mrf.mxu0  ;;  %v17335_v12 = vld [vmem:[%s29483_s4 + $0x1350] sm:$0xf] }
 0x476   :  { %10406 = vmatpush.bf16.msrb.mxu2 %v14904_v23  ;;  %10369 = vmatmul.bf16.vlgmr.msrb.gmra.mxu3 %v24683_v39  ;;  %v27218_v23 = vpop.f32.mrf.mxu1 }
 0x477   :  { %10413 = vmatpush.bf16.msra.mxu3 %v15296_v49  ;;  %10376 = vmatpush.bf16.msrb.mxu0 %v17476_v15  ;;  %v17419_v49 = vld [vmem:[%s29483_s4 + $0x13f8] sm:$0xf]  ;;  %v27237_v63 = vadd.f32 %v27052_v55, %v10098_v26  ;;  %v18987_v55 = vld [vmem:[%s29483_s4 + $0x244] sm:$0xf]  ;;  %v17363_v15 = vld [vmem:[%s29483_s4 + $0x1388] sm:$0xf] }
 0x478   :  { %v17420_v11 = vor.u32 %v19557_v36, %v17419_v49  ;;  %v15156_v57 = vor.u32 %v18987_v55, %v15153_v54  ;;  %v17364_v51 = vor.u32 %v19543_v59, %v17363_v15  ;;  %v18973_v49 = vld [vmem:[%s29483_s4 + $0x1d4] sm:$0xf]  ;;  %v19078_v36 = vld [vmem:[%s29483_s4 + $0x51c] sm:$0xf]  ;;  %v16189_v26 = vld [vmem:[%s29483_s4 + $0xa74] sm:$0xf0] }
 0x479   :  { %10439 = vmatpush.bf16.msrb.mxu1 %v15744_v52  ;;  %v19169_v52 = vld [vmem:[%s29483_s4 + $0x7f4] sm:$0xf]  ;;  %v15520_v1 = vor.u32 %v19078_v36, %v15517_v19  ;;  %v15489_v55 = vld [vmem:[%s29483_s4 + $0x4fc] sm:$0xf0]  ;;  %v19358_v54 = vld [vmem:[%s29483_s4 + $0xddc] sm:$0xf] }
 0x47a   :  { %10407 = vmatpush.bf16.msrb.mxu2 %v14876_v9  ;;  %v15884_v46 = vor.u32 %v19169_v52, %v15881_v32  ;;  %v17392_v9 = vor.u32 %v19550_v7, %v17391_v6  ;;  %v15797_v52 = vld [vmem:[%s29483_s4 + $0x764] sm:$0xf0]  ;;  %v15545_v7 = vld [vmem:[%s29483_s4 + $0x56c] sm:$0xf0]  ;;  %v19141_v15 = vld [vmem:[%s29483_s4 + $0x714] sm:$0xf]  ;;  %v15492_v59 = vor.u32 %v19071_v44, %v15489_v55 }
 0x47b   :  { %10414 = vmatpush.bf16.msra.mxu3 %v15268_v37  ;;  %10377 = vmatpush.bf16.msrb.mxu0 %v17448_v40  ;;  %v15184_v37 = vor.u32 %v18994_v45, %v15181_v3  ;;  %v19536_v40 = vld [vmem:[%s29483_s4 + $0x1368] sm:$0xf0]  ;;  %v19246_v3 = vld [vmem:[%s29483_s4 + $0xa5c] sm:$0xf]  ;;  %v19057_v36 = vld [vmem:[%s29483_s4 + $0x474] sm:$0xf] }
 0x47c   :  { %v16192_v58 = vor.u32 %v19246_v3, %v16189_v26  ;;  %v15433_v3 = vld [vmem:[%s29483_s4 + $0x48c] sm:$0xf0]  ;;  %v19344_v26 = vld [vmem:[%s29483_s4 + $0xd6c] sm:$0xf]  ;;  %v19050_v44 = vld [vmem:[%s29483_s4 + $0x43c] sm:$0xf] }
 0x47d   :  { %10440 = vmatpush.bf16.msrb.mxu1 %v15716_v4  ;;  %10408 = vmatmul.bf16.vlgmr.msrb.gmra.mxu2 %v24088_v43  ;;  %v27265_v4 = vpop.f32.mrf.mxu3  ;;  %v19337_v55 = vld [vmem:[%s29483_s4 + $0xd34] sm:$0xf] }
 0x47e   :  { %10452 = vmatpush.bf16.msra.mxu2 %v15968_v28  ;;  %v15853_v28 = vld [vmem:[%s29483_s4 + $0x7d4] sm:$0xf0] }
 0x47f   :  { %10415 = vmatpush.bf16.msra.mxu3 %v15240_v2  ;;  %10378 = vmatpush.bf16.msrb.mxu0 %v17420_v11  ;;  %v10138_v2 = vpop.f32.mrf.mxu1  ;;  %v15856_v34 = vor.u32 %v19162_v60, %v15853_v28  ;;  %v15576_v11 = vor.u32 %v19092_v38, %v15573_v14  ;;  %v16161_v60 = vld [vmem:[%s29483_s4 + $0xa3c] sm:$0xf0] }
 0x480   :  { %17601 = vmatmul.msk.bf16.vlgmr.msra.gmra.mxu1 %vm9551_vm1, %v25005_v17  ;;  %v27312_v16 = vpop.f32.mrf.mxu2  ;;  %v16861_v2 = vld [vmem:[%s29483_s4 + $0xfb4] sm:$0xf0] }
 0x481   :  { %10441 = vmatpush.bf16.msrb.mxu1 %v15688_v61  ;;  %v15128_v61 = vor.u32 %v18980_v20, %v15125_v5  ;;  %v19064_v20 = vld [vmem:[%s29483_s4 + $0x4ac] sm:$0xf] }
 0x482   :  { %10453 = vmatpush.bf16.msra.mxu2 %v15940_v62  ;;  %v15825_v62 = vld [vmem:[%s29483_s4 + $0x79c] sm:$0xf0] }
 0x483   :  { %10416 = vmatpush.bf16.msra.mxu3 %v15212_v41  ;;  %10379 = vmatpush.bf16.msrb.mxu0 %v17392_v9  ;;  %v15097_v41 = vld [vmem:[%s29483_s4 + $0x1ec] sm:$0xf0]  ;;  %v15828_v45 = vor.u32 %v19155_v25, %v15825_v62  ;;  %v19351_v25 = vld [vmem:[%s29483_s4 + $0xda4] sm:$0xf]  ;;  %v10123_v19 = vpop.f32.mrf.mxu0 }
 0x484   :  { %v15100_v6 = vor.u32 %v18973_v49, %v15097_v41  ;;  %v19407_v49 = vld [vmem:[%s29483_s4 + $0xf64] sm:$0xf]  ;;  %v16833_v41 = vld [vmem:[%s29483_s4 + $0xf7c] sm:$0xf0] }
 0x485   :  { %10442 = vmatpush.bf16.msrb.mxu1 %v15660_v27  ;;  %v19148_v27 = vld [vmem:[%s29483_s4 + $0x74c] sm:$0xf]  ;;  %v10164_v32 = vpop.f32.mrf.mxu3 }
 0x486   :  { %10454 = vmatpush.bf16.msra.mxu2 %v15912_v8  ;;  %v17336_v8 = vor.u32 %v19536_v40, %v17335_v12  ;;  %v15800_v9 = vor.u32 %v19148_v27, %v15797_v52  ;;  %v19232_v12 = vld [vmem:[%s29483_s4 + $0x9ec] sm:$0xf]  ;;  %v16133_v40 = vld [vmem:[%s29483_s4 + $0xa04] sm:$0xf0]  ;;  %v19225_v27 = vld [vmem:[%s29483_s4 + $0x9b4] sm:$0xf]  ;;  %v16836_v32 = vor.u32 %v19407_v49, %v16833_v41 }
 0x487   :  { %10417 = vmatpush.bf16.msra.mxu3 %v15184_v37  ;;  %10380 = vmatpush.bf16.msrb.mxu0 %v17364_v51  ;;  %v19085_v37 = vld [vmem:[%s29483_s4 + $0x554] sm:$0xf]  ;;  %v16609_v51 = vld [vmem:[%s29483_s4 + $0xdbc] sm:$0xf0]  ;;  %v16105_v52 = vld [vmem:[%s29483_s4 + $0x9cc] sm:$0xf0] }
 0x488   :  { %v15548_v28 = vor.u32 %v19085_v37, %v15545_v7  ;;  %v16612_v14 = vor.u32 %v19351_v25, %v16609_v51  ;;  %v16805_v7 = vld [vmem:[%s29483_s4 + $0xf44] sm:$0xf0]  ;;  %v16525_v25 = vld [vmem:[%s29483_s4 + $0xd14] sm:$0xf0]  ;;  %v16049_v51 = vld [vmem:[%s29483_s4 + $0x95c] sm:$0xf0] }
 0x489   :  { %10443 = vmatpush.bf16.msrb.mxu1 %v15632_v48  ;;  %v19239_v48 = vld [vmem:[%s29483_s4 + $0xa24] sm:$0xf]  ;;  %v15349_v41 = vld [vmem:[%s29483_s4 + $0x3e4] sm:$0xf0] }
 0x48a   :  { %10455 = vmatpush.bf16.msra.mxu2 %v15884_v46  ;;  %v16637_v46 = vld [vmem:[%s29483_s4 + $0xdf4] sm:$0xf0]  ;;  %v16164_v5 = vor.u32 %v19239_v48, %v16161_v60 }
 0x48b   :  { %10418 = vmatpush.bf16.msra.mxu3 %v15156_v57  ;;  %10381 = vmatpush.bf16.msrb.mxu0 %v17336_v8  ;;  %v15769_v57 = vld [vmem:[%s29483_s4 + $0x72c] sm:$0xf0]  ;;  %v16640_v24 = vor.u32 %v19358_v54, %v16637_v46  ;;  %v16581_v8 = vld [vmem:[%s29483_s4 + $0xd84] sm:$0xf0]  ;;  %v16077_v48 = vld [vmem:[%s29483_s4 + $0x994] sm:$0xf0] }
 0x48c   :  { %v15772_v62 = vor.u32 %v19141_v15, %v15769_v57  ;;  %v16584_v37 = vor.u32 %v19344_v26, %v16581_v8  ;;  %v16553_v54 = vld [vmem:[%s29483_s4 + $0xd4c] sm:$0xf0]  ;;  %v16021_v26 = vld [vmem:[%s29483_s4 + $0x924] sm:$0xf0] }
 0x48d   :  { %10444 = vmatpush.bf16.msrb.mxu1 %v15604_v56  ;;  %v10203_v56 = vpop.f32.mrf.mxu2  ;;  %v27428_v46 = vpop.f32.mrf.mxu1  ;;  %v16556_v57 = vor.u32 %v19337_v55, %v16553_v54  ;;  %v16413_v55 = vld [vmem:[%s29483_s4 + $0xc34] sm:$0xf0] }
 0x48e   :  { %10456 = vmatpush.bf16.msra.mxu2 %v15856_v34  ;;  %v15461_v34 = vld [vmem:[%s29483_s4 + $0x4c4] sm:$0xf0]  ;;  %10382 = vmatmul.bf16.vlgmr.msrb.gmra.mxu0 %v24685_v0 }
 0x48f   :  { %10419 = vmatpush.bf16.msra.mxu3 %v15128_v61  ;;  %10426 = vmatpush.bf16.msra.mxu0 %v15520_v1  ;;  %v16864_v61 = vor.u32 %v19414_v50, %v16861_v2  ;;  %v15464_v38 = vor.u32 %v19064_v20, %v15461_v34  ;;  %v15436_v1 = vor.u32 %v19057_v36, %v15433_v3  ;;  %v19043_v50 = vld [vmem:[%s29483_s4 + $0x404] sm:$0xf]  ;;  %v10125_v2 = vpop.f32.mrf.mxu0  ;;  %v19330_v34 = vld [vmem:[%s29483_s4 + $0xcfc] sm:$0xf]  ;;  %v19204_v3 = vld [vmem:[%s29483_s4 + $0x90c] sm:$0xf] }
 0x490   :  { %v19323_v36 = vld [vmem:[%s29483_s4 + $0xcc4] sm:$0xf] }
 0x491   :  { %10445 = vmatpush.bf16.msrb.mxu1 %v15576_v11  ;;  %v10124_v11 = vadd.f32 %v10123_v19, %v27237_v63  ;;  %v19400_v63 = vld [vmem:[%s29483_s4 + $0xf2c] sm:$0xf]  ;;  %v16497_v19 = vld [vmem:[%s29483_s4 + $0xcdc] sm:$0xf0] }
 0x492   :  { %10457 = vmatpush.bf16.msra.mxu2 %v15828_v45  ;;  %v16136_v45 = vor.u32 %v19232_v12, %v16133_v40  ;;  %v16528_v12 = vor.u32 %v19330_v34, %v16525_v25  ;;  %v19386_v40 = vld [vmem:[%s29483_s4 + $0xebc] sm:$0xf]  ;;  %v19295_v34 = vld [vmem:[%s29483_s4 + $0xbe4] sm:$0xf] }
 0x493   :  { %10420 = vmatpush.bf16.msra.mxu3 %v15100_v6  ;;  %10427 = vmatpush.bf16.msra.mxu0 %v15492_v59  ;;  %v10137_v6 = vadd.f32 %v27218_v23, %v10124_v11  ;;  %v16108_v23 = vor.u32 %v19225_v27, %v16105_v52  ;;  %v19393_v59 = vld [vmem:[%s29483_s4 + $0xef4] sm:$0xf]  ;;  %v19379_v11 = vld [vmem:[%s29483_s4 + $0xe84] sm:$0xf]  ;;  %v16500_v52 = vor.u32 %v19323_v36, %v16497_v19  ;;  %v19596_v19 = vld [vmem:[%s29483_s4 + $0x154c] sm:$0xf] }
 0x495   :  { %10446 = vmatpush.bf16.msrb.mxu1 %v15548_v28  ;;  %v10150_v60 = vadd.f32 %v27102_v31, %v10137_v6  ;;  %v16808_v28 = vor.u32 %v19400_v63, %v16805_v7  ;;  %v19029_v6 = vld [vmem:[%s29483_s4 + $0x394] sm:$0xf]  ;;  %v19316_v63 = vld [vmem:[%s29483_s4 + $0xc8c] sm:$0xf]  ;;  %v16469_v7 = vld [vmem:[%s29483_s4 + $0xca4] sm:$0xf0] }
 0x496   :  { %10458 = vmatpush.bf16.msra.mxu2 %v15800_v9  ;;  %10421 = vmatmul.bf16.vlgmr.msra.gmra.mxu3 %v24090_v53  ;;  %v19218_v9 = vld [vmem:[%s29483_s4 + $0x97c] sm:$0xf] }
 0x497   :  { %10465 = vmatpush.bf16.msrb.mxu3 %v16192_v58  ;;  %10428 = vmatpush.bf16.msra.mxu0 %v15464_v38  ;;  %v15405_v58 = vld [vmem:[%s29483_s4 + $0x454] sm:$0xf0]  ;;  %v27447_v31 = vadd.f32 %v27265_v4, %v10150_v60  ;;  %v16080_v20 = vor.u32 %v19218_v9, %v16077_v48  ;;  %v19211_v4 = vld [vmem:[%s29483_s4 + $0x944] sm:$0xf]  ;;  %v19036_v38 = vld [vmem:[%s29483_s4 + $0x3cc] sm:$0xf] }
 0x498   :  { %10447 = vmatmul.bf16.vlgmr.msrb.gmra.mxu1 %v24278_v30  ;;  %v15408_v15 = vor.u32 %v19050_v44, %v15405_v58  ;;  %v16052_v49 = vor.u32 %v19211_v4, %v16049_v51  ;;  %v15352_v27 = vor.u32 %v19036_v38, %v15349_v41  ;;  %v19197_v44 = vld [vmem:[%s29483_s4 + $0x8d4] sm:$0xf]  ;;  %v19302_v58 = vld [vmem:[%s29483_s4 + $0xc1c] sm:$0xf]  ;;  %v17085_v60 = vld [vmem:[%s29483_s4 + $0x1174] sm:$0xf0] }
 0x499   :  { %10491 = vmatpush.bf16.msra.mxu1 %v16640_v24  ;;  %v16777_v24 = vld [vmem:[%s29483_s4 + $0xf0c] sm:$0xf0]  ;;  %v19470_v48 = vld [vmem:[%s29483_s4 + $0x115c] sm:$0xf]  ;;  %v16416_v2 = vor.u32 %v19302_v58, %v16413_v55  ;;  %v16385_v4 = vld [vmem:[%s29483_s4 + $0xbfc] sm:$0xf0] }
 0x49a   :  { %10459 = vmatpush.bf16.msra.mxu2 %v15772_v62  ;;  %v16780_v56 = vor.u32 %v19393_v59, %v16777_v24  ;;  %v16693_v59 = vld [vmem:[%s29483_s4 + $0xe64] sm:$0xf0]  ;;  %v17088_v25 = vor.u32 %v19470_v48, %v17085_v60  ;;  %v19582_v51 = vld [vmem:[%s29483_s4 + $0x14dc] sm:$0xf]  ;;  %v19365_v38 = vld [vmem:[%s29483_s4 + $0xe14] sm:$0xf]  ;;  %v16388_v41 = vor.u32 %v19295_v34, %v16385_v4 }
 0x49b   :  { %10466 = vmatpush.bf16.msrb.mxu3 %v16164_v5  ;;  %10429 = vmatpush.bf16.msra.mxu0 %v15436_v1  ;;  %v15377_v5 = vld [vmem:[%s29483_s4 + $0x41c] sm:$0xf0]  ;;  %v15321_v1 = vld [vmem:[%s29483_s4 + $0x3ac] sm:$0xf0]  ;;  %v19281_v58 = vld [vmem:[%s29483_s4 + $0xb74] sm:$0xf] }
 0x49c   :  { %v15380_v62 = vor.u32 %v19043_v50, %v15377_v5  ;;  %v16441_v5 = vld [vmem:[%s29483_s4 + $0xc6c] sm:$0xf0]  ;;  %v19568_v60 = vld [vmem:[%s29483_s4 + $0x146c] sm:$0xf]  ;;  %v19274_v4 = vld [vmem:[%s29483_s4 + $0xb3c] sm:$0xf] }
 0x49d   :  { %10492 = vmatpush.bf16.msra.mxu1 %v16612_v14  ;;  %10460 = vmatmul.bf16.vlgmr.msra.gmra.mxu2 %v24306_v10  ;;  %v27473_v14 = vpop.f32.mrf.mxu3  ;;  %v16329_v55 = vld [vmem:[%s29483_s4 + $0xb8c] sm:$0xf0] }
 0x49e   :  { %10504 = vmatpush.bf16.msrb.mxu2 %v16864_v61  ;;  %v16749_v61 = vld [vmem:[%s29483_s4 + $0xed4] sm:$0xf0]  ;;  %v16332_v34 = vor.u32 %v19281_v58, %v16329_v55  ;;  %v16245_v58 = vld [vmem:[%s29483_s4 + $0xae4] sm:$0xf0] }
 0x49f   :  { %10467 = vmatpush.bf16.msrb.mxu3 %v16136_v45  ;;  %10430 = vmatpush.bf16.msra.mxu0 %v15408_v15  ;;  %v10190_v45 = vpop.f32.mrf.mxu1  ;;  %v16752_v8 = vor.u32 %v19386_v40, %v16749_v61  ;;  %v16472_v15 = vor.u32 %v19316_v63, %v16469_v7  ;;  %v17057_v40 = vld [vmem:[%s29483_s4 + $0x113c] sm:$0xf0]  ;;  %v19589_v63 = vld [vmem:[%s29483_s4 + $0x1514] sm:$0xf] }
 0x4a0   :  { %v27520_v54 = vpop.f32.mrf.mxu2  ;;  %v17589_v45 = vld [vmem:[%s29483_s4 + $0x1564] sm:$0xf0] }
 0x4a1   :  { %10493 = vmatpush.bf16.msra.mxu1 %v16584_v37  ;;  %v16024_v37 = vor.u32 %v19204_v3, %v16021_v26  ;;  %v19288_v3 = vld [vmem:[%s29483_s4 + $0xbac] sm:$0xf] }
 0x4a2   :  { %10505 = vmatpush.bf16.msrb.mxu2 %v16836_v32  ;;  %v16721_v32 = vld [vmem:[%s29483_s4 + $0xe9c] sm:$0xf0] }
 0x4a3   :  { %10468 = vmatpush.bf16.msrb.mxu3 %v16108_v23  ;;  %10431 = vmatpush.bf16.msra.mxu0 %v15380_v62  ;;  %v15993_v23 = vld [vmem:[%s29483_s4 + $0x8ec] sm:$0xf0]  ;;  %v16724_v9 = vor.u32 %v19379_v11, %v16721_v32  ;;  %v19575_v11 = vld [vmem:[%s29483_s4 + $0x14a4] sm:$0xf] }
 0x4a4   :  { %v15996_v50 = vor.u32 %v19197_v44, %v15993_v23  ;;  %v17561_v23 = vld [vmem:[%s29483_s4 + $0x152c] sm:$0xf0] }
 0x4a5   :  { %10494 = vmatpush.bf16.msra.mxu1 %v16556_v57  ;;  %v19372_v57 = vld [vmem:[%s29483_s4 + $0xe4c] sm:$0xf]  ;;  %v10216_v24 = vpop.f32.mrf.mxu3 }
 0x4a6   :  { %10506 = vmatpush.bf16.msrb.mxu2 %v16808_v28  ;;  %v15324_v28 = vor.u32 %v19029_v6, %v15321_v1  ;;  %v16696_v62 = vor.u32 %v19372_v57, %v16693_v59  ;;  %v19456_v6 = vld [vmem:[%s29483_s4 + $0x10ec] sm:$0xf]  ;;  %v17029_v1 = vld [vmem:[%s29483_s4 + $0x1104] sm:$0xf0]  ;;  %v19138_v59 = vld [vmem:[%s29483_s4 + $0x6f8] sm:$0xf0] }
 0x4a7   :  { %10469 = vmatpush.bf16.msrb.mxu3 %v16080_v20  ;;  %10432 = vmatpush.bf16.msra.mxu0 %v15352_v27  ;;  %v19309_v20 = vld [vmem:[%s29483_s4 + $0xc54] sm:$0xf]  ;;  %v17505_v27 = vld [vmem:[%s29483_s4 + $0x14bc] sm:$0xf0]  ;;  %v17032_v48 = vor.u32 %v19456_v6, %v17029_v1  ;;  %v19554_v6 = vld [vmem:[%s29483_s4 + $0x13fc] sm:$0xf] }
 0x4a8   :  { %v16444_v61 = vor.u32 %v19309_v20, %v16441_v5  ;;  %v17508_v44 = vor.u32 %v19575_v11, %v17505_v27  ;;  %v19449_v24 = vld [vmem:[%s29483_s4 + $0x10b4] sm:$0xf]  ;;  %v17564_v20 = vor.u32 %v19589_v63, %v17561_v23  ;;  %v17421_v1 = vld [vmem:[%s29483_s4 + $0x1414] sm:$0xf0]  ;;  %v16945_v63 = vld [vmem:[%s29483_s4 + $0x105c] sm:$0xf0] }
 0x4a9   :  { %10495 = vmatpush.bf16.msra.mxu1 %v16528_v12  ;;  %v19463_v12 = vld [vmem:[%s29483_s4 + $0x1124] sm:$0xf]  ;;  %v19260_v23 = vld [vmem:[%s29483_s4 + $0xacc] sm:$0xf] }
 0x4aa   :  { %10507 = vmatpush.bf16.msrb.mxu2 %v16780_v56  ;;  %v17533_v56 = vld [vmem:[%s29483_s4 + $0x14f4] sm:$0xf0]  ;;  %v17060_v26 = vor.u32 %v19463_v12, %v17057_v40  ;;  %v17449_v12 = vld [vmem:[%s29483_s4 + $0x144c] sm:$0xf0]  ;;  %v15719_v40 = vld [vmem:[%s29483_s4 + $0x6a8] sm:$0xf] }
 0x4ab   :  { %10470 = vmatpush.bf16.msrb.mxu3 %v16052_v49  ;;  %10433 = vmatpush.bf16.msra.mxu0 %v15324_v28  ;;  %v16665_v49 = vld [vmem:[%s29483_s4 + $0xe2c] sm:$0xf0]  ;;  %v17536_v36 = vor.u32 %v19582_v51, %v17533_v56  ;;  %v17477_v28 = vld [vmem:[%s29483_s4 + $0x1484] sm:$0xf0]  ;;  %v16301_v51 = vld [vmem:[%s29483_s4 + $0xb54] sm:$0xf0] }
 0x4ac   :  { %v16668_v32 = vor.u32 %v19365_v38, %v16665_v49  ;;  %v19131_v38 = vld [vmem:[%s29483_s4 + $0x6c0] sm:$0xf0]  ;;  %v19442_v49 = vld [vmem:[%s29483_s4 + $0x107c] sm:$0xf] }
 0x4ad   :  { %10496 = vmatpush.bf16.msra.mxu1 %v16500_v52  ;;  %v10255_v52 = vpop.f32.mrf.mxu2 }
 0x4ae   :  { %10508 = vmatpush.bf16.msrb.mxu2 %v16752_v8  ;;  %v16357_v8 = vld [vmem:[%s29483_s4 + $0xbc4] sm:$0xf0]  ;;  %10434 = vmatmul.bf16.vlgmr.msra.gmra.mxu0 %v24268_v13 }
 0x4af   :  { %10471 = vmatpush.bf16.msrb.mxu3 %v16024_v37  ;;  %10478 = vmatpush.bf16.msrb.mxu0 %v16416_v2  ;;  %v17592_v37 = vor.u32 %v19596_v19, %v17589_v45  ;;  %v16360_v7 = vor.u32 %v19288_v3, %v16357_v8  ;;  %v16304_v45 = vor.u32 %v19274_v4, %v16301_v51  ;;  %v16273_v8 = vld [vmem:[%s29483_s4 + $0xb1c] sm:$0xf0]  ;;  %v19540_v4 = vld [vmem:[%s29483_s4 + $0x138c] sm:$0xf] }
 0x4b1   :  { %10497 = vmatpush.bf16.msra.mxu1 %v16472_v15  ;;  %v15747_v15 = vld [vmem:[%s29483_s4 + $0x6e0] sm:$0xf] }
 0x4b2   :  { %10509 = vmatpush.bf16.msrb.mxu2 %v16724_v9  ;;  %v10175_v9 = vpop.f32.mrf.mxu0  ;;  %v15748_v56 = vor.u32 %v19138_v59, %v15747_v15  ;;  %v15663_v15 = vld [vmem:[%s29483_s4 + $0x638] sm:$0xf] }
 0x4b3   :  { %10472 = vmatpush.bf16.msrb.mxu3 %v15996_v50  ;;  %10479 = vmatpush.bf16.msrb.mxu0 %v16388_v41  ;;  %v10176_v57 = vadd.f32 %v10175_v9, %v27447_v31  ;;  %v17001_v50 = vld [vmem:[%s29483_s4 + $0x10cc] sm:$0xf0]  ;;  %v27625_v31 = vld [vmem:[%s29484_s5] sm:$0x7f]  ;;  %v16973_v41 = vld [vmem:[%s29483_s4 + $0x1094] sm:$0xf0] }
 0x4b4   :  { %v6013_v2 = vperm.slane %v27625_v31, 4  ;;  %v16976_v52 = vor.u32 %v19442_v49, %v16973_v41  ;;  %v19526_v49 = vld [vmem:[%s29483_s4 + $0x131c] sm:$0xf] }
 0x4b5   :  { %10498 = vmatpush.bf16.msra.mxu1 %v16444_v61  ;;  %v10189_v5 = vadd.f32 %v27428_v46, %v10176_v57  ;;  %v19561_v46 = vld [vmem:[%s29483_s4 + $0x1434] sm:$0xf]  ;;  %v10240_v61 = vpop.f32.mrf.mxu1 }
 0x4b6   :  { %10510 = vmatpush.bf16.msrb.mxu2 %v16696_v62  ;;  %10473 = vmatmul.bf16.vlgmr.msrb.gmra.mxu3 %v24308_v33  ;;  %v17004_v62 = vor.u32 %v19449_v24, %v17001_v50  ;;  %v10241_v19 = vadd.f32 %v10240_v61, %v6013_v2  ;;  %v17452_v3 = vor.u32 %v19561_v46, %v17449_v12  ;;  %v19117_v24 = vld [vmem:[%s29483_s4 + $0x650] sm:$0xf0]  ;;  %v19428_v50 = vld [vmem:[%s29483_s4 + $0x100c] sm:$0xf]  ;;  %v16917_v2 = vld [vmem:[%s29483_s4 + $0x1024] sm:$0xf0] }
 0x4b7   :  { %10517 = vmatpush.bf16.msra.mxu3 %v17088_v25  ;;  %10480 = vmatpush.bf16.msrb.mxu0 %v16360_v7  ;;  %v17480_v25 = vor.u32 %v19568_v60, %v17477_v28  ;;  %v19547_v60 = vld [vmem:[%s29483_s4 + $0x13c4] sm:$0xf]  ;;  %v17393_v28 = vld [vmem:[%s29483_s4 + $0x13dc] sm:$0xf0]  ;;  %v15664_v51 = vor.u32 %v19117_v24, %v15663_v15  ;;  %v19110_v12 = vld [vmem:[%s29483_s4 + $0x618] sm:$0xf0] }
 0x4b8   :  { %10499 = vmatmul.bf16.vlgmr.msra.gmra.mxu1 %v24495_v29  ;;  %v15635_v46 = vld [vmem:[%s29483_s4 + $0x600] sm:$0xf]  ;;  %v19421_v61 = vld [vmem:[%s29483_s4 + $0xfd4] sm:$0xf] }
 0x4b9   :  { %10543 = vmatpush.bf16.msrb.mxu1 %v17536_v36  ;;  %v10202_v36 = vadd.f32 %v27312_v16, %v10189_v5  ;;  %v15720_v16 = vor.u32 %v19131_v38, %v15719_v40  ;;  %v10266_v55 = vpop.f32.mrf.mxu3  ;;  %v17396_v5 = vor.u32 %v19547_v60, %v17393_v28  ;;  %v16889_v38 = vld [vmem:[%s29483_s4 + $0xfec] sm:$0xf0]  ;;  %v19096_v28 = vld [vmem:[%s29483_s4 + $0x5a8] sm:$0xf0] }
 0x4ba   :  { %10511 = vmatpush.bf16.msrb.mxu2 %v16668_v32  ;;  %v10177_v27 = vpop.f32.mrf.mxu0  ;;  %v10254_v32 = vadd.f32 %v27520_v54, %v10241_v19  ;;  %v19435_v54 = vld [vmem:[%s29483_s4 + $0x1044] sm:$0xf]  ;;  %v17309_v19 = vld [vmem:[%s29483_s4 + $0x1334] sm:$0xf0]  ;;  %v15579_v60 = vld [vmem:[%s29483_s4 + $0x590] sm:$0xf] }
 0x4bb   :  { %10518 = vmatpush.bf16.msra.mxu3 %v17060_v26  ;;  %10481 = vmatpush.bf16.msrb.mxu0 %v16332_v34  ;;  %v19267_v26 = vld [vmem:[%s29483_s4 + $0xb04] sm:$0xf]  ;;  %v10215_v11 = vadd.f32 %v27473_v14, %v10202_v36  ;;  %v19124_v14 = vld [vmem:[%s29483_s4 + $0x688] sm:$0xf0]  ;;  %v19253_v34 = vld [vmem:[%s29483_s4 + $0xa94] sm:$0xf] }
 0x4bc   :  { %v16276_v7 = vor.u32 %v19267_v26, %v16273_v8  ;;  %v27696_v59 = vadd.f32 %v10266_v55, %v10254_v32  ;;  %v17337_v32 = vld [vmem:[%s29483_s4 + $0x136c] sm:$0xf0] }
 0x4bd   :  { %10544 = vmatpush.bf16.msrb.mxu1 %v17508_v44  ;;  %10512 = vmatmul.bf16.vlgmr.msrb.gmra.mxu2 %v24519_v21  ;;  %v17424_v44 = vor.u32 %v19554_v6, %v17421_v1  ;;  %v10242_v57 = vpop.f32.mrf.mxu1  ;;  %v15607_v6 = vld [vmem:[%s29483_s4 + $0x5c8] sm:$0xf]  ;;  %v19103_v1 = vld [vmem:[%s29483_s4 + $0x5e0] sm:$0xf0] }
 0x4be   :  { %10562 = vmatpush.bf16.msra.mxu2 %v17592_v37  ;;  %v15691_v37 = vld [vmem:[%s29483_s4 + $0x670] sm:$0xf] }
 0x4bf   :  { %10519 = vmatpush.bf16.msra.mxu3 %v17032_v48  ;;  %10482 = vmatpush.bf16.msrb.mxu0 %v16304_v45  ;;  %v15692_v9 = vor.u32 %v19124_v14, %v15691_v37  ;;  %v16948_v48 = vor.u32 %v19435_v54, %v16945_v63  ;;  %v15075_v45 = vld [vmem:[%s29483_s4 + $0x1a0] sm:$0xf]  ;;  %v17312_v37 = vor.u32 %v19526_v49, %v17309_v19  ;;  %v19519_v54 = vld [vmem:[%s29483_s4 + $0x12e4] sm:$0xf]  ;;  %v19068_v49 = vld [vmem:[%s29483_s4 + $0x4c8] sm:$0xf0] }
 0x4c0   :  { %v27736_v36 = vpop.f32.mrf.mxu2  ;;  %v15523_v63 = vld [vmem:[%s29483_s4 + $0x520] sm:$0xf]  ;;  %v17225_v19 = vld [vmem:[%s29483_s4 + $0x128c] sm:$0xf0] }
 0x4c1   :  { %10545 = vmatpush.bf16.msrb.mxu1 %v17480_v25  ;;  %v16217_v25 = vld [vmem:[%s29483_s4 + $0xaac] sm:$0xf0]  ;;  %v10268_v27 = vpop.f32.mrf.mxu3 }
 0x4c2   :  { %10563 = vmatpush.bf16.msra.mxu2 %v17564_v20  ;;  %v16248_v20 = vor.u32 %v19260_v23, %v16245_v58  ;;  %v10227_v40 = vpop.f32.mrf.mxu0  ;;  %v16220_v26 = vor.u32 %v19253_v34, %v16217_v25  ;;  %v15047_v23 = vld [vmem:[%s29483_s4 + $0x168] sm:$0xf]  ;;  %v18963_v58 = vld [vmem:[%s29483_s4 + $0x180] sm:$0xf0]  ;;  %v15019_v25 = vld [vmem:[%s29483_s4 + $0x130] sm:$0xf] }
 0x4c3   :  { %10520 = vmatpush.bf16.msra.mxu3 %v17004_v62  ;;  %10483 = vmatpush.bf16.msrb.mxu0 %v16276_v7  ;;  %v17365_v62 = vld [vmem:[%s29483_s4 + $0x13a4] sm:$0xf0]  ;;  %v27734_v41 = vadd.f32 %v10227_v40, %v10215_v11  ;;  %v19533_v11 = vld [vmem:[%s29483_s4 + $0x1354] sm:$0xf]  ;;  %v19082_v7 = vld [vmem:[%s29483_s4 + $0x538] sm:$0xf0]  ;;  %v15048_v24 = vor.u32 %v18963_v58, %v15047_v23 }
 0x4c4   :  { %v17368_v8 = vor.u32 %v19540_v4, %v17365_v62  ;;  %v17340_v55 = vor.u32 %v19533_v11, %v17337_v32  ;;  %v17253_v34 = vld [vmem:[%s29483_s4 + $0x12c4] sm:$0xf0]  ;;  %v18956_v4 = vld [vmem:[%s29483_s4 + $0x148] sm:$0xf0]  ;;  %v15551_v62 = vld [vmem:[%s29483_s4 + $0x558] sm:$0xf] }
 0x4c5   :  { %10546 = vmatpush.bf16.msrb.mxu1 %v17452_v3  ;;  %v18970_v3 = vld [vmem:[%s29483_s4 + $0x1b8] sm:$0xf0]  ;;  %v15020_v40 = vor.u32 %v18956_v4, %v15019_v25  ;;  %v14963_v23 = vld [vmem:[%s29483_s4 + $0xc0] sm:$0xf] }
 0x4c6   :  { %10608 = vmatpush.bf16.msrb.mxu2 %v15748_v56  ;;  %v16920_v56 = vor.u32 %v19428_v50, %v16917_v2  ;;  %v15076_v14 = vor.u32 %v18970_v3, %v15075_v45  ;;  %v19512_v50 = vld [vmem:[%s29483_s4 + $0x12ac] sm:$0xf]  ;;  %v15495_v2 = vld [vmem:[%s29483_s4 + $0x4e8] sm:$0xf]  ;;  %v16643_v45 = vld [vmem:[%s29483_s4 + $0xde0] sm:$0xf] }
 0x4c7   :  { %10521 = vmatpush.bf16.msra.mxu3 %v16976_v52  ;;  %10484 = vmatpush.bf16.msrb.mxu0 %v16248_v20  ;;  %v16892_v52 = vor.u32 %v19421_v61, %v16889_v38  ;;  %v19075_v20 = vld [vmem:[%s29483_s4 + $0x500] sm:$0xf0]  ;;  %v19505_v61 = vld [vmem:[%s29483_s4 + $0x1274] sm:$0xf]  ;;  %v15467_v38 = vld [vmem:[%s29483_s4 + $0x4b0] sm:$0xf] }
 0x4c8   :  { %v19362_v3 = vld [vmem:[%s29483_s4 + $0xdf8] sm:$0xf0]  ;;  %v15468_v27 = vor.u32 %v19068_v49, %v15467_v38  ;;  %v16559_v38 = vld [vmem:[%s29483_s4 + $0xd38] sm:$0xf]  ;;  %v19341_v49 = vld [vmem:[%s29483_s4 + $0xd50] sm:$0xf0] }
 0x4c9   :  { %10547 = vmatpush.bf16.msrb.mxu1 %v17424_v44  ;;  %v17281_v44 = vld [vmem:[%s29483_s4 + $0x12fc] sm:$0xf0]  ;;  %v19498_v32 = vld [vmem:[%s29483_s4 + $0x123c] sm:$0xf] }
 0x4ca   :  { %10609 = vmatpush.bf16.msrb.mxu2 %v15720_v16  ;;  %v15636_v16 = vor.u32 %v19110_v12, %v15635_v46  ;;  %v10229_v15 = vpop.f32.mrf.mxu0  ;;  %v17284_v57 = vor.u32 %v19519_v54, %v17281_v44  ;;  %v19089_v46 = vld [vmem:[%s29483_s4 + $0x570] sm:$0xf0]  ;;  %v17256_v12 = vor.u32 %v19512_v50, %v17253_v34  ;;  %v17197_v54 = vld [vmem:[%s29483_s4 + $0x1254] sm:$0xf0]  ;;  %v18942_v58 = vld [vmem:[%s29483_s4 + $0xd8] sm:$0xf0] }
 0x4cb   :  { %10522 = vmatpush.bf16.msra.mxu3 %v16948_v48  ;;  %10485 = vmatpush.bf16.msrb.mxu0 %v16220_v26  ;;  %v15524_v48 = vor.u32 %v19082_v7, %v15523_v63  ;;  %v14991_v26 = vld [vmem:[%s29483_s4 + $0xf8] sm:$0xf]  ;;  %v15552_v11 = vor.u32 %v19089_v46, %v15551_v62  ;;  %v16615_v63 = vld [vmem:[%s29483_s4 + $0xda8] sm:$0xf]  ;;  %v19355_v7 = vld [vmem:[%s29483_s4 + $0xdc0] sm:$0xf0] }
 0x4cc   :  { %v15411_v15 = vld [vmem:[%s29483_s4 + $0x440] sm:$0xf]  ;;  %v18935_v34 = vld [vmem:[%s29483_s4 + $0xa0] sm:$0xf0]  ;;  %v15383_v62 = vld [vmem:[%s29483_s4 + $0x408] sm:$0xf] }
 0x4cd   :  { %10548 = vmatpush.bf16.msrb.mxu1 %v17396_v5  ;;  %17602 = vmatmul.msk.bf16.vlgmr.msra.gmra.mxu2 %vm9551_vm1, %v25005_v17  ;;  %v10307_v5 = vpop.f32.mrf.mxu2  ;;  %v17169_v50 = vld [vmem:[%s29483_s4 + $0x121c] sm:$0xf0]  ;;  %v19047_v46 = vld [vmem:[%s29483_s4 + $0x420] sm:$0xf0] }
 0x4ce   :  { %10610 = vmatpush.bf16.msrb.mxu2 %v15692_v9  ;;  %v15608_v9 = vor.u32 %v19103_v1, %v15607_v6  ;;  %10486 = vmatmul.bf16.vlgmr.msrb.gmra.mxu0 %v24493_v35  ;;  %v15439_v6 = vld [vmem:[%s29483_s4 + $0x478] sm:$0xf]  ;;  %v19061_v1 = vld [vmem:[%s29483_s4 + $0x490] sm:$0xf0]  ;;  %v14935_v5 = vld [vmem:[%s29483_s4 + $0x88] sm:$0xf] }
 0x4cf   :  { %10523 = vmatpush.bf16.msra.mxu3 %v16920_v56  ;;  %10530 = vmatpush.bf16.msra.mxu0 %v17312_v37  ;;  %v15496_v56 = vor.u32 %v19075_v20, %v15495_v2  ;;  %v10292_v37 = vpop.f32.mrf.mxu1  ;;  %v16587_v2 = vld [vmem:[%s29483_s4 + $0xd70] sm:$0xf]  ;;  %v19348_v20 = vld [vmem:[%s29483_s4 + $0xd88] sm:$0xf0] }
 0x4d1   :  { %10549 = vmatpush.bf16.msrb.mxu1 %v17368_v8  ;;  %v18949_v8 = vld [vmem:[%s29483_s4 + $0x110] sm:$0xf0] }
 0x4d2   :  { %10611 = vmatpush.bf16.msrb.mxu2 %v15664_v51  ;;  %v15580_v51 = vor.u32 %v19096_v28, %v15579_v60  ;;  %v10279_v44 = vpop.f32.mrf.mxu0  ;;  %v16616_v60 = vor.u32 %v19355_v7, %v16615_v63  ;;  %v19491_v28 = vld [vmem:[%s29483_s4 + $0x1204] sm:$0xf]  ;;  %v18921_v63 = vld [vmem:[%s29483_s4 + $0x30] sm:$0xf0]  ;;  %v15299_v7 = vld [vmem:[%s29483_s4 + $0x360] sm:$0xf] }
 0x4d3   :  { %10524 = vmatpush.bf16.msra.mxu3 %v16892_v52  ;;  %10531 = vmatpush.bf16.msra.mxu0 %v17284_v57  ;;  %v16644_v52 = vor.u32 %v19362_v3, %v16643_v45  ;;  %v19054_v57 = vld [vmem:[%s29483_s4 + $0x458] sm:$0xf0]  ;;  %v14907_v3 = vld [vmem:[%s29483_s4 + $0x50] sm:$0xf] }
 0x4d4   :  { %v15412_v4 = vor.u32 %v19054_v57, %v15411_v15  ;;  %v19033_v15 = vld [vmem:[%s29483_s4 + $0x3b0] sm:$0xf0] }
 0x4d5   :  { %10550 = vmatpush.bf16.msrb.mxu1 %v17340_v55  ;;  %v10280_v55 = vadd.f32 %v10279_v44, %v27696_v59  ;;  %v19026_v44 = vld [vmem:[%s29483_s4 + $0x378] sm:$0xf0] }
 0x4d6   :  { %10612 = vmatpush.bf16.msrb.mxu2 %v15636_v16  ;;  %10525 = vmatmul.bf16.vlgmr.msra.gmra.mxu3 %v24522_v47  ;;  %v17228_v16 = vor.u32 %v19505_v61, %v17225_v19  ;;  %v17141_v61 = vld [vmem:[%s29483_s4 + $0x11e4] sm:$0xf0] }
 0x4d7   :  { %10569 = vmatpush.bf16.msrb.mxu3 %v15076_v14  ;;  %10532 = vmatpush.bf16.msra.mxu0 %v17256_v12  ;;  %v14992_v14 = vor.u32 %v18949_v8, %v14991_v26  ;;  %v10293_v59 = vadd.f32 %v10292_v37, %v10280_v55  ;;  %v10294_v12 = vpop.f32.mrf.mxu1  ;;  %v18928_v26 = vld [vmem:[%s29483_s4 + $0x68] sm:$0xf0]  ;;  %v15384_v8 = vor.u32 %v19047_v46, %v15383_v62  ;;  %v16531_v37 = vld [vmem:[%s29483_s4 + $0xd00] sm:$0xf] }
 0x4d8   :  { %10551 = vmatmul.bf16.vlgmr.msrb.gmra.mxu1 %v24685_v0  ;;  %v15971_v55 = vld [vmem:[%s29483_s4 + $0x8a0] sm:$0xf] }
 0x4d9   :  { %10595 = vmatpush.bf16.msra.mxu1 %v15524_v48  ;;  %v17200_v48 = vor.u32 %v19498_v32, %v17197_v54  ;;  %v10306_v25 = vadd.f32 %v27736_v36, %v10293_v59  ;;  %v10318_v36 = vpop.f32.mrf.mxu3  ;;  %v15355_v32 = vld [vmem:[%s29483_s4 + $0x3d0] sm:$0xf]  ;;  %v14879_v54 = vld [vmem:[%s29483_s4 + $0x18] sm:$0xf] }
 0x4da   :  { %10613 = vmatpush.bf16.msrb.mxu2 %v15608_v9  ;;  %v15440_v9 = vor.u32 %v19061_v1, %v15439_v6  ;;  %v10281_v45 = vpop.f32.mrf.mxu0  ;;  %v19040_v6 = vld [vmem:[%s29483_s4 + $0x3e8] sm:$0xf0]  ;;  %v14908_v1 = vor.u32 %v18928_v26, %v14907_v3  ;;  %v14880_v59 = vor.u32 %v18921_v63, %v14879_v54  ;;  %v19299_v3 = vld [vmem:[%s29483_s4 + $0xc00] sm:$0xf0]  ;;  %v17539_v63 = vld [vmem:[%s29483_s4 + $0x14e0] sm:$0xf] }
 0x4db   :  { %10570 = vmatpush.bf16.msrb.mxu3 %v15048_v24  ;;  %10533 = vmatpush.bf16.msra.mxu0 %v17228_v16  ;;  %v14964_v24 = vor.u32 %v18942_v58, %v14963_v23  ;;  %v27905_v19 = vadd.f32 %v10318_v36, %v10306_v25  ;;  %v16560_v16 = vor.u32 %v19341_v49, %v16559_v38  ;;  %v16419_v25 = vld [vmem:[%s29483_s4 + $0xc20] sm:$0xf]  ;;  %v16475_v36 = vld [vmem:[%s29483_s4 + $0xc90] sm:$0xf]  ;;  %v19012_v49 = vld [vmem:[%s29483_s4 + $0x308] sm:$0xf0] }
 0x4dc   :  { %v15356_v58 = vor.u32 %v19040_v6, %v15355_v32  ;;  %v16391_v45 = vld [vmem:[%s29483_s4 + $0xbe8] sm:$0xf]  ;;  %v19313_v6 = vld [vmem:[%s29483_s4 + $0xc70] sm:$0xf0]  ;;  %v19292_v54 = vld [vmem:[%s29483_s4 + $0xbc8] sm:$0xf0] }
 0x4dd   :  { %10596 = vmatpush.bf16.msra.mxu1 %v15496_v56  ;;  %v16588_v56 = vor.u32 %v19348_v20, %v16587_v2  ;;  %v19327_v2 = vld [vmem:[%s29483_s4 + $0xce0] sm:$0xf0]  ;;  %v15271_v20 = vld [vmem:[%s29483_s4 + $0x328] sm:$0xf]  ;;  %v16392_v32 = vor.u32 %v19299_v3, %v16391_v45 }
 0x4de   :  { %10614 = vmatpush.bf16.msrb.mxu2 %v15580_v51  ;;  %v17172_v51 = vor.u32 %v19491_v28, %v17169_v50  ;;  %v15327_v28 = vld [vmem:[%s29483_s4 + $0x398] sm:$0xf]  ;;  %v16503_v50 = vld [vmem:[%s29483_s4 + $0xcc8] sm:$0xf] }
 0x4df   :  { %10571 = vmatpush.bf16.msrb.mxu3 %v15020_v40  ;;  %10534 = vmatpush.bf16.msra.mxu0 %v17200_v48  ;;  %v14936_v40 = vor.u32 %v18935_v34, %v14935_v5  ;;  %v19019_v34 = vld [vmem:[%s29483_s4 + $0x340] sm:$0xf0]  ;;  %v16504_v62 = vor.u32 %v19327_v2, %v16503_v50  ;;  %v17511_v50 = vld [vmem:[%s29483_s4 + $0x14a8] sm:$0xf] }
 0x4e0   :  { %v27943_v23 = vpop.f32.mrf.mxu2  ;;  %v15272_v46 = vor.u32 %v19019_v34, %v15271_v20  ;;  %v19579_v20 = vld [vmem:[%s29483_s4 + $0x14c0] sm:$0xf0]  ;;  %v19166_v34 = vld [vmem:[%s29483_s4 + $0x7d8] sm:$0xf0] }
 0x4e1   :  { %10597 = vmatpush.bf16.msra.mxu1 %v15468_v27  ;;  %v10320_v57 = vpop.f32.mrf.mxu3 }
 0x4e2   :  { %10615 = vmatpush.bf16.msrb.mxu2 %v15552_v11  ;;  %v19477_v11 = vld [vmem:[%s29483_s4 + $0x1194] sm:$0xf] }
 0x4e3   :  { %10572 = vmatpush.bf16.msrb.mxu3 %v14992_v14  ;;  %10535 = vmatpush.bf16.msra.mxu0 %v17172_v51  ;;  %v19334_v14 = vld [vmem:[%s29483_s4 + $0xd18] sm:$0xf0]  ;;  %v15328_v51 = vor.u32 %v19033_v15, %v15327_v28 }
 0x4e5   :  { %10616 = vmatmul.bf16.vlgmr.msrb.gmra.mxu2 %v24278_v30  ;;  %10598 = vmatpush.bf16.msra.mxu1 %v15440_v9  ;;  %v19484_v30 = vld [vmem:[%s29483_s4 + $0x11cc] sm:$0xf]  ;;  %v19194_v9 = vld [vmem:[%s29483_s4 + $0x8b8] sm:$0xf0] }
 0x4e6   :  { %10660 = vmatpush.bf16.msra.mxu2 %v16644_v52  ;;  %v17144_v27 = vor.u32 %v19484_v30, %v17141_v61  ;;  %v17113_v52 = vld [vmem:[%s29483_s4 + $0x11ac] sm:$0xf0]  ;;  %v15972_v5 = vor.u32 %v19194_v9, %v15971_v55  ;;  %v19187_v30 = vld [vmem:[%s29483_s4 + $0x880] sm:$0xf0] }
 0x4e7   :  { %10573 = vmatpush.bf16.msrb.mxu3 %v14964_v24  ;;  %v17116_v48 = vor.u32 %v19477_v11, %v17113_v52  ;;  %v15300_v24 = vor.u32 %v19026_v44, %v15299_v7  ;;  %v15243_v61 = vld [vmem:[%s29483_s4 + $0x2f0] sm:$0xf]  ;;  %v19180_v11 = vld [vmem:[%s29483_s4 + $0x848] sm:$0xf0]  ;;  %v19586_v7 = vld [vmem:[%s29483_s4 + $0x14f8] sm:$0xf0] }
 0x4e8   :  { %10536 = vmatpush.bf16.msra.mxu0 %v17144_v27  ;;  %v10359_v26 = vpop.f32.mrf.mxu2  ;;  %v15244_v52 = vor.u32 %v19012_v49, %v15243_v61  ;;  %v19173_v44 = vld [vmem:[%s29483_s4 + $0x810] sm:$0xf0]  ;;  %v17540_v15 = vor.u32 %v19586_v7, %v17539_v63  ;;  %v19572_v61 = vld [vmem:[%s29483_s4 + $0x1488] sm:$0xf0]  ;;  %v19159_v49 = vld [vmem:[%s29483_s4 + $0x7a0] sm:$0xf0] }
 0x4e9   :  { %10599 = vmatpush.bf16.msra.mxu1 %v15412_v4  ;;  %v19306_v4 = vld [vmem:[%s29483_s4 + $0xc38] sm:$0xf0] }
 0x4ea   :  { %10661 = vmatpush.bf16.msra.mxu2 %v16616_v60  ;;  %v16532_v60 = vor.u32 %v19334_v14, %v16531_v37  ;;  %v16420_v12 = vor.u32 %v19306_v4, %v16419_v25  ;;  %v16363_v14 = vld [vmem:[%s29483_s4 + $0xbb0] sm:$0xf] }
 0x4eb   :  { %10574 = vmatpush.bf16.msrb.mxu3 %v14936_v40  ;;  %v19320_v40 = vld [vmem:[%s29483_s4 + $0xca8] sm:$0xf0]  ;;  %v16364_v9 = vor.u32 %v19292_v54, %v16363_v14  ;;  %v10331_v2 = vpop.f32.mrf.mxu0  ;;  %v15803_v14 = vld [vmem:[%s29483_s4 + $0x750] sm:$0xf] }
 0x4ec   :  { %10537 = vmatpush.bf16.msra.mxu0 %v17116_v48  ;;  %v16476_v27 = vor.u32 %v19320_v40, %v16475_v36  ;;  %v15187_v48 = vld [vmem:[%s29483_s4 + $0x280] sm:$0xf]  ;;  %v10332_v25 = vadd.f32 %v10331_v2, %v27905_v19  ;;  %v19278_v36 = vld [vmem:[%s29483_s4 + $0xb58] sm:$0xf0]  ;;  %v17483_v40 = vld [vmem:[%s29483_s4 + $0x1470] sm:$0xf] }
 0x4ed   :  { %10600 = vmatpush.bf16.msra.mxu1 %v15384_v8  ;;  %v15915_v8 = vld [vmem:[%s29483_s4 + $0x830] sm:$0xf]  ;;  %v10344_v28 = vpop.f32.mrf.mxu1  ;;  %v16307_v19 = vld [vmem:[%s29483_s4 + $0xb40] sm:$0xf]  ;;  %v19152_v54 = vld [vmem:[%s29483_s4 + $0x768] sm:$0xf0] }
 0x4ee   :  { %10662 = vmatpush.bf16.msra.mxu2 %v16588_v56  ;;  %v15943_v56 = vld [vmem:[%s29483_s4 + $0x868] sm:$0xf]  ;;  %v15916_v37 = vor.u32 %v19180_v11, %v15915_v8  ;;  %v16308_v26 = vor.u32 %v19278_v36, %v16307_v19  ;;  %v18984_v8 = vld [vmem:[%s29483_s4 + $0x228] sm:$0xf0]  ;;  %v16867_v2 = vld [vmem:[%s29483_s4 + $0xfa0] sm:$0xf] }
 0x4ef   :  { %10575 = vmatpush.bf16.msrb.mxu3 %v14908_v1  ;;  %v15944_v38 = vor.u32 %v19187_v30, %v15943_v56  ;;  %10538 = vmatmul.bf16.vlgmr.msra.gmra.mxu0 %v24683_v39  ;;  %v15215_v1 = vld [vmem:[%s29483_s4 + $0x2b8] sm:$0xf]  ;;  %v15159_v56 = vld [vmem:[%s29483_s4 + $0x248] sm:$0xf]  ;;  %v18991_v30 = vld [vmem:[%s29483_s4 + $0x260] sm:$0xf0] }
 0x4f0   :  { %10582 = vmatpush.bf16.msrb.mxu0 %v15300_v24  ;;  %v19285_v24 = vld [vmem:[%s29483_s4 + $0xb90] sm:$0xf0]  ;;  %v15160_v3 = vor.u32 %v18991_v30, %v15159_v56 }
 0x4f1   :  { %10601 = vmatpush.bf16.msra.mxu1 %v15356_v58 }
 0x4f2   :  { %10663 = vmatpush.bf16.msra.mxu2 %v16560_v16  ;;  %v16447_v16 = vld [vmem:[%s29483_s4 + $0xc58] sm:$0xf] }
 0x4f3   :  { %10576 = vmatpush.bf16.msrb.mxu3 %v14880_v59  ;;  %v16448_v58 = vor.u32 %v19313_v6, %v16447_v16  ;;  %v16335_v59 = vld [vmem:[%s29483_s4 + $0xb78] sm:$0xf]  ;;  %v17484_v16 = vor.u32 %v19572_v61, %v17483_v40  ;;  %v16167_v40 = vld [vmem:[%s29483_s4 + $0xa28] sm:$0xf]  ;;  %v17315_v61 = vld [vmem:[%s29483_s4 + $0x1320] sm:$0xf] }
 0x4f4   :  { %10583 = vmatpush.bf16.msrb.mxu0 %v15272_v46  ;;  %v17512_v46 = vor.u32 %v19579_v20, %v17511_v50  ;;  %v17455_v6 = vld [vmem:[%s29483_s4 + $0x1438] sm:$0xf]  ;;  %v19250_v50 = vld [vmem:[%s29483_s4 + $0xa78] sm:$0xf0] }
 0x4f5   :  { %10602 = vmatpush.bf16.msra.mxu1 %v15328_v51  ;;  %v16336_v51 = vor.u32 %v19285_v24, %v16335_v59  ;;  %v10346_v11 = vpop.f32.mrf.mxu1  ;;  %v16195_v59 = vld [vmem:[%s29483_s4 + $0xa60] sm:$0xf]  ;;  %v19418_v20 = vld [vmem:[%s29483_s4 + $0xfb8] sm:$0xf0] }
 0x4f6   :  { %10664 = vmatpush.bf16.msra.mxu2 %v16532_v60  ;;  %10577 = vmatmul.bf16.vlgmr.msrb.gmra.mxu3 %v24088_v43  ;;  %v19005_v43 = vld [vmem:[%s29483_s4 + $0x2d0] sm:$0xf0]  ;;  %v18998_v60 = vld [vmem:[%s29483_s4 + $0x298] sm:$0xf0]  ;;  %v16196_v19 = vor.u32 %v19250_v50, %v16195_v59  ;;  %v16868_v36 = vor.u32 %v19418_v20, %v16867_v2  ;;  %v17371_v11 = vld [vmem:[%s29483_s4 + $0x1390] sm:$0xf] }
 0x4f7   :  { %10621 = vmatpush.bf16.msra.mxu3 %v15972_v5  ;;  %v15216_v55 = vor.u32 %v19005_v43, %v15215_v1  ;;  %v15859_v5 = vld [vmem:[%s29483_s4 + $0x7c0] sm:$0xf]  ;;  %v15188_v4 = vor.u32 %v18998_v60, %v15187_v48  ;;  %v10333_v43 = vpop.f32.mrf.mxu0  ;;  %v19264_v48 = vld [vmem:[%s29483_s4 + $0xae8] sm:$0xf0] }
 0x4f8   :  { %10603 = vmatmul.bf16.vlgmr.msra.gmra.mxu1 %v24268_v13  ;;  %v15887_v13 = vld [vmem:[%s29483_s4 + $0x7f8] sm:$0xf]  ;;  %10584 = vmatpush.bf16.msrb.mxu0 %v15244_v52  ;;  %v17427_v60 = vld [vmem:[%s29483_s4 + $0x1400] sm:$0xf] }
 0x4f9   :  { %10647 = vmatpush.bf16.msrb.mxu1 %v16420_v12  ;;  %v15888_v57 = vor.u32 %v19173_v44, %v15887_v13  ;;  %v15860_v12 = vor.u32 %v19166_v34, %v15859_v5  ;;  %v15103_v13 = vld [vmem:[%s29483_s4 + $0x1d8] sm:$0xf]  ;;  %v18977_v44 = vld [vmem:[%s29483_s4 + $0x1f0] sm:$0xf0] }
 0x4fa   :  { %10665 = vmatpush.bf16.msra.mxu2 %v16504_v62  ;;  %v10345_v62 = vadd.f32 %v10344_v28, %v10332_v25  ;;  %v19558_v28 = vld [vmem:[%s29483_s4 + $0x1418] sm:$0xf0]  ;;  %v15104_v5 = vor.u32 %v18977_v44, %v15103_v13  ;;  %v16223_v25 = vld [vmem:[%s29483_s4 + $0xa98] sm:$0xf]  ;;  %v19537_v44 = vld [vmem:[%s29483_s4 + $0x1370] sm:$0xf0] }
 0x4fb   :  { %10622 = vmatpush.bf16.msra.mxu3 %v15944_v38  ;;  %v15831_v38 = vld [vmem:[%s29483_s4 + $0x788] sm:$0xf]  ;;  %v17428_v56 = vor.u32 %v19558_v28, %v17427_v60  ;;  %v17343_v13 = vld [vmem:[%s29483_s4 + $0x1358] sm:$0xf]  ;;  %v19229_v60 = vld [vmem:[%s29483_s4 + $0x9d0] sm:$0xf0] }
 0x4fc   :  { %10585 = vmatpush.bf16.msrb.mxu0 %v15216_v55  ;;  %v10358_v45 = vadd.f32 %v27943_v23, %v10345_v62  ;;  %v15832_v52 = vor.u32 %v19159_v49, %v15831_v38  ;;  %v16279_v23 = vld [vmem:[%s29483_s4 + $0xb08] sm:$0xf]  ;;  %v19257_v62 = vld [vmem:[%s29483_s4 + $0xab0] sm:$0xf0]  ;;  %v19530_v38 = vld [vmem:[%s29483_s4 + $0x1338] sm:$0xf0]  ;;  %v17344_v59 = vor.u32 %v19537_v44, %v17343_v13 }
 0x4fd   :  { %10648 = vmatpush.bf16.msrb.mxu1 %v16392_v32  ;;  %v19271_v32 = vld [vmem:[%s29483_s4 + $0xb20] sm:$0xf0]  ;;  %v17882_v28 = vld [vmem:[%s29485_s6 + $0x228] sm:$0xf]  ;;  %v19662_v13 = vld [vmem:[%s29485_s6 + $0x1e8] sm:$0xf0] }
 0x4fe   :  { %10666 = vmatpush.bf16.msra.mxu2 %v16476_v27  ;;  %v10370_v27 = vpop.f32.mrf.mxu3  ;;  %v16280_v7 = vor.u32 %v19271_v32, %v16279_v23  ;;  %v19243_v49 = vld [vmem:[%s29483_s4 + $0xa40] sm:$0xf0]  ;;  %v16139_v23 = vld [vmem:[%s29483_s4 + $0x9f0] sm:$0xf]  ;;  %v17287_v32 = vld [vmem:[%s29483_s4 + $0x12e8] sm:$0xf] }
 0x4ff   :  { %10623 = vmatpush.bf16.msra.mxu3 %v15916_v37  ;;  %v28104_v1 = vadd.f32 %v10370_v27, %v10358_v45  ;;  %v19565_v37 = vld [vmem:[%s29483_s4 + $0x1450] sm:$0xf0]  ;;  %v16839_v45 = vld [vmem:[%s29483_s4 + $0xf68] sm:$0xf]  ;;  %v19544_v27 = vld [vmem:[%s29483_s4 + $0x13a8] sm:$0xf0] }
 0x500   :  { %10586 = vmatpush.bf16.msrb.mxu0 %v15188_v4  ;;  %v17456_v55 = vor.u32 %v19565_v37, %v17455_v6  ;;  %v28142_v24 = vpop.f32.mrf.mxu2  ;;  %v19523_v6 = vld [vmem:[%s29483_s4 + $0x1300] sm:$0xf0]  ;;  %v19236_v37 = vld [vmem:[%s29483_s4 + $0xa08] sm:$0xf0]  ;;  %v16699_v44 = vld [vmem:[%s29483_s4 + $0xe50] sm:$0xf] }
 0x501   :  { %10649 = vmatpush.bf16.msrb.mxu1 %v16364_v9  ;;  %v15804_v9 = vor.u32 %v19152_v54, %v15803_v14  ;;  %v16811_v14 = vld [vmem:[%s29483_s4 + $0xf30] sm:$0xf]  ;;  %v19404_v54 = vld [vmem:[%s29483_s4 + $0xf48] sm:$0xf0] }
 0x502   :  { %10667 = vmatpush.bf16.msra.mxu2 %v16448_v58  ;;  %v16251_v58 = vld [vmem:[%s29483_s4 + $0xad0] sm:$0xf] }
 0x503   :  { %10624 = vmatpush.bf16.msra.mxu3 %v15888_v57  ;;  %v19145_v57 = vld [vmem:[%s29483_s4 + $0x730] sm:$0xf0]  ;;  %v16252_v34 = vor.u32 %v19264_v48, %v16251_v58  ;;  %v16140_v58 = vor.u32 %v19236_v37, %v16139_v23  ;;  %v19516_v48 = vld [vmem:[%s29483_s4 + $0x12c8] sm:$0xf0]  ;;  %v17175_v37 = vld [vmem:[%s29483_s4 + $0x1208] sm:$0xf] }
 0x504   :  { %10587 = vmatpush.bf16.msrb.mxu0 %v15160_v3  ;;  %v19411_v3 = vld [vmem:[%s29483_s4 + $0xf80] sm:$0xf0] }
 0x505   :  { %10668 = vmatmul.bf16.vlgmr.msra.gmra.mxu2 %v24495_v29  ;;  %10650 = vmatpush.bf16.msrb.mxu1 %v16336_v51  ;;  %v15131_v29 = vld [vmem:[%s29483_s4 + $0x210] sm:$0xf]  ;;  %v28156_v51 = vpop.f32.mrf.mxu1 }
 0x506   :  { %10712 = vmatpush.bf16.msrb.mxu2 %v17540_v15  ;;  %v15132_v63 = vor.u32 %v18984_v8, %v15131_v29  ;;  %v15775_v15 = vld [vmem:[%s29483_s4 + $0x718] sm:$0xf]  ;;  %v10372_v4 = vpop.f32.mrf.mxu3  ;;  %v17316_v8 = vor.u32 %v19530_v38, %v17315_v61 }
 0x507   :  { %10625 = vmatpush.bf16.msra.mxu3 %v15860_v12  ;;  %v15776_v30 = vor.u32 %v19145_v57, %v15775_v15  ;;  %v19551_v12 = vld [vmem:[%s29483_s4 + $0x13e0] sm:$0xf0]  ;;  %v19671_v15 = vld [vmem:[%s29485_s6 + $0x230] sm:$0xf0]  ;;  %v16783_v57 = vld [vmem:[%s29483_s4 + $0xef8] sm:$0xf] }
 0x508   :  { %10588 = vmatpush.bf16.msrb.mxu0 %v15132_v63  ;;  %v10411_v43 = vpop.f32.mrf.mxu2  ;;  %v17883_v20 = vor.u32 %v19671_v15, %v17882_v28  ;;  %v17147_v28 = vld [vmem:[%s29483_s4 + $0x11d0] sm:$0xf]  ;;  %v19488_v15 = vld [vmem:[%s29483_s4 + $0x11e8] sm:$0xf0] }
 0x509   :  { %10651 = vmatpush.bf16.msrb.mxu1 %v16308_v26  ;;  %v16224_v26 = vor.u32 %v19257_v62, %v16223_v25  ;;  %v19509_v25 = vld [vmem:[%s29483_s4 + $0x1290] sm:$0xf0]  ;;  %v17870_v62 = vld [vmem:[%s29485_s6 + $0x210] sm:$0xf] }
 0x50a   :  { %10713 = vmatpush.bf16.msrb.mxu2 %v17512_v46  ;;  %v17399_v46 = vld [vmem:[%s29483_s4 + $0x13c8] sm:$0xf] }
 0x50b   :  { %10626 = vmatpush.bf16.msra.mxu3 %v15832_v52  ;;  %v17400_v29 = vor.u32 %v19551_v12, %v17399_v46  ;;  %v16840_v52 = vor.u32 %v19411_v3, %v16839_v45  ;;  %v10383_v4 = vpop.f32.mrf.mxu0  ;;  %v19668_v46 = vld [vmem:[%s29485_s6 + $0x218] sm:$0xf0]  ;;  %v16055_v45 = vld [vmem:[%s29483_s4 + $0x948] sm:$0xf]  ;;  %v17203_v3 = vld [vmem:[%s29483_s4 + $0x1240] sm:$0xf] }
 0x50c   :  { %10589 = vmatpush.bf16.msrb.mxu0 %v15104_v5  ;;  %v16083_v5 = vld [vmem:[%s29483_s4 + $0x980] sm:$0xf]  ;;  %v10384_v12 = vadd.f32 %v10383_v4, %v28104_v1  ;;  %v17871_v1 = vor.u32 %v19668_v46, %v17870_v62  ;;  %v17148_v4 = vor.u32 %v19488_v15, %v17147_v28  ;;  %v17762_v28 = vld [vmem:[%s29485_s6 + $0x138] sm:$0xf]  ;;  %v19641_v15 = vld [vmem:[%s29485_s6 + $0x140] sm:$0xf0] }
 0x50d   :  { %10652 = vmatpush.bf16.msrb.mxu1 %v16280_v7  ;;  %v10398_v63 = vpop.f32.mrf.mxu1  ;;  %v17288_v7 = vor.u32 %v19523_v6, %v17287_v32 }
 0x50e   :  { %10714 = vmatpush.bf16.msrb.mxu2 %v17484_v16  ;;  %v16168_v16 = vor.u32 %v19243_v49, %v16167_v40  ;;  %v6014_v40 = vperm.slane %v27625_v31, 5  ;;  %v28269_v38 = vadd.f32 %v28156_v51, %v10384_v12  ;;  %v19502_v31 = vld [vmem:[%s29483_s4 + $0x1258] sm:$0xf0] }
 0x50f   :  { %10627 = vmatpush.bf16.msra.mxu3 %v15804_v9  ;;  %10590 = vmatmul.bf16.vlgmr.msrb.gmra.mxu0 %v24090_v53  ;;  %v17372_v53 = vor.u32 %v19544_v27, %v17371_v11  ;;  %v17259_v9 = vld [vmem:[%s29483_s4 + $0x12b0] sm:$0xf]  ;;  %v19665_v11 = vld [vmem:[%s29485_s6 + $0x200] sm:$0xf0]  ;;  %v16727_v27 = vld [vmem:[%s29483_s4 + $0xe88] sm:$0xf]  ;;  %v17204_v23 = vor.u32 %v19502_v31, %v17203_v3 }
 0x510   :  { %10634 = vmatpush.bf16.msra.mxu0 %v16196_v19  ;;  %v17260_v50 = vor.u32 %v19516_v48, %v17259_v9  ;;  %v16755_v19 = vld [vmem:[%s29483_s4 + $0xec0] sm:$0xf]  ;;  %v19467_v31 = vld [vmem:[%s29483_s4 + $0x1140] sm:$0xf0] }
 0x511   :  { %10653 = vmatpush.bf16.msrb.mxu1 %v16252_v34  ;;  %v17231_v34 = vld [vmem:[%s29483_s4 + $0x1278] sm:$0xf] }
 0x512   :  { %10715 = vmatpush.bf16.msrb.mxu2 %v17456_v55  ;;  %v16812_v55 = vor.u32 %v19404_v54, %v16811_v14  ;;  %v17232_v61 = vor.u32 %v19509_v25, %v17231_v34  ;;  %v19495_v14 = vld [vmem:[%s29483_s4 + $0x1220] sm:$0xf0]  ;;  %v17091_v34 = vld [vmem:[%s29483_s4 + $0x1160] sm:$0xf]  ;;  %v19474_v25 = vld [vmem:[%s29483_s4 + $0x1178] sm:$0xf0] }
 0x513   :  { %10628 = vmatpush.bf16.msra.mxu3 %v15776_v30  ;;  %v19222_v30 = vld [vmem:[%s29483_s4 + $0x998] sm:$0xf0]  ;;  %v10385_v54 = vpop.f32.mrf.mxu0 }
 0x514   :  { %10635 = vmatpush.bf16.msra.mxu0 %v16168_v16  ;;  %v16084_v49 = vor.u32 %v19222_v30, %v16083_v5  ;;  %v19383_v16 = vld [vmem:[%s29483_s4 + $0xea0] sm:$0xf0]  ;;  %v19369_v5 = vld [vmem:[%s29483_s4 + $0xe30] sm:$0xf0]  ;;  %v19600_v30 = vld [vmem:[%s29483_s4 + $0x1568] sm:$0xf0] }
 0x515   :  { %10654 = vmatpush.bf16.msrb.mxu1 %v16224_v26  ;;  %v28280_v26 = vpop.f32.mrf.mxu1  ;;  %v16728_v63 = vor.u32 %v19383_v16, %v16727_v27  ;;  %v19593_v27 = vld [vmem:[%s29483_s4 + $0x1530] sm:$0xf0] }
 0x516   :  { %10716 = vmatpush.bf16.msrb.mxu2 %v17428_v56  ;;  %10629 = vmatmul.bf16.vlgmr.msra.gmra.mxu3 %v24306_v10  ;;  %v16111_v10 = vld [vmem:[%s29483_s4 + $0x9b8] sm:$0xf] }
 0x517   :  { %10673 = vmatpush.bf16.msrb.mxu3 %v16868_v36  ;;  %v16112_v2 = vor.u32 %v19229_v60, %v16111_v10  ;;  %v19390_v36 = vld [vmem:[%s29483_s4 + $0xed8] sm:$0xf0]  ;;  %v15999_v10 = vld [vmem:[%s29483_s4 + $0x8d8] sm:$0xf]  ;;  %v19201_v60 = vld [vmem:[%s29483_s4 + $0x8f0] sm:$0xf0] }
 0x518   :  { %10655 = vmatmul.bf16.vlgmr.msrb.gmra.mxu1 %v24493_v35  ;;  %v19397_v35 = vld [vmem:[%s29483_s4 + $0xf10] sm:$0xf0]  ;;  %10636 = vmatpush.bf16.msra.mxu0 %v16140_v58  ;;  %v16756_v51 = vor.u32 %v19390_v36, %v16755_v19  ;;  %v19376_v58 = vld [vmem:[%s29483_s4 + $0xe68] sm:$0xf0]  ;;  %v16000_v46 = vor.u32 %v19201_v60, %v15999_v10  ;;  %v17119_v19 = vld [vmem:[%s29483_s4 + $0x1198] sm:$0xf] }
 0x519   :  { %10699 = vmatpush.bf16.msra.mxu1 %v17316_v8  ;;  %v16784_v56 = vor.u32 %v19397_v35, %v16783_v57  ;;  %v17858_v8 = vld [vmem:[%s29485_s6 + $0x1f8] sm:$0xf]  ;;  %v10422_v32 = vpop.f32.mrf.mxu3  ;;  %v16700_v35 = vor.u32 %v19376_v58, %v16699_v44  ;;  %v19481_v36 = vld [vmem:[%s29483_s4 + $0x11b0] sm:$0xf0]  ;;  %v17966_v58 = vld [vmem:[%s29485_s6 + $0x2d0] sm:$0xf] }
 0x51a   :  { %10717 = vmatpush.bf16.msrb.mxu2 %v17400_v29  ;;  %v19215_v29 = vld [vmem:[%s29483_s4 + $0x960] sm:$0xf0]  ;;  %v17859_v43 = vor.u32 %v19665_v11, %v17858_v8  ;;  %v17120_v8 = vor.u32 %v19481_v36, %v17119_v19  ;;  %v17567_v11 = vld [vmem:[%s29483_s4 + $0x1518] sm:$0xf]  ;;  %v19453_v60 = vld [vmem:[%s29483_s4 + $0x10d0] sm:$0xf0] }
 0x51b   :  { %10674 = vmatpush.bf16.msrb.mxu3 %v16840_v52  ;;  %v10410_v52 = vadd.f32 %v28142_v24, %v6014_v40  ;;  %v16056_v6 = vor.u32 %v19215_v29, %v16055_v45  ;;  %v17063_v45 = vld [vmem:[%s29483_s4 + $0x1128] sm:$0xf]  ;;  %v19647_v29 = vld [vmem:[%s29485_s6 + $0x170] sm:$0xf0]  ;;  %v17568_v54 = vor.u32 %v19593_v27, %v17567_v11  ;;  %v19686_v19 = vld [vmem:[%s29485_s6 + $0x2a8] sm:$0xf0] }
 0x51c   :  { %10637 = vmatpush.bf16.msra.mxu0 %v16112_v2  ;;  %v16671_v2 = vld [vmem:[%s29483_s4 + $0xe18] sm:$0xf] }
 0x51d   :  { %10700 = vmatpush.bf16.msra.mxu1 %v17288_v7  ;;  %v28308_v24 = vadd.f32 %v10422_v32, %v10410_v52  ;;  %v17846_v7 = vld [vmem:[%s29485_s6 + $0x1e0] sm:$0xf]  ;;  %v10450_v57 = vpop.f32.mrf.mxu1  ;;  %v16672_v40 = vor.u32 %v19369_v5, %v16671_v2  ;;  %v17978_v52 = vld [vmem:[%s29485_s6 + $0x2e8] sm:$0xf]  ;;  %v17064_v32 = vor.u32 %v19467_v31, %v17063_v45  ;;  %v17763_v5 = vor.u32 %v19641_v15, %v17762_v28  ;;  %v19626_v15 = vld [vmem:[%s29485_s6 + $0xc8] sm:$0xf0] }
 0x51e   :  { %10718 = vmatpush.bf16.msrb.mxu2 %v17372_v53  ;;  %v19208_v53 = vld [vmem:[%s29483_s4 + $0x928] sm:$0xf0]  ;;  %v17847_v48 = vor.u32 %v19662_v13, %v17846_v7  ;;  %v19644_v7 = vld [vmem:[%s29485_s6 + $0x158] sm:$0xf0]  ;;  %v17738_v45 = vld [vmem:[%s29485_s6 + $0x108] sm:$0xf] }
 0x51f   :  { %10675 = vmatpush.bf16.msrb.mxu3 %v16812_v55  ;;  %v17176_v55 = vor.u32 %v19495_v14, %v17175_v37  ;;  %v17035_v37 = vld [vmem:[%s29483_s4 + $0x10f0] sm:$0xf]  ;;  %v17702_v28 = vld [vmem:[%s29485_s6 + $0xc0] sm:$0xf] }
 0x520   :  { %10638 = vmatpush.bf16.msra.mxu0 %v16084_v49  ;;  %v17822_v49 = vld [vmem:[%s29485_s6 + $0x1b0] sm:$0xf] }
 0x521   :  { %10701 = vmatpush.bf16.msra.mxu1 %v17260_v50  ;;  %v19659_v50 = vld [vmem:[%s29485_s6 + $0x1d0] sm:$0xf0]  ;;  %v10424_v62 = vpop.f32.mrf.mxu3 }
 0x522   :  { %10719 = vmatpush.bf16.msrb.mxu2 %v17344_v59  ;;  %v17834_v59 = vld [vmem:[%s29485_s6 + $0x1c8] sm:$0xf] }
 0x523   :  { %10676 = vmatpush.bf16.msrb.mxu3 %v16784_v56  ;;  %v17595_v56 = vld [vmem:[%s29483_s4 + $0x1550] sm:$0xf]  ;;  %v17835_v12 = vor.u32 %v19659_v50, %v17834_v59  ;;  %v19689_v50 = vld [vmem:[%s29485_s6 + $0x2c0] sm:$0xf0] }
 0x524   :  { %10639 = vmatpush.bf16.msra.mxu0 %v16056_v6  ;;  %v17596_v3 = vor.u32 %v19600_v30, %v17595_v56  ;;  %v19638_v56 = vld [vmem:[%s29485_s6 + $0x128] sm:$0xf0] }
 0x525   :  { %10720 = vmatmul.bf16.vlgmr.msrb.gmra.mxu2 %v24685_v0  ;;  %10702 = vmatpush.bf16.msra.mxu1 %v17232_v61  ;;  %v16027_v0 = vld [vmem:[%s29483_s4 + $0x910] sm:$0xf]  ;;  %v17092_v61 = vor.u32 %v19474_v25, %v17091_v34  ;;  %v16979_v34 = vld [vmem:[%s29483_s4 + $0x1080] sm:$0xf] }
 0x526   :  { %11769 = vmatpush.bf16.msra.mxu2 %v17883_v20  ;;  %v16028_v9 = vor.u32 %v19208_v53, %v16027_v0  ;;  %v28346_v20 = vpop.f32.mrf.mxu2  ;;  %v19653_v0 = vld [vmem:[%s29485_s6 + $0x1a0] sm:$0xf0]  ;;  %v17774_v53 = vld [vmem:[%s29485_s6 + $0x150] sm:$0xf] }
 0x527   :  { %10677 = vmatpush.bf16.msrb.mxu3 %v16756_v51  ;;  %v17786_v51 = vld [vmem:[%s29485_s6 + $0x168] sm:$0xf] }
 0x528   :  { %10640 = vmatpush.bf16.msra.mxu0 %v16028_v9  ;;  %v17787_v6 = vor.u32 %v19647_v29, %v17786_v51  ;;  %v17775_v9 = vor.u32 %v19644_v7, %v17774_v53  ;;  %v17930_v51 = vld [vmem:[%s29485_s6 + $0x288] sm:$0xf]  ;;  %v19683_v29 = vld [vmem:[%s29485_s6 + $0x290] sm:$0xf0]  ;;  %v17714_v53 = vld [vmem:[%s29485_s6 + $0xd8] sm:$0xf] }
 0x529   :  { %10703 = vmatpush.bf16.msra.mxu1 %v17204_v23  ;;  %v19695_v23 = vld [vmem:[%s29485_s6 + $0x2f0] sm:$0xf0]  ;;  %v19629_v7 = vld [vmem:[%s29485_s6 + $0xe0] sm:$0xf0] }
 0x52a   :  { %11770 = vmatpush.bf16.msra.mxu2 %v17871_v1  ;;  %v19656_v1 = vld [vmem:[%s29485_s6 + $0x1b8] sm:$0xf0]  ;;  %v17979_v13 = vor.u32 %v19695_v23, %v17978_v52  ;;  %v19432_v52 = vld [vmem:[%s29483_s4 + $0x1028] sm:$0xf0]  ;;  %v17726_v23 = vld [vmem:[%s29485_s6 + $0xf0] sm:$0xf] }
 0x52b   :  { %10678 = vmatpush.bf16.msrb.mxu3 %v16728_v63  ;;  %v17823_v16 = vor.u32 %v19656_v1, %v17822_v49  ;;  %v19460_v63 = vld [vmem:[%s29483_s4 + $0x1108] sm:$0xf0]  ;;  %v10435_v25 = vpop.f32.mrf.mxu0  ;;  %v19439_v1 = vld [vmem:[%s29483_s4 + $0x1060] sm:$0xf0] }
 0x52c   :  { %10641 = vmatpush.bf16.msra.mxu0 %v16000_v46  ;;  %v17036_v10 = vor.u32 %v19460_v63, %v17035_v37  ;;  %v10436_v30 = vadd.f32 %v10435_v25, %v28308_v24  ;;  %v16951_v24 = vld [vmem:[%s29483_s4 + $0x1048] sm:$0xf]  ;;  %v19622_v25 = vld [vmem:[%s29485_s6 + $0xac] sm:$0xf] }
 0x52d   :  { %10704 = vmatpush.bf16.msra.mxu1 %v17176_v55  ;;  %v19692_v55 = vld [vmem:[%s29485_s6 + $0x2d8] sm:$0xf0]  ;;  %v16952_v11 = vor.u32 %v19439_v1, %v16951_v24  ;;  %v19619_v1 = vld [vmem:[%s29485_s6 + $0x94] sm:$0xf] }
 0x52e   :  { %11771 = vmatpush.bf16.msra.mxu2 %v17859_v43  ;;  %v17810_v43 = vld [vmem:[%s29485_s6 + $0x198] sm:$0xf]  ;;  %v10463_v14 = vpop.f32.mrf.mxu2  ;;  %v17967_v57 = vor.u32 %v19692_v55, %v17966_v58  ;;  %v10449_v36 = vadd.f32 %v28280_v26, %v10436_v30  ;;  %v19635_v26 = vld [vmem:[%s29485_s6 + $0x110] sm:$0xf0]  ;;  %v17690_v58 = vld [vmem:[%s29485_s6 + $0xa8] sm:$0xf] }
 0x52f   :  { %10679 = vmatpush.bf16.msrb.mxu3 %v16700_v35  ;;  %10642 = vmatmul.bf16.vlgmr.msra.gmra.mxu0 %v24308_v33  ;;  %v17811_v44 = vor.u32 %v19653_v0, %v17810_v43  ;;  %v17798_v33 = vld [vmem:[%s29485_s6 + $0x180] sm:$0xf]  ;;  %v10740_v35 = vmax.f32 %v27014_v18, 0.0  ;;  %v19446_v18 = vld [vmem:[%s29483_s4 + $0x1098] sm:$0xf0]  ;;  %v17739_v27 = vor.u32 %v19635_v26, %v17738_v45 }
 0x530   :  { %10686 = vmatpush.bf16.msrb.mxu0 %v17092_v61  ;;  %v17918_v43 = vld [vmem:[%s29485_s6 + $0x270] sm:$0xf]  ;;  %v19680_v0 = vld [vmem:[%s29485_s6 + $0x278] sm:$0xf0]  ;;  %v19623_v55 = vld [vmem:[%s29485_s6 + $0xb0] sm:$0xf0] }
 0x531   :  { %10705 = vmatpush.bf16.msra.mxu1 %v17148_v4  ;;  %v17750_v4 = vld [vmem:[%s29485_s6 + $0x120] sm:$0xf]  ;;  %v28464_v46 = vpack.c.bf16 %v10740_v35, %v10740_v35  ;;  %v19740_v24 = vld [vmem:[%s29485_s6 + $0x458] sm:$0xf0] }
 0x532   :  { %11772 = vmatpush.bf16.msra.mxu2 %v17847_v48  ;;  %v17007_v48 = vld [vmem:[%s29483_s4 + $0x10b8] sm:$0xf]  ;;  %v17751_v61 = vor.u32 %v19638_v56, %v17750_v4  ;;  %v10739_v4 = vmax.f32 %v26353_v42, 0.0  ;;  %v18158_v42 = vld [vmem:[%s29485_s6 + $0x450] sm:$0xf] }
 0x533   :  { %10680 = vmatpush.bf16.msrb.mxu3 %v16672_v40  ;;  %v17008_v2 = vor.u32 %v19453_v60, %v17007_v48  ;;  %v16980_v40 = vor.u32 %v19446_v18, %v16979_v34  ;;  %v17715_v48 = vor.u32 %v19629_v7, %v17714_v53  ;;  %v17691_v60 = vor.u32 %v19623_v55, %v17690_v58  ;;  %v17692_v18 = vld [vmem:[%s29485_s6 + $0xb4] sm:$0xf0]  ;;  %v17656_v53 = vld [vmem:[%s29485_s6 + $0x6c] sm:$0xf0] }
 0x534   :  { %10687 = vmatpush.bf16.msrb.mxu0 %v17064_v32  ;;  %v19632_v32 = vld [vmem:[%s29485_s6 + $0xf8] sm:$0xf0]  ;;  %v17703_v34 = vor.u32 %v19626_v15, %v17702_v28  ;;  %v28596_v45 = vpack.c.bf16 %v10739_v4, %v10739_v4  ;;  %v18159_v26 = vor.u32 %v19740_v24, %v18158_v42  ;;  %v17630_v55 = vld [vmem:[%s29485_s6 + $0x30] sm:$0xf]  ;;  %v19719_v42 = vld [vmem:[%s29485_s6 + $0x3b0] sm:$0xf0] }
 0x535   :  { %10706 = vmatpush.bf16.msra.mxu1 %v17120_v8  ;;  %v28476_v49 = vpop.f32.mrf.mxu1  ;;  %v17727_v14 = vor.u32 %v19632_v32, %v17726_v23  ;;  %v19604_v24 = vld [vmem:[%s29485_s6 + $0x1c] sm:$0xf] }
 0x536   :  { %11773 = vmatpush.bf16.msra.mxu2 %v17835_v12  ;;  %10681 = vmatmul.bf16.vlgmr.msrb.gmra.mxu3 %v24519_v21  ;;  %v19650_v21 = vld [vmem:[%s29485_s6 + $0x188] sm:$0xf0]  ;;  %v17942_v12 = vld [vmem:[%s29485_s6 + $0x2a0] sm:$0xf] }
 0x537   :  { %10731 = vmatpush.bf16.msra.mxu3 %v17596_v3  ;;  %v17799_v59 = vor.u32 %v19650_v21, %v17798_v33  ;;  %v28489_v3 = vadd.f32 %v28346_v20, %v10449_v36  ;;  %v17943_v31 = vor.u32 %v19686_v19, %v17942_v12  ;;  %v16923_v20 = vld [vmem:[%s29483_s4 + $0x1010] sm:$0xf]  ;;  %v17666_v19 = vld [vmem:[%s29485_s6 + $0x78] sm:$0xf]  ;;  %v19617_v36 = vld [vmem:[%s29485_s6 + $0x80] sm:$0xf0] }
 0x538   :  { %10707 = vmatmul.bf16.vlgmr.msra.gmra.mxu1 %v24683_v39  ;;  %v17954_v39 = vld [vmem:[%s29485_s6 + $0x2b8] sm:$0xf]  ;;  %10688 = vmatpush.bf16.msrb.mxu0 %v17036_v10  ;;  %v16924_v37 = vor.u32 %v19432_v52, %v16923_v20  ;;  %v19737_v20 = vld [vmem:[%s29485_s6 + $0x440] sm:$0xf0]  ;;  %v17668_v52 = vld [vmem:[%s29485_s6 + $0x84] sm:$0xf0] }
 0x539   :  { %11756 = vmatpush.bf16.msrb.mxu1 %v17787_v6  ;;  %v17955_v62 = vor.u32 %v19689_v50, %v17954_v39  ;;  %v28497_v8 = vpop.f32.mrf.mxu3  ;;  %v17931_v6 = vor.u32 %v19683_v29, %v17930_v51  ;;  %v17906_v10 = vld [vmem:[%s29485_s6 + $0x258] sm:$0xf]  ;;  %v18170_v39 = vld [vmem:[%s29485_s6 + $0x468] sm:$0xf]  ;;  %v19743_v50 = vld [vmem:[%s29485_s6 + $0x470] sm:$0xf0] }
 0x53a   :  { %11774 = vmatpush.bf16.msra.mxu2 %v17823_v16  ;;  %v10437_v16 = vpop.f32.mrf.mxu0  ;;  %v18171_v30 = vor.u32 %v19743_v50, %v18170_v39  ;;  %v19614_v51 = vld [vmem:[%s29485_s6 + $0x68] sm:$0xf0]  ;;  %v19605_v39 = vld [vmem:[%s29485_s6 + $0x20] sm:$0xf0] }
 0x53b   :  { %10732 = vmatpush.bf16.msra.mxu3 %v17568_v54  ;;  %v16895_v54 = vld [vmem:[%s29483_s4 + $0xfd8] sm:$0xf]  ;;  %v19616_v16 = vld [vmem:[%s29485_s6 + $0x7c] sm:$0xf] }
 0x53c   :  { %10689 = vmatpush.bf16.msrb.mxu0 %v17008_v2  ;;  %v17894_v2 = vld [vmem:[%s29485_s6 + $0x240] sm:$0xf] }
 0x53d   :  { %11757 = vmatpush.bf16.msrb.mxu1 %v17775_v9  ;;  %v10502_v63 = vpop.f32.mrf.mxu1  ;;  %v19677_v9 = vld [vmem:[%s29485_s6 + $0x260] sm:$0xf0] }
 0x53e   :  { %11775 = vmatpush.bf16.msra.mxu2 %v17811_v44  ;;  %v17919_v44 = vor.u32 %v19680_v0, %v17918_v43  ;;  %v17907_v35 = vor.u32 %v19677_v9, %v17906_v10  ;;  %v17642_v43 = vld [vmem:[%s29485_s6 + $0x48] sm:$0xf]  ;;  %v19611_v0 = vld [vmem:[%s29485_s6 + $0x50] sm:$0xf0]  ;;  %v19734_v63 = vld [vmem:[%s29485_s6 + $0x428] sm:$0xf0] }
 0x53f   :  { %11782 = vmatpush.bf16.msrb.mxu3 %v17979_v13  ;;  %v17643_v7 = vor.u32 %v19611_v0, %v17642_v43  ;;  %v19608_v10 = vld [vmem:[%s29485_s6 + $0x38] sm:$0xf0]  ;;  %v19718_v0 = vld [vmem:[%s29485_s6 + $0x3ac] sm:$0xf] }
 0x540   :  { %10690 = vmatpush.bf16.msrb.mxu0 %v16980_v40  ;;  %v28531_v13 = vpop.f32.mrf.mxu2  ;;  %v10741_v40 = vmax.f32 %v27734_v41, 0.0  ;;  %v17680_v41 = vld [vmem:[%s29485_s6 + $0x9c] sm:$0xf0]  ;;  %v17631_v15 = vor.u32 %v19608_v10, %v17630_v55  ;;  %v18050_v55 = vld [vmem:[%s29485_s6 + $0x378] sm:$0xf] }
 0x541   :  { %11758 = vmatpush.bf16.msrb.mxu1 %v17763_v5  ;;  %v10476_v33 = vpop.f32.mrf.mxu3  ;;  %v19674_v5 = vld [vmem:[%s29485_s6 + $0x248] sm:$0xf0]  ;;  %v19713_v10 = vld [vmem:[%s29485_s6 + $0x380] sm:$0xf0] }
 0x542   :  { %11776 = vmatpush.bf16.msra.mxu2 %v17799_v59  ;;  %v19620_v59 = vld [vmem:[%s29485_s6 + $0x98] sm:$0xf0]  ;;  %v17895_v12 = vor.u32 %v19674_v5, %v17894_v2  ;;  %v28604_v29 = vpack.c.bf16 %v10741_v40, %v10741_v40  ;;  %v18122_v33 = vld [vmem:[%s29485_s6 + $0x408] sm:$0xf]  ;;  %v18110_v5 = vld [vmem:[%s29485_s6 + $0x3f0] sm:$0xf] }
 0x543   :  { %11783 = vmatpush.bf16.msrb.mxu3 %v17967_v57  ;;  %v17678_v57 = vld [vmem:[%s29485_s6 + $0x90] sm:$0xf]  ;;  %v19725_v40 = vld [vmem:[%s29485_s6 + $0x3e0] sm:$0xf0] }
 0x544   :  { %10691 = vmatpush.bf16.msrb.mxu0 %v16952_v11  ;;  %v17679_v56 = vor.u32 %v19620_v59, %v17678_v57  ;;  %v17683_v11 = vor.u32 %v19619_v1, %v17680_v41  ;;  %v17618_v59 = vld [vmem:[%s29485_s6 + $0x18] sm:$0xf]  ;;  %v17620_v1 = vld [vmem:[%s29485_s6 + $0x24] sm:$0xf0]  ;;  %v10475_v41 = vadd.f32 %v28497_v8, %v28489_v3  ;;  %v18062_v8 = vld [vmem:[%s29485_s6 + $0x390] sm:$0xf] }
 0x545   :  { %11777 = vmatmul.bf16.vlgmr.msra.gmra.mxu2 %v28464_v46  ;;  %11759 = vmatpush.bf16.msrb.mxu1 %v17751_v61  ;;  %v17695_v61 = vor.u32 %v19622_v25, %v17692_v18  ;;  %v19607_v25 = vld [vmem:[%s29485_s6 + $0x34] sm:$0xf]  ;;  %v17632_v18 = vld [vmem:[%s29485_s6 + $0x3c] sm:$0xf0]  ;;  %v17619_v4 = vor.u32 %v19605_v39, %v17618_v59  ;;  %v17623_v3 = vor.u32 %v19604_v24, %v17620_v1  ;;  %v19710_v59 = vld [vmem:[%s29485_s6 + $0x368] sm:$0xf0] }
 0x546   :  { %17603 = vmatmul.msk.bf16.vlgmr.msra.gmra.mxu3 %vm9551_vm1, %v25005_v17  ;;  %v19425_v17 = vld [vmem:[%s29483_s4 + $0xff0] sm:$0xf0] }
 0x547   :  { %11784 = vmatpush.bf16.msrb.mxu3 %v17955_v62  ;;  %v16896_v21 = vor.u32 %v19425_v17, %v16895_v54  ;;  %v18134_v54 = vld [vmem:[%s29485_s6 + $0x420] sm:$0xf]  ;;  %v19613_v17 = vld [vmem:[%s29485_s6 + $0x64] sm:$0xf] }
 0x548   :  { %10692 = vmatpush.bf16.msrb.mxu0 %v16924_v37  ;;  %v10515_v62 = vpop.f32.mrf.mxu2  ;;  %v18135_v58 = vor.u32 %v19734_v63, %v18134_v54  ;;  %v17659_v9 = vor.u32 %v19613_v17, %v17656_v53 }
 0x549   :  { %11760 = vmatpush.bf16.msrb.mxu1 %v17739_v27  ;;  %v18146_v27 = vld [vmem:[%s29485_s6 + $0x438] sm:$0xf]  ;;  %v17606_v62 = vld [vmem:[%s29485_s6] sm:$0xf] }
 0x54b   :  { %11785 = vmatpush.bf16.msrb.mxu3 %v17943_v31  ;;  %v17654_v31 = vld [vmem:[%s29485_s6 + $0x60] sm:$0xf]  ;;  %v28620_v32 = vpop.f32.mrf.mxu0 }
 0x54c   :  { %10693 = vmatpush.bf16.msrb.mxu0 %v16896_v21  ;;  %v17655_v23 = vor.u32 %v19614_v51, %v17654_v31  ;;  %v19731_v21 = vld [vmem:[%s29485_s6 + $0x410] sm:$0xf0]  ;;  %v10738_v31 = vmax.f32 %v25882_v22, 0.0  ;;  %v19716_v22 = vld [vmem:[%s29485_s6 + $0x398] sm:$0xf0] }
 0x54d   :  { %11761 = vmatpush.bf16.msrb.mxu1 %v17727_v14  ;;  %v17671_v14 = vor.u32 %v19616_v16, %v17668_v52  ;;  %v10488_v16 = vadd.f32 %v28620_v32, %v10475_v41  ;;  %v19694_v52 = vld [vmem:[%s29485_s6 + $0x2ec] sm:$0xf]  ;;  %v19601_v32 = vld [vmem:[%s29485_s6 + $0x4] sm:$0xf]  ;;  %v18063_v17 = vor.u32 %v19716_v22, %v18062_v8 }
 0x54e   :  { %v28742_v54 = vpack.c.bf16 %v10738_v31, %v10738_v31 }
 0x54f   :  { %11786 = vmatpush.bf16.msrb.mxu3 %v17931_v6  ;;  %10694 = vmatmul.bf16.vlgmr.msrb.gmra.mxu0 %v24522_v47  ;;  %v17667_v47 = vor.u32 %v19617_v36, %v17666_v19  ;;  %v18147_v6 = vor.u32 %v19737_v20, %v18146_v27  ;;  %v18098_v19 = vld [vmem:[%s29485_s6 + $0x3d8] sm:$0xf]  ;;  %v17635_v36 = vor.u32 %v19607_v25, %v17632_v18  ;;  %v18086_v27 = vld [vmem:[%s29485_s6 + $0x3c0] sm:$0xf]  ;;  %v19722_v20 = vld [vmem:[%s29485_s6 + $0x3c8] sm:$0xf0] }
 0x550   :  { %11743 = vmatpush.bf16.msra.mxu0 %v17691_v60  ;;  %v28628_v37 = vpop.f32.mrf.mxu2  ;;  %v17644_v60 = vld [vmem:[%s29485_s6 + $0x54] sm:$0xf0]  ;;  %v18099_v51 = vor.u32 %v19725_v40, %v18098_v19  ;;  %v18087_v63 = vor.u32 %v19722_v20, %v18086_v27  ;;  %v10501_v53 = vadd.f32 %v28476_v49, %v10488_v16  ;;  %v17968_v49 = vld [vmem:[%s29485_s6 + $0x2dc] sm:$0xf0]  ;;  %v19685_v19 = vld [vmem:[%s29485_s6 + $0x2a4] sm:$0xf] }
 0x551   :  { %11762 = vmatpush.bf16.msrb.mxu1 %v17715_v48  ;;  %v19610_v48 = vld [vmem:[%s29485_s6 + $0x4c] sm:$0xf]  ;;  %v19709_v40 = vld [vmem:[%s29485_s6 + $0x364] sm:$0xf]  ;;  %v18028_v20 = vld [vmem:[%s29485_s6 + $0x354] sm:$0xf0] }
 0x552   :  { %v17647_v2 = vor.u32 %v19610_v48, %v17644_v60  ;;  %v18064_v48 = vld [vmem:[%s29485_s6 + $0x39c] sm:$0xf0]  ;;  %v18051_v60 = vor.u32 %v19713_v10, %v18050_v55  ;;  %v19706_v27 = vld [vmem:[%s29485_s6 + $0x34c] sm:$0xf] }
 0x553   :  { %11787 = vmatpush.bf16.msrb.mxu3 %v17919_v44  ;;  %v10489_v57 = vpop.f32.mrf.mxu0  ;;  %v17990_v55 = vld [vmem:[%s29485_s6 + $0x300] sm:$0xf]  ;;  %v19698_v10 = vld [vmem:[%s29485_s6 + $0x308] sm:$0xf0] }
 0x554   :  { %11744 = vmatpush.bf16.msra.mxu0 %v17679_v56 }
 0x555   :  { %11763 = vmatpush.bf16.msrb.mxu1 %v17703_v34  ;;  %v28642_v44 = vpop.f32.mrf.mxu1  ;;  %v19728_v34 = vld [vmem:[%s29485_s6 + $0x3f8] sm:$0xf0] }
 0x557   :  { %11788 = vmatpush.bf16.msrb.mxu3 %v17907_v35  ;;  %v18123_v35 = vor.u32 %v19731_v21, %v18122_v33  ;;  %v19691_v33 = vld [vmem:[%s29485_s6 + $0x2d4] sm:$0xf] }
 0x558   :  { %11764 = vmatmul.bf16.vlgmr.msrb.gmra.mxu1 %v28596_v45  ;;  %11745 = vmatpush.bf16.msra.mxu0 %v17667_v47  ;;  %v10567_v50 = vpop.f32.mrf.mxu2  ;;  %v19715_v21 = vld [vmem:[%s29485_s6 + $0x394] sm:$0xf]  ;;  %v17971_v57 = vor.u32 %v19691_v33, %v17968_v49  ;;  %v17908_v49 = vld [vmem:[%s29485_s6 + $0x264] sm:$0xf0] }
 0x559   :  { %11808 = vmatpush.bf16.msra.mxu1 %v18171_v30  ;;  %v28662_v28 = vpop.f32.mrf.mxu3  ;;  %v18111_v30 = vor.u32 %v19728_v34, %v18110_v5  ;;  %v18067_v39 = vor.u32 %v19715_v21, %v18064_v48  ;;  %v19688_v50 = vld [vmem:[%s29485_s6 + $0x2bc] sm:$0xf]  ;;  %v18052_v34 = vld [vmem:[%s29485_s6 + $0x384] sm:$0xf0]  ;;  %v19670_v21 = vld [vmem:[%s29485_s6 + $0x22c] sm:$0xf] }
 0x55a   :  { %v19712_v5 = vld [vmem:[%s29485_s6 + $0x37c] sm:$0xf]  ;;  %v17884_v48 = vld [vmem:[%s29485_s6 + $0x234] sm:$0xf0] }
 0x55b   :  { %11789 = vmatpush.bf16.msrb.mxu3 %v17895_v12  ;;  %v19602_v12 = vld [vmem:[%s29485_s6 + $0x8] sm:$0xf0] }
 0x55c   :  { %11746 = vmatpush.bf16.msra.mxu0 %v17655_v23  ;;  %v17980_v23 = vld [vmem:[%s29485_s6 + $0x2f4] sm:$0xf0] }
 0x55d   :  { %11809 = vmatpush.bf16.msra.mxu1 %v18159_v26  ;;  %v10554_v56 = vpop.f32.mrf.mxu1  ;;  %v17607_v26 = vor.u32 %v19602_v12, %v17606_v62  ;;  %v18055_v12 = vor.u32 %v19712_v5, %v18052_v34  ;;  %v19667_v34 = vld [vmem:[%s29485_s6 + $0x214] sm:$0xf] }
 0x55e   :  { %11790 = vmatmul.bf16.vlgmr.msrb.gmra.mxu3 %v28604_v29  ;;  %v18026_v56 = vld [vmem:[%s29485_s6 + $0x348] sm:$0xf] }
 0x55f   :  { %11834 = vmatpush.bf16.msra.mxu3 %v17695_v61  ;;  %v18074_v61 = vld [vmem:[%s29485_s6 + $0x3a8] sm:$0xf] }
 0x560   :  { %11747 = vmatpush.bf16.msra.mxu0 %v17643_v7  ;;  %v17983_v7 = vor.u32 %v19694_v52, %v17980_v23  ;;  %v18002_v52 = vld [vmem:[%s29485_s6 + $0x318] sm:$0xf] }
 0x561   :  { %11810 = vmatpush.bf16.msra.mxu1 %v18147_v6  ;;  %v10528_v47 = vpop.f32.mrf.mxu3  ;;  %v17608_v6 = vld [vmem:[%s29485_s6 + $0xc] sm:$0xf0] }
 0x562   :  { %v18014_v47 = vld [vmem:[%s29485_s6 + $0x330] sm:$0xf] }
 0x563   :  { %11835 = vmatpush.bf16.msra.mxu3 %v17683_v11  ;;  %v18075_v11 = vor.u32 %v19719_v42, %v18074_v61  ;;  %v18040_v61 = vld [vmem:[%s29485_s6 + $0x36c] sm:$0xf0] }
 0x564   :  { %11748 = vmatpush.bf16.msra.mxu0 %v17631_v15  ;;  %v10514_v15 = vadd.f32 %v28531_v13, %v10501_v53  ;;  %v17956_v13 = vld [vmem:[%s29485_s6 + $0x2c4] sm:$0xf0]  ;;  %v18043_v31 = vor.u32 %v19709_v40, %v18040_v61 }
 0x565   :  { %11811 = vmatpush.bf16.msra.mxu1 %v18135_v58  ;;  %v17611_v58 = vor.u32 %v19601_v32, %v17608_v6  ;;  %v18031_v32 = vor.u32 %v19706_v27, %v18028_v20  ;;  %v19679_v6 = vld [vmem:[%s29485_s6 + $0x274] sm:$0xf] }
 0x566   :  { %v10527_v18 = vadd.f32 %v28662_v28, %v10514_v15  ;;  %v17944_v28 = vld [vmem:[%s29485_s6 + $0x2ac] sm:$0xf0]  ;;  %v18004_v15 = vld [vmem:[%s29485_s6 + $0x324] sm:$0xf0] }
 0x567   :  { %11836 = vmatpush.bf16.msra.mxu3 %v17671_v14  ;;  %v18076_v14 = vld [vmem:[%s29485_s6 + $0x3b4] sm:$0xf0]  ;;  %v17947_v41 = vor.u32 %v19685_v19, %v17944_v28 }
 0x568   :  { %11749 = vmatpush.bf16.msra.mxu0 %v17619_v4  ;;  %v28734_v43 = vpop.f32.mrf.mxu2  ;;  %v17959_v4 = vor.u32 %v19688_v50, %v17956_v13  ;;  %v17887_v50 = vor.u32 %v19670_v21, %v17884_v48  ;;  %v19673_v13 = vld [vmem:[%s29485_s6 + $0x244] sm:$0xf] }
 0x569   :  { %11812 = vmatpush.bf16.msra.mxu1 %v18123_v35  ;;  %v18038_v35 = vld [vmem:[%s29485_s6 + $0x360] sm:$0xf] }
 0x56a   :  { %v18039_v25 = vor.u32 %v19710_v59, %v18038_v35  ;;  %v10742_v35 = vmax.f32 %v28269_v38, 0.0  ;;  %v17872_v38 = vld [vmem:[%s29485_s6 + $0x21c] sm:$0xf0] }
 0x56b   :  { %11837 = vmatpush.bf16.msra.mxu3 %v17659_v9  ;;  %v18079_v9 = vor.u32 %v19718_v0, %v18076_v14  ;;  %v17920_v0 = vld [vmem:[%s29485_s6 + $0x27c] sm:$0xf0] }
 0x56c   :  { %11750 = vmatpush.bf16.msra.mxu0 %v17607_v26  ;;  %v10539_v62 = vpop.f32.mrf.mxu0  ;;  %v19704_v26 = vld [vmem:[%s29485_s6 + $0x338] sm:$0xf0]  ;;  %v28905_v19 = vpack.c.bf16 %v10742_v35, %v10742_v35 }
 0x56d   :  { %11813 = vmatpush.bf16.msra.mxu1 %v18111_v30  ;;  %v19707_v30 = vld [vmem:[%s29485_s6 + $0x350] sm:$0xf0]  ;;  %v18015_v16 = vor.u32 %v19704_v26, %v18014_v47  ;;  %v17686_v47 = vld [vmem:[%s29485_s6 + $0x98] sm:$0xf]  ;;  %v19621_v26 = vld [vmem:[%s29485_s6 + $0xa0] sm:$0xf0] }
 0x56e   :  { %v18027_v42 = vor.u32 %v19707_v30, %v18026_v56  ;;  %v17992_v56 = vld [vmem:[%s29485_s6 + $0x30c] sm:$0xf0]  ;;  %v17687_v20 = vor.u32 %v19621_v26, %v17686_v47 }
 0x56f   :  { %11838 = vmatpush.bf16.msra.mxu3 %v17647_v2  ;;  %11751 = vmatmul.bf16.vlgmr.msra.gmra.mxu0 %v28742_v54 }
 0x570   :  { %11795 = vmatpush.bf16.msrb.mxu0 %v18075_v11  ;;  %v10619_v2 = vpop.f32.mrf.mxu2 }
 0x571   :  { %11814 = vmatpush.bf16.msra.mxu1 %v18099_v51  ;;  %v19682_v51 = vld [vmem:[%s29485_s6 + $0x28c] sm:$0xf]  ;;  %v17896_v2 = vld [vmem:[%s29485_s6 + $0x24c] sm:$0xf0] }
 0x572   :  { %v17899_v28 = vor.u32 %v19673_v13, %v17896_v2  ;;  %v17746_v13 = vld [vmem:[%s29485_s6 + $0x110] sm:$0xf]  ;;  %v19636_v2 = vld [vmem:[%s29485_s6 + $0x118] sm:$0xf0] }
 0x573   :  { %11839 = vmatpush.bf16.msra.mxu3 %v17635_v36  ;;  %v10540_v36 = vadd.f32 %v10539_v62, %v10527_v18  ;;  %v19624_v18 = vld [vmem:[%s29485_s6 + $0xb8] sm:$0xf0]  ;;  %v17794_v62 = vld [vmem:[%s29485_s6 + $0x170] sm:$0xf] }
 0x574   :  { %11796 = vmatpush.bf16.msrb.mxu0 %v18063_v17  ;;  %v10541_v23 = vpop.f32.mrf.mxu0  ;;  %v18016_v17 = vld [vmem:[%s29485_s6 + $0x33c] sm:$0xf0] }
 0x575   :  { %11815 = vmatpush.bf16.msra.mxu1 %v18087_v63  ;;  %v10553_v24 = vadd.f32 %v28642_v44, %v10540_v36  ;;  %v28804_v1 = vpop.f32.mrf.mxu1  ;;  %v17932_v44 = vld [vmem:[%s29485_s6 + $0x294] sm:$0xf0]  ;;  %v19703_v63 = vld [vmem:[%s29485_s6 + $0x334] sm:$0xf]  ;;  %v17875_v36 = vor.u32 %v19667_v34, %v17872_v38  ;;  %v19652_v34 = vld [vmem:[%s29485_s6 + $0x19c] sm:$0xf] }
 0x576   :  { %v17935_v22 = vor.u32 %v19682_v51, %v17932_v44  ;;  %v18019_v33 = vor.u32 %v19703_v63, %v18016_v17  ;;  %v19645_v51 = vld [vmem:[%s29485_s6 + $0x160] sm:$0xf0] }
 0x577   :  { %11840 = vmatpush.bf16.msra.mxu3 %v17623_v3  ;;  %v10566_v11 = vadd.f32 %v28628_v37, %v10553_v24  ;;  %v19701_v37 = vld [vmem:[%s29485_s6 + $0x320] sm:$0xf0]  ;;  %v17860_v24 = vld [vmem:[%s29485_s6 + $0x204] sm:$0xf0] }
 0x578   :  { %11797 = vmatpush.bf16.msrb.mxu0 %v18051_v60  ;;  %v18003_v53 = vor.u32 %v19701_v37, %v18002_v52  ;;  %v19700_v60 = vld [vmem:[%s29485_s6 + $0x31c] sm:$0xf]  ;;  %v17674_v52 = vld [vmem:[%s29485_s6 + $0x80] sm:$0xf]  ;;  %v19618_v37 = vld [vmem:[%s29485_s6 + $0x88] sm:$0xf0] }
 0x579   :  { %11873 = vmatpush.bf16.msrb.mxu1 %v17983_v7  ;;  %v10743_v3 = vmax.f32 %v10566_v11, 0.0  ;;  %v28825_v8 = vpop.f32.mrf.mxu3  ;;  %v18007_v5 = vor.u32 %v19700_v60, %v18004_v15  ;;  %v19777_v11 = vld [vmem:[%s29484_s5] sm:$0x7f]  ;;  %v17675_v17 = vor.u32 %v19618_v37, %v17674_v52  ;;  %v19655_v15 = vld [vmem:[%s29485_s6 + $0x1b4] sm:$0xf] }
 0x57a   :  { %v6015_v27 = vperm.slane %v19777_v11, 6  ;;  %v17776_v52 = vld [vmem:[%s29485_s6 + $0x15c] sm:$0xf0] }
 0x57b   :  { %11841 = vmatpush.bf16.msra.mxu3 %v17611_v58  ;;  %v28839_v14 = vpack.c.bf16 %v10743_v3, %v10743_v3  ;;  %v17923_v58 = vor.u32 %v19679_v6, %v17920_v0  ;;  %v17848_v3 = vld [vmem:[%s29485_s6 + $0x1ec] sm:$0xf0]  ;;  %v19642_v6 = vld [vmem:[%s29485_s6 + $0x148] sm:$0xf0] }
 0x57c   :  { %11798 = vmatpush.bf16.msrb.mxu0 %v18039_v25  ;;  %v17698_v25 = vld [vmem:[%s29485_s6 + $0xb0] sm:$0xf]  ;;  %v10579_v63 = vadd.f32 %v28825_v8, %v6015_v27  ;;  %v19615_v8 = vld [vmem:[%s29485_s6 + $0x70] sm:$0xf0]  ;;  %v17626_v27 = vld [vmem:[%s29485_s6 + $0x20] sm:$0xf] }
 0x57d   :  { %11874 = vmatpush.bf16.msrb.mxu1 %v17971_v57  ;;  %v10606_v7 = vpop.f32.mrf.mxu1  ;;  %v17991_v57 = vor.u32 %v19698_v10, %v17990_v55  ;;  %v17699_v40 = vor.u32 %v19624_v18, %v17698_v25  ;;  %v17662_v10 = vld [vmem:[%s29485_s6 + $0x68] sm:$0xf]  ;;  %v17638_v18 = vld [vmem:[%s29485_s6 + $0x38] sm:$0xf] }
 0x57e   :  { %11842 = vmatmul.bf16.vlgmr.msra.gmra.mxu3 %v28742_v54  ;;  %11816 = vmatmul.bf16.vlgmr.msra.gmra.mxu1 %v28839_v14  ;;  %v17836_v7 = vld [vmem:[%s29485_s6 + $0x1d4] sm:$0xf0]  ;;  %v17663_v60 = vor.u32 %v19615_v8, %v17662_v10  ;;  %v19640_v10 = vld [vmem:[%s29485_s6 + $0x13c] sm:$0xf]  ;;  %v17764_v8 = vld [vmem:[%s29485_s6 + $0x144] sm:$0xf0] }
 0x57f   :  { %11886 = vmatpush.bf16.msrb.mxu3 %v18079_v9  ;;  %v19676_v9 = vld [vmem:[%s29485_s6 + $0x25c] sm:$0xf] }
 0x580   :  { %11799 = vmatpush.bf16.msrb.mxu0 %v18027_v42  ;;  %v19664_v42 = vld [vmem:[%s29485_s6 + $0x1fc] sm:$0xf] }
 0x581   :  { %11875 = vmatpush.bf16.msrb.mxu1 %v17959_v4  ;;  %v10580_v59 = vpop.f32.mrf.mxu3  ;;  %v19697_v4 = vld [vmem:[%s29485_s6 + $0x304] sm:$0xf]  ;;  %v17863_v44 = vor.u32 %v19664_v42, %v17860_v24  ;;  %v19646_v42 = vld [vmem:[%s29485_s6 + $0x16c] sm:$0xf]  ;;  %v17788_v24 = vld [vmem:[%s29485_s6 + $0x174] sm:$0xf0] }
 0x582   :  { %v17995_v61 = vor.u32 %v19697_v4, %v17992_v56  ;;  %v19609_v4 = vld [vmem:[%s29485_s6 + $0x40] sm:$0xf0]  ;;  %v17791_v47 = vor.u32 %v19646_v42, %v17788_v24  ;;  %v17740_v42 = vld [vmem:[%s29485_s6 + $0x114] sm:$0xf0]  ;;  %v18154_v24 = vld [vmem:[%s29485_s6 + $0x440] sm:$0xf] }
 0x583   :  { %11887 = vmatpush.bf16.msrb.mxu3 %v18067_v39  ;;  %v17911_v39 = vor.u32 %v19676_v9, %v17908_v49  ;;  %v19639_v49 = vld [vmem:[%s29485_s6 + $0x130] sm:$0xf0]  ;;  %v17639_v26 = vor.u32 %v19609_v4, %v17638_v18  ;;  %v17890_v4 = vld [vmem:[%s29485_s6 + $0x230] sm:$0xf] }
 0x584   :  { %11800 = vmatpush.bf16.msrb.mxu0 %v18015_v16  ;;  %v19661_v16 = vld [vmem:[%s29485_s6 + $0x1e4] sm:$0xf] }
 0x585   :  { %11876 = vmatpush.bf16.msrb.mxu1 %v17947_v41  ;;  %v17851_v0 = vor.u32 %v19661_v16, %v17848_v3  ;;  %v17722_v16 = vld [vmem:[%s29485_s6 + $0xe0] sm:$0xf]  ;;  %v19630_v3 = vld [vmem:[%s29485_s6 + $0xe8] sm:$0xf0] }
 0x587   :  { %11888 = vmatpush.bf16.msrb.mxu3 %v18055_v12  ;;  %v19648_v12 = vld [vmem:[%s29485_s6 + $0x178] sm:$0xf0] }
 0x588   :  { %11801 = vmatpush.bf16.msrb.mxu0 %v18003_v53  ;;  %v28897_v30 = vpop.f32.mrf.mxu2  ;;  %v17795_v41 = vor.u32 %v19648_v12, %v17794_v62  ;;  %v19658_v53 = vld [vmem:[%s29485_s6 + $0x1cc] sm:$0xf]  ;;  %v17747_v62 = vor.u32 %v19636_v2, %v17746_v13  ;;  %v17734_v12 = vld [vmem:[%s29485_s6 + $0xf8] sm:$0xf]  ;;  %v19637_v13 = vld [vmem:[%s29485_s6 + $0x124] sm:$0xf] }
 0x589   :  { %11877 = vmatpush.bf16.msrb.mxu1 %v17935_v22  ;;  %v17839_v21 = vor.u32 %v19658_v53, %v17836_v7  ;;  %v18082_v53 = vld [vmem:[%s29485_s6 + $0x3b0] sm:$0xf]  ;;  %v19720_v7 = vld [vmem:[%s29485_s6 + $0x3b8] sm:$0xf0] }
 0x58a   :  { %v17752_v2 = vld [vmem:[%s29485_s6 + $0x12c] sm:$0xf0] }
 0x58b   :  { %11889 = vmatpush.bf16.msrb.mxu3 %v18043_v31  ;;  %v17782_v31 = vld [vmem:[%s29485_s6 + $0x158] sm:$0xf] }
 0x58c   :  { %11802 = vmatpush.bf16.msrb.mxu0 %v17991_v57  ;;  %v17783_v22 = vor.u32 %v19645_v51, %v17782_v31  ;;  %v17824_v57 = vld [vmem:[%s29485_s6 + $0x1bc] sm:$0xf0]  ;;  %v19649_v31 = vld [vmem:[%s29485_s6 + $0x184] sm:$0xf]  ;;  %v17800_v51 = vld [vmem:[%s29485_s6 + $0x18c] sm:$0xf0] }
 0x58d   :  { %11878 = vmatpush.bf16.msrb.mxu1 %v17923_v58  ;;  %v10591_v58 = vpop.f32.mrf.mxu0  ;;  %v17803_v37 = vor.u32 %v19649_v31, %v17800_v51  ;;  %v17878_v31 = vld [vmem:[%s29485_s6 + $0x218] sm:$0xf] }
 0x58e   :  { %v10592_v9 = vadd.f32 %v10591_v58, %v10579_v63  ;;  %v19603_v63 = vld [vmem:[%s29485_s6 + $0x10] sm:$0xf0]  ;;  %v17710_v58 = vld [vmem:[%s29485_s6 + $0xc8] sm:$0xf] }
 0x58f   :  { %11890 = vmatpush.bf16.msrb.mxu3 %v18031_v32  ;;  %11803 = vmatmul.bf16.vlgmr.msrb.gmra.mxu0 %v28905_v19  ;;  %v17770_v32 = vld [vmem:[%s29485_s6 + $0x140] sm:$0xf] }
 0x590   :  { %11860 = vmatpush.bf16.msra.mxu0 %v17887_v50  ;;  %v10671_v23 = vpop.f32.mrf.mxu2  ;;  %v17771_v55 = vor.u32 %v19642_v6, %v17770_v32  ;;  %v10605_v48 = vadd.f32 %v28804_v1, %v10592_v9  ;;  %v19612_v1 = vld [vmem:[%s29485_s6 + $0x58] sm:$0xf0]  ;;  %v18178_v9 = vld [vmem:[%s29485_s6 + $0x470] sm:$0xf] }
 0x591   :  { %11879 = vmatpush.bf16.msrb.mxu1 %v17911_v39  ;;  %v17650_v39 = vld [vmem:[%s29485_s6 + $0x50] sm:$0xf] }
 0x592   :  { %v28984_v50 = vadd.f32 %v28734_v43, %v10605_v48  ;;  %v17651_v25 = vor.u32 %v19612_v1, %v17650_v39  ;;  %v17812_v43 = vld [vmem:[%s29485_s6 + $0x1a4] sm:$0xf0]  ;;  %v18166_v1 = vld [vmem:[%s29485_s6 + $0x458] sm:$0xf] }
 0x593   :  { %11891 = vmatpush.bf16.msrb.mxu3 %v18019_v33  ;;  %v17758_v33 = vld [vmem:[%s29485_s6 + $0x128] sm:$0xf] }
 0x594   :  { %11861 = vmatpush.bf16.msra.mxu0 %v17875_v36  ;;  %v17759_v59 = vor.u32 %v19639_v49, %v17758_v33  ;;  %v19746_v36 = vld [vmem:[%s29485_s6 + $0x488] sm:$0xf0]  ;;  %v19744_v33 = vld [vmem:[%s29485_s6 + $0x478] sm:$0xf0]  ;;  %v17767_v49 = vor.u32 %v19640_v10, %v17764_v8  ;;  %v17716_v8 = vld [vmem:[%s29485_s6 + $0xe4] sm:$0xf0] }
 0x595   :  { %11880 = vmatpush.bf16.msrb.mxu1 %v17899_v28  ;;  %v28975_v35 = vpop.f32.mrf.mxu1  ;;  %v10593_v56 = vpop.f32.mrf.mxu0  ;;  %v18182_v28 = vld [vmem:[%s29485_s6 + $0x480] sm:$0xf]  ;;  %v18179_v39 = vor.u32 %v19744_v33, %v18178_v9  ;;  %v19628_v10 = vld [vmem:[%s29485_s6 + $0xdc] sm:$0xf] }
 0x596   :  { %v19672_v56 = vld [vmem:[%s29485_s6 + $0x238] sm:$0xf0]  ;;  %v17719_v33 = vor.u32 %v19628_v10, %v17716_v8 }
 0x597   :  { %11892 = vmatpush.bf16.msrb.mxu3 %v18007_v5  ;;  %v17827_v5 = vor.u32 %v19655_v15, %v17824_v57  ;;  %v18070_v57 = vld [vmem:[%s29485_s6 + $0x398] sm:$0xf]  ;;  %v19732_v9 = vld [vmem:[%s29485_s6 + $0x418] sm:$0xf0] }
 0x598   :  { %11862 = vmatpush.bf16.msra.mxu0 %v17863_v44  ;;  %11881 = vmatmul.bf16.vlgmr.msrb.gmra.mxu1 %v28604_v29 }
 0x599   :  { %11925 = vmatpush.bf16.msra.mxu1 %v17699_v40  ;;  %v28995_v38 = vpop.f32.mrf.mxu3  ;;  %v19633_v40 = vld [vmem:[%s29485_s6 + $0x100] sm:$0xf0] }
 0x59a   :  { %v17735_v11 = vor.u32 %v19633_v40, %v17734_v12  ;;  %v18058_v12 = vld [vmem:[%s29485_s6 + $0x380] sm:$0xf]  ;;  %v19714_v40 = vld [vmem:[%s29485_s6 + $0x388] sm:$0xf0] }
 0x59b   :  { %11893 = vmatpush.bf16.msrb.mxu3 %v17995_v61  ;;  %v18183_v61 = vor.u32 %v19746_v36, %v18182_v28  ;;  %v17891_v28 = vor.u32 %v19672_v56, %v17890_v4  ;;  %v18059_v51 = vor.u32 %v19714_v40, %v18058_v12  ;;  %v19660_v4 = vld [vmem:[%s29485_s6 + $0x1d8] sm:$0xf0]  ;;  %v19702_v40 = vld [vmem:[%s29485_s6 + $0x328] sm:$0xf0] }
 0x59c   :  { %11863 = vmatpush.bf16.msra.mxu0 %v17851_v0  ;;  %v17614_v0 = vld [vmem:[%s29485_s6 + $0x8] sm:$0xf] }
 0x59d   :  { %11926 = vmatpush.bf16.msra.mxu1 %v17687_v20  ;;  %11828 = vmatpush.bf16.msrb.mxu2 %v18183_v61  ;;  %v10658_v44 = vpop.f32.mrf.mxu1  ;;  %v19606_v20 = vld [vmem:[%s29485_s6 + $0x28] sm:$0xf0]  ;;  %v17615_v48 = vor.u32 %v19603_v63, %v17614_v0  ;;  %v18034_v63 = vld [vmem:[%s29485_s6 + $0x350] sm:$0xf] }
 0x59e   :  { %11894 = vmatmul.bf16.vlgmr.msrb.gmra.mxu3 %v28905_v19  ;;  %v17627_v6 = vor.u32 %v19606_v20, %v17626_v27  ;;  %v19634_v61 = vld [vmem:[%s29485_s6 + $0x10c] sm:$0xf]  ;;  %v18046_v44 = vld [vmem:[%s29485_s6 + $0x368] sm:$0xf]  ;;  %v10631_v27 = vadd.f32 %v28995_v38, %v28984_v50  ;;  %v19735_v38 = vld [vmem:[%s29485_s6 + $0x430] sm:$0xf0] }
 0x59f   :  { %11938 = vmatpush.bf16.msra.mxu3 %v17795_v41  ;;  %v17815_v41 = vor.u32 %v19652_v34, %v17812_v43  ;;  %v17755_v34 = vor.u32 %v19637_v13, %v17752_v2  ;;  %v18184_v43 = vld [vmem:[%s29485_s6 + $0x48c] sm:$0xf0]  ;;  %v18142_v50 = vld [vmem:[%s29485_s6 + $0x428] sm:$0xf]  ;;  %v19625_v13 = vld [vmem:[%s29485_s6 + $0xc4] sm:$0xf] }
 0x5a0   :  { %11864 = vmatpush.bf16.msra.mxu0 %v17839_v21  ;;  %v17704_v2 = vld [vmem:[%s29485_s6 + $0xcc] sm:$0xf0] }
 0x5a1   :  { %11927 = vmatpush.bf16.msra.mxu1 %v17675_v17  ;;  %11847 = vmatpush.bf16.msra.mxu2 %v17791_v47  ;;  %v10632_v32 = vpop.f32.mrf.mxu3  ;;  %v17723_v17 = vor.u32 %v19630_v3, %v17722_v16  ;;  %v17743_v47 = vor.u32 %v19634_v61, %v17740_v42  ;;  %v19711_v16 = vld [vmem:[%s29485_s6 + $0x370] sm:$0xf0]  ;;  %v18106_v61 = vld [vmem:[%s29485_s6 + $0x3e0] sm:$0xf]  ;;  %v19726_v42 = vld [vmem:[%s29485_s6 + $0x3e8] sm:$0xf0] }
 0x5a2   :  { %v19631_v3 = vld [vmem:[%s29485_s6 + $0xf4] sm:$0xf]  ;;  %v17866_v32 = vld [vmem:[%s29485_s6 + $0x200] sm:$0xf]  ;;  %v18047_v0 = vor.u32 %v19711_v16, %v18046_v44  ;;  %v19654_v16 = vld [vmem:[%s29485_s6 + $0x1a8] sm:$0xf0] }
 0x5a3   :  { %11939 = vmatpush.bf16.msra.mxu3 %v17783_v22  ;;  %v19643_v22 = vld [vmem:[%s29485_s6 + $0x154] sm:$0xf] }
 0x5a4   :  { %11865 = vmatpush.bf16.msra.mxu0 %v17827_v5  ;;  %v17779_v23 = vor.u32 %v19643_v22, %v17776_v52  ;;  %v19741_v5 = vld [vmem:[%s29485_s6 + $0x460] sm:$0xf0]  ;;  %v17728_v22 = vld [vmem:[%s29485_s6 + $0xfc] sm:$0xf0]  ;;  %v19699_v44 = vld [vmem:[%s29485_s6 + $0x310] sm:$0xf0] }
 0x5a5   :  { %11928 = vmatpush.bf16.msra.mxu1 %v17663_v60  ;;  %v18083_v60 = vor.u32 %v19720_v7, %v18082_v53  ;;  %v18167_v36 = vor.u32 %v19741_v5, %v18166_v1  ;;  %v19705_v1 = vld [vmem:[%s29485_s6 + $0x340] sm:$0xf0] }
 0x5a6   :  { %11848 = vmatpush.bf16.msra.mxu2 %v17779_v23 }
 0x5a7   :  { %11940 = vmatpush.bf16.msra.mxu3 %v17771_v55  ;;  %v19627_v55 = vld [vmem:[%s29485_s6 + $0xd0] sm:$0xf0] }
 0x5a8   :  { %11866 = vmatpush.bf16.msra.mxu0 %v17815_v41  ;;  %v29078_v21 = vpop.f32.mrf.mxu2  ;;  %v17711_v15 = vor.u32 %v19627_v55, %v17710_v58  ;;  %v19738_v41 = vld [vmem:[%s29485_s6 + $0x448] sm:$0xf0]  ;;  %v18143_v58 = vor.u32 %v19735_v38, %v18142_v50  ;;  %v19708_v55 = vld [vmem:[%s29485_s6 + $0x358] sm:$0xf0]  ;;  %v17806_v38 = vld [vmem:[%s29485_s6 + $0x188] sm:$0xf] }
 0x5a9   :  { %11929 = vmatpush.bf16.msra.mxu1 %v17651_v25  ;;  %v19745_v25 = vld [vmem:[%s29485_s6 + $0x484] sm:$0xf]  ;;  %v18155_v20 = vor.u32 %v19738_v41, %v18154_v24  ;;  %v17830_v24 = vld [vmem:[%s29485_s6 + $0x1b8] sm:$0xf] }
 0x5aa   :  { %11849 = vmatpush.bf16.msra.mxu2 %v17767_v49  ;;  %v18187_v18 = vor.u32 %v19745_v25, %v18184_v43  ;;  %v19729_v25 = vld [vmem:[%s29485_s6 + $0x400] sm:$0xf0]  ;;  %v17707_v43 = vor.u32 %v19625_v13, %v17704_v2  ;;  %v18148_v13 = vld [vmem:[%s29485_s6 + $0x444] sm:$0xf0] }
 0x5ab   :  { %11941 = vmatpush.bf16.msra.mxu3 %v17759_v59  ;;  %v19717_v59 = vld [vmem:[%s29485_s6 + $0x3a0] sm:$0xf0] }
 0x5ac   :  { %11867 = vmatpush.bf16.msra.mxu0 %v17803_v37  ;;  %v10643_v52 = vpop.f32.mrf.mxu0  ;;  %v17731_v37 = vor.u32 %v19631_v3, %v17728_v22  ;;  %v19657_v41 = vld [vmem:[%s29485_s6 + $0x1c0] sm:$0xf0] }
 0x5ad   :  { %11930 = vmatpush.bf16.msra.mxu1 %v17639_v26  ;;  %v10644_v23 = vadd.f32 %v10643_v52, %v10631_v27  ;;  %v19723_v27 = vld [vmem:[%s29485_s6 + $0x3d0] sm:$0xf0] }
 0x5ae   :  { %11850 = vmatpush.bf16.msra.mxu2 %v17755_v34  ;;  %v18118_v34 = vld [vmem:[%s29485_s6 + $0x3f8] sm:$0xf] }
 0x5af   :  { %11942 = vmatpush.bf16.msra.mxu3 %v17747_v62  ;;  %11868 = vmatmul.bf16.vlgmr.msra.gmra.mxu0 %v28464_v46  ;;  %v18071_v62 = vor.u32 %v19717_v59, %v18070_v57  ;;  %v10657_v53 = vadd.f32 %v28975_v35, %v10644_v23  ;;  %v18130_v35 = vld [vmem:[%s29485_s6 + $0x410] sm:$0xf]  ;;  %v18022_v57 = vld [vmem:[%s29485_s6 + $0x338] sm:$0xf] }
 0x5b0   :  { %11919 = vmatpush.bf16.msrb.mxu0 %v18187_v18  ;;  %v10723_v26 = vpop.f32.mrf.mxu2  ;;  %v17842_v18 = vld [vmem:[%s29485_s6 + $0x1d0] sm:$0xf]  ;;  %v18023_v56 = vor.u32 %v19705_v1, %v18022_v57  ;;  %v18160_v57 = vld [vmem:[%s29485_s6 + $0x45c] sm:$0xf0]  ;;  %v19736_v1 = vld [vmem:[%s29485_s6 + $0x43c] sm:$0xf] }
 0x5b1   :  { %11931 = vmatpush.bf16.msra.mxu1 %v17627_v6  ;;  %v19666_v6 = vld [vmem:[%s29485_s6 + $0x208] sm:$0xf0]  ;;  %v29185_v49 = vadd.f32 %v28897_v30, %v10657_v53  ;;  %v18131_v30 = vor.u32 %v19732_v9, %v18130_v35  ;;  %v17831_v26 = vor.u32 %v19657_v41, %v17830_v24  ;;  %v18151_v2 = vor.u32 %v19736_v1, %v18148_v13  ;;  %v19724_v24 = vld [vmem:[%s29485_s6 + $0x3dc] sm:$0xf]  ;;  %v18100_v41 = vld [vmem:[%s29485_s6 + $0x3e4] sm:$0xf0] }
 0x5b2   :  { %11851 = vmatpush.bf16.msra.mxu2 %v17743_v47  ;;  %v19742_v35 = vld [vmem:[%s29485_s6 + $0x46c] sm:$0xf]  ;;  %v19755_v13 = vld [vmem:[%s29487_s8 + $0x38] sm:$0xff] }
 0x5b3   :  { %11943 = vmatpush.bf16.msra.mxu3 %v17735_v11 }
 0x5b4   :  { %11951 = vmatpush.bf16.msra.mxu0 %v17891_v28  ;;  %v10645_v5 = vpop.f32.mrf.mxu0  ;;  %v18119_v28 = vor.u32 %v19729_v25, %v18118_v34  ;;  %v18136_v34 = vld [vmem:[%s29485_s6 + $0x42c] sm:$0xf0] }
 0x5b5   :  { %11932 = vmatpush.bf16.msra.mxu1 %v17615_v48  ;;  %v29167_v7 = vpop.f32.mrf.mxu1  ;;  %v17854_v48 = vld [vmem:[%s29485_s6 + $0x1e8] sm:$0xf]  ;;  %v19733_v5 = vld [vmem:[%s29485_s6 + $0x424] sm:$0xf] }
 0x5b6   :  { %11852 = vmatpush.bf16.msra.mxu2 %v17731_v37  ;;  %v19651_v37 = vld [vmem:[%s29485_s6 + $0x190] sm:$0xf0] }
 0x5b7   :  { %11944 = vmatpush.bf16.msra.mxu3 %v17723_v17  ;;  %v17867_v17 = vor.u32 %v19666_v6, %v17866_v32  ;;  %v17807_v23 = vor.u32 %v19651_v37, %v17806_v38  ;;  %v19690_v38 = vld [vmem:[%s29485_s6 + $0x2c8] sm:$0xf0] }
 0x5b8   :  { %11933 = vmatmul.bf16.vlgmr.msra.gmra.mxu1 %v28742_v54  ;;  %v19669_v54 = vld [vmem:[%s29485_s6 + $0x220] sm:$0xf0] }
 0x5b9   :  { %11977 = vmatpush.bf16.msrb.mxu1 %v18083_v60  ;;  %v17879_v11 = vor.u32 %v19669_v54, %v17878_v31  ;;  %v19663_v60 = vld [vmem:[%s29485_s6 + $0x1f0] sm:$0xf0]  ;;  %v18107_v54 = vor.u32 %v19726_v42, %v18106_v61 }
 0x5ba   :  { %v17855_v59 = vor.u32 %v19663_v60, %v17854_v48  ;;  %11853 = vmatpush.bf16.msra.mxu2 %v17719_v33  ;;  %v18190_v33 = vld [vmem:[%s29485_s6 + $0x488] sm:$0xf] }
 0x5bb   :  { %11945 = vmatpush.bf16.msra.mxu3 %v17711_v15  ;;  %11952 = vmatpush.bf16.msra.mxu0 %v17879_v11  ;;  %v18035_v15 = vor.u32 %v19708_v55, %v18034_v63  ;;  %v18094_v11 = vld [vmem:[%s29485_s6 + $0x3c8] sm:$0xf] }
 0x5bc   :  { %v18095_v50 = vor.u32 %v19723_v27, %v18094_v11 }
 0x5bd   :  { %11978 = vmatpush.bf16.msrb.mxu1 %v18071_v62  ;;  %v17843_v62 = vor.u32 %v19660_v4, %v17842_v18  ;;  %v10710_v12 = vpop.f32.mrf.mxu1  ;;  %v29301_v18 = vld [vmem:[%s29486_s7] sm:$0x7]  ;;  %v19730_v4 = vld [vmem:[%s29485_s6 + $0x40c] sm:$0xf] }
 0x5be   :  { %11946 = vmatmul.bf16.vlgmr.msra.gmra.mxu3 %v28596_v45  ;;  %11854 = vmatpush.bf16.msra.mxu2 %v17707_v43  ;;  %v18139_v43 = vor.u32 %v19733_v5, %v18136_v34  ;;  %v19754_v5 = vld [vmem:[%s29487_s8 + $0x30] sm:$0xff] }
 0x5bf   :  { %11990 = vmatpush.bf16.msrb.mxu3 %v18179_v39  ;;  %11953 = vmatpush.bf16.msra.mxu0 %v17867_v17  ;;  %v10682_v39 = vpop.f32.mrf.mxu3 }
 0x5c1   :  { %11979 = vmatpush.bf16.msrb.mxu1 %v18059_v51  ;;  %v17998_v51 = vld [vmem:[%s29485_s6 + $0x308] sm:$0xf] }
 0x5c2   :  { %v17999_v22 = vor.u32 %v19699_v44, %v17998_v51  ;;  %v19696_v51 = vld [vmem:[%s29485_s6 + $0x2f8] sm:$0xf0] }
 0x5c3   :  { %11991 = vmatpush.bf16.msrb.mxu3 %v18167_v36  ;;  %11954 = vmatpush.bf16.msra.mxu0 %v17855_v59  ;;  %v18010_v36 = vld [vmem:[%s29485_s6 + $0x320] sm:$0xf] }
 0x5c4   :  { %v18011_v47 = vor.u32 %v19702_v40, %v18010_v36  ;;  %v18112_v36 = vld [vmem:[%s29485_s6 + $0x3fc] sm:$0xf0] }
 0x5c5   :  { %11980 = vmatpush.bf16.msrb.mxu1 %v18047_v0  ;;  %v10683_v0 = vadd.f32 %v10682_v39, %v29185_v49 }
 0x5c7   :  { %11992 = vmatpush.bf16.msrb.mxu3 %v18155_v20  ;;  %11955 = vmatpush.bf16.msra.mxu0 %v17843_v62  ;;  %v10684_v31 = vpop.f32.mrf.mxu3  ;;  %v17818_v20 = vld [vmem:[%s29485_s6 + $0x1a0] sm:$0xf]  ;;  %v10950_v62 = vperm.slane %v29301_v18, 0 }
 0x5c8   :  { %v29253_v3 = vpop.f32.mrf.mxu2  ;;  %v17819_v52 = vor.u32 %v19654_v16, %v17818_v20  ;;  %v17974_v16 = vld [vmem:[%s29485_s6 + $0x2d8] sm:$0xf] }
 0x5c9   :  { %11981 = vmatpush.bf16.msrb.mxu1 %v18035_v15  ;;  %v19739_v15 = vld [vmem:[%s29485_s6 + $0x454] sm:$0xf] }
 0x5cb   :  { %11993 = vmatpush.bf16.msrb.mxu3 %v18143_v58  ;;  %11956 = vmatpush.bf16.msra.mxu0 %v17831_v26  ;;  %v18103_v26 = vor.u32 %v19724_v24, %v18100_v41  ;;  %v19749_v24 = vld [vmem:[%s29487_s8 + $0x8] sm:$0xff]  ;;  %v12058_v41 = vld [vmem:[%s29480_s1] sm:$0xff]  ;;  %s12283_s1 = sshll.u32 %s29492_s13, 4  ;;  %s12284_s1 = int_to_ptr.hbm [resolvable:$true] %s12283_s1 }
 0x5cc   :  { %v10695_v63 = vpop.f32.mrf.mxu0 }
 0x5cd   :  { %11982 = vmatpush.bf16.msrb.mxu1 %v18023_v56  ;;  %v10696_v17 = vadd.f32 %v10695_v63, %v10683_v0  ;;  %v18124_v56 = vld [vmem:[%s29485_s6 + $0x414] sm:$0xf0] }
 0x5ce   :  { %v18127_v12 = vor.u32 %v19730_v4, %v18124_v56  ;;  %v19752_v4 = vld [vmem:[%s29487_s8 + $0x20] sm:$0xff] }
 0x5cf   :  { %11994 = vmatpush.bf16.msrb.mxu3 %v18131_v30  ;;  %11957 = vmatpush.bf16.msra.mxu0 %v17819_v52  ;;  %v10734_v32 = vpop.f32.mrf.mxu3  ;;  %v10709_v58 = vadd.f32 %v29167_v7, %v10696_v17  ;;  %v19747_v7 = vld [vmem:[%s29485_s6 + $0x490] sm:$0xf0]  ;;  %v18163_v30 = vor.u32 %v19739_v15, %v18160_v57  ;;  %v19684_v17 = vld [vmem:[%s29485_s6 + $0x298] sm:$0xf0] }
 0x5d0   :  { %v11780_v6 = vpop.f32.mrf.mxu2  ;;  %v18191_v48 = vor.u32 %v19747_v7, %v18190_v33  ;;  %v19678_v33 = vld [vmem:[%s29485_s6 + $0x268] sm:$0xf0] }
 0x5d1   :  { %11983 = vmatpush.bf16.msrb.mxu1 %v18011_v47  ;;  %v10722_v10 = vadd.f32 %v29078_v21, %v10709_v58  ;;  %v17926_v58 = vld [vmem:[%s29485_s6 + $0x278] sm:$0xf] }
 0x5d3   :  { %11995 = vmatpush.bf16.msrb.mxu3 %v18119_v28  ;;  %11958 = vmatpush.bf16.msra.mxu0 %v17807_v23  ;;  %v10735_v8 = vadd.f32 %v10734_v32, %v10722_v10  ;;  %v19727_v28 = vld [vmem:[%s29485_s6 + $0x3f4] sm:$0xf]  ;;  %v17950_v23 = vld [vmem:[%s29485_s6 + $0x2a8] sm:$0xf] }
 0x5d4   :  { %v10697_v9 = vpop.f32.mrf.mxu0  ;;  %v18115_v42 = vor.u32 %v19727_v28, %v18112_v36  ;;  %v19687_v32 = vld [vmem:[%s29485_s6 + $0x2b0] sm:$0xf0]  ;;  %v19751_v28 = vld [vmem:[%s29487_s8 + $0x18] sm:$0xff] }
 0x5d5   :  { %11984 = vmatpush.bf16.msrb.mxu1 %v17999_v22  ;;  %v11765_v55 = vpop.f32.mrf.mxu1  ;;  %v10744_v49 = vmax.f32 %v10735_v8, 0.0  ;;  %v17951_v63 = vor.u32 %v19687_v32, %v17950_v23  ;;  %v17914_v9 = vld [vmem:[%s29485_s6 + $0x260] sm:$0xf]  ;;  %v19750_v36 = vld [vmem:[%s29487_s8 + $0x10] sm:$0xff] }
 0x5d6   :  { %v17915_v7 = vor.u32 %v19678_v33, %v17914_v9 }
 0x5d7   :  { %11996 = vmatpush.bf16.msrb.mxu3 %v18107_v54  ;;  %v10736_v53 = vpop.f32.mrf.mxu3  ;;  %v10751_v60 = vpack.c.bf16 %v10744_v49, %v10744_v49  ;;  %v17986_v54 = vld [vmem:[%s29485_s6 + $0x2f0] sm:$0xf] }
 0x5d8   :  { %11985 = vmatmul.bf16.vlgmr.msrb.gmra.mxu1 %v28905_v19  ;;  %v18172_v19 = vld [vmem:[%s29485_s6 + $0x474] sm:$0xf0]  ;;  %v17987_v20 = vor.u32 %v19696_v51, %v17986_v54 }
 0x5d9   :  { %v18175_v21 = vor.u32 %v19742_v35, %v18172_v19  ;;  %18192 = vmatmul.msk.bf16.vlgmr.msrb.gmra.mxu2 %vm4010_vm0, %v10751_v60  ;;  %18193 = vmatmul.msk.bf16.vlgmr.msrb.gmra.mxu0 %vm4010_vm0, %v10751_v60 }
 0x5da   :  { %12010 = vmatpush.bf16.msrb.mxu0 %v18191_v48  ;;  %v19675_v48 = vld [vmem:[%s29485_s6 + $0x250] sm:$0xf0] }
 0x5db   :  { %11997 = vmatpush.bf16.msrb.mxu3 %v18095_v50  ;;  %11899 = vmatpush.bf16.msrb.mxu2 %v18175_v21  ;;  %v17962_v50 = vld [vmem:[%s29485_s6 + $0x2c0] sm:$0xf]  ;;  %v17902_v21 = vld [vmem:[%s29485_s6 + $0x248] sm:$0xf] }
 0x5dc   :  { %v17963_v37 = vor.u32 %v19690_v38, %v17962_v50  ;;  %v17903_v57 = vor.u32 %v19675_v48, %v17902_v21  ;;  %v19757_v38 = vld [vmem:[%s29487_s8 + $0x48] sm:$0xff] }
 0x5dd   :  { %v11767_v59 = vpop.f32.mrf.mxu1 }
 0x5de   :  { %11998 = vmatmul.bf16.vlgmr.msrb.gmra.mxu3 %v28839_v14 }
 0x5df   :  { %11900 = vmatpush.bf16.msrb.mxu2 %v18163_v30 }
 0x5e1   :  { %v11791_v39 = vpop.f32.mrf.mxu3 }
 0x5e3   :  { %11901 = vmatpush.bf16.msrb.mxu2 %v18151_v2  ;;  %v10952_v2 = vperm.slane %v29301_v18, 2 }
 0x5e7   :  { %11902 = vmatpush.bf16.msrb.mxu2 %v18139_v43 }
 0x5e9   :  { %v11793_v25 = vpop.f32.mrf.mxu3  ;;  %11855 = vmatmul.bf16.vlgmr.msra.gmra.mxu2 %v28596_v45  ;;  %11959 = vmatmul.bf16.vlgmr.msra.gmra.mxu0 %v28464_v46  ;;  %v19721_v46 = vld [vmem:[%s29485_s6 + $0x3c4] sm:$0xf]  ;;  %v18088_v45 = vld [vmem:[%s29485_s6 + $0x3cc] sm:$0xf0] }
 0x5ea   :  { %v18091_v27 = vor.u32 %v19721_v46, %v18088_v45  ;;  %12193 = vmatpush.bf16.msra.mxu0 %v19755_v13  ;;  %v19763_v46 = vld [vmem:[%s29487_s8 + $0x78] sm:$0xff]  ;;  %v19762_v45 = vld [vmem:[%s29487_s8 + $0x70] sm:$0xff] }
 0x5eb   :  { %11903 = vmatpush.bf16.msrb.mxu2 %v18127_v12  ;;  %12206 = vmatpush.bf16.msra.mxu1 %v19763_v46  ;;  %v19770_v46 = vld [vmem:[%s29491_s12] ss:$0 sm:$0xff] }
 0x5ec   :  { %v11752_v40 = vpop.f32.mrf.mxu0 }
 0x5ed   :  { %v11753_v61 = vadd.f32 %v11752_v40, %v10950_v62  ;;  %v12060_v40 = vld [vmem:[%s29488_s9] sm:$0x3] }
 0x5ee   :  { %12194 = vmatpush.bf16.msra.mxu0 %v19754_v5 }
 0x5ef   :  { %v11766_v47 = vadd.f32 %v11765_v55, %v11753_v61  ;;  %11904 = vmatpush.bf16.msrb.mxu2 %v18115_v42  ;;  %v19681_v55 = vld [vmem:[%s29485_s6 + $0x280] sm:$0xf0]  ;;  %v12067_v42 = vsel %vm12065_vm2, %v12060_v40, 0  ;;  %12207 = vmatpush.bf16.msra.mxu1 %v19762_v45 }
 0x5f0   :  { %v17927_v19 = vor.u32 %v19681_v55, %v17926_v58 }
 0x5f1   :  { %v11779_v31 = vadd.f32 %v29253_v3, %v11766_v47  ;;  %v19693_v3 = vld [vmem:[%s29485_s6 + $0x2e0] sm:$0xf0]  ;;  %v12059_v47 = vpack.c.bf16 %v12058_v41, %v12058_v41 }
 0x5f2   :  { %v17975_v52 = vor.u32 %v19693_v3, %v17974_v16  ;;  %v19758_v3 = vld [vmem:[%s29487_s8 + $0x50] sm:$0xff] }
 0x5f3   :  { %v11792_v44 = vadd.f32 %v11791_v39, %v11779_v31  ;;  %11905 = vmatpush.bf16.msrb.mxu2 %v18103_v26  ;;  %v19748_v26 = vld [vmem:[%s29487_s8] sm:$0xff] }
 0x5f4   :  { %v11754_v11 = vpop.f32.mrf.mxu0 }
 0x5f5   :  { %v19760_v11 = vld [vmem:[%s29487_s8 + $0x60] sm:$0xff] }
 0x5f7   :  { %11906 = vmatpush.bf16.msrb.mxu2 %v18091_v27 }
 0x5f9   :  { %18194 = vmatmul.msk.bf16.vlgmr.msrb.gmra.mxu0 %vm4010_vm0, %v10751_v60 }
 0x5fa   :  { %11907 = vmatmul.bf16.vlgmr.msrb.gmra.mxu2 %v28839_v14  ;;  %v17938_v14 = vld [vmem:[%s29485_s6 + $0x290] sm:$0xf] }
 0x5fb   :  { %11964 = vmatpush.bf16.msra.mxu2 %v17987_v20  ;;  %v11817_v6 = vpop.f32.mrf.mxu1  ;;  %v17939_v53 = vor.u32 %v19684_v17, %v17938_v14  ;;  %v19759_v20 = vld [vmem:[%s29487_s8 + $0x58] sm:$0xff]  ;;  %v10951_v17 = vperm.slane %v29301_v18, 1  ;;  %v19764_v18 = vld [vmem:[%s29487_s8 + $0x80] sm:$0xff] }
 0x5ff   :  { %11965 = vmatpush.bf16.msra.mxu2 %v17975_v52 }
 0x601   :  { %v29343_v22 = vpop.f32.mrf.mxu3 }
 0x602   :  { %v11844_v58 = vadd.f32 %v29343_v22, %v10951_v17 }
 0x603   :  { %11966 = vmatpush.bf16.msra.mxu2 %v17963_v37  ;;  %v11819_v10 = vpop.f32.mrf.mxu1 }
 0x607   :  { %11967 = vmatpush.bf16.msra.mxu2 %v17951_v63  ;;  %v19765_v63 = vld [vmem:[%s29487_s8 + $0x88] sm:$0xff] }
 0x609   :  { %v11845_v0 = vpop.f32.mrf.mxu3 }
 0x60b   :  { %11968 = vmatpush.bf16.msra.mxu2 %v17939_v53 }
 0x60c   :  { %v11804_v8 = vpop.f32.mrf.mxu0 }
 0x60d   :  { %v11805_v35 = vadd.f32 %v11804_v8, %v11792_v44  ;;  %v19761_v44 = vld [vmem:[%s29487_s8 + $0x68] sm:$0xff] }
 0x60e   :  { %12208 = vmatpush.bf16.msra.mxu1 %v19761_v44 }
 0x60f   :  { %v29377_v49 = vadd.f32 %v11817_v6, %v11805_v35  ;;  %11969 = vmatpush.bf16.msra.mxu2 %v17927_v19  ;;  %v19756_v6 = vld [vmem:[%s29487_s8 + $0x40] sm:$0xff] }
 0x612   :  { %12209 = vmatpush.bf16.msra.mxu1 %v19760_v11 }
 0x613   :  { %11970 = vmatpush.bf16.msra.mxu2 %v17915_v7 }
 0x614   :  { %v11806_v15 = vpop.f32.mrf.mxu0 }
 0x615   :  { %v29385_v60 = vpop.f32.mrf.mxu1 }
 0x616   :  { %12210 = vmatpush.bf16.msra.mxu1 %v19759_v20 }
 0x617   :  { %11971 = vmatpush.bf16.msra.mxu2 %v17903_v57 }
 0x61a   :  { %11972 = vmatmul.bf16.vlgmr.msra.gmra.mxu2 %v28604_v29  ;;  %v19753_v29 = vld [vmem:[%s29487_s8 + $0x28] sm:$0xff]  ;;  %12211 = vmatpush.bf16.msra.mxu1 %v19758_v3 }
 0x61b   :  { %12195 = vmatpush.bf16.msra.mxu0 %v19753_v29  ;;  %12076 = vmatpush.bf16.msrb.mxu2 %v12067_v42 }
 0x61d   :  { %v11884_v39 = vpop.f32.mrf.mxu1 }
 0x61e   :  { %12212 = vmatpush.bf16.msra.mxu1 %v19757_v38 }
 0x61f   :  { %12196 = vmatpush.bf16.msra.mxu0 %v19752_v4  ;;  %12225 = vmatpush.bf16.msra.mxu2 %v19765_v63 }
 0x621   :  { %v29387_v59 = vpop.f32.mrf.mxu3 }
 0x622   :  { %12213 = vmatpush.bf16.msra.mxu1 %v19756_v6 }
 0x623   :  { %12197 = vmatpush.bf16.msra.mxu0 %v19751_v28  ;;  %12226 = vmatpush.bf16.msra.mxu2 %v19764_v18 }
 0x627   :  { %12198 = vmatpush.bf16.msra.mxu0 %v19750_v36  ;;  %v19766_v36 = vld [vmem:[%s29490_s11] sm:$0xff] }
 0x629   :  { %v11897_v30 = vpop.f32.mrf.mxu3 }
 0x62a   :  { %18195 = vmatmul.msk.bf16.vlgmr.msrb.gmra.mxu2 %vm12061_vm3, %v12059_v47 }
 0x62b   :  { %12199 = vmatpush.bf16.msra.mxu0 %v19749_v24 }
 0x62c   :  { %v29390_v1 = vpop.f32.mrf.mxu0 }
 0x62f   :  { %12200 = vmatpush.bf16.msra.mxu0 %v19748_v26 }
 0x634   :  { %v11871_v43 = vpop.f32.mrf.mxu0 }
 0x635   :  { %v11934_v34 = vpop.f32.mrf.mxu1 }
 0x636   :  { %v11935_v25 = vadd.f32 %v11934_v34, %v10952_v2 }
 0x63d   :  { %v11936_v62 = vpop.f32.mrf.mxu1 }
 0x63e   :  { %v19767_v62 = vld [vmem:[%s29490_s11 + $0x8] sm:$0xff]  ;;  %s12281_s11 = sshll.u32 %s19804_s3, 4  ;;  %s12282_s11 = int_to_ptr.vmem [resolvable:$true] %s12281_s11 }
 0x63f   :  { %12268 = vmatpush.bf16.msra.mxu3 %v19767_v62 }
 0x641   :  { %v11947_v56 = vpop.f32.mrf.mxu3 }
 0x642   :  { %v29405_v12 = vadd.f32 %v11947_v56, %v11935_v25 }
 0x643   :  { %12269 = vmatpush.bf16.msra.mxu3 %v19766_v36 }
 0x649   :  { %v11949_v61 = vpop.f32.mrf.mxu3 }
 0x64a   :  { %v19769_v61 = vld [vmem:[%s29489_s10] ss:$0 sm:$0xff] }
 0x655   :  { %v11986_v31 = vpop.f32.mrf.mxu1 }
 0x656   :  { %v11921_v16 = vpop.f32.mrf.mxu0 }
 0x65c   :  { %v11830_v52 = vpop.f32.mrf.mxu2 }
 0x65d   :  { %v11988_v51 = vpop.f32.mrf.mxu1  ;;  %v11831_v50 = vadd.f32 %v11830_v52, %v29377_v49 }
 0x65e   :  { %v11923_v37 = vpop.f32.mrf.mxu0 }
 0x65f   :  { %v12016_v23 = vmax.f32 %v11831_v50, 0.0 }
 0x661   :  { %v11999_v54 = vpop.f32.mrf.mxu3  ;;  %v12019_v32 = vpack.c.bf16 %v12016_v23, %v12016_v23 }
 0x663   :  { %12201 = vmatmul.bf16.vlgmr.msra.gmra.mxu0 %v12019_v32 }
 0x664   :  { %v11832_v0 = vpop.f32.mrf.mxu2 }
 0x666   :  { %v11960_v14 = vpop.f32.mrf.mxu0 }
 0x667   :  { %v11961_v39 = vadd.f32 %v11960_v14, %v29405_v12 }
 0x669   :  { %v12001_v27 = vpop.f32.mrf.mxu3 }
 0x66c   :  { %v11856_v53 = vpop.f32.mrf.mxu2 }
 0x66d   :  { %v11857_v10 = vadd.f32 %v11856_v53, %v11844_v58 }
 0x66e   :  { %v11962_v55 = vpop.f32.mrf.mxu0 }
 0x66f   :  { %v11870_v8 = vadd.f32 %v29390_v1, %v11857_v10 }
 0x671   :  { %v11883_v9 = vadd.f32 %v29385_v60, %v11870_v8 }
 0x673   :  { %v11896_v33 = vadd.f32 %v29387_v59, %v11883_v9 }
 0x674   :  { %v11858_v35 = vpop.f32.mrf.mxu2 }
 0x676   :  { %v12012_v19 = vpop.f32.mrf.mxu0 }
 0x67d   :  { %v11908_v49 = vpop.f32.mrf.mxu2 }
 0x67e   :  { %v11909_v7 = vadd.f32 %v11908_v49, %v11896_v33  ;;  %v12014_v21 = vpop.f32.mrf.mxu0 }
 0x680   :  { %v11922_v48 = vadd.f32 %v11921_v16, %v11909_v7 }
 0x682   :  { %v12017_v15 = vmax.f32 %v11922_v48, 0.0 }
 0x684   :  { %v12020_v22 = vpack.c.bf16 %v12017_v15, %v12017_v15 }
 0x685   :  { %v11910_v57 = vpop.f32.mrf.mxu2 }
 0x686   :  { %12214 = vmatmul.bf16.vlgmr.msra.gmra.mxu1 %v12020_v22 }
 0x69d   :  { %v11973_v30 = vpop.f32.mrf.mxu2 }
 0x69e   :  { %v11974_v1 = vadd.f32 %v11973_v30, %v11961_v39 }
 0x6a0   :  { %v11987_v60 = vadd.f32 %v11986_v31, %v11974_v1 }
 0x6a2   :  { %v12000_v13 = vadd.f32 %v11999_v54, %v11987_v60 }
 0x6a4   :  { %v12013_v59 = vadd.f32 %v12012_v19, %v12000_v13 }
 0x6a5   :  { %v11975_v2 = vpop.f32.mrf.mxu2 }
 0x6a6   :  { %v12018_v5 = vmax.f32 %v12013_v59, 0.0 }
 0x6a8   :  { %v12021_v34 = vpack.c.bf16 %v12018_v5, %v12018_v5 }
 0x6aa   :  { %18268 = vmatmul.msk.bf16.vlgmr.msra.gmra.mxu2 %vm9551_vm1, %v12021_v34 }
 0x6ad   :  { %v12078_v25 = vpop.f32.mrf.mxu2 }
 0x6b5   :  { %v12080_v43 = vpop.f32.mrf.mxu2 }
 0x6e0   :  { %v12202_v29 = vpop.f32.mrf.mxu0 }
 0x6e1   :  { %v12203_v4 = vadd.f32 %v12202_v29, %v12078_v25 }
 0x6e8   :  { %v12204_v56 = vpop.f32.mrf.mxu0 }
 0x703   :  { %v12215_v12 = vpop.f32.mrf.mxu1 }
 0x704   :  { %v12216_v40 = vadd.f32 %v12215_v12, %v12203_v4 }
 0x70b   :  { %v12217_v28 = vpop.f32.mrf.mxu1 }
 0x72d   :  { %v12228_v42 = vpop.f32.mrf.mxu2 }
 0x72e   :  { %v12229_v24 = vadd.f32 %v12228_v42, %v12216_v40 }
 0x730   :  { %v12236_v41 = vadd.f32 %v19769_v61, %v12229_v24 }
 0x732   :  { %v12237_v47 = vmax.f32 %v12236_v41, 0.0 }
 0x734   :  { %v12238_v26 = vpack.c.bf16 %v12237_v47, %v12237_v47 }
 0x735   :  { %v12230_v31 = vpop.f32.mrf.mxu2 }
 0x736   :  { %18277 = vmatmul.msk.bf16.vlgmr.msra.gmra.mxu3 %vm9551_vm1, %v12238_v26 }
 0x7b9   :  { %v12271_v45 = vpop.f32.mrf.mxu3 }
 0x7ba   :  { %v12272_v54 = vadd.f32 %v19770_v46, %v12271_v45 }
 0x7bc   :  { %12275 = vst [vmem:[#allocation2] sm:$0xff] %v12272_v54 }
 0x7bd   :  { %12286 = dma.vmem_to_hbm [thread:$0]  %s12282_s11, 128, %s12284_s1, [#allocation3]  }
 0x7c1   :  { %v12273_v51 = vpop.f32.mrf.mxu3 }
 0x7c2   :  { %19802 = dma.done.wait [#allocation3], 128  }
 0x7c3   :  { %19803 = vsyncadd [#allocation3], 4294967168 }
 0x7c4   :  { %12291 = vsyncpa [#allocation3], 1 }

</bundles_post_ra>
